<compile_context>
chip_gen: v5e
topology: v5e:2x2
jax: 0.10.0
libtpu: 0.0.40
codegen_flags: <defaults>
</compile_context>

<pallas_src>
import jax
import jax.numpy as jnp
import numpy as np
from jax.experimental import pallas as pl
from jax.experimental.pallas import tpu as pltpu

NUM_CLASSES = 7
HID = 128                 # GRU hidden size
CONV_C = 32               # conv1 output channels
FC1 = 64
LANE = 128                # lane-padded width for the fc head / output slab
H, W = 40, 16             # mel bins x frames (GRU input 32*20 fixes H=40)
HP, T = H // 2, W // 2    # pooled height (20) and sequence length (8)
KROWS = 3 * (H + 2)       # 126  : conv contraction dim, ordered (dw, padded row r)
KROWS_P = 128             # lane-dense padded contraction dim
FEAT = HP * CONV_C        # 640  : GRU input features, ordered (hp, c)
KCOLS = 2 * FEAT          # 1280 : conv matmul output cols, ordered (i, hp, c)
BB = 16                   # batch rows per grid step (conv matmul M = 2*T*BB = 256)

# offsets into the packed bias slab (one DMA for all small params)
B_CONV = 0                # (hp,c)-ordered conv bias, width FEAT
B_GI = FEAT               # b_ih with b_hh r/z folded in, width 3*HID
B_HN = B_GI + 3 * HID     # b_hh n-part, width HID
B_FC1 = B_HN + HID        # fc1 bias padded to LANE
B_FC2 = B_FC1 + LANE      # fc2 bias padded to LANE
B_END = B_FC2 + LANE      # 1408


# --------------------------- fused forward kernel ---------------------------
def fused_kernel(lhs_ref, kbig_ref, wgru_ref, wfc_ref, bias_ref, o_ref):
    bb = o_ref.shape[0]                      # batch rows in this grid step
    n_rows = T * bb

    # conv1 as one bf16 matmul (f32 accum): rows (j, t, b), cols (i, hp, c)
    conv = jnp.dot(lhs_ref[...], kbig_ref[...],
                   preferred_element_type=jnp.float32)             # (2*T*bb, 1280)

    # 2x2 max-pool: max over j (aligned row halves) then over i (aligned lane halves)
    m = jnp.maximum(conv[0:n_rows, :], conv[n_rows:2 * n_rows, :])  # (T*bb, 1280)
    m = jnp.maximum(m[:, 0:FEAT], m[:, FEAT:KCOLS])                 # (T*bb, 640)
    # per-channel bias is constant over the pool window, so bias-after-max +
    # a single ReLU is exact.
    x_all = jnp.maximum(m + bias_ref[:, B_CONV:B_CONV + FEAT], 0.0)  # (t,b)x(hp,c)

    # GRU: input projection hoisted out of the recurrence (one pass over W_ih).
    wih = wgru_ref[0:FEAT, :]                                        # bf16 (640, 384)
    whh = wgru_ref[FEAT:FEAT + HID, :]                               # bf16 (128, 384)
    gi = jnp.dot(x_all.astype(jnp.bfloat16), wih,
                 preferred_element_type=jnp.float32) + bias_ref[:, B_GI:B_GI + 3 * HID]
    bhh_n = bias_ref[:, B_HN:B_HN + HID]                             # (1, 128)

    # TODO(synk): hold whh resident in the MXU across the T=8 recurrence via
    # pltpu.matmul_push_rhs / matmul_acc_lhs / matmul_pop to skip 7 of the 8
    # weight-push rounds sitting on the serial critical path.
    h = jnp.zeros((bb, HID), jnp.float32)
    for t in range(T):                        # static unroll, T = 8
        gi_t = gi[t * bb:(t + 1) * bb, :]     # aligned (bb multiple of 8)
        gh = jnp.dot(h.astype(jnp.bfloat16), whh,
                     preferred_element_type=jnp.float32)             # (bb, 384)
        r = jax.nn.sigmoid(gi_t[:, 0:HID] + gh[:, 0:HID])
        z = jax.nn.sigmoid(gi_t[:, HID:2 * HID] + gh[:, HID:2 * HID])
        n = jnp.tanh(gi_t[:, 2 * HID:3 * HID] + r * (gh[:, 2 * HID:3 * HID] + bhh_n))
        h = (1.0 - z) * n + z * h

    # fc1 + ReLU + fc2 head, fused; both weights lane-padded to 128 -> dense stores.
    w1 = wfc_ref[0:HID, :]                                           # (128, 128)
    w2 = wfc_ref[HID:HID + LANE, :]                                  # (128, 128)
    h1 = jnp.maximum(
        jnp.dot(h.astype(jnp.bfloat16), w1, preferred_element_type=jnp.float32)
        + bias_ref[:, B_FC1:B_FC1 + LANE], 0.0)                      # (bb, 128)
    out = jnp.dot(h1.astype(jnp.bfloat16), w2, preferred_element_type=jnp.float32) \
        + bias_ref[:, B_FC2:B_FC2 + LANE]                            # (bb, 128)
    o_ref[...] = out


def forward(x, p):
    B, C, Hx, Wx = x.shape
    assert C == 1 and Hx == H and Wx == W
    NB = (B + BB - 1) // BB
    BP = NB * BB

    # ---- input-side glue: pad + gather to build the conv matmul LHS --------
    # lhs[((nb, j, t, b_in) row), dw*(H+2)+r] = xp[b, r, 2*t + j + dw]
    xp = jnp.pad(x[:, 0], ((0, 0), (1, 1), (1, 1)))               # (B, H+2, W+2)
    w_idx = (2 * jnp.arange(T)[None, :, None]
             + jnp.arange(2)[:, None, None]
             + jnp.arange(3)[None, None, :])                      # (j, t, dw)
    g = xp[:, :, w_idx]                                           # (b, r, j, t, dw)
    g = g.transpose(2, 3, 0, 4, 1)                                # (j, t, b, dw, r)
    g = jnp.pad(g, ((0, 0), (0, 0), (0, BP - B), (0, 0), (0, 0)))
    g = g.reshape(2, T, NB, BB, 3 * (H + 2))                      # (j, t, nb, b_in, dw*r)
    g = g.transpose(2, 0, 1, 3, 4)                                # (nb, j, t, b_in, dw*r)
    lhs = g.reshape(NB * 2 * T * BB, KROWS)
    # pad contraction dim 126 -> 128 (lane-dense) and store in bf16.
    lhs = jnp.pad(lhs, ((0, 0), (0, KROWS_P - KROWS))).astype(jnp.bfloat16)
    # TODO(synk): if the wrapper gather's dispatch shows up in traces, move it
    # in-kernel by passing xp with memory_space=pl.ANY and static column slices.

    out = pl.pallas_call(
        fused_kernel,
        out_shape=jax.ShapeDtypeStruct((BP, LANE), jnp.float32),
        grid=(NB,),
        in_specs=[
            pl.BlockSpec((2 * T * BB, KROWS_P), lambda i: (i, 0)),   # per-batch-block LHS
            pl.BlockSpec(p["kbig"].shape, lambda i: (0, 0)),         # fetched once
            pl.BlockSpec(p["wgru"].shape, lambda i: (0, 0)),
            pl.BlockSpec(p["wfc"].shape, lambda i: (0, 0)),
            pl.BlockSpec(p["bias"].shape, lambda i: (0, 0)),
        ],
        out_specs=pl.BlockSpec((BB, LANE), lambda i: (i, 0)),
        compiler_params=pltpu.CompilerParams(
            dimension_semantics=("parallel",)),                      # v7x: 2 TCs split batch
    )(lhs, p["kbig"], p["wgru"], p["wfc"], p["bias"])
    return out[:B, :NUM_CLASSES]


# ------------------- parameters (PyTorch layout + kernel layout) ------------
def init_raw_params(key):
    ks = jax.random.split(key, 10)
    s = 0.1
    I = CONV_C * HP

    def q(a):  # weights exactly representable in bf16 (kernel uses bf16 MXU operands)
        return a.astype(jnp.bfloat16).astype(jnp.float32)

    return {
        "wc": q(jax.random.normal(ks[0], (CONV_C, 1, 3, 3), jnp.float32) * s),
        "bc": jax.random.normal(ks[1], (CONV_C,), jnp.float32) * s,
        "wih": q(jax.random.normal(ks[2], (3 * HID, I), jnp.float32) * (1.0 / np.sqrt(I))),
        "whh": q(jax.random.normal(ks[3], (3 * HID, HID), jnp.float32) * (1.0 / np.sqrt(HID))),
        "b_ih": jax.random.normal(ks[4], (3 * HID,), jnp.float32) * s,
        "b_hh": jax.random.normal(ks[5], (3 * HID,), jnp.float32) * s,
        "w1": q(jax.random.normal(ks[6], (FC1, HID), jnp.float32) * (1.0 / np.sqrt(HID))),
        "b1": jax.random.normal(ks[7], (FC1,), jnp.float32) * s,
        "w2": q(jax.random.normal(ks[8], (NUM_CLASSES, FC1), jnp.float32) * (1.0 / np.sqrt(FC1))),
        "b2": jax.random.normal(ks[9], (NUM_CLASSES,), jnp.float32) * s,
    }


def pack_params(raw):
    wc, bc = raw["wc"], raw["bc"]
    # Banded conv weight: kbig[(dw, r), (i, hp, c)] = wc[c, 0, r-(2hp+i), dw]
    dh = (jnp.arange(H + 2)[:, None, None]
          - jnp.arange(2)[None, :, None]
          - 2 * jnp.arange(HP)[None, None, :])            # (r, i, hp)
    valid = (dh >= 0) & (dh <= 2)
    wt = wc[:, 0].transpose(1, 2, 0)                      # (dh, dw, c)
    k = wt[jnp.clip(dh, 0, 2)]                            # (r, i, hp, dw, c)
    k = jnp.where(valid[..., None, None], k, 0.0)
    kbig = k.transpose(3, 0, 1, 2, 4).reshape(KROWS, KCOLS)   # (dw,r) x (i,hp,c)
    kbig = jnp.pad(kbig, ((0, KROWS_P - KROWS), (0, 0))).astype(jnp.bfloat16)

    bconv = jnp.tile(bc, (HP,))                               # (640,) in (hp,c) order

    # GRU input weight: PyTorch feature index is c*HP+hp; permute rows to (hp,c).
    wih_t = raw["wih"].T                                      # (640, 384)
    wih_p = wih_t.reshape(CONV_C, HP, 3 * HID).transpose(1, 0, 2).reshape(FEAT, 3 * HID)
    wgru = jnp.concatenate([wih_p, raw["whh"].T], axis=0).astype(jnp.bfloat16)  # (768,384)

    # Fold b_hh r/z parts into b_ih (exact: r/z only see gi+gh summed).
    b_ih_fold = jnp.concatenate([raw["b_ih"][:2 * HID] + raw["b_hh"][:2 * HID],
                                 raw["b_ih"][2 * HID:]])      # (384,)
    bhh_n = raw["b_hh"][2 * HID:]                             # (128,)

    # fc head weights, lane-padded to 128 output columns (zero padding is exact).
    w1p = jnp.pad(raw["w1"].T, ((0, 0), (0, LANE - FC1)))                     # (128,128)
    w2p = jnp.pad(raw["w2"].T, ((0, LANE - FC1), (0, LANE - NUM_CLASSES)))    # (128,128)
    wfc = jnp.concatenate([w1p, w2p], axis=0).astype(jnp.bfloat16)            # (256,128)

    b1p = jnp.pad(raw["b1"], (0, LANE - FC1))
    b2p = jnp.pad(raw["b2"], (0, LANE - NUM_CLASSES))
    bias = jnp.concatenate([bconv, b_ih_fold, bhh_n, b1p, b2p]).astype(jnp.float32)
    bias = bias.reshape(1, B_END)                              # (1, 1408) — one DMA

    return {"kbig": kbig, "wgru": wgru, "wfc": wfc, "bias": bias}


# -------------------- pure-JAX reference (correctness check) ----------------
def reference_forward(x, raw):
    conv = jax.lax.conv_general_dilated(
        x, raw["wc"], (1, 1), ((1, 1), (1, 1)),
        dimension_numbers=("NCHW", "OIHW", "NCHW"))
    conv = jnp.maximum(conv + raw["bc"].reshape(1, CONV_C, 1, 1), 0.0)
    B, Cc, Hh, Ww = conv.shape
    pooled = conv.reshape(B, Cc, Hh // 2, 2, Ww // 2, 2).max(axis=(3, 5))
    seq = pooled.transpose(0, 3, 1, 2).reshape(B, Ww // 2, Cc * (Hh // 2))
    wih_t, whh_t = raw["wih"].T, raw["whh"].T
    b_ih, b_hh = raw["b_ih"], raw["b_hh"]

    def step(h, x_t):
        gi = x_t @ wih_t + b_ih
        gh = h @ whh_t + b_hh
        r = jax.nn.sigmoid(gi[:, :HID] + gh[:, :HID])
        z = jax.nn.sigmoid(gi[:, HID:2 * HID] + gh[:, HID:2 * HID])
        n = jnp.tanh(gi[:, 2 * HID:] + r * gh[:, 2 * HID:])
        return (1.0 - z) * n + z * h, None

    h0 = jnp.zeros((B, HID), jnp.float32)
    h, _ = jax.lax.scan(step, h0, seq.transpose(1, 0, 2))
    h1 = jnp.maximum(h @ raw["w1"].T + raw["b1"], 0.0)
    return h1 @ raw["w2"].T + raw["b2"]


if __name__ == "__main__":
    key = jax.random.PRNGKey(0)
    kx, kp = jax.random.split(key)
    # batch=2, 1 channel, 40 mel bins (=> GRU input 32*20), 16 frames (=> T=8)
    x = jax.random.normal(kx, (2, 1, H, W), jnp.float32)
    raw = init_raw_params(kp)
    params = pack_params(raw)

    out = jax.jit(forward)(x, params)
    out = jax.block_until_ready(out)
    assert out.shape == (2, NUM_CLASSES)

    ref = reference_forward(x, raw)
    # bf16 MXU operands (f32 accum) -> compare against the f32 reference with a
    # bf16-appropriate tolerance.
    np.testing.assert_allclose(np.asarray(out), np.asarray(ref), rtol=5e-2, atol=5e-2)
    print("KERNEL_OK")
</pallas_src>

<mosaic_0001>
module attributes {stable_mosaic.version = 11 : i64} {
  func.func @fused_kernel(%arg0: i32, %arg1: memref<256x128xbf16, #tpu.memory_space<vmem>>, %arg2: memref<128x1280xbf16, #tpu.memory_space<vmem>>, %arg3: memref<768x384xbf16, #tpu.memory_space<vmem>>, %arg4: memref<256x128xbf16, #tpu.memory_space<vmem>>, %arg5: memref<1x1408xf32, #tpu.memory_space<vmem>>, %arg6: memref<16x128xf32, #tpu.memory_space<vmem>>) attributes {dimension_semantics = [#tpu.dimension_semantics<parallel>], iteration_bounds = array<i64: 1>, scalar_prefetch = 0 : i64, scratch_operands = 0 : i64, tpu.core_type = #tpu.core_type<tc>, window_params = [{transform_indices = @transform_0, window_bounds = array<i64: 256, 128>}, {pipeline_mode = #tpu.pipeline_mode<synchronous>, transform_indices = @transform_1, window_bounds = array<i64: 128, 1280>}, {pipeline_mode = #tpu.pipeline_mode<synchronous>, transform_indices = @transform_2, window_bounds = array<i64: 768, 384>}, {pipeline_mode = #tpu.pipeline_mode<synchronous>, transform_indices = @transform_3, window_bounds = array<i64: 256, 128>}, {pipeline_mode = #tpu.pipeline_mode<synchronous>, transform_indices = @transform_4, window_bounds = array<i64: 1, 1408>}, {transform_indices = @transform_5, window_bounds = array<i64: 16, 128>}]} {
    %c0 = arith.constant 0 : index
    %c0_0 = arith.constant 0 : index
    %0 = vector.load %arg1[%c0, %c0_0] : memref<256x128xbf16, #tpu.memory_space<vmem>>, vector<256x128xbf16>
    %c0_1 = arith.constant 0 : index
    %c0_2 = arith.constant 0 : index
    %1 = vector.load %arg2[%c0_1, %c0_2] : memref<128x1280xbf16, #tpu.memory_space<vmem>>, vector<128x1280xbf16>
    %cst = arith.constant dense<0.000000e+00> : vector<256x1280xf32>
    %2 = tpu.matmul %0, %1, %cst {dimension_numbers = #tpu.dot_dimension_numbers<[1], [0], [0], [1], [0, 0, 1, 1], [], []>} : vector<256x128xbf16>, vector<128x1280xbf16>, vector<256x1280xf32> -> vector<256x1280xf32>
    %3 = vector.extract_strided_slice %2 {offsets = [0, 0], sizes = [128, 1280], strides = [1, 1]} : vector<256x1280xf32> to vector<128x1280xf32>
    %4 = vector.extract_strided_slice %2 {offsets = [128, 0], sizes = [128, 1280], strides = [1, 1]} : vector<256x1280xf32> to vector<128x1280xf32>
    %5 = arith.maximumf %3, %4 : vector<128x1280xf32>
    %6 = vector.extract_strided_slice %5 {offsets = [0, 0], sizes = [128, 640], strides = [1, 1]} : vector<128x1280xf32> to vector<128x640xf32>
    %7 = vector.extract_strided_slice %5 {offsets = [0, 640], sizes = [128, 640], strides = [1, 1]} : vector<128x1280xf32> to vector<128x640xf32>
    %8 = arith.maximumf %6, %7 : vector<128x640xf32>
    %c0_3 = arith.constant 0 : index
    %c0_4 = arith.constant 0 : index
    %9 = vector.load %arg5[%c0_3, %c0_4] : memref<1x1408xf32, #tpu.memory_space<vmem>>, vector<1x640xf32>
    %10 = vector.broadcast %9 : vector<1x640xf32> to vector<128x640xf32>
    %11 = arith.addf %8, %10 : vector<128x640xf32>
    %cst_5 = arith.constant 0.000000e+00 : f32
    %12 = vector.broadcast %cst_5 : f32 to vector<128x640xf32>
    %13 = arith.maximumf %11, %12 : vector<128x640xf32>
    %c0_6 = arith.constant 0 : index
    %c0_7 = arith.constant 0 : index
    %14 = vector.load %arg3[%c0_6, %c0_7] : memref<768x384xbf16, #tpu.memory_space<vmem>>, vector<640x384xbf16>
    %c640 = arith.constant 640 : index
    %c0_8 = arith.constant 0 : index
    %15 = vector.load %arg3[%c640, %c0_8] : memref<768x384xbf16, #tpu.memory_space<vmem>>, vector<128x384xbf16>
    %16 = arith.truncf %13 : vector<128x640xf32> to vector<128x640xbf16>
    %cst_9 = arith.constant dense<0.000000e+00> : vector<128x384xf32>
    %17 = tpu.matmul %16, %14, %cst_9 {dimension_numbers = #tpu.dot_dimension_numbers<[1], [0], [0], [1], [0, 0, 1, 1], [], []>} : vector<128x640xbf16>, vector<640x384xbf16>, vector<128x384xf32> -> vector<128x384xf32>
    %c0_10 = arith.constant 0 : index
    %c640_11 = arith.constant 640 : index
    %18 = vector.load %arg5[%c0_10, %c640_11] : memref<1x1408xf32, #tpu.memory_space<vmem>>, vector<1x384xf32>
    %19 = vector.broadcast %18 : vector<1x384xf32> to vector<128x384xf32>
    %20 = arith.addf %17, %19 : vector<128x384xf32>
    %c0_12 = arith.constant 0 : index
    %c1024 = arith.constant 1024 : index
    %21 = vector.load %arg5[%c0_12, %c1024] : memref<1x1408xf32, #tpu.memory_space<vmem>>, vector<1x128xf32>
    %cst_13 = arith.constant 0.000000e+00 : f32
    %22 = vector.broadcast %cst_13 : f32 to vector<16x128xf32>
    %23 = vector.extract_strided_slice %20 {offsets = [0, 0], sizes = [16, 384], strides = [1, 1]} : vector<128x384xf32> to vector<16x384xf32>
    %24 = arith.truncf %22 : vector<16x128xf32> to vector<16x128xbf16>
    %cst_14 = arith.constant dense<0.000000e+00> : vector<16x384xf32>
    %25 = tpu.matmul %24, %15, %cst_14 {dimension_numbers = #tpu.dot_dimension_numbers<[1], [0], [0], [1], [0, 0, 1, 1], [], []>} : vector<16x128xbf16>, vector<128x384xbf16>, vector<16x384xf32> -> vector<16x384xf32>
    %26 = vector.extract_strided_slice %23 {offsets = [0, 0], sizes = [16, 128], strides = [1, 1]} : vector<16x384xf32> to vector<16x128xf32>
    %27 = vector.extract_strided_slice %25 {offsets = [0, 0], sizes = [16, 128], strides = [1, 1]} : vector<16x384xf32> to vector<16x128xf32>
    %28 = arith.addf %26, %27 : vector<16x128xf32>
    %29 = arith.negf %28 : vector<16x128xf32>
    %30 = math.exp %29 : vector<16x128xf32>
    %cst_15 = arith.constant 1.000000e+00 : f32
    %31 = vector.broadcast %cst_15 : f32 to vector<16x128xf32>
    %32 = arith.addf %31, %30 : vector<16x128xf32>
    %33 = arith.divf %31, %32 : vector<16x128xf32>
    %34 = vector.extract_strided_slice %23 {offsets = [0, 128], sizes = [16, 128], strides = [1, 1]} : vector<16x384xf32> to vector<16x128xf32>
    %35 = vector.extract_strided_slice %25 {offsets = [0, 128], sizes = [16, 128], strides = [1, 1]} : vector<16x384xf32> to vector<16x128xf32>
    %36 = arith.addf %34, %35 : vector<16x128xf32>
    %37 = arith.negf %36 : vector<16x128xf32>
    %38 = math.exp %37 : vector<16x128xf32>
    %cst_16 = arith.constant 1.000000e+00 : f32
    %39 = vector.broadcast %cst_16 : f32 to vector<16x128xf32>
    %40 = arith.addf %39, %38 : vector<16x128xf32>
    %41 = arith.divf %39, %40 : vector<16x128xf32>
    %42 = vector.extract_strided_slice %23 {offsets = [0, 256], sizes = [16, 128], strides = [1, 1]} : vector<16x384xf32> to vector<16x128xf32>
    %43 = vector.extract_strided_slice %25 {offsets = [0, 256], sizes = [16, 128], strides = [1, 1]} : vector<16x384xf32> to vector<16x128xf32>
    %44 = vector.broadcast %21 : vector<1x128xf32> to vector<16x128xf32>
    %45 = arith.addf %43, %44 : vector<16x128xf32>
    %46 = arith.mulf %33, %45 : vector<16x128xf32>
    %47 = arith.addf %42, %46 : vector<16x128xf32>
    %48 = math.tanh %47 : vector<16x128xf32>
    %cst_17 = arith.constant 1.000000e+00 : f32
    %49 = vector.broadcast %cst_17 : f32 to vector<16x128xf32>
    %50 = arith.subf %49, %41 : vector<16x128xf32>
    %51 = arith.mulf %50, %48 : vector<16x128xf32>
    %52 = arith.mulf %41, %22 : vector<16x128xf32>
    %53 = arith.addf %51, %52 : vector<16x128xf32>
    %54 = vector.extract_strided_slice %20 {offsets = [16, 0], sizes = [16, 384], strides = [1, 1]} : vector<128x384xf32> to vector<16x384xf32>
    %55 = arith.truncf %53 : vector<16x128xf32> to vector<16x128xbf16>
    %cst_18 = arith.constant dense<0.000000e+00> : vector<16x384xf32>
    %56 = tpu.matmul %55, %15, %cst_18 {dimension_numbers = #tpu.dot_dimension_numbers<[1], [0], [0], [1], [0, 0, 1, 1], [], []>} : vector<16x128xbf16>, vector<128x384xbf16>, vector<16x384xf32> -> vector<16x384xf32>
    %57 = vector.extract_strided_slice %54 {offsets = [0, 0], sizes = [16, 128], strides = [1, 1]} : vector<16x384xf32> to vector<16x128xf32>
    %58 = vector.extract_strided_slice %56 {offsets = [0, 0], sizes = [16, 128], strides = [1, 1]} : vector<16x384xf32> to vector<16x128xf32>
    %59 = arith.addf %57, %58 : vector<16x128xf32>
    %60 = arith.negf %59 : vector<16x128xf32>
    %61 = math.exp %60 : vector<16x128xf32>
    %cst_19 = arith.constant 1.000000e+00 : f32
    %62 = vector.broadcast %cst_19 : f32 to vector<16x128xf32>
    %63 = arith.addf %62, %61 : vector<16x128xf32>
    %64 = arith.divf %62, %63 : vector<16x128xf32>
    %65 = vector.extract_strided_slice %54 {offsets = [0, 128], sizes = [16, 128], strides = [1, 1]} : vector<16x384xf32> to vector<16x128xf32>
    %66 = vector.extract_strided_slice %56 {offsets = [0, 128], sizes = [16, 128], strides = [1, 1]} : vector<16x384xf32> to vector<16x128xf32>
    %67 = arith.addf %65, %66 : vector<16x128xf32>
    %68 = arith.negf %67 : vector<16x128xf32>
    %69 = math.exp %68 : vector<16x128xf32>
    %cst_20 = arith.constant 1.000000e+00 : f32
    %70 = vector.broadcast %cst_20 : f32 to vector<16x128xf32>
    %71 = arith.addf %70, %69 : vector<16x128xf32>
    %72 = arith.divf %70, %71 : vector<16x128xf32>
    %73 = vector.extract_strided_slice %54 {offsets = [0, 256], sizes = [16, 128], strides = [1, 1]} : vector<16x384xf32> to vector<16x128xf32>
    %74 = vector.extract_strided_slice %56 {offsets = [0, 256], sizes = [16, 128], strides = [1, 1]} : vector<16x384xf32> to vector<16x128xf32>
    %75 = vector.broadcast %21 : vector<1x128xf32> to vector<16x128xf32>
    %76 = arith.addf %74, %75 : vector<16x128xf32>
    %77 = arith.mulf %64, %76 : vector<16x128xf32>
    %78 = arith.addf %73, %77 : vector<16x128xf32>
    %79 = math.tanh %78 : vector<16x128xf32>
    %cst_21 = arith.constant 1.000000e+00 : f32
    %80 = vector.broadcast %cst_21 : f32 to vector<16x128xf32>
    %81 = arith.subf %80, %72 : vector<16x128xf32>
    %82 = arith.mulf %81, %79 : vector<16x128xf32>
    %83 = arith.mulf %72, %53 : vector<16x128xf32>
    %84 = arith.addf %82, %83 : vector<16x128xf32>
    %85 = vector.extract_strided_slice %20 {offsets = [32, 0], sizes = [16, 384], strides = [1, 1]} : vector<128x384xf32> to vector<16x384xf32>
    %86 = arith.truncf %84 : vector<16x128xf32> to vector<16x128xbf16>
    %cst_22 = arith.constant dense<0.000000e+00> : vector<16x384xf32>
    %87 = tpu.matmul %86, %15, %cst_22 {dimension_numbers = #tpu.dot_dimension_numbers<[1], [0], [0], [1], [0, 0, 1, 1], [], []>} : vector<16x128xbf16>, vector<128x384xbf16>, vector<16x384xf32> -> vector<16x384xf32>
    %88 = vector.extract_strided_slice %85 {offsets = [0, 0], sizes = [16, 128], strides = [1, 1]} : vector<16x384xf32> to vector<16x128xf32>
    %89 = vector.extract_strided_slice %87 {offsets = [0, 0], sizes = [16, 128], strides = [1, 1]} : vector<16x384xf32> to vector<16x128xf32>
    %90 = arith.addf %88, %89 : vector<16x128xf32>
    %91 = arith.negf %90 : vector<16x128xf32>
    %92 = math.exp %91 : vector<16x128xf32>
    %cst_23 = arith.constant 1.000000e+00 : f32
    %93 = vector.broadcast %cst_23 : f32 to vector<16x128xf32>
    %94 = arith.addf %93, %92 : vector<16x128xf32>
    %95 = arith.divf %93, %94 : vector<16x128xf32>
    %96 = vector.extract_strided_slice %85 {offsets = [0, 128], sizes = [16, 128], strides = [1, 1]} : vector<16x384xf32> to vector<16x128xf32>
    %97 = vector.extract_strided_slice %87 {offsets = [0, 128], sizes = [16, 128], strides = [1, 1]} : vector<16x384xf32> to vector<16x128xf32>
    %98 = arith.addf %96, %97 : vector<16x128xf32>
    %99 = arith.negf %98 : vector<16x128xf32>
    %100 = math.exp %99 : vector<16x128xf32>
    %cst_24 = arith.constant 1.000000e+00 : f32
    %101 = vector.broadcast %cst_24 : f32 to vector<16x128xf32>
    %102 = arith.addf %101, %100 : vector<16x128xf32>
    %103 = arith.divf %101, %102 : vector<16x128xf32>
    %104 = vector.extract_strided_slice %85 {offsets = [0, 256], sizes = [16, 128], strides = [1, 1]} : vector<16x384xf32> to vector<16x128xf32>
    %105 = vector.extract_strided_slice %87 {offsets = [0, 256], sizes = [16, 128], strides = [1, 1]} : vector<16x384xf32> to vector<16x128xf32>
    %106 = vector.broadcast %21 : vector<1x128xf32> to vector<16x128xf32>
    %107 = arith.addf %105, %106 : vector<16x128xf32>
    %108 = arith.mulf %95, %107 : vector<16x128xf32>
    %109 = arith.addf %104, %108 : vector<16x128xf32>
    %110 = math.tanh %109 : vector<16x128xf32>
    %cst_25 = arith.constant 1.000000e+00 : f32
    %111 = vector.broadcast %cst_25 : f32 to vector<16x128xf32>
    %112 = arith.subf %111, %103 : vector<16x128xf32>
    %113 = arith.mulf %112, %110 : vector<16x128xf32>
    %114 = arith.mulf %103, %84 : vector<16x128xf32>
    %115 = arith.addf %113, %114 : vector<16x128xf32>
    %116 = vector.extract_strided_slice %20 {offsets = [48, 0], sizes = [16, 384], strides = [1, 1]} : vector<128x384xf32> to vector<16x384xf32>
    %117 = arith.truncf %115 : vector<16x128xf32> to vector<16x128xbf16>
    %cst_26 = arith.constant dense<0.000000e+00> : vector<16x384xf32>
    %118 = tpu.matmul %117, %15, %cst_26 {dimension_numbers = #tpu.dot_dimension_numbers<[1], [0], [0], [1], [0, 0, 1, 1], [], []>} : vector<16x128xbf16>, vector<128x384xbf16>, vector<16x384xf32> -> vector<16x384xf32>
    %119 = vector.extract_strided_slice %116 {offsets = [0, 0], sizes = [16, 128], strides = [1, 1]} : vector<16x384xf32> to vector<16x128xf32>
    %120 = vector.extract_strided_slice %118 {offsets = [0, 0], sizes = [16, 128], strides = [1, 1]} : vector<16x384xf32> to vector<16x128xf32>
    %121 = arith.addf %119, %120 : vector<16x128xf32>
    %122 = arith.negf %121 : vector<16x128xf32>
    %123 = math.exp %122 : vector<16x128xf32>
    %cst_27 = arith.constant 1.000000e+00 : f32
    %124 = vector.broadcast %cst_27 : f32 to vector<16x128xf32>
    %125 = arith.addf %124, %123 : vector<16x128xf32>
    %126 = arith.divf %124, %125 : vector<16x128xf32>
    %127 = vector.extract_strided_slice %116 {offsets = [0, 128], sizes = [16, 128], strides = [1, 1]} : vector<16x384xf32> to vector<16x128xf32>
    %128 = vector.extract_strided_slice %118 {offsets = [0, 128], sizes = [16, 128], strides = [1, 1]} : vector<16x384xf32> to vector<16x128xf32>
    %129 = arith.addf %127, %128 : vector<16x128xf32>
    %130 = arith.negf %129 : vector<16x128xf32>
    %131 = math.exp %130 : vector<16x128xf32>
    %cst_28 = arith.constant 1.000000e+00 : f32
    %132 = vector.broadcast %cst_28 : f32 to vector<16x128xf32>
    %133 = arith.addf %132, %131 : vector<16x128xf32>
    %134 = arith.divf %132, %133 : vector<16x128xf32>
    %135 = vector.extract_strided_slice %116 {offsets = [0, 256], sizes = [16, 128], strides = [1, 1]} : vector<16x384xf32> to vector<16x128xf32>
    %136 = vector.extract_strided_slice %118 {offsets = [0, 256], sizes = [16, 128], strides = [1, 1]} : vector<16x384xf32> to vector<16x128xf32>
    %137 = vector.broadcast %21 : vector<1x128xf32> to vector<16x128xf32>
    %138 = arith.addf %136, %137 : vector<16x128xf32>
    %139 = arith.mulf %126, %138 : vector<16x128xf32>
    %140 = arith.addf %135, %139 : vector<16x128xf32>
    %141 = math.tanh %140 : vector<16x128xf32>
    %cst_29 = arith.constant 1.000000e+00 : f32
    %142 = vector.broadcast %cst_29 : f32 to vector<16x128xf32>
    %143 = arith.subf %142, %134 : vector<16x128xf32>
    %144 = arith.mulf %143, %141 : vector<16x128xf32>
    %145 = arith.mulf %134, %115 : vector<16x128xf32>
    %146 = arith.addf %144, %145 : vector<16x128xf32>
    %147 = vector.extract_strided_slice %20 {offsets = [64, 0], sizes = [16, 384], strides = [1, 1]} : vector<128x384xf32> to vector<16x384xf32>
    %148 = arith.truncf %146 : vector<16x128xf32> to vector<16x128xbf16>
    %cst_30 = arith.constant dense<0.000000e+00> : vector<16x384xf32>
    %149 = tpu.matmul %148, %15, %cst_30 {dimension_numbers = #tpu.dot_dimension_numbers<[1], [0], [0], [1], [0, 0, 1, 1], [], []>} : vector<16x128xbf16>, vector<128x384xbf16>, vector<16x384xf32> -> vector<16x384xf32>
    %150 = vector.extract_strided_slice %147 {offsets = [0, 0], sizes = [16, 128], strides = [1, 1]} : vector<16x384xf32> to vector<16x128xf32>
    %151 = vector.extract_strided_slice %149 {offsets = [0, 0], sizes = [16, 128], strides = [1, 1]} : vector<16x384xf32> to vector<16x128xf32>
    %152 = arith.addf %150, %151 : vector<16x128xf32>
    %153 = arith.negf %152 : vector<16x128xf32>
    %154 = math.exp %153 : vector<16x128xf32>
    %cst_31 = arith.constant 1.000000e+00 : f32
    %155 = vector.broadcast %cst_31 : f32 to vector<16x128xf32>
    %156 = arith.addf %155, %154 : vector<16x128xf32>
    %157 = arith.divf %155, %156 : vector<16x128xf32>
    %158 = vector.extract_strided_slice %147 {offsets = [0, 128], sizes = [16, 128], strides = [1, 1]} : vector<16x384xf32> to vector<16x128xf32>
    %159 = vector.extract_strided_slice %149 {offsets = [0, 128], sizes = [16, 128], strides = [1, 1]} : vector<16x384xf32> to vector<16x128xf32>
    %160 = arith.addf %158, %159 : vector<16x128xf32>
    %161 = arith.negf %160 : vector<16x128xf32>
    %162 = math.exp %161 : vector<16x128xf32>
    %cst_32 = arith.constant 1.000000e+00 : f32
    %163 = vector.broadcast %cst_32 : f32 to vector<16x128xf32>
    %164 = arith.addf %163, %162 : vector<16x128xf32>
    %165 = arith.divf %163, %164 : vector<16x128xf32>
    %166 = vector.extract_strided_slice %147 {offsets = [0, 256], sizes = [16, 128], strides = [1, 1]} : vector<16x384xf32> to vector<16x128xf32>
    %167 = vector.extract_strided_slice %149 {offsets = [0, 256], sizes = [16, 128], strides = [1, 1]} : vector<16x384xf32> to vector<16x128xf32>
    %168 = vector.broadcast %21 : vector<1x128xf32> to vector<16x128xf32>
    %169 = arith.addf %167, %168 : vector<16x128xf32>
    %170 = arith.mulf %157, %169 : vector<16x128xf32>
    %171 = arith.addf %166, %170 : vector<16x128xf32>
    %172 = math.tanh %171 : vector<16x128xf32>
    %cst_33 = arith.constant 1.000000e+00 : f32
    %173 = vector.broadcast %cst_33 : f32 to vector<16x128xf32>
    %174 = arith.subf %173, %165 : vector<16x128xf32>
    %175 = arith.mulf %174, %172 : vector<16x128xf32>
    %176 = arith.mulf %165, %146 : vector<16x128xf32>
    %177 = arith.addf %175, %176 : vector<16x128xf32>
    %178 = vector.extract_strided_slice %20 {offsets = [80, 0], sizes = [16, 384], strides = [1, 1]} : vector<128x384xf32> to vector<16x384xf32>
    %179 = arith.truncf %177 : vector<16x128xf32> to vector<16x128xbf16>
    %cst_34 = arith.constant dense<0.000000e+00> : vector<16x384xf32>
    %180 = tpu.matmul %179, %15, %cst_34 {dimension_numbers = #tpu.dot_dimension_numbers<[1], [0], [0], [1], [0, 0, 1, 1], [], []>} : vector<16x128xbf16>, vector<128x384xbf16>, vector<16x384xf32> -> vector<16x384xf32>
    %181 = vector.extract_strided_slice %178 {offsets = [0, 0], sizes = [16, 128], strides = [1, 1]} : vector<16x384xf32> to vector<16x128xf32>
    %182 = vector.extract_strided_slice %180 {offsets = [0, 0], sizes = [16, 128], strides = [1, 1]} : vector<16x384xf32> to vector<16x128xf32>
    %183 = arith.addf %181, %182 : vector<16x128xf32>
    %184 = arith.negf %183 : vector<16x128xf32>
    %185 = math.exp %184 : vector<16x128xf32>
    %cst_35 = arith.constant 1.000000e+00 : f32
    %186 = vector.broadcast %cst_35 : f32 to vector<16x128xf32>
    %187 = arith.addf %186, %185 : vector<16x128xf32>
    %188 = arith.divf %186, %187 : vector<16x128xf32>
    %189 = vector.extract_strided_slice %178 {offsets = [0, 128], sizes = [16, 128], strides = [1, 1]} : vector<16x384xf32> to vector<16x128xf32>
    %190 = vector.extract_strided_slice %180 {offsets = [0, 128], sizes = [16, 128], strides = [1, 1]} : vector<16x384xf32> to vector<16x128xf32>
    %191 = arith.addf %189, %190 : vector<16x128xf32>
    %192 = arith.negf %191 : vector<16x128xf32>
    %193 = math.exp %192 : vector<16x128xf32>
    %cst_36 = arith.constant 1.000000e+00 : f32
    %194 = vector.broadcast %cst_36 : f32 to vector<16x128xf32>
    %195 = arith.addf %194, %193 : vector<16x128xf32>
    %196 = arith.divf %194, %195 : vector<16x128xf32>
    %197 = vector.extract_strided_slice %178 {offsets = [0, 256], sizes = [16, 128], strides = [1, 1]} : vector<16x384xf32> to vector<16x128xf32>
    %198 = vector.extract_strided_slice %180 {offsets = [0, 256], sizes = [16, 128], strides = [1, 1]} : vector<16x384xf32> to vector<16x128xf32>
    %199 = vector.broadcast %21 : vector<1x128xf32> to vector<16x128xf32>
    %200 = arith.addf %198, %199 : vector<16x128xf32>
    %201 = arith.mulf %188, %200 : vector<16x128xf32>
    %202 = arith.addf %197, %201 : vector<16x128xf32>
    %203 = math.tanh %202 : vector<16x128xf32>
    %cst_37 = arith.constant 1.000000e+00 : f32
    %204 = vector.broadcast %cst_37 : f32 to vector<16x128xf32>
    %205 = arith.subf %204, %196 : vector<16x128xf32>
    %206 = arith.mulf %205, %203 : vector<16x128xf32>
    %207 = arith.mulf %196, %177 : vector<16x128xf32>
    %208 = arith.addf %206, %207 : vector<16x128xf32>
    %209 = vector.extract_strided_slice %20 {offsets = [96, 0], sizes = [16, 384], strides = [1, 1]} : vector<128x384xf32> to vector<16x384xf32>
    %210 = arith.truncf %208 : vector<16x128xf32> to vector<16x128xbf16>
    %cst_38 = arith.constant dense<0.000000e+00> : vector<16x384xf32>
    %211 = tpu.matmul %210, %15, %cst_38 {dimension_numbers = #tpu.dot_dimension_numbers<[1], [0], [0], [1], [0, 0, 1, 1], [], []>} : vector<16x128xbf16>, vector<128x384xbf16>, vector<16x384xf32> -> vector<16x384xf32>
    %212 = vector.extract_strided_slice %209 {offsets = [0, 0], sizes = [16, 128], strides = [1, 1]} : vector<16x384xf32> to vector<16x128xf32>
    %213 = vector.extract_strided_slice %211 {offsets = [0, 0], sizes = [16, 128], strides = [1, 1]} : vector<16x384xf32> to vector<16x128xf32>
    %214 = arith.addf %212, %213 : vector<16x128xf32>
    %215 = arith.negf %214 : vector<16x128xf32>
    %216 = math.exp %215 : vector<16x128xf32>
    %cst_39 = arith.constant 1.000000e+00 : f32
    %217 = vector.broadcast %cst_39 : f32 to vector<16x128xf32>
    %218 = arith.addf %217, %216 : vector<16x128xf32>
    %219 = arith.divf %217, %218 : vector<16x128xf32>
    %220 = vector.extract_strided_slice %209 {offsets = [0, 128], sizes = [16, 128], strides = [1, 1]} : vector<16x384xf32> to vector<16x128xf32>
    %221 = vector.extract_strided_slice %211 {offsets = [0, 128], sizes = [16, 128], strides = [1, 1]} : vector<16x384xf32> to vector<16x128xf32>
    %222 = arith.addf %220, %221 : vector<16x128xf32>
    %223 = arith.negf %222 : vector<16x128xf32>
    %224 = math.exp %223 : vector<16x128xf32>
    %cst_40 = arith.constant 1.000000e+00 : f32
    %225 = vector.broadcast %cst_40 : f32 to vector<16x128xf32>
    %226 = arith.addf %225, %224 : vector<16x128xf32>
    %227 = arith.divf %225, %226 : vector<16x128xf32>
    %228 = vector.extract_strided_slice %209 {offsets = [0, 256], sizes = [16, 128], strides = [1, 1]} : vector<16x384xf32> to vector<16x128xf32>
    %229 = vector.extract_strided_slice %211 {offsets = [0, 256], sizes = [16, 128], strides = [1, 1]} : vector<16x384xf32> to vector<16x128xf32>
    %230 = vector.broadcast %21 : vector<1x128xf32> to vector<16x128xf32>
    %231 = arith.addf %229, %230 : vector<16x128xf32>
    %232 = arith.mulf %219, %231 : vector<16x128xf32>
    %233 = arith.addf %228, %232 : vector<16x128xf32>
    %234 = math.tanh %233 : vector<16x128xf32>
    %cst_41 = arith.constant 1.000000e+00 : f32
    %235 = vector.broadcast %cst_41 : f32 to vector<16x128xf32>
    %236 = arith.subf %235, %227 : vector<16x128xf32>
    %237 = arith.mulf %236, %234 : vector<16x128xf32>
    %238 = arith.mulf %227, %208 : vector<16x128xf32>
    %239 = arith.addf %237, %238 : vector<16x128xf32>
    %240 = vector.extract_strided_slice %20 {offsets = [112, 0], sizes = [16, 384], strides = [1, 1]} : vector<128x384xf32> to vector<16x384xf32>
    %241 = arith.truncf %239 : vector<16x128xf32> to vector<16x128xbf16>
    %cst_42 = arith.constant dense<0.000000e+00> : vector<16x384xf32>
    %242 = tpu.matmul %241, %15, %cst_42 {dimension_numbers = #tpu.dot_dimension_numbers<[1], [0], [0], [1], [0, 0, 1, 1], [], []>} : vector<16x128xbf16>, vector<128x384xbf16>, vector<16x384xf32> -> vector<16x384xf32>
    %243 = vector.extract_strided_slice %240 {offsets = [0, 0], sizes = [16, 128], strides = [1, 1]} : vector<16x384xf32> to vector<16x128xf32>
    %244 = vector.extract_strided_slice %242 {offsets = [0, 0], sizes = [16, 128], strides = [1, 1]} : vector<16x384xf32> to vector<16x128xf32>
    %245 = arith.addf %243, %244 : vector<16x128xf32>
    %246 = arith.negf %245 : vector<16x128xf32>
    %247 = math.exp %246 : vector<16x128xf32>
    %cst_43 = arith.constant 1.000000e+00 : f32
    %248 = vector.broadcast %cst_43 : f32 to vector<16x128xf32>
    %249 = arith.addf %248, %247 : vector<16x128xf32>
    %250 = arith.divf %248, %249 : vector<16x128xf32>
    %251 = vector.extract_strided_slice %240 {offsets = [0, 128], sizes = [16, 128], strides = [1, 1]} : vector<16x384xf32> to vector<16x128xf32>
    %252 = vector.extract_strided_slice %242 {offsets = [0, 128], sizes = [16, 128], strides = [1, 1]} : vector<16x384xf32> to vector<16x128xf32>
    %253 = arith.addf %251, %252 : vector<16x128xf32>
    %254 = arith.negf %253 : vector<16x128xf32>
    %255 = math.exp %254 : vector<16x128xf32>
    %cst_44 = arith.constant 1.000000e+00 : f32
    %256 = vector.broadcast %cst_44 : f32 to vector<16x128xf32>
    %257 = arith.addf %256, %255 : vector<16x128xf32>
    %258 = arith.divf %256, %257 : vector<16x128xf32>
    %259 = vector.extract_strided_slice %240 {offsets = [0, 256], sizes = [16, 128], strides = [1, 1]} : vector<16x384xf32> to vector<16x128xf32>
    %260 = vector.extract_strided_slice %242 {offsets = [0, 256], sizes = [16, 128], strides = [1, 1]} : vector<16x384xf32> to vector<16x128xf32>
    %261 = vector.broadcast %21 : vector<1x128xf32> to vector<16x128xf32>
    %262 = arith.addf %260, %261 : vector<16x128xf32>
    %263 = arith.mulf %250, %262 : vector<16x128xf32>
    %264 = arith.addf %259, %263 : vector<16x128xf32>
    %265 = math.tanh %264 : vector<16x128xf32>
    %cst_45 = arith.constant 1.000000e+00 : f32
    %266 = vector.broadcast %cst_45 : f32 to vector<16x128xf32>
    %267 = arith.subf %266, %258 : vector<16x128xf32>
    %268 = arith.mulf %267, %265 : vector<16x128xf32>
    %269 = arith.mulf %258, %239 : vector<16x128xf32>
    %270 = arith.addf %268, %269 : vector<16x128xf32>
    %c0_46 = arith.constant 0 : index
    %c0_47 = arith.constant 0 : index
    %271 = vector.load %arg4[%c0_46, %c0_47] : memref<256x128xbf16, #tpu.memory_space<vmem>>, vector<128x128xbf16>
    %c128 = arith.constant 128 : index
    %c0_48 = arith.constant 0 : index
    %272 = vector.load %arg4[%c128, %c0_48] : memref<256x128xbf16, #tpu.memory_space<vmem>>, vector<128x128xbf16>
    %273 = arith.truncf %270 : vector<16x128xf32> to vector<16x128xbf16>
    %cst_49 = arith.constant dense<0.000000e+00> : vector<16x128xf32>
    %274 = tpu.matmul %273, %271, %cst_49 {dimension_numbers = #tpu.dot_dimension_numbers<[1], [0], [0], [1], [0, 0, 1, 1], [], []>} : vector<16x128xbf16>, vector<128x128xbf16>, vector<16x128xf32> -> vector<16x128xf32>
    %c0_50 = arith.constant 0 : index
    %c1152 = arith.constant 1152 : index
    %275 = vector.load %arg5[%c0_50, %c1152] : memref<1x1408xf32, #tpu.memory_space<vmem>>, vector<1x128xf32>
    %276 = vector.broadcast %275 : vector<1x128xf32> to vector<16x128xf32>
    %277 = arith.addf %274, %276 : vector<16x128xf32>
    %cst_51 = arith.constant 0.000000e+00 : f32
    %278 = vector.broadcast %cst_51 : f32 to vector<16x128xf32>
    %279 = arith.maximumf %277, %278 : vector<16x128xf32>
    %280 = arith.truncf %279 : vector<16x128xf32> to vector<16x128xbf16>
    %cst_52 = arith.constant dense<0.000000e+00> : vector<16x128xf32>
    %281 = tpu.matmul %280, %272, %cst_52 {dimension_numbers = #tpu.dot_dimension_numbers<[1], [0], [0], [1], [0, 0, 1, 1], [], []>} : vector<16x128xbf16>, vector<128x128xbf16>, vector<16x128xf32> -> vector<16x128xf32>
    %c0_53 = arith.constant 0 : index
    %c1280 = arith.constant 1280 : index
    %282 = vector.load %arg5[%c0_53, %c1280] : memref<1x1408xf32, #tpu.memory_space<vmem>>, vector<1x128xf32>
    %283 = vector.broadcast %282 : vector<1x128xf32> to vector<16x128xf32>
    %284 = arith.addf %281, %283 : vector<16x128xf32>
    %c0_54 = arith.constant 0 : index
    %c0_55 = arith.constant 0 : index
    %285 = vector.load %arg6[%c0_54, %c0_55] : memref<16x128xf32, #tpu.memory_space<vmem>>, vector<16x128xf32>
    tpu.vector_store %arg6[%c0_54, %c0_55], %284 {strides = array<i32>} : memref<16x128xf32, #tpu.memory_space<vmem>>, vector<16x128xf32>,
    return
  }
  func.func @transform_0(%arg0: i32) -> (i32, i32) {
    %c0_i32 = arith.constant 0 : i32
    %c0_i32_0 = arith.constant 0 : i32
    return %arg0, %c0_i32 : i32, i32
  }
  func.func @transform_1(%arg0: i32) -> (i32, i32) {
    %c0_i32 = arith.constant 0 : i32
    %c0_i32_0 = arith.constant 0 : i32
    %c0_i32_1 = arith.constant 0 : i32
    return %c0_i32, %c0_i32_0 : i32, i32
  }
  func.func @transform_2(%arg0: i32) -> (i32, i32) {
    %c0_i32 = arith.constant 0 : i32
    %c0_i32_0 = arith.constant 0 : i32
    %c0_i32_1 = arith.constant 0 : i32
    return %c0_i32, %c0_i32_0 : i32, i32
  }
  func.func @transform_3(%arg0: i32) -> (i32, i32) {
    %c0_i32 = arith.constant 0 : i32
    %c0_i32_0 = arith.constant 0 : i32
    %c0_i32_1 = arith.constant 0 : i32
    return %c0_i32, %c0_i32_0 : i32, i32
  }
  func.func @transform_4(%arg0: i32) -> (i32, i32) {
    %c0_i32 = arith.constant 0 : i32
    %c0_i32_0 = arith.constant 0 : i32
    %c0_i32_1 = arith.constant 0 : i32
    return %c0_i32, %c0_i32_0 : i32, i32
  }
  func.func @transform_5(%arg0: i32) -> (i32, i32) {
    %c0_i32 = arith.constant 0 : i32
    %c0_i32_0 = arith.constant 0 : i32
    return %arg0, %c0_i32 : i32, i32
  }
}

</mosaic_0001>

<bundles_post_ra>
// kernel: forward.1
= control target key start
LH: loop header
LB: loop body
LE: loop exit
PB: predicated region body
PF: predicated region fallthrough
CT: control target
= control target key end

     0   :  { %s10113_s1 = inlined_call_operand.vmem [shape: bf16[128,1280], index: 1, kind: input, shape index: {}]   ;;  %s10114_s0 = inlined_call_operand.vmem [shape: bf16[256,128], index: 0, kind: input, shape index: {}]   ;;  %s10115_s2 = inlined_call_operand.vmem [shape: bf16[768,384], index: 2, kind: input, shape index: {}]   ;;  %s10116_s4 = inlined_call_operand.vmem [shape: f32[1,1408], index: 4, kind: input, shape index: {}]   ;;  %s10117_s3 = inlined_call_operand.vmem [shape: bf16[256,128], index: 3, kind: input, shape index: {}]   ;;  %s10118_s5 = inlined_call_operand.vmem [shape: f32[16,128], index: 5, kind: output, shape index: {}]  }
   0x1   :  { %v5309_v0 = vld [vmem:[%s10113_s1 + $0x230] sm:$0xf]  ;;  %v6110_v1 = vld [vmem:[%s10113_s1 + $0x254] sm:$0xf0]  ;;  %v6105_v2 = vld [vmem:[%s10113_s1 + $0x234] sm:$0xf] }
   0x2   :  { %v5310_v3 = vor.u32 %v6110_v1, %v5309_v0  ;;  %v5311_v4 = vld [vmem:[%s10113_s1 + $0x258] sm:$0xf0]  ;;  %v5317_v5 = vld [vmem:[%s10113_s1 + $0x238] sm:$0xf]  ;;  %v6111_v6 = vld [vmem:[%s10113_s1 + $0x25c] sm:$0xf0] }
   0x3   :  { %v5314_v7 = vor.u32 %v6105_v2, %v5311_v4  ;;  %v5318_v8 = vor.u32 %v6111_v6, %v5317_v5  ;;  %v6106_v9 = vld [vmem:[%s10113_s1 + $0x23c] sm:$0xf]  ;;  %v5319_v10 = vld [vmem:[%s10113_s1 + $0x260] sm:$0xf0]  ;;  %v5269_v11 = vld [vmem:[%s10113_s1 + $0x1e0] sm:$0xf] }
   0x4   :  { %629 = vmatpush.bf16.msra.mxu0 %v5310_v3  ;;  %v5322_v12 = vor.u32 %v6106_v9, %v5319_v10  ;;  %v6100_v13 = vld [vmem:[%s10113_s1 + $0x204] sm:$0xf0]  ;;  %v6095_v14 = vld [vmem:[%s10113_s1 + $0x1e4] sm:$0xf]  ;;  %v5271_v15 = vld [vmem:[%s10113_s1 + $0x208] sm:$0xf0] }
   0x5   :  { %718 = vmatpush.bf16.msra.mxu1 %v5314_v7  ;;  %807 = vmatpush.bf16.msra.mxu2 %v5318_v8  ;;  %v5270_v16 = vor.u32 %v6100_v13, %v5269_v11  ;;  %v5274_v17 = vor.u32 %v6095_v14, %v5271_v15  ;;  %v5277_v18 = vld [vmem:[%s10113_s1 + $0x1e8] sm:$0xf]  ;;  %v6101_v19 = vld [vmem:[%s10113_s1 + $0x20c] sm:$0xf0]  ;;  %v6096_v20 = vld [vmem:[%s10113_s1 + $0x1ec] sm:$0xf] }
   0x6   :  { %896 = vmatpush.bf16.msra.mxu3 %v5322_v12  ;;  %v5278_v21 = vor.u32 %v6101_v19, %v5277_v18  ;;  %v5279_v22 = vld [vmem:[%s10113_s1 + $0x210] sm:$0xf0]  ;;  %v5229_v23 = vld [vmem:[%s10113_s1 + $0x190] sm:$0xf]  ;;  %v6090_v24 = vld [vmem:[%s10113_s1 + $0x1b4] sm:$0xf0] }
   0x7   :  { %v5282_v25 = vor.u32 %v6096_v20, %v5279_v22  ;;  %v6085_v26 = vld [vmem:[%s10113_s1 + $0x194] sm:$0xf]  ;;  %v5231_v27 = vld [vmem:[%s10113_s1 + $0x1b8] sm:$0xf0]  ;;  %v5237_v28 = vld [vmem:[%s10113_s1 + $0x198] sm:$0xf]  ;;  %v5230_v29 = vor.u32 %v6090_v24, %v5229_v23 }
   0x8   :  { %630 = vmatpush.bf16.msra.mxu0 %v5270_v16  ;;  %v6091_v30 = vld [vmem:[%s10113_s1 + $0x1bc] sm:$0xf0]  ;;  %v6086_v31 = vld [vmem:[%s10113_s1 + $0x19c] sm:$0xf]  ;;  %v5239_v32 = vld [vmem:[%s10113_s1 + $0x1c0] sm:$0xf0]  ;;  %v5234_v33 = vor.u32 %v6085_v26, %v5231_v27 }
   0x9   :  { %719 = vmatpush.bf16.msra.mxu1 %v5274_v17  ;;  %808 = vmatpush.bf16.msra.mxu2 %v5278_v21  ;;  %v5238_v34 = vor.u32 %v6091_v30, %v5237_v28  ;;  %v5189_v35 = vld [vmem:[%s10113_s1 + $0x140] sm:$0xf]  ;;  %v6080_v36 = vld [vmem:[%s10113_s1 + $0x164] sm:$0xf0]  ;;  %v6075_v37 = vld [vmem:[%s10113_s1 + $0x144] sm:$0xf]  ;;  %v5242_v38 = vor.u32 %v6086_v31, %v5239_v32 }
   0xa   :  { %897 = vmatpush.bf16.msra.mxu3 %v5282_v25  ;;  %v5191_v39 = vld [vmem:[%s10113_s1 + $0x168] sm:$0xf0]  ;;  %v5197_v40 = vld [vmem:[%s10113_s1 + $0x148] sm:$0xf]  ;;  %v6081_v41 = vld [vmem:[%s10113_s1 + $0x16c] sm:$0xf0]  ;;  %v5190_v44 = vor.u32 %v6080_v36, %v5189_v35 }
   0xb   :  { %v6076_v42 = vld [vmem:[%s10113_s1 + $0x14c] sm:$0xf]  ;;  %v5199_v43 = vld [vmem:[%s10113_s1 + $0x170] sm:$0xf0]  ;;  %v5194_v45 = vor.u32 %v6075_v37, %v5191_v39  ;;  %v5198_v46 = vor.u32 %v6081_v41, %v5197_v40  ;;  %v5149_v47 = vld [vmem:[%s10113_s1 + $0xf0] sm:$0xf] }
   0xc   :  { %631 = vmatpush.bf16.msra.mxu0 %v5230_v29  ;;  %v6070_v48 = vld [vmem:[%s10113_s1 + $0x114] sm:$0xf0]  ;;  %v6065_v49 = vld [vmem:[%s10113_s1 + $0xf4] sm:$0xf]  ;;  %v5202_v50 = vor.u32 %v6076_v42, %v5199_v43  ;;  %v5151_v51 = vld [vmem:[%s10113_s1 + $0x118] sm:$0xf0] }
   0xd   :  { %720 = vmatpush.bf16.msra.mxu1 %v5234_v33  ;;  %809 = vmatpush.bf16.msra.mxu2 %v5238_v34  ;;  %v5157_v52 = vld [vmem:[%s10113_s1 + $0xf8] sm:$0xf]  ;;  %v6071_v53 = vld [vmem:[%s10113_s1 + $0x11c] sm:$0xf0]  ;;  %v6066_v54 = vld [vmem:[%s10113_s1 + $0xfc] sm:$0xf]  ;;  %v5150_v56 = vor.u32 %v6070_v48, %v5149_v47  ;;  %v5154_v57 = vor.u32 %v6065_v49, %v5151_v51 }
   0xe   :  { %898 = vmatpush.bf16.msra.mxu3 %v5242_v38  ;;  %v5159_v55 = vld [vmem:[%s10113_s1 + $0x120] sm:$0xf0]  ;;  %v5158_v58 = vor.u32 %v6071_v53, %v5157_v52  ;;  %v5109_v59 = vld [vmem:[%s10113_s1 + $0xa0] sm:$0xf]  ;;  %v6060_v60 = vld [vmem:[%s10113_s1 + $0xc4] sm:$0xf0] }
   0xf   :  { %v6055_v61 = vld [vmem:[%s10113_s1 + $0xa4] sm:$0xf]  ;;  %v5162_v62 = vor.u32 %v6066_v54, %v5159_v55  ;;  %v5111_v63 = vld [vmem:[%s10113_s1 + $0xc8] sm:$0xf0]  ;;  %v5117_v0 = vld [vmem:[%s10113_s1 + $0xa8] sm:$0xf]  ;;  %v5110_v4 = vor.u32 %v6060_v60, %v5109_v59 }
  0x10   :  { %632 = vmatpush.bf16.msra.mxu0 %v5190_v44  ;;  %v6061_v1 = vld [vmem:[%s10113_s1 + $0xcc] sm:$0xf0]  ;;  %v6056_v2 = vld [vmem:[%s10113_s1 + $0xac] sm:$0xf]  ;;  %v5119_v3 = vld [vmem:[%s10113_s1 + $0xd0] sm:$0xf0]  ;;  %v5114_v5 = vor.u32 %v6055_v61, %v5111_v63 }
  0x11   :  { %721 = vmatpush.bf16.msra.mxu1 %v5194_v45  ;;  %810 = vmatpush.bf16.msra.mxu2 %v5198_v46  ;;  %v5118_v6 = vor.u32 %v6061_v1, %v5117_v0  ;;  %v5069_v7 = vld [vmem:[%s10113_s1 + $0x50] sm:$0xf]  ;;  %v6050_v8 = vld [vmem:[%s10113_s1 + $0x74] sm:$0xf0]  ;;  %v6045_v9 = vld [vmem:[%s10113_s1 + $0x54] sm:$0xf]  ;;  %v5122_v10 = vor.u32 %v6056_v2, %v5119_v3 }
  0x12   :  { %899 = vmatpush.bf16.msra.mxu3 %v5202_v50  ;;  %v5071_v11 = vld [vmem:[%s10113_s1 + $0x78] sm:$0xf0]  ;;  %v5077_v12 = vld [vmem:[%s10113_s1 + $0x58] sm:$0xf]  ;;  %v6051_v13 = vld [vmem:[%s10113_s1 + $0x7c] sm:$0xf0]  ;;  %v5070_v16 = vor.u32 %v6050_v8, %v5069_v7 }
  0x13   :  { %v6046_v14 = vld [vmem:[%s10113_s1 + $0x5c] sm:$0xf]  ;;  %v5079_v15 = vld [vmem:[%s10113_s1 + $0x80] sm:$0xf0]  ;;  %v5029_v17 = vld [vmem:[%s10113_s1] sm:$0xf]  ;;  %v5074_v18 = vor.u32 %v6045_v9, %v5071_v11  ;;  %v5078_v19 = vor.u32 %v6051_v13, %v5077_v12 }
  0x14   :  { %633 = vmatpush.bf16.msra.mxu0 %v5150_v56  ;;  %v6040_v20 = vld [vmem:[%s10113_s1 + $0x24] sm:$0xf0]  ;;  %v6035_v21 = vld [vmem:[%s10113_s1 + $0x4] sm:$0xf]  ;;  %v5031_v22 = vld [vmem:[%s10113_s1 + $0x28] sm:$0xf0]  ;;  %v5082_v23 = vor.u32 %v6046_v14, %v5079_v15 }
  0x15   :  { %722 = vmatpush.bf16.msra.mxu1 %v5154_v57  ;;  %811 = vmatpush.bf16.msra.mxu2 %v5158_v58  ;;  %v5037_v24 = vld [vmem:[%s10113_s1 + $0x8] sm:$0xf]  ;;  %v6041_v25 = vld [vmem:[%s10113_s1 + $0x2c] sm:$0xf0]  ;;  %v6036_v26 = vld [vmem:[%s10113_s1 + $0xc] sm:$0xf]  ;;  %v5030_v30 = vor.u32 %v6040_v20, %v5029_v17  ;;  %v5034_v31 = vor.u32 %v6035_v21, %v5031_v22 }
  0x16   :  { %900 = vmatpush.bf16.msra.mxu3 %v5162_v62  ;;  %v5039_v27 = vld [vmem:[%s10113_s1 + $0x30] sm:$0xf0]  ;;  %v5325_v28 = vld [vmem:[%s10113_s1 + $0x240] sm:$0xf]  ;;  %v6112_v29 = vld [vmem:[%s10113_s1 + $0x264] sm:$0xf0]  ;;  %v5038_v32 = vor.u32 %v6041_v25, %v5037_v24 }
  0x17   :  { %v5042_v33 = vor.u32 %v6036_v26, %v5039_v27  ;;  %v5326_v34 = vor.u32 %v6112_v29, %v5325_v28  ;;  %v6691_v35 = vld [vmem:[%s10114_s0] sm:$0xff]  ;;  %v5285_v36 = vld [vmem:[%s10113_s1 + $0x1f0] sm:$0xf]  ;;  %v6102_v37 = vld [vmem:[%s10113_s1 + $0x214] sm:$0xf0] }
  0x18   :  { %634 = vmatpush.bf16.msra.mxu0 %v5110_v4  ;;  %v5286_v38 = vor.u32 %v6102_v37, %v5285_v36  ;;  %v6706_v39 = vld [vmem:[%s10114_s0 + $0x8] sm:$0xff]  ;;  %v6715_v40 = vld [vmem:[%s10114_s0 + $0x10] sm:$0xff]  ;;  %v5245_v41 = vld [vmem:[%s10113_s1 + $0x1a0] sm:$0xf] }
  0x19   :  { %723 = vmatpush.bf16.msra.mxu1 %v5114_v5  ;;  %812 = vmatpush.bf16.msra.mxu2 %v5118_v6  ;;  %v6092_v42 = vld [vmem:[%s10113_s1 + $0x1c4] sm:$0xf0]  ;;  %v6730_v44 = vld [vmem:[%s10114_s0 + $0x18] sm:$0xff]  ;;  %v6739_v45 = vld [vmem:[%s10114_s0 + $0x20] sm:$0xff] }
  0x1a   :  { %901 = vmatpush.bf16.msra.mxu3 %v5122_v10  ;;  %v5246_v43 = vor.u32 %v6092_v42, %v5245_v41  ;;  %v5205_v46 = vld [vmem:[%s10113_s1 + $0x150] sm:$0xf]  ;;  %v6082_v47 = vld [vmem:[%s10113_s1 + $0x174] sm:$0xf0]  ;;  %v6754_v49 = vld [vmem:[%s10114_s0 + $0x28] sm:$0xff] }
  0x1b   :  { %v5206_v48 = vor.u32 %v6082_v47, %v5205_v46  ;;  %v5333_v50 = vld [vmem:[%s10113_s1 + $0x248] sm:$0xf]  ;;  %v6113_v51 = vld [vmem:[%s10113_s1 + $0x26c] sm:$0xf0]  ;;  %v5165_v54 = vld [vmem:[%s10113_s1 + $0x100] sm:$0xf] }
  0x1c   :  { %635 = vmatpush.bf16.msra.mxu0 %v5070_v16  ;;  %v5334_v52 = vor.u32 %v6113_v51, %v5333_v50  ;;  %v6769_v53 = vld [vmem:[%s10114_s0 + $0x30] sm:$0xff]  ;;  %v6072_v55 = vld [vmem:[%s10113_s1 + $0x124] sm:$0xf0]  ;;  %v6784_v57 = vld [vmem:[%s10114_s0 + $0x38] sm:$0xff] }
  0x1d   :  { %724 = vmatpush.bf16.msra.mxu1 %v5074_v18  ;;  %813 = vmatpush.bf16.msra.mxu2 %v5078_v19  ;;  %v5166_v56 = vor.u32 %v6072_v55, %v5165_v54  ;;  %v6108_v58 = vld [vmem:[%s10113_s1 + $0x24c] sm:$0xf]  ;;  %v5335_v59 = vld [vmem:[%s10113_s1 + $0x270] sm:$0xf0]  ;;  %v5293_v61 = vld [vmem:[%s10113_s1 + $0x1f8] sm:$0xf] }
  0x1e   :  { %902 = vmatpush.bf16.msra.mxu3 %v5082_v23  ;;  %v5338_v60 = vor.u32 %v6108_v58, %v5335_v59  ;;  %v6103_v62 = vld [vmem:[%s10113_s1 + $0x21c] sm:$0xf0]  ;;  %v5125_v3 = vld [vmem:[%s10113_s1 + $0xb0] sm:$0xf]  ;;  %v6062_v4 = vld [vmem:[%s10113_s1 + $0xd4] sm:$0xf0] }
  0x1f   :  { %v5294_v63 = vor.u32 %v6103_v62, %v5293_v61  ;;  %v6805_v0 = vld [vmem:[%s10114_s0 + $0x40] sm:$0xff]  ;;  %v5126_v5 = vor.u32 %v6062_v4, %v5125_v3  ;;  %v5327_v11 = vld [vmem:[%s10113_s1 + $0x268] sm:$0xf0]  ;;  %v6098_v18 = vld [vmem:[%s10113_s1 + $0x1fc] sm:$0xf] }
  0x20   :  { %636 = vmatpush.bf16.msra.mxu0 %v5030_v30  ;;  %v6107_v10 = vld [vmem:[%s10113_s1 + $0x244] sm:$0xf]  ;;  %v6840_v14 = vld [vmem:[%s10114_s0 + $0x48] sm:$0xff]  ;;  %v6093_v26 = vld [vmem:[%s10113_s1 + $0x1cc] sm:$0xf0] }
  0x21   :  { %725 = vmatpush.bf16.msra.mxu1 %v5034_v31  ;;  %814 = vmatpush.bf16.msra.mxu2 %v5038_v32  ;;  %v5330_v12 = vor.u32 %v6107_v10, %v5327_v11  ;;  %v5295_v19 = vld [vmem:[%s10113_s1 + $0x220] sm:$0xf0]  ;;  %v5253_v25 = vld [vmem:[%s10113_s1 + $0x1a8] sm:$0xf]  ;;  %v6877_v29 = vld [vmem:[%s10114_s0 + $0x50] sm:$0xff] }
  0x22   :  { %903 = vmatpush.bf16.msra.mxu3 %v5042_v33  ;;  %v5298_v20 = vor.u32 %v6098_v18, %v5295_v19  ;;  %v5254_v27 = vor.u32 %v6093_v26, %v5253_v25  ;;  %v5085_v33 = vld [vmem:[%s10113_s1 + $0x60] sm:$0xf]  ;;  %v5287_v46 = vld [vmem:[%s10113_s1 + $0x218] sm:$0xf0]  ;;  %v6088_v55 = vld [vmem:[%s10113_s1 + $0x1ac] sm:$0xf] }
  0x23   :  { %637 = vmatmul.bf16.vlgmr.msra.gmra.mxu0 %v6691_v35  ;;  %v6914_v50 = vld [vmem:[%s10114_s0 + $0x58] sm:$0xff]  ;;  %v6083_v3 = vld [vmem:[%s10113_s1 + $0x17c] sm:$0xf0]  ;;  %v5045_v19 = vld [vmem:[%s10113_s1 + $0x10] sm:$0xf] }
  0x24   :  { %985 = vmatpush.bf16.msrb.mxu0 %v5326_v34  ;;  %726 = vmatmul.bf16.vlgmr.msra.gmra.mxu1 %v6691_v35  ;;  %v6052_v34 = vld [vmem:[%s10113_s1 + $0x84] sm:$0xf0]  ;;  %v6951_v10 = vld [vmem:[%s10114_s0 + $0x60] sm:$0xff] }
  0x25   :  { %815 = vmatmul.bf16.vlgmr.msra.gmra.mxu2 %v6691_v35  ;;  %904 = vmatmul.bf16.vlgmr.msra.gmra.mxu3 %v6691_v35  ;;  %v5086_v36 = vor.u32 %v6052_v34, %v5085_v33 }
  0x26   :  { %1163 = vmatpush.bf16.msrb.mxu2 %v5334_v52  ;;  %1252 = vmatpush.bf16.msrb.mxu3 %v5338_v60 }
  0x27   :  { %1074 = vmatpush.bf16.msrb.mxu1 %v5330_v12 }
  0x28   :  { %986 = vmatpush.bf16.msrb.mxu0 %v5286_v38 }
  0x2a   :  { %1164 = vmatpush.bf16.msrb.mxu2 %v5294_v63  ;;  %1253 = vmatpush.bf16.msrb.mxu3 %v5298_v20  ;;  %v5213_v63 = vld [vmem:[%s10113_s1 + $0x158] sm:$0xf] }
  0x2b   :  { %v5214_v4 = vor.u32 %v6083_v3, %v5213_v63  ;;  %v6042_v20 = vld [vmem:[%s10113_s1 + $0x34] sm:$0xf0]  ;;  %v6078_v63 = vld [vmem:[%s10113_s1 + $0x15c] sm:$0xf] }
  0x2c   :  { %987 = vmatpush.bf16.msrb.mxu0 %v5246_v43  ;;  %v6097_v43 = vld [vmem:[%s10113_s1 + $0x1f4] sm:$0xf]  ;;  %v5046_v25 = vor.u32 %v6042_v20, %v5045_v19  ;;  %v5215_v20 = vld [vmem:[%s10113_s1 + $0x180] sm:$0xf0] }
  0x2d   :  { %v5290_v47 = vor.u32 %v6097_v43, %v5287_v46  ;;  %v5247_v43 = vld [vmem:[%s10113_s1 + $0x1c8] sm:$0xf0] }
  0x2e   :  { %1165 = vmatpush.bf16.msrb.mxu2 %v5254_v27 }
  0x2f   :  { %1075 = vmatpush.bf16.msrb.mxu1 %v5290_v47  ;;  %v6986_v47 = vld [vmem:[%s10114_s0 + $0x68] sm:$0xff] }
  0x30   :  { %988 = vmatpush.bf16.msrb.mxu0 %v5206_v48 }
  0x32   :  { %1166 = vmatpush.bf16.msrb.mxu2 %v5214_v4 }
  0x33   :  { %642 = vmatmul.bf16.gmra.mxu0 %v6706_v39 }
  0x34   :  { %731 = vmatmul.bf16.gmra.mxu1 %v6706_v39  ;;  %989 = vmatpush.bf16.msrb.mxu0 %v5166_v56  ;;  %v5255_v56 = vld [vmem:[%s10113_s1 + $0x1d0] sm:$0xf0] }
  0x35   :  { %820 = vmatmul.bf16.gmra.mxu2 %v6706_v39  ;;  %909 = vmatmul.bf16.gmra.mxu3 %v6706_v39  ;;  %v5258_v58 = vor.u32 %v6088_v55, %v5255_v56  ;;  %v6077_v56 = vld [vmem:[%s10113_s1 + $0x154] sm:$0xf] }
  0x37   :  { %1254 = vmatpush.bf16.msrb.mxu3 %v5258_v58  ;;  %v5207_v58 = vld [vmem:[%s10113_s1 + $0x178] sm:$0xf0] }
  0x38   :  { %990 = vmatpush.bf16.msrb.mxu0 %v5126_v5  ;;  %v5210_v19 = vor.u32 %v6077_v56, %v5207_v58  ;;  %v5173_v56 = vld [vmem:[%s10113_s1 + $0x108] sm:$0xf] }
  0x3c   :  { %991 = vmatpush.bf16.msrb.mxu0 %v5086_v36  ;;  %v6087_v36 = vld [vmem:[%s10113_s1 + $0x1a4] sm:$0xf] }
  0x3d   :  { %v5250_v46 = vor.u32 %v6087_v36, %v5247_v43  ;;  %v5218_v36 = vor.u32 %v6078_v63, %v5215_v20  ;;  %v6067_v43 = vld [vmem:[%s10113_s1 + $0x104] sm:$0xf]  ;;  %v6073_v63 = vld [vmem:[%s10113_s1 + $0x12c] sm:$0xf0]  ;;  %v5175_v20 = vld [vmem:[%s10113_s1 + $0x130] sm:$0xf0] }
  0x3f   :  { %1076 = vmatpush.bf16.msrb.mxu1 %v5250_v46  ;;  %1255 = vmatpush.bf16.msrb.mxu3 %v5218_v36  ;;  %v5167_v46 = vld [vmem:[%s10113_s1 + $0x128] sm:$0xf0]  ;;  %v5174_v36 = vor.u32 %v6073_v63, %v5173_v56  ;;  %v6058_v63 = vld [vmem:[%s10113_s1 + $0xbc] sm:$0xf] }
  0x40   :  { %992 = vmatpush.bf16.msrb.mxu0 %v5046_v25  ;;  %v5170_v58 = vor.u32 %v6067_v43, %v5167_v46  ;;  %v6057_v43 = vld [vmem:[%s10113_s1 + $0xb4] sm:$0xf]  ;;  %v5127_v46 = vld [vmem:[%s10113_s1 + $0xd8] sm:$0xf0] }
  0x41   :  { %1167 = vmatpush.bf16.msrb.mxu2 %v5174_v36 }
  0x43   :  { %647 = vmatmul.bf16.gmra.mxu0 %v6715_v40  ;;  %1077 = vmatpush.bf16.msrb.mxu1 %v5210_v19  ;;  %v6068_v19 = vld [vmem:[%s10113_s1 + $0x10c] sm:$0xf] }
  0x44   :  { %736 = vmatmul.bf16.gmra.mxu1 %v6715_v40 }
  0x45   :  { %825 = vmatmul.bf16.gmra.mxu2 %v6715_v40  ;;  %914 = vmatmul.bf16.gmra.mxu3 %v6715_v40 }
  0x47   :  { %1078 = vmatpush.bf16.msrb.mxu1 %v5170_v58  ;;  %v5130_v58 = vor.u32 %v6057_v43, %v5127_v46  ;;  %v6047_v43 = vld [vmem:[%s10113_s1 + $0x64] sm:$0xf]  ;;  %v5087_v46 = vld [vmem:[%s10113_s1 + $0x88] sm:$0xf0] }
  0x4b   :  { %1079 = vmatpush.bf16.msrb.mxu1 %v5130_v58  ;;  %v7077_v58 = vld [vmem:[%s10114_s0 + $0x70] sm:$0xff] }
  0x53   :  { %652 = vmatmul.bf16.gmra.mxu0 %v6730_v44 }
  0x54   :  { %741 = vmatmul.bf16.gmra.mxu1 %v6730_v44 }
  0x55   :  { %830 = vmatmul.bf16.gmra.mxu2 %v6730_v44  ;;  %919 = vmatmul.bf16.gmra.mxu3 %v6730_v44 }
  0x63   :  { %657 = vmatmul.bf16.gmra.mxu0 %v6739_v45 }
  0x64   :  { %746 = vmatmul.bf16.gmra.mxu1 %v6739_v45 }
  0x65   :  { %835 = vmatmul.bf16.gmra.mxu2 %v6739_v45  ;;  %924 = vmatmul.bf16.gmra.mxu3 %v6739_v45 }
  0x73   :  { %662 = vmatmul.bf16.gmra.mxu0 %v6754_v49 }
  0x74   :  { %751 = vmatmul.bf16.gmra.mxu1 %v6754_v49 }
  0x75   :  { %840 = vmatmul.bf16.gmra.mxu2 %v6754_v49  ;;  %929 = vmatmul.bf16.gmra.mxu3 %v6754_v49 }
  0x83   :  { %667 = vmatmul.bf16.gmra.mxu0 %v6769_v53 }
  0x84   :  { %756 = vmatmul.bf16.gmra.mxu1 %v6769_v53 }
  0x85   :  { %845 = vmatmul.bf16.gmra.mxu2 %v6769_v53  ;;  %934 = vmatmul.bf16.gmra.mxu3 %v6769_v53 }
  0x93   :  { %672 = vmatmul.bf16.gmra.mxu0 %v6784_v57 }
  0x94   :  { %761 = vmatmul.bf16.gmra.mxu1 %v6784_v57 }
  0x95   :  { %850 = vmatmul.bf16.gmra.mxu2 %v6784_v57  ;;  %939 = vmatmul.bf16.gmra.mxu3 %v6784_v57 }
  0xa0   :  { %v6807_v1 = vpop.f32.mrf.mxu0 }
  0xa1   :  { %v6809_v2 = vpop.f32.mrf.mxu1 }
  0xa3   :  { %677 = vmatmul.bf16.gmra.mxu0 %v6805_v0 }
  0xa4   :  { %766 = vmatmul.bf16.gmra.mxu1 %v6805_v0 }
  0xa5   :  { %855 = vmatmul.bf16.gmra.mxu2 %v6805_v0  ;;  %944 = vmatmul.bf16.gmra.mxu3 %v6805_v0 }
  0xa8   :  { %v6821_v6 = vpop.f32.mrf.mxu2  ;;  %v6823_v7 = vpop.f32.mrf.mxu3 }
  0xa9   :  { %10155 = vst [vmem:[#allocation2_spill] sm:$0xff] %v6823_v7  ;;  %v6825_v8 = vpop.f32.mrf.mxu0  ;;  %v6827_v9 = vpop.f32.mrf.mxu1 }
  0xb0   :  { %v6835_v13 = vpop.f32.mrf.mxu2  ;;  %v6842_v15 = vpop.f32.mrf.mxu3 }
  0xb1   :  { %10156 = vst [vmem:[#allocation3_spill] sm:$0xff] %v6842_v15  ;;  %v6844_v16 = vpop.f32.mrf.mxu0  ;;  %v6846_v17 = vpop.f32.mrf.mxu1  ;;  %v7128_v15 = vld [vmem:[%s10114_s0 + $0x78] sm:$0xff] }
  0xb3   :  { %682 = vmatmul.bf16.gmra.mxu0 %v6840_v14 }
  0xb4   :  { %771 = vmatmul.bf16.gmra.mxu1 %v6840_v14 }
  0xb5   :  { %860 = vmatmul.bf16.gmra.mxu2 %v6840_v14  ;;  %949 = vmatmul.bf16.gmra.mxu3 %v6840_v14 }
  0xb8   :  { %v6858_v21 = vpop.f32.mrf.mxu2  ;;  %v6860_v22 = vpop.f32.mrf.mxu3 }
  0xb9   :  { %10157 = vst [vmem:[#allocation4_spill] sm:$0xff] %v6860_v22  ;;  %v6862_v23 = vpop.f32.mrf.mxu0  ;;  %v6864_v24 = vpop.f32.mrf.mxu1 }
  0xc0   :  { %v6872_v28 = vpop.f32.mrf.mxu2  ;;  %v6879_v30 = vpop.f32.mrf.mxu3 }
  0xc1   :  { %10158 = vst [vmem:[#allocation5_spill] sm:$0xff] %v6879_v30  ;;  %v6881_v31 = vpop.f32.mrf.mxu0  ;;  %v6883_v32 = vpop.f32.mrf.mxu1  ;;  %v6053_v30 = vld [vmem:[%s10113_s1 + $0x8c] sm:$0xf0] }
  0xc3   :  { %687 = vmatmul.bf16.gmra.mxu0 %v6877_v29 }
  0xc4   :  { %776 = vmatmul.bf16.gmra.mxu1 %v6877_v29 }
  0xc5   :  { %865 = vmatmul.bf16.gmra.mxu2 %v6877_v29  ;;  %954 = vmatmul.bf16.gmra.mxu3 %v6877_v29 }
  0xc8   :  { %v6895_v37 = vpop.f32.mrf.mxu2  ;;  %v6897_v38 = vpop.f32.mrf.mxu3 }
  0xc9   :  { %10159 = vst [vmem:[#allocation6_spill] sm:$0xff] %v6897_v38  ;;  %v6899_v41 = vpop.f32.mrf.mxu0  ;;  %v6901_v42 = vpop.f32.mrf.mxu1  ;;  %v5090_v38 = vor.u32 %v6047_v43, %v5087_v46  ;;  %v6037_v46 = vld [vmem:[%s10113_s1 + $0x14] sm:$0xf] }
  0xcb   :  { %1080 = vmatpush.bf16.msrb.mxu1 %v5090_v38 }
  0xd0   :  { %v6909_v48 = vpop.f32.mrf.mxu2  ;;  %v6916_v51 = vpop.f32.mrf.mxu3 }
  0xd1   :  { %10160 = vst [vmem:[#allocation7_spill] sm:$0xff] %v6909_v48  ;;  %v6918_v52 = vpop.f32.mrf.mxu0  ;;  %v6920_v54 = vpop.f32.mrf.mxu1 }
  0xd2   :  { %10161 = vst [vmem:[#allocation8_spill] sm:$0xff] %v6916_v51 }
  0xd3   :  { %10162 = vst [vmem:[#allocation9_spill] sm:$0xff] %v6918_v52  ;;  %692 = vmatmul.bf16.gmra.mxu0 %v6914_v50  ;;  %v5303_v52 = vld [vmem:[%s10113_s1 + $0x228] sm:$0xf0] }
  0xd4   :  { %10163 = vst [vmem:[#allocation10_spill] sm:$0xff] %v6920_v54  ;;  %781 = vmatmul.bf16.gmra.mxu1 %v6914_v50 }
  0xd5   :  { %870 = vmatmul.bf16.gmra.mxu2 %v6914_v50  ;;  %959 = vmatmul.bf16.gmra.mxu3 %v6914_v50 }
  0xd8   :  { %v6932_v59 = vpop.f32.mrf.mxu2  ;;  %v6934_v60 = vpop.f32.mrf.mxu3 }
  0xd9   :  { %10164 = vst [vmem:[#allocation11_spill] sm:$0xff] %v6932_v59  ;;  %v6936_v61 = vpop.f32.mrf.mxu0  ;;  %v6938_v62 = vpop.f32.mrf.mxu1 }
  0xda   :  { %10165 = vst [vmem:[#allocation12_spill] sm:$0xff] %v6934_v60 }
  0xdb   :  { %10166 = vst [vmem:[#allocation13_spill] sm:$0xff] %v6936_v61 }
  0xdc   :  { %10167 = vst [vmem:[#allocation14_spill] sm:$0xff] %v6938_v62 }
  0xe0   :  { %v6946_v5 = vpop.f32.mrf.mxu2  ;;  %v6953_v11 = vpop.f32.mrf.mxu3 }
  0xe1   :  { %10168 = vst [vmem:[#allocation15_spill] sm:$0xff] %v6946_v5  ;;  %v6955_v12 = vpop.f32.mrf.mxu0  ;;  %v6957_v18 = vpop.f32.mrf.mxu1 }
  0xe2   :  { %10169 = vst [vmem:[#allocation16_spill] sm:$0xff] %v6953_v11  ;;  %v5133_v11 = vld [vmem:[%s10113_s1 + $0xb8] sm:$0xf] }
  0xe3   :  { %10170 = vst [vmem:[#allocation17_spill] sm:$0xff] %v6955_v12  ;;  %697 = vmatmul.bf16.gmra.mxu0 %v6951_v10 }
  0xe4   :  { %10171 = vst [vmem:[#allocation18_spill] sm:$0xff] %v6957_v18  ;;  %786 = vmatmul.bf16.gmra.mxu1 %v6951_v10 }
  0xe5   :  { %875 = vmatmul.bf16.gmra.mxu2 %v6951_v10  ;;  %964 = vmatmul.bf16.gmra.mxu3 %v6951_v10 }
  0xe8   :  { %v6969_v26 = vpop.f32.mrf.mxu2  ;;  %v6971_v27 = vpop.f32.mrf.mxu3 }
  0xe9   :  { %10172 = vst [vmem:[#allocation19_spill] sm:$0xff] %v6969_v26  ;;  %v6973_v33 = vpop.f32.mrf.mxu0  ;;  %v6975_v34 = vpop.f32.mrf.mxu1 }
  0xea   :  { %10173 = vst [vmem:[#allocation20_spill] sm:$0xff] %v6971_v27 }
  0xeb   :  { %10174 = vst [vmem:[#allocation21_spill] sm:$0xff] %v6973_v33 }
  0xec   :  { %10175 = vst [vmem:[#allocation22_spill] sm:$0xff] %v6975_v34 }
  0xf0   :  { %v6988_v55 = vpop.f32.mrf.mxu2  ;;  %v6999_v3 = vpop.f32.mrf.mxu3 }
  0xf1   :  { %10176 = vst [vmem:[#allocation23_spill] sm:$0xff] %v6988_v55  ;;  %v7001_v4 = vpop.f32.mrf.mxu0  ;;  %v7006_v25 = vpop.f32.mrf.mxu1 }
  0xf2   :  { %10177 = vst [vmem:[#allocation24_spill] sm:$0xff] %v6999_v3  ;;  %v5178_v3 = vor.u32 %v6068_v19, %v5175_v20  ;;  %v5135_v19 = vld [vmem:[%s10113_s1 + $0xe0] sm:$0xf0] }
  0xf3   :  { %10178 = vst [vmem:[#allocation25_spill] sm:$0xff] %v7001_v4  ;;  %702 = vmatmul.bf16.gmra.mxu0 %v6986_v47  ;;  %v5138_v51 = vor.u32 %v6058_v63, %v5135_v19 }
  0xf4   :  { %10179 = vst [vmem:[#allocation26_spill] sm:$0xff] %v7006_v25  ;;  %791 = vmatmul.bf16.gmra.mxu1 %v6986_v47  ;;  %1256 = vmatpush.bf16.msrb.mxu3 %v5178_v3  ;;  %v6063_v3 = vld [vmem:[%s10113_s1 + $0xdc] sm:$0xf0] }
  0xf5   :  { %880 = vmatmul.bf16.gmra.mxu2 %v6986_v47  ;;  %969 = vmatmul.bf16.gmra.mxu3 %v6986_v47  ;;  %v5134_v36 = vor.u32 %v6063_v3, %v5133_v11  ;;  %v6048_v11 = vld [vmem:[%s10113_s1 + $0x6c] sm:$0xf]  ;;  %v5095_v3 = vld [vmem:[%s10113_s1 + $0x90] sm:$0xf0] }
  0xf6   :  { %v5098_v19 = vor.u32 %v6048_v11, %v5095_v3  ;;  %v6043_v11 = vld [vmem:[%s10113_s1 + $0x3c] sm:$0xf0]  ;;  %v6038_v3 = vld [vmem:[%s10113_s1 + $0x1c] sm:$0xf] }
  0xf7   :  { %1168 = vmatpush.bf16.msrb.mxu2 %v5134_v36 }
  0xf8   :  { %v7030_v27 = vpop.f32.mrf.mxu2  ;;  %v7041_v60 = vpop.f32.mrf.mxu3  ;;  %1257 = vmatpush.bf16.msrb.mxu3 %v5138_v51  ;;  %v5047_v51 = vld [vmem:[%s10113_s1 + $0x38] sm:$0xf0] }
  0xf9   :  { %10180 = vst [vmem:[#allocation27_spill] sm:$0xff] %v7030_v27  ;;  %v7043_v56 = vpop.f32.mrf.mxu0  ;;  %v7054_v20 = vpop.f32.mrf.mxu1  ;;  %v5050_v38 = vor.u32 %v6037_v46, %v5047_v51  ;;  %v5341_v46 = vld [vmem:[%s10113_s1 + $0x250] sm:$0xf]  ;;  %v6114_v51 = vld [vmem:[%s10113_s1 + $0x274] sm:$0xf0] }
  0xfa   :  { %10181 = vst [vmem:[#allocation28_spill] sm:$0xff] %v7041_v60  ;;  %v5093_v60 = vld [vmem:[%s10113_s1 + $0x68] sm:$0xf] }
  0xfb   :  { %10182 = vst [vmem:[#allocation29_spill] sm:$0xff] %v7043_v56  ;;  %v5094_v63 = vor.u32 %v6053_v30, %v5093_v60  ;;  %v5053_v30 = vld [vmem:[%s10113_s1 + $0x18] sm:$0xf]  ;;  %1081 = vmatpush.bf16.msrb.mxu1 %v5050_v38 }
  0xfc   :  { %10183 = vst [vmem:[#allocation30_spill] sm:$0xff] %v7054_v20  ;;  %1258 = vmatpush.bf16.msrb.mxu3 %v5098_v19  ;;  %v5054_v22 = vor.u32 %v6043_v11, %v5053_v30  ;;  %v5342_v30 = vor.u32 %v6114_v51, %v5341_v46 }
  0xfd   :  { %1169 = vmatpush.bf16.msrb.mxu2 %v5094_v63  ;;  %v5055_v63 = vld [vmem:[%s10113_s1 + $0x40] sm:$0xf0] }
  0xfe   :  { %1341 = vmatpush.bf16.msra.mxu0 %v5342_v30 }
 0x100   :  { %v7079_v43 = vpop.f32.mrf.mxu2  ;;  %v7090_v60 = vpop.f32.mrf.mxu3 }
 0x101   :  { %10184 = vst [vmem:[#allocation31_spill] sm:$0xff] %v7079_v43  ;;  %v7092_v36 = vpop.f32.mrf.mxu0  ;;  %v7103_v19 = vpop.f32.mrf.mxu1  ;;  %1170 = vmatpush.bf16.msrb.mxu2 %v5054_v22 }
 0x102   :  { %10185 = vst [vmem:[#allocation32_spill] sm:$0xff] %v7090_v60  ;;  %v5058_v60 = vor.u32 %v6038_v3, %v5055_v63 }
 0x103   :  { %10186 = vst [vmem:[#allocation33_spill] sm:$0xff] %v7092_v36  ;;  %707 = vmatmul.bf16.gmra.mxu0 %v7077_v58 }
 0x104   :  { %10187 = vst [vmem:[#allocation34_spill] sm:$0xff] %v7103_v19  ;;  %796 = vmatmul.bf16.gmra.mxu1 %v7077_v58  ;;  %1259 = vmatpush.bf16.msrb.mxu3 %v5058_v60 }
 0x105   :  { %885 = vmatmul.bf16.gmra.mxu2 %v7077_v58  ;;  %974 = vmatmul.bf16.gmra.mxu3 %v7077_v58 }
 0x108   :  { %v7115_v38 = vpop.f32.mrf.mxu2  ;;  %v7117_v11 = vpop.f32.mrf.mxu3 }
 0x109   :  { %10188 = vst [vmem:[#allocation35_spill] sm:$0xff] %v7115_v38  ;;  %v7119_v22 = vpop.f32.mrf.mxu0  ;;  %v7121_v3 = vpop.f32.mrf.mxu1 }
 0x10a   :  { %10189 = vst [vmem:[#allocation36_spill] sm:$0xff] %v7117_v11 }
 0x10b   :  { %10190 = vst [vmem:[#allocation37_spill] sm:$0xff] %v7119_v22 }
 0x10c   :  { %10191 = vst [vmem:[#allocation38_spill] sm:$0xff] %v7121_v3 }
 0x110   :  { %v7123_v63 = vpop.f32.mrf.mxu2  ;;  %v7130_v7 = vpop.f32.mrf.mxu3 }
 0x111   :  { %10192 = vst [vmem:[#allocation39_spill] sm:$0xff] %v7123_v63  ;;  %v7132_v60 = vpop.f32.mrf.mxu0  ;;  %v7134_v46 = vpop.f32.mrf.mxu1 }
 0x112   :  { %10193 = vst [vmem:[#allocation40_spill] sm:$0xff] %v7130_v7 }
 0x113   :  { %10194 = vst [vmem:[#allocation41_spill] sm:$0xff] %v7132_v60  ;;  %712 = vmatmul.bf16.gmra.mxu0 %v7128_v15 }
 0x114   :  { %10195 = vst [vmem:[#allocation42_spill] sm:$0xff] %v7134_v46  ;;  %801 = vmatmul.bf16.gmra.mxu1 %v7128_v15 }
 0x115   :  { %890 = vmatmul.bf16.gmra.mxu2 %v7128_v15  ;;  %979 = vmatmul.bf16.gmra.mxu3 %v7128_v15 }
 0x118   :  { %v7140_v51 = vpop.f32.mrf.mxu2  ;;  %v7142_v30 = vpop.f32.mrf.mxu3 }
 0x119   :  { %10196 = vst [vmem:[#allocation43_spill] sm:$0xff] %v7140_v51  ;;  %v7144_v11 = vpop.f32.mrf.mxu0  ;;  %v7146_v63 = vpop.f32.mrf.mxu1 }
 0x11a   :  { %10197 = vst [vmem:[#allocation44_spill] sm:$0xff] %v7142_v30  ;;  %v5301_v30 = vld [vmem:[%s10113_s1 + $0x200] sm:$0xf] }
 0x11b   :  { %10198 = vst [vmem:[#allocation45_spill] sm:$0xff] %v7144_v11 }
 0x11c   :  { %10199 = vst [vmem:[#allocation46_spill] sm:$0xff] %v7146_v63 }
 0x120   :  { %v7148_v7 = vpop.f32.mrf.mxu2  ;;  %v7150_v60 = vpop.f32.mrf.mxu3 }
 0x121   :  { %10200 = vst [vmem:[#allocation47_spill] sm:$0xff] %v7148_v7  ;;  %v7152_v46 = vpop.f32.mrf.mxu0  ;;  %v7154_v3 = vpop.f32.mrf.mxu1 }
 0x122   :  { %10201 = vst [vmem:[#allocation48_spill] sm:$0xff] %v7150_v60  ;;  %v6104_v60 = vld [vmem:[%s10113_s1 + $0x224] sm:$0xf0] }
 0x123   :  { %993 = vmatmul.bf16.vlgmr.msrb.gmra.mxu0 %v6691_v35  ;;  %v5302_v7 = vor.u32 %v6104_v60, %v5301_v30 }
 0x124   :  { %1082 = vmatmul.bf16.vlgmr.msrb.gmra.mxu1 %v6691_v35 }
 0x125   :  { %1171 = vmatmul.bf16.vlgmr.msrb.gmra.mxu2 %v6691_v35  ;;  %1260 = vmatmul.bf16.vlgmr.msrb.gmra.mxu3 %v6691_v35 }
 0x126   :  { %1342 = vmatpush.bf16.msra.mxu0 %v5302_v7 }
 0x128   :  { %v7166_v63 = vpop.f32.mrf.mxu2  ;;  %v7168_v51 = vpop.f32.mrf.mxu3 }
 0x129   :  { %10202 = vst [vmem:[#allocation49_spill] sm:$0xff] %v7168_v51  ;;  %v7170_v11 = vpop.f32.mrf.mxu0  ;;  %v7172_v38 = vpop.f32.mrf.mxu1 }
 0x130   :  { %v7174_v19 = vpop.f32.mrf.mxu2  ;;  %v7176_v35 = vpop.f32.mrf.mxu3 }
 0x131   :  { %10203 = vst [vmem:[#allocation50_spill] sm:$0xff] %v7176_v35  ;;  %v7178_v22 = vpop.f32.mrf.mxu0  ;;  %v7180_v36 = vpop.f32.mrf.mxu1 }
 0x133   :  { %998 = vmatmul.bf16.gmra.mxu0 %v6706_v39 }
 0x134   :  { %1087 = vmatmul.bf16.gmra.mxu1 %v6706_v39 }
 0x135   :  { %1176 = vmatmul.bf16.gmra.mxu2 %v6706_v39  ;;  %1265 = vmatmul.bf16.gmra.mxu3 %v6706_v39  ;;  %v5261_v39 = vld [vmem:[%s10113_s1 + $0x1b0] sm:$0xf] }
 0x138   :  { %v7186_v60 = vpop.f32.mrf.mxu2  ;;  %v7188_v7 = vpop.f32.mrf.mxu3 }
 0x139   :  { %10204 = vst [vmem:[#allocation51_spill] sm:$0xff] %v7188_v7  ;;  %v7190_v30 = vpop.f32.mrf.mxu0  ;;  %v7192_v51 = vpop.f32.mrf.mxu1 }
 0x140   :  { %v7194_v35 = vpop.f32.mrf.mxu2  ;;  %v7196_v43 = vpop.f32.mrf.mxu3 }
 0x141   :  { %10205 = vst [vmem:[#allocation52_spill] sm:$0xff] %v7196_v43  ;;  %v7198_v20 = vpop.f32.mrf.mxu0  ;;  %v7200_v27 = vpop.f32.mrf.mxu1  ;;  %v6094_v43 = vld [vmem:[%s10113_s1 + $0x1d4] sm:$0xf0] }
 0x142   :  { %v5262_v7 = vor.u32 %v6094_v43, %v5261_v39 }
 0x143   :  { %1003 = vmatmul.bf16.gmra.mxu0 %v6715_v40 }
 0x144   :  { %1092 = vmatmul.bf16.gmra.mxu1 %v6715_v40  ;;  %1343 = vmatpush.bf16.msra.mxu0 %v5262_v7 }
 0x145   :  { %1181 = vmatmul.bf16.gmra.mxu2 %v6715_v40  ;;  %1270 = vmatmul.bf16.gmra.mxu3 %v6715_v40 }
 0x148   :  { %v7212_v25 = vpop.f32.mrf.mxu2  ;;  %v7214_v56 = vpop.f32.mrf.mxu3 }
 0x149   :  { %10206 = vst [vmem:[#allocation53_spill] sm:$0xff] %v7214_v56  ;;  %v7216_v4 = vpop.f32.mrf.mxu0  ;;  %v7218_v55 = vpop.f32.mrf.mxu1 }
 0x150   :  { %v7220_v34 = vpop.f32.mrf.mxu2  ;;  %v7222_v40 = vpop.f32.mrf.mxu3 }
 0x151   :  { %10207 = vst [vmem:[#allocation54_spill] sm:$0xff] %v7220_v34  ;;  %v7224_v26 = vpop.f32.mrf.mxu0  ;;  %v7226_v18 = vpop.f32.mrf.mxu1  ;;  %v6134_v34 = vld [vmem:[%s10115_s2 + $0x98] sm:$0xf0] }
 0x152   :  { %10208 = vst [vmem:[#allocation55_spill] sm:$0xff] %v7222_v40 }
 0x153   :  { %10209 = vst [vmem:[#allocation56_spill] sm:$0xff] %v7224_v26  ;;  %1008 = vmatmul.bf16.gmra.mxu0 %v6730_v44 }
 0x154   :  { %10210 = vst [vmem:[#allocation57_spill] sm:$0xff] %v7226_v18  ;;  %1097 = vmatmul.bf16.gmra.mxu1 %v6730_v44 }
 0x155   :  { %1186 = vmatmul.bf16.gmra.mxu2 %v6730_v44  ;;  %1275 = vmatmul.bf16.gmra.mxu3 %v6730_v44  ;;  %v5221_v44 = vld [vmem:[%s10113_s1 + $0x160] sm:$0xf] }
 0x158   :  { %v7232_v43 = vpop.f32.mrf.mxu2  ;;  %v7234_v7 = vpop.f32.mrf.mxu3 }
 0x159   :  { %10211 = vst [vmem:[#allocation58_spill] sm:$0xff] %v7232_v43  ;;  %v7236_v39 = vpop.f32.mrf.mxu0  ;;  %v7238_v56 = vpop.f32.mrf.mxu1 }
 0x15a   :  { %10212 = vst [vmem:[#allocation59_spill] sm:$0xff] %v7234_v7 }
 0x15b   :  { %10213 = vst [vmem:[#allocation60_spill] sm:$0xff] %v7236_v39 }
 0x15c   :  { %10214 = vst [vmem:[#allocation61_spill] sm:$0xff] %v7238_v56 }
 0x160   :  { %v7240_v40 = vpop.f32.mrf.mxu2  ;;  %v7242_v33 = vpop.f32.mrf.mxu3 }
 0x161   :  { %10215 = vst [vmem:[#allocation62_spill] sm:$0xff] %v7240_v40  ;;  %v7244_v12 = vpop.f32.mrf.mxu0  ;;  %v7246_v5 = vpop.f32.mrf.mxu1 }
 0x162   :  { %10216 = vst [vmem:[#allocation63_spill] sm:$0xff] %v7242_v33  ;;  %v6084_v33 = vld [vmem:[%s10113_s1 + $0x184] sm:$0xf0] }
 0x163   :  { %10217 = vst [vmem:[#allocation64_spill] sm:$0xff] %v7244_v12  ;;  %1013 = vmatmul.bf16.gmra.mxu0 %v6739_v45  ;;  %v5222_v7 = vor.u32 %v6084_v33, %v5221_v44 }
 0x164   :  { %10218 = vst [vmem:[#allocation65_spill] sm:$0xff] %v7246_v5  ;;  %1102 = vmatmul.bf16.gmra.mxu1 %v6739_v45 }
 0x165   :  { %1191 = vmatmul.bf16.gmra.mxu2 %v6739_v45  ;;  %1280 = vmatmul.bf16.gmra.mxu3 %v6739_v45 }
 0x166   :  { %1344 = vmatpush.bf16.msra.mxu0 %v5222_v7 }
 0x168   :  { %v7258_v12 = vpop.f32.mrf.mxu2  ;;  %v7260_v5 = vpop.f32.mrf.mxu3 }
 0x169   :  { %10219 = vst [vmem:[#allocation66_spill] sm:$0xff] %v7258_v12  ;;  %v7262_v40 = vpop.f32.mrf.mxu0  ;;  %v7264_v62 = vpop.f32.mrf.mxu1 }
 0x16a   :  { %10220 = vst [vmem:[#allocation67_spill] sm:$0xff] %v7260_v5 }
 0x16b   :  { %10221 = vst [vmem:[#allocation68_spill] sm:$0xff] %v7262_v40  ;;  %v6137_v40 = vld [vmem:[%s10115_s2 + $0xb0] sm:$0xf0] }
 0x16c   :  { %10222 = vst [vmem:[#allocation69_spill] sm:$0xff] %v7264_v62 }
 0x170   :  { %v7266_v56 = vpop.f32.mrf.mxu2  ;;  %v7268_v45 = vpop.f32.mrf.mxu3 }
 0x171   :  { %10223 = vst [vmem:[#allocation70_spill] sm:$0xff] %v7266_v56  ;;  %v7270_v59 = vpop.f32.mrf.mxu0  ;;  %v7272_v43 = vpop.f32.mrf.mxu1 }
 0x172   :  { %10224 = vst [vmem:[#allocation71_spill] sm:$0xff] %v7268_v45 }
 0x173   :  { %10225 = vst [vmem:[#allocation72_spill] sm:$0xff] %v7270_v59  ;;  %1018 = vmatmul.bf16.gmra.mxu0 %v6754_v49 }
 0x174   :  { %10226 = vst [vmem:[#allocation73_spill] sm:$0xff] %v7272_v43  ;;  %1107 = vmatmul.bf16.gmra.mxu1 %v6754_v49 }
 0x175   :  { %1196 = vmatmul.bf16.gmra.mxu2 %v6754_v49  ;;  %1285 = vmatmul.bf16.gmra.mxu3 %v6754_v49  ;;  %v5181_v49 = vld [vmem:[%s10113_s1 + $0x110] sm:$0xf] }
 0x178   :  { %v7278_v33 = vpop.f32.mrf.mxu2  ;;  %v7280_v7 = vpop.f32.mrf.mxu3 }
 0x179   :  { %10227 = vst [vmem:[#allocation74_spill] sm:$0xff] %v7278_v33  ;;  %v7282_v44 = vpop.f32.mrf.mxu0  ;;  %v7284_v5 = vpop.f32.mrf.mxu1 }
 0x17a   :  { %10228 = vst [vmem:[#allocation75_spill] sm:$0xff] %v7280_v7 }
 0x17b   :  { %10229 = vst [vmem:[#allocation76_spill] sm:$0xff] %v7282_v44 }
 0x17c   :  { %10230 = vst [vmem:[#allocation77_spill] sm:$0xff] %v7284_v5 }
 0x180   :  { %v7286_v45 = vpop.f32.mrf.mxu2  ;;  %v7288_v59 = vpop.f32.mrf.mxu3 }
 0x181   :  { %10231 = vst [vmem:[#allocation78_spill] sm:$0xff] %v7286_v45  ;;  %v7290_v43 = vpop.f32.mrf.mxu0  ;;  %v7292_v56 = vpop.f32.mrf.mxu1 }
 0x182   :  { %10232 = vst [vmem:[#allocation79_spill] sm:$0xff] %v7288_v59  ;;  %v6074_v59 = vld [vmem:[%s10113_s1 + $0x134] sm:$0xf0] }
 0x183   :  { %10233 = vst [vmem:[#allocation80_spill] sm:$0xff] %v7290_v43  ;;  %1023 = vmatmul.bf16.gmra.mxu0 %v6769_v53  ;;  %v5182_v7 = vor.u32 %v6074_v59, %v5181_v49  ;;  %v5529_v59 = vld [vmem:[%s10115_s2 + $0x168] sm:$0xf] }
 0x184   :  { %10234 = vst [vmem:[#allocation81_spill] sm:$0xff] %v7292_v56  ;;  %1112 = vmatmul.bf16.gmra.mxu1 %v6769_v53 }
 0x185   :  { %1201 = vmatmul.bf16.gmra.mxu2 %v6769_v53  ;;  %1290 = vmatmul.bf16.gmra.mxu3 %v6769_v53 }
 0x186   :  { %1345 = vmatpush.bf16.msra.mxu0 %v5182_v7  ;;  %v6161_v7 = vld [vmem:[%s10115_s2 + $0x170] sm:$0xf0] }
 0x187   :  { %v5530_v49 = vor.u32 %v6161_v7, %v5529_v59  ;;  %v5141_v59 = vld [vmem:[%s10113_s1 + $0xc0] sm:$0xf]  ;;  %v6064_v7 = vld [vmem:[%s10113_s1 + $0xe4] sm:$0xf0] }
 0x188   :  { %v7304_v43 = vpop.f32.mrf.mxu2  ;;  %v7306_v56 = vpop.f32.mrf.mxu3 }
 0x189   :  { %10235 = vst [vmem:[#allocation82_spill] sm:$0xff] %v7304_v43  ;;  %v7308_v45 = vpop.f32.mrf.mxu0  ;;  %v7310_v5 = vpop.f32.mrf.mxu1  ;;  %2860 = vmatpush.bf16.msra.mxu3 %v5530_v49  ;;  %v5142_v49 = vor.u32 %v6064_v7, %v5141_v59 }
 0x18a   :  { %10236 = vst [vmem:[#allocation83_spill] sm:$0xff] %v7306_v56 }
 0x18b   :  { %10237 = vst [vmem:[#allocation84_spill] sm:$0xff] %v7308_v45  ;;  %1346 = vmatpush.bf16.msra.mxu0 %v5142_v49 }
 0x18c   :  { %10238 = vst [vmem:[#allocation85_spill] sm:$0xff] %v7310_v5 }
 0x190   :  { %v7312_v33 = vpop.f32.mrf.mxu2  ;;  %v7314_v53 = vpop.f32.mrf.mxu3 }
 0x191   :  { %10239 = vst [vmem:[#allocation86_spill] sm:$0xff] %v7312_v33  ;;  %v7316_v44 = vpop.f32.mrf.mxu0  ;;  %v7318_v62 = vpop.f32.mrf.mxu1 }
 0x192   :  { %10240 = vst [vmem:[#allocation87_spill] sm:$0xff] %v7314_v53 }
 0x193   :  { %10241 = vst [vmem:[#allocation88_spill] sm:$0xff] %v7316_v44  ;;  %1028 = vmatmul.bf16.gmra.mxu0 %v6784_v57 }
 0x194   :  { %10242 = vst [vmem:[#allocation89_spill] sm:$0xff] %v7318_v62  ;;  %1117 = vmatmul.bf16.gmra.mxu1 %v6784_v57 }
 0x195   :  { %1206 = vmatmul.bf16.gmra.mxu2 %v6784_v57  ;;  %1295 = vmatmul.bf16.gmra.mxu3 %v6784_v57 }
 0x198   :  { %v7330_v53 = vpop.f32.mrf.mxu2  ;;  %v7332_v56 = vpop.f32.mrf.mxu3 }
 0x199   :  { %10243 = vst [vmem:[#allocation90_spill] sm:$0xff] %v7330_v53  ;;  %v7334_v62 = vpop.f32.mrf.mxu0  ;;  %v7336_v44 = vpop.f32.mrf.mxu1 }
 0x19a   :  { %10244 = vst [vmem:[#allocation91_spill] sm:$0xff] %v7332_v56 }
 0x19b   :  { %10245 = vst [vmem:[#allocation92_spill] sm:$0xff] %v7334_v62 }
 0x19c   :  { %10246 = vst [vmem:[#allocation93_spill] sm:$0xff] %v7336_v44  ;;  %v5343_v44 = vld [vmem:[%s10113_s1 + $0x278] sm:$0xf0] }
 0x1a0   :  { %v7338_v33 = vpop.f32.mrf.mxu2  ;;  %v7340_v57 = vpop.f32.mrf.mxu3 }
 0x1a1   :  { %10247 = vst [vmem:[#allocation94_spill] sm:$0xff] %v7338_v33  ;;  %v7342_v5 = vpop.f32.mrf.mxu0  ;;  %v7344_v43 = vpop.f32.mrf.mxu1 }
 0x1a2   :  { %10248 = vst [vmem:[#allocation95_spill] sm:$0xff] %v7340_v57 }
 0x1a3   :  { %10249 = vst [vmem:[#allocation96_spill] sm:$0xff] %v7342_v5  ;;  %1033 = vmatmul.bf16.gmra.mxu0 %v6805_v0 }
 0x1a4   :  { %1122 = vmatmul.bf16.gmra.mxu1 %v6805_v0 }
 0x1a5   :  { %1211 = vmatmul.bf16.gmra.mxu2 %v6805_v0  ;;  %1300 = vmatmul.bf16.gmra.mxu3 %v6805_v0  ;;  %v6109_v0 = vld [vmem:[%s10113_s1 + $0x254] sm:$0xf] }
 0x1a6   :  { %v5346_v53 = vor.u32 %v6109_v0, %v5343_v44  ;;  %v5517_v44 = vld [vmem:[%s10115_s2 + $0x150] sm:$0xf] }
 0x1a8   :  { %v7356_v57 = vpop.f32.mrf.mxu2  ;;  %v7358_v56 = vpop.f32.mrf.mxu3  ;;  %1430 = vmatpush.bf16.msra.mxu1 %v5346_v53  ;;  %v6158_v53 = vld [vmem:[%s10115_s2 + $0x158] sm:$0xf0] }
 0x1a9   :  { %v7360_v5 = vpop.f32.mrf.mxu0  ;;  %v7362_v33 = vpop.f32.mrf.mxu1  ;;  %v5518_v49 = vor.u32 %v6158_v53, %v5517_v44 }
 0x1aa   :  { %10250 = vst [vmem:[#allocation97_spill] sm:$0xff] %v7360_v5 }
 0x1ab   :  { %2861 = vmatpush.bf16.msra.mxu3 %v5518_v49 }
 0x1b0   :  { %v7370_v59 = vpop.f32.mrf.mxu2  ;;  %v7372_v7 = vpop.f32.mrf.mxu3 }
 0x1b1   :  { %v7374_v62 = vpop.f32.mrf.mxu0  ;;  %v7376_v5 = vpop.f32.mrf.mxu1 }
 0x1b2   :  { %10251 = vst [vmem:[#allocation98_spill] sm:$0xff] %v7374_v62 }
 0x1b3   :  { %1038 = vmatmul.bf16.gmra.mxu0 %v6840_v14 }
 0x1b4   :  { %1127 = vmatmul.bf16.gmra.mxu1 %v6840_v14 }
 0x1b5   :  { %1216 = vmatmul.bf16.gmra.mxu2 %v6840_v14  ;;  %1305 = vmatmul.bf16.gmra.mxu3 %v6840_v14  ;;  %v5433_v14 = vld [vmem:[%s10115_s2 + $0xa8] sm:$0xf] }
 0x1b6   :  { %v5434_v54 = vor.u32 %v6137_v40, %v5433_v14  ;;  %v6054_v40 = vld [vmem:[%s10113_s1 + $0x94] sm:$0xf0] }
 0x1b8   :  { %v7388_v0 = vpop.f32.mrf.mxu2  ;;  %v7390_v62 = vpop.f32.mrf.mxu3  ;;  %2811 = vmatpush.bf16.msra.mxu2 %v5434_v54  ;;  %v5101_v54 = vld [vmem:[%s10113_s1 + $0x70] sm:$0xf] }
 0x1b9   :  { %v7392_v45 = vpop.f32.mrf.mxu0  ;;  %v7394_v12 = vpop.f32.mrf.mxu1  ;;  %v5102_v49 = vor.u32 %v6054_v40, %v5101_v54 }
 0x1ba   :  { %10252 = vst [vmem:[#allocation99_spill] sm:$0xff] %v7392_v45 }
 0x1bb   :  { %1347 = vmatpush.bf16.msra.mxu0 %v5102_v49 }
 0x1c0   :  { %v7402_v44 = vpop.f32.mrf.mxu2  ;;  %v7404_v53 = vpop.f32.mrf.mxu3 }
 0x1c1   :  { %v7406_v18 = vpop.f32.mrf.mxu0  ;;  %v7408_v45 = vpop.f32.mrf.mxu1 }
 0x1c2   :  { %10253 = vst [vmem:[#allocation100_spill] sm:$0xff] %v7406_v18 }
 0x1c3   :  { %1043 = vmatmul.bf16.gmra.mxu0 %v6877_v29 }
 0x1c4   :  { %1132 = vmatmul.bf16.gmra.mxu1 %v6877_v29 }
 0x1c5   :  { %1221 = vmatmul.bf16.gmra.mxu2 %v6877_v29  ;;  %1310 = vmatmul.bf16.gmra.mxu3 %v6877_v29  ;;  %v6099_v29 = vld [vmem:[%s10113_s1 + $0x204] sm:$0xf] }
 0x1c6   :  { %v5306_v26 = vor.u32 %v6099_v29, %v5303_v52  ;;  %v5505_v52 = vld [vmem:[%s10115_s2 + $0x138] sm:$0xf] }
 0x1c8   :  { %v7420_v14 = vpop.f32.mrf.mxu2  ;;  %v7422_v18 = vpop.f32.mrf.mxu3  ;;  %1431 = vmatpush.bf16.msra.mxu1 %v5306_v26  ;;  %v6155_v26 = vld [vmem:[%s10115_s2 + $0x140] sm:$0xf0] }
 0x1c9   :  { %v7424_v61 = vpop.f32.mrf.mxu0  ;;  %v7426_v39 = vpop.f32.mrf.mxu1  ;;  %v5506_v49 = vor.u32 %v6155_v26, %v5505_v52 }
 0x1ca   :  { %10254 = vst [vmem:[#allocation101_spill] sm:$0xff] %v7424_v61 }
 0x1cb   :  { %2862 = vmatpush.bf16.msra.mxu3 %v5506_v49 }
 0x1d0   :  { %v7434_v54 = vpop.f32.mrf.mxu2  ;;  %v7436_v40 = vpop.f32.mrf.mxu3 }
 0x1d1   :  { %10255 = vst [vmem:[#allocation102_spill] sm:$0xff] %v7434_v54  ;;  %v7438_v48 = vpop.f32.mrf.mxu0  ;;  %v7440_v61 = vpop.f32.mrf.mxu1 }
 0x1d2   :  { %10256 = vst [vmem:[#allocation103_spill] sm:$0xff] %v7436_v40 }
 0x1d3   :  { %10257 = vst [vmem:[#allocation104_spill] sm:$0xff] %v7438_v48  ;;  %1048 = vmatmul.bf16.gmra.mxu0 %v6914_v50 }
 0x1d4   :  { %10258 = vst [vmem:[#allocation105_spill] sm:$0xff] %v7440_v61  ;;  %1137 = vmatmul.bf16.gmra.mxu1 %v6914_v50 }
 0x1d5   :  { %1226 = vmatmul.bf16.gmra.mxu2 %v6914_v50  ;;  %1315 = vmatmul.bf16.gmra.mxu3 %v6914_v50  ;;  %v5421_v50 = vld [vmem:[%s10115_s2 + $0x90] sm:$0xf] }
 0x1d6   :  { %v5422_v54 = vor.u32 %v6134_v34, %v5421_v50  ;;  %v5061_v34 = vld [vmem:[%s10113_s1 + $0x20] sm:$0xf] }
 0x1d8   :  { %v7452_v29 = vpop.f32.mrf.mxu2  ;;  %v7454_v48 = vpop.f32.mrf.mxu3  ;;  %2812 = vmatpush.bf16.msra.mxu2 %v5422_v54  ;;  %v6044_v54 = vld [vmem:[%s10113_s1 + $0x44] sm:$0xf0] }
 0x1d9   :  { %10259 = vst [vmem:[#allocation106_spill] sm:$0xff] %v7454_v48  ;;  %v7456_v61 = vpop.f32.mrf.mxu0  ;;  %v7458_v40 = vpop.f32.mrf.mxu1  ;;  %v5062_v49 = vor.u32 %v6044_v54, %v5061_v34  ;;  %v6079_v54 = vld [vmem:[%s10113_s1 + $0x164] sm:$0xf] }
 0x1da   :  { %10260 = vst [vmem:[#allocation107_spill] sm:$0xff] %v7456_v61 }
 0x1db   :  { %10261 = vst [vmem:[#allocation108_spill] sm:$0xff] %v7458_v40  ;;  %1348 = vmatpush.bf16.msra.mxu0 %v5062_v49  ;;  %v5223_v49 = vld [vmem:[%s10113_s1 + $0x188] sm:$0xf0] }
 0x1e0   :  { %v7466_v52 = vpop.f32.mrf.mxu2  ;;  %v7468_v26 = vpop.f32.mrf.mxu3 }
 0x1e1   :  { %10262 = vst [vmem:[#allocation109_spill] sm:$0xff] %v7466_v52  ;;  %v7470_v48 = vpop.f32.mrf.mxu0  ;;  %v7472_v61 = vpop.f32.mrf.mxu1  ;;  %v5263_v52 = vld [vmem:[%s10113_s1 + $0x1d8] sm:$0xf0] }
 0x1e2   :  { %10263 = vst [vmem:[#allocation110_spill] sm:$0xff] %v7468_v26 }
 0x1e3   :  { %10264 = vst [vmem:[#allocation111_spill] sm:$0xff] %v7470_v48  ;;  %1053 = vmatmul.bf16.gmra.mxu0 %v6951_v10 }
 0x1e4   :  { %10265 = vst [vmem:[#allocation112_spill] sm:$0xff] %v7472_v61  ;;  %1142 = vmatmul.bf16.gmra.mxu1 %v6951_v10 }
 0x1e5   :  { %1231 = vmatmul.bf16.gmra.mxu2 %v6951_v10  ;;  %1320 = vmatmul.bf16.gmra.mxu3 %v6951_v10  ;;  %v6089_v10 = vld [vmem:[%s10113_s1 + $0x1b4] sm:$0xf] }
 0x1e6   :  { %v5266_v40 = vor.u32 %v6089_v10, %v5263_v52  ;;  %v5183_v52 = vld [vmem:[%s10113_s1 + $0x138] sm:$0xf0] }
 0x1e8   :  { %v7484_v50 = vpop.f32.mrf.mxu2  ;;  %v7486_v48 = vpop.f32.mrf.mxu3  ;;  %1432 = vmatpush.bf16.msra.mxu1 %v5266_v40  ;;  %v6069_v40 = vld [vmem:[%s10113_s1 + $0x114] sm:$0xf] }
 0x1e9   :  { %10266 = vst [vmem:[#allocation113_spill] sm:$0xff] %v7484_v50  ;;  %v7488_v61 = vpop.f32.mrf.mxu0  ;;  %v7490_v26 = vpop.f32.mrf.mxu1  ;;  %v5186_v10 = vor.u32 %v6069_v40, %v5183_v52 }
 0x1ea   :  { %10267 = vst [vmem:[#allocation114_spill] sm:$0xff] %v7486_v48 }
 0x1eb   :  { %10268 = vst [vmem:[#allocation115_spill] sm:$0xff] %v7488_v61 }
 0x1ec   :  { %10269 = vst [vmem:[#allocation116_spill] sm:$0xff] %v7490_v26  ;;  %v5226_v26 = vor.u32 %v6079_v54, %v5223_v49  ;;  %v6152_v54 = vld [vmem:[%s10115_s2 + $0x128] sm:$0xf0] }
 0x1ee   :  { %1433 = vmatpush.bf16.msra.mxu1 %v5226_v26  ;;  %v5493_v26 = vld [vmem:[%s10115_s2 + $0x120] sm:$0xf] }
 0x1ef   :  { %v5494_v49 = vor.u32 %v6152_v54, %v5493_v26  ;;  %v6131_v26 = vld [vmem:[%s10115_s2 + $0x80] sm:$0xf0]  ;;  %v6049_v54 = vld [vmem:[%s10113_s1 + $0x74] sm:$0xf] }
 0x1f0   :  { %v7498_v34 = vpop.f32.mrf.mxu2  ;;  %v7506_v61 = vpop.f32.mrf.mxu3 }
 0x1f1   :  { %10270 = vst [vmem:[#allocation117_spill] sm:$0xff] %v7498_v34  ;;  %v7508_v48 = vpop.f32.mrf.mxu0  ;;  %v7510_v50 = vpop.f32.mrf.mxu1  ;;  %2863 = vmatpush.bf16.msra.mxu3 %v5494_v49 }
 0x1f2   :  { %10271 = vst [vmem:[#allocation118_spill] sm:$0xff] %v7506_v61  ;;  %1434 = vmatpush.bf16.msra.mxu1 %v5186_v10  ;;  %v5409_v10 = vld [vmem:[%s10115_s2 + $0x78] sm:$0xf] }
 0x1f3   :  { %10272 = vst [vmem:[#allocation119_spill] sm:$0xff] %v7508_v48  ;;  %1058 = vmatmul.bf16.gmra.mxu0 %v6986_v47 }
 0x1f4   :  { %10273 = vst [vmem:[#allocation120_spill] sm:$0xff] %v7510_v50  ;;  %1147 = vmatmul.bf16.gmra.mxu1 %v6986_v47  ;;  %v6059_v50 = vld [vmem:[%s10113_s1 + $0xc4] sm:$0xf] }
 0x1f5   :  { %1236 = vmatmul.bf16.gmra.mxu2 %v6986_v47  ;;  %1325 = vmatmul.bf16.gmra.mxu3 %v6986_v47  ;;  %v5143_v47 = vld [vmem:[%s10113_s1 + $0xe8] sm:$0xf0] }
 0x1f6   :  { %v5146_v61 = vor.u32 %v6059_v50, %v5143_v47  ;;  %v5103_v50 = vld [vmem:[%s10113_s1 + $0x98] sm:$0xf0] }
 0x1f7   :  { %v5106_v49 = vor.u32 %v6049_v54, %v5103_v50  ;;  %v6128_v54 = vld [vmem:[%s10115_s2 + $0x68] sm:$0xf0] }
 0x1f8   :  { %v7528_v48 = vpop.f32.mrf.mxu2  ;;  %v7536_v40 = vpop.f32.mrf.mxu3  ;;  %1435 = vmatpush.bf16.msra.mxu1 %v5146_v61  ;;  %v5397_v61 = vld [vmem:[%s10115_s2 + $0x60] sm:$0xf] }
 0x1f9   :  { %10274 = vst [vmem:[#allocation121_spill] sm:$0xff] %v7528_v48  ;;  %v7538_v52 = vpop.f32.mrf.mxu0  ;;  %v7540_v34 = vpop.f32.mrf.mxu1 }
 0x1fa   :  { %10275 = vst [vmem:[#allocation122_spill] sm:$0xff] %v7536_v40  ;;  %v5410_v40 = vor.u32 %v6131_v26, %v5409_v10 }
 0x1fb   :  { %10276 = vst [vmem:[#allocation123_spill] sm:$0xff] %v7538_v52  ;;  %v6039_v52 = vld [vmem:[%s10113_s1 + $0x24] sm:$0xf] }
 0x1fc   :  { %10277 = vst [vmem:[#allocation124_spill] sm:$0xff] %v7540_v34  ;;  %2813 = vmatpush.bf16.msra.mxu2 %v5410_v40  ;;  %1436 = vmatpush.bf16.msra.mxu1 %v5106_v49  ;;  %v5063_v34 = vld [vmem:[%s10113_s1 + $0x48] sm:$0xf0]  ;;  %v5398_v49 = vor.u32 %v6128_v54, %v5397_v61  ;;  %v5373_v61 = vld [vmem:[%s10115_s2 + $0x30] sm:$0xf] }
 0x1fd   :  { %v5066_v40 = vor.u32 %v6039_v52, %v5063_v34 }
 0x200   :  { %v7554_v47 = vpop.f32.mrf.mxu2  ;;  %v7565_v10 = vpop.f32.mrf.mxu3  ;;  %1437 = vmatpush.bf16.msra.mxu1 %v5066_v40  ;;  %2814 = vmatpush.bf16.msra.mxu2 %v5398_v49  ;;  %v6122_v40 = vld [vmem:[%s10115_s2 + $0x38] sm:$0xf0] }
 0x201   :  { %10278 = vst [vmem:[#allocation125_spill] sm:$0xff] %v7554_v47  ;;  %v7567_v26 = vpop.f32.mrf.mxu0  ;;  %v7572_v50 = vpop.f32.mrf.mxu1  ;;  %v5385_v47 = vld [vmem:[%s10115_s2 + $0x48] sm:$0xf] }
 0x202   :  { %10279 = vst [vmem:[#allocation126_spill] sm:$0xff] %v7565_v10 }
 0x203   :  { %10280 = vst [vmem:[#allocation127_spill] sm:$0xff] %v7567_v26  ;;  %1063 = vmatmul.bf16.gmra.mxu0 %v7077_v58  ;;  %v6125_v26 = vld [vmem:[%s10115_s2 + $0x50] sm:$0xf0] }
 0x204   :  { %10281 = vst [vmem:[#allocation128_spill] sm:$0xff] %v7572_v50  ;;  %1152 = vmatmul.bf16.gmra.mxu1 %v7077_v58  ;;  %v5386_v34 = vor.u32 %v6125_v26, %v5385_v47  ;;  %v5374_v50 = vor.u32 %v6122_v40, %v5373_v61  ;;  %v6149_v47 = vld [vmem:[%s10115_s2 + $0x110] sm:$0xf0]  ;;  %v6119_v61 = vld [vmem:[%s10115_s2 + $0x20] sm:$0xf0] }
 0x205   :  { %1241 = vmatmul.bf16.gmra.mxu2 %v7077_v58  ;;  %1330 = vmatmul.bf16.gmra.mxu3 %v7077_v58  ;;  %v5481_v58 = vld [vmem:[%s10115_s2 + $0x108] sm:$0xf] }
 0x206   :  { %2815 = vmatpush.bf16.msra.mxu2 %v5386_v34  ;;  %v5482_v26 = vor.u32 %v6149_v47, %v5481_v58  ;;  %v5361_v34 = vld [vmem:[%s10115_s2 + $0x18] sm:$0xf]  ;;  %v5349_v47 = vld [vmem:[%s10115_s2] sm:$0xf] }
 0x207   :  { %v5362_v40 = vor.u32 %v6119_v61, %v5361_v34 }
 0x208   :  { %v7584_v52 = vpop.f32.mrf.mxu2  ;;  %v7592_v54 = vpop.f32.mrf.mxu3  ;;  %2864 = vmatpush.bf16.msra.mxu3 %v5482_v26  ;;  %v6116_v26 = vld [vmem:[%s10115_s2 + $0x8] sm:$0xf0] }
 0x209   :  { %10282 = vst [vmem:[#allocation129_spill] sm:$0xff] %v7584_v52  ;;  %v7594_v49 = vpop.f32.mrf.mxu0  ;;  %v7596_v10 = vpop.f32.mrf.mxu1 }
 0x20a   :  { %10283 = vst [vmem:[#allocation130_spill] sm:$0xff] %v7592_v54  ;;  %2816 = vmatpush.bf16.msra.mxu2 %v5374_v50  ;;  %v6146_v54 = vld [vmem:[%s10115_s2 + $0xf8] sm:$0xf0] }
 0x20b   :  { %10284 = vst [vmem:[#allocation131_spill] sm:$0xff] %v7594_v49  ;;  %v5469_v49 = vld [vmem:[%s10115_s2 + $0xf0] sm:$0xf] }
 0x20c   :  { %10285 = vst [vmem:[#allocation132_spill] sm:$0xff] %v7596_v10  ;;  %v5470_v58 = vor.u32 %v6146_v54, %v5469_v49  ;;  %v5350_v10 = vor.u32 %v6116_v26, %v5349_v47  ;;  %v5457_v54 = vld [vmem:[%s10115_s2 + $0xd8] sm:$0xf]  ;;  %v6143_v49 = vld [vmem:[%s10115_s2 + $0xe0] sm:$0xf0] }
 0x20d   :  { %v6140_v47 = vld [vmem:[%s10115_s2 + $0xc8] sm:$0xf0] }
 0x20e   :  { %2817 = vmatpush.bf16.msra.mxu2 %v5362_v40  ;;  %2865 = vmatpush.bf16.msra.mxu3 %v5470_v58  ;;  %v5458_v40 = vor.u32 %v6143_v49, %v5457_v54  ;;  %v5445_v58 = vld [vmem:[%s10115_s2 + $0xc0] sm:$0xf] }
 0x20f   :  { %v5446_v26 = vor.u32 %v6140_v47, %v5445_v58  ;;  %v1759_v47 = vld [vmem:[%s10116_s4] sm:$0x1f] }
 0x210   :  { %v7616_v50 = vpop.f32.mrf.mxu2  ;;  %v7624_v34 = vpop.f32.mrf.mxu3  ;;  %v7683_v48 = vperm.slane %v1759_v47, 1 }
 0x211   :  { %10286 = vst [vmem:[#allocation133_spill] sm:$0xff] %v7616_v50  ;;  %v7626_v61 = vpop.f32.mrf.mxu0  ;;  %v7628_v52 = vpop.f32.mrf.mxu1 }
 0x212   :  { %10287 = vst [vmem:[#allocation134_spill] sm:$0xff] %v7624_v34  ;;  %2818 = vmatpush.bf16.msra.mxu2 %v5350_v10  ;;  %2866 = vmatpush.bf16.msra.mxu3 %v5458_v40  ;;  %v6439_v40 = vld [vmem:[%s10114_s0] sm:$0xff] }
 0x213   :  { %10288 = vst [vmem:[#allocation135_spill] sm:$0xff] %v7626_v61  ;;  %1068 = vmatmul.bf16.gmra.mxu0 %v7128_v15 }
 0x214   :  { %10289 = vst [vmem:[#allocation136_spill] sm:$0xff] %v7628_v52  ;;  %1157 = vmatmul.bf16.gmra.mxu1 %v7128_v15 }
 0x215   :  { %1246 = vmatmul.bf16.gmra.mxu2 %v7128_v15  ;;  %1335 = vmatmul.bf16.gmra.mxu3 %v7128_v15 }
 0x216   :  { %2867 = vmatpush.bf16.msra.mxu3 %v5446_v26  ;;  %v1519_v26 = vmax.f32 %v6807_v1, %v7152_v46  ;;  %v1520_v1 = vmax.f32 %v6809_v2, %v7154_v3 }
 0x218   :  { %v7646_v54 = vpop.f32.mrf.mxu2  ;;  %v7648_v49 = vpop.f32.mrf.mxu3 }
 0x219   :  { %10290 = vst [vmem:[#allocation137_spill] sm:$0xff] %v7646_v54  ;;  %v7650_v10 = vpop.f32.mrf.mxu0  ;;  %v7652_v61 = vpop.f32.mrf.mxu1  ;;  %v1529_v54 = vmax.f32 %v6825_v8, %v7170_v11 }
 0x21a   :  { %10291 = vst [vmem:[#allocation138_spill] sm:$0xff] %v7648_v49 }
 0x21b   :  { %10292 = vst [vmem:[#allocation139_spill] sm:$0xff] %v7650_v10 }
 0x21c   :  { %10293 = vst [vmem:[#allocation140_spill] sm:$0xff] %v7652_v61 }
 0x220   :  { %v7654_v15 = vpop.f32.mrf.mxu2  ;;  %v7656_v52 = vpop.f32.mrf.mxu3 }
 0x221   :  { %10294 = vst [vmem:[#allocation141_spill] sm:$0xff] %v7654_v15  ;;  %v7658_v34 = vpop.f32.mrf.mxu0  ;;  %v1123_v50 = vpop.f32.mrf.mxu1  ;;  %v7669_v15 = vperm.slane %v1759_v47, 0 }
 0x222   :  { %10295 = vst [vmem:[#allocation142_spill] sm:$0xff] %v7656_v52  ;;  %v1524_v58 = vmax.f32 %v7344_v43, %v1123_v50 }
 0x223   :  { %10296 = vst [vmem:[#allocation143_spill] sm:$0xff] %v7658_v34  ;;  %1349 = vmatmul.bf16.vlgmr.msra.gmra.mxu0 %v6439_v40 }
 0x224   :  { %1438 = vmatmul.bf16.vlgmr.msra.gmra.mxu1 %v6439_v40  ;;  %v1679_v52 = vmax.f32 %v1519_v26, %v1524_v58  ;;  %v1521_v26 = vmax.f32 %v6821_v6, %v7166_v63  ;;  %v1531_v6 = vmax.f32 %v6835_v13, %v7174_v19 }
 0x226   :  { %v1771_v46 = vadd.f32 %v7669_v15, %v1679_v52 }
 0x228   :  { %v1212_v10 = vpop.f32.mrf.mxu2  ;;  %v1301_v34 = vpop.f32.mrf.mxu3 }
 0x229   :  { %v7671_v49 = vpop.f32.mrf.mxu0  ;;  %v1125_v61 = vpop.f32.mrf.mxu1  ;;  %v1525_v43 = vmax.f32 %v7356_v57, %v1212_v10  ;;  %v1526_v40 = vmax.f32 %v7358_v56, %v1301_v34  ;;  %v7686_v57 = vperm.slane %v1759_v47, 2  ;;  %v1530_v56 = vmax.f32 %v6827_v9, %v7172_v38 }
 0x22a   :  { %10297 = vst [vmem:[#allocation144_spill] sm:$0xff] %v7671_v49  ;;  %v1534_v50 = vmax.f32 %v7362_v33, %v1125_v61  ;;  %v1851_v34 = vmax.f32 %v1771_v46, 0.0 }
 0x22b   :  { %v1680_v49 = vmax.f32 %v1520_v1, %v1525_v43  ;;  %v1681_v11 = vmax.f32 %v1521_v26, %v1526_v40 }
 0x22c   :  { %v1684_v58 = vmax.f32 %v1529_v54, %v1534_v50 }
 0x22d   :  { %v1772_v10 = vadd.f32 %v7683_v48, %v1680_v49  ;;  %v1773_v9 = vadd.f32 %v7686_v57, %v1681_v11 }
 0x22e   :  { %v1776_v8 = vadd.f32 %v7669_v15, %v1684_v58 }
 0x22f   :  { %v1852_v49 = vmax.f32 %v1772_v10, 0.0  ;;  %v1853_v1 = vmax.f32 %v1773_v9, 0.0 }
 0x230   :  { %v1214_v33 = vpop.f32.mrf.mxu2  ;;  %v1856_v2 = vmax.f32 %v1776_v8, 0.0  ;;  %v1303_v52 = vpop.f32.mrf.mxu3 }
 0x231   :  { %v1535_v3 = vmax.f32 %v7370_v59, %v1214_v33  ;;  %v7691_v61 = vpop.f32.mrf.mxu0  ;;  %v1536_v63 = vmax.f32 %v7372_v7, %v1303_v52  ;;  %v1128_v54 = vpop.f32.mrf.mxu1  ;;  %v6440_v59 = vld [vmem:[%s10114_s0 + $0x8] sm:$0xff]  ;;  %v1539_v7 = vmax.f32 %v6844_v16, %v7178_v22 }
 0x232   :  { %v7697_v47 = vpack.c.bf16 %v1856_v2, %v1851_v34  ;;  %v1544_v13 = vmax.f32 %v7376_v5, %v1128_v54  ;;  %v1549_v34 = vmax.f32 %v6862_v23, %v7190_v30 }
 0x233   :  { %v1685_v43 = vmax.f32 %v1530_v56, %v1535_v3  ;;  %v1686_v38 = vmax.f32 %v1531_v6, %v1536_v63  ;;  %1354 = vmatmul.bf16.gmra.mxu0 %v6440_v59  ;;  %v1540_v3 = vmax.f32 %v6846_v17, %v7180_v36  ;;  %v1541_v63 = vmax.f32 %v6858_v21, %v7186_v60 }
 0x234   :  { %10298 = vst [vmem:[#allocation145_spill] sm:$0xff] %v7697_v47  ;;  %1443 = vmatmul.bf16.gmra.mxu1 %v6440_v59  ;;  %2819 = vmatmul.bf16.vlgmr.msra.gmra.mxu2 %v7697_v47  ;;  %v1689_v8 = vmax.f32 %v1539_v7, %v1544_v13  ;;  %v1551_v36 = vmax.f32 %v6872_v28, %v7194_v35 }
 0x235   :  { %v1777_v50 = vadd.f32 %v7683_v48, %v1685_v43  ;;  %v1778_v19 = vadd.f32 %v7686_v57, %v1686_v38 }
 0x236   :  { %v1781_v52 = vadd.f32 %v7669_v15, %v1689_v8 }
 0x237   :  { %v1857_v40 = vmax.f32 %v1777_v50, 0.0  ;;  %v1858_v46 = vmax.f32 %v1778_v19, 0.0 }
 0x238   :  { %v1217_v58 = vpop.f32.mrf.mxu2  ;;  %v1306_v11 = vpop.f32.mrf.mxu3  ;;  %v1861_v10 = vmax.f32 %v1781_v52, 0.0  ;;  %v1561_v52 = vmax.f32 %v6895_v37, %v7212_v25 }
 0x239   :  { %v7709_v26 = vpack.c.bf16 %v1857_v40, %v1852_v49  ;;  %v7711_v33 = vpop.f32.mrf.mxu0  ;;  %v7713_v5 = vpack.c.bf16 %v1858_v46, %v1853_v1  ;;  %v1130_v56 = vpop.f32.mrf.mxu1  ;;  %v1545_v2 = vmax.f32 %v7388_v0, %v1217_v58  ;;  %v1546_v22 = vmax.f32 %v7390_v62, %v1306_v11 }
 0x23a   :  { %v1554_v16 = vmax.f32 %v7394_v12, %v1130_v56  ;;  %v1550_v12 = vmax.f32 %v6864_v24, %v7192_v51 }
 0x23b   :  { %10299 = vst [vmem:[#allocation146_spill] sm:$0xff] %v7713_v5  ;;  %2868 = vmatmul.bf16.vlgmr.msra.gmra.mxu3 %v7709_v26  ;;  %v1690_v54 = vmax.f32 %v1540_v3, %v1545_v2  ;;  %v1691_v30 = vmax.f32 %v1541_v63, %v1546_v22 }
 0x23c   :  { %v1694_v6 = vmax.f32 %v1549_v34, %v1554_v16  ;;  %v1569_v34 = vmax.f32 %v6899_v41, %v7216_v4  ;;  %v1560_v16 = vmax.f32 %v6883_v32, %v7200_v27  ;;  %v10303_v27 = vld [vmem:[#allocation54_spill] sm:$0xff] }
 0x23d   :  { %v1782_v38 = vadd.f32 %v7683_v48, %v1690_v54  ;;  %v1783_v24 = vadd.f32 %v7686_v57, %v1691_v30  ;;  %v10302_v54 = vld [vmem:[#allocation102_spill] sm:$0xff] }
 0x23e   :  { %v1786_v23 = vadd.f32 %v7669_v15, %v1694_v6 }
 0x23f   :  { %v1862_v19 = vmax.f32 %v1782_v38, 0.0  ;;  %v1863_v49 = vmax.f32 %v1783_v24, 0.0  ;;  %v10307_v24 = vld [vmem:[#allocation56_spill] sm:$0xff] }
 0x240   :  { %v1219_v0 = vpop.f32.mrf.mxu2  ;;  %v1308_v43 = vpop.f32.mrf.mxu3  ;;  %v1866_v17 = vmax.f32 %v1786_v23, 0.0 }
 0x241   :  { %v1555_v62 = vmax.f32 %v7402_v44, %v1219_v0  ;;  %v7730_v9 = vpop.f32.mrf.mxu0  ;;  %v1556_v21 = vmax.f32 %v7404_v53, %v1308_v43  ;;  %v1133_v60 = vpop.f32.mrf.mxu1  ;;  %v6441_v44 = vld [vmem:[%s10114_s0 + $0x10] sm:$0xff]  ;;  %v1559_v53 = vmax.f32 %v6881_v31, %v7198_v20  ;;  %v10304_v0 = vld [vmem:[#allocation7_spill] sm:$0xff] }
 0x242   :  { %v7736_v50 = vpack.c.bf16 %v1866_v17, %v1861_v10  ;;  %v1564_v28 = vmax.f32 %v7408_v45, %v1133_v60  ;;  %v10305_v10 = vld [vmem:[#allocation103_spill] sm:$0xff]  ;;  %v10306_v60 = vld [vmem:[#allocation105_spill] sm:$0xff] }
 0x243   :  { %v1695_v59 = vmax.f32 %v1550_v12, %v1555_v62  ;;  %v1696_v51 = vmax.f32 %v1551_v36, %v1556_v21  ;;  %1359 = vmatmul.bf16.gmra.mxu0 %v6441_v44  ;;  %v1571_v12 = vmax.f32 %v10304_v0, %v10303_v27  ;;  %v6442_v36 = vld [vmem:[%s10114_s0 + $0x18] sm:$0xff]  ;;  %v10320_v0 = vld [vmem:[#allocation14_spill] sm:$0xff] }
 0x244   :  { %1448 = vmatmul.bf16.gmra.mxu1 %v6441_v44  ;;  %2824 = vmatmul.bf16.gmra.mxu2 %v7736_v50  ;;  %v1699_v46 = vmax.f32 %v1559_v53, %v1564_v28  ;;  %v10319_v27 = vld [vmem:[#allocation61_spill] sm:$0xff] }
 0x245   :  { %v1787_v13 = vadd.f32 %v7683_v48, %v1695_v59  ;;  %v1788_v35 = vadd.f32 %v7686_v57, %v1696_v51  ;;  %v10308_v51 = vld [vmem:[#allocation9_spill] sm:$0xff] }
 0x246   :  { %v1791_v22 = vadd.f32 %v7669_v15, %v1699_v46  ;;  %v1579_v44 = vmax.f32 %v10308_v51, %v10307_v24 }
 0x247   :  { %v1867_v7 = vmax.f32 %v1787_v13, 0.0  ;;  %v1868_v1 = vmax.f32 %v1788_v35, 0.0 }
 0x248   :  { %v1222_v40 = vpop.f32.mrf.mxu2  ;;  %v1311_v58 = vpop.f32.mrf.mxu3  ;;  %v1871_v63 = vmax.f32 %v1791_v22, 0.0  ;;  %v10314_v22 = vld [vmem:[#allocation106_spill] sm:$0xff] }
 0x249   :  { %v7748_v8 = vpop.f32.mrf.mxu0  ;;  %v7750_v11 = vpack.c.bf16 %v1867_v7, %v1862_v19  ;;  %v1135_v45 = vpop.f32.mrf.mxu1  ;;  %v7752_v56 = vpack.c.bf16 %v1868_v1, %v1863_v49  ;;  %v1565_v2 = vmax.f32 %v7420_v14, %v1222_v40  ;;  %v1566_v20 = vmax.f32 %v7422_v18, %v1311_v58 }
 0x24a   :  { %v1574_v31 = vmax.f32 %v7426_v39, %v1135_v45  ;;  %v1570_v39 = vmax.f32 %v6901_v42, %v7218_v55  ;;  %v10311_v45 = vld [vmem:[#allocation60_spill] sm:$0xff] }
 0x24b   :  { %10300 = vst [vmem:[#allocation147_spill] sm:$0xff] %v7750_v11  ;;  %2873 = vmatmul.bf16.gmra.mxu3 %v7750_v11  ;;  %v1700_v6 = vmax.f32 %v1560_v16, %v1565_v2  ;;  %v1701_v4 = vmax.f32 %v1561_v52, %v1566_v20  ;;  %v10313_v20 = vld [vmem:[#allocation108_spill] sm:$0xff]  ;;  %v10315_v52 = vld [vmem:[#allocation57_spill] sm:$0xff] }
 0x24c   :  { %10301 = vst [vmem:[#allocation148_spill] sm:$0xff] %v7752_v56  ;;  %v1704_v3 = vmax.f32 %v1569_v34, %v1574_v31  ;;  %v10312_v34 = vld [vmem:[#allocation13_spill] sm:$0xff] }
 0x24d   :  { %v1792_v62 = vadd.f32 %v7683_v48, %v1700_v6  ;;  %v1793_v42 = vadd.f32 %v7686_v57, %v1701_v4  ;;  %v1589_v2 = vmax.f32 %v10312_v34, %v10311_v45  ;;  %v10316_v6 = vld [vmem:[#allocation10_spill] sm:$0xff]  ;;  %v10327_v45 = vld [vmem:[#allocation17_spill] sm:$0xff] }
 0x24e   :  { %v1796_v41 = vadd.f32 %v7669_v15, %v1704_v3 }
 0x24f   :  { %v1872_v13 = vmax.f32 %v1792_v62, 0.0  ;;  %v1873_v35 = vmax.f32 %v1793_v42, 0.0 }
 0x250   :  { %v1224_v14 = vpop.f32.mrf.mxu2  ;;  %v1313_v23 = vpop.f32.mrf.mxu3  ;;  %v1876_v32 = vmax.f32 %v1796_v41, 0.0  ;;  %v1580_v41 = vmax.f32 %v10316_v6, %v10315_v52 }
 0x251   :  { %v1575_v18 = vmax.f32 %v10302_v54, %v1224_v14  ;;  %v7769_v30 = vpop.f32.mrf.mxu0  ;;  %v1576_v37 = vmax.f32 %v10305_v10, %v1313_v23  ;;  %v1138_v25 = vpop.f32.mrf.mxu1 }
 0x252   :  { %v7775_v17 = vpack.c.bf16 %v1876_v32, %v1871_v63  ;;  %v1584_v38 = vmax.f32 %v10306_v60, %v1138_v25  ;;  %v10318_v63 = vld [vmem:[#allocation11_spill] sm:$0xff]  ;;  %v10324_v60 = vld [vmem:[#allocation110_spill] sm:$0xff] }
 0x253   :  { %v1705_v43 = vmax.f32 %v1570_v39, %v1575_v18  ;;  %v1706_v55 = vmax.f32 %v1571_v12, %v1576_v37  ;;  %1364 = vmatmul.bf16.gmra.mxu0 %v6442_v36  ;;  %v10317_v39 = vld [vmem:[#allocation58_spill] sm:$0xff]  ;;  %v1590_v12 = vmax.f32 %v10320_v0, %v10319_v27  ;;  %v10321_v37 = vld [vmem:[#allocation109_spill] sm:$0xff] }
 0x254   :  { %1453 = vmatmul.bf16.gmra.mxu1 %v6442_v36  ;;  %2829 = vmatmul.bf16.gmra.mxu2 %v7775_v17  ;;  %v1709_v7 = vmax.f32 %v1579_v44, %v1584_v38  ;;  %v1581_v54 = vmax.f32 %v10318_v63, %v10317_v39  ;;  %v10323_v36 = vld [vmem:[#allocation15_spill] sm:$0xff]  ;;  %v10331_v39 = vld [vmem:[#allocation68_spill] sm:$0xff]  ;;  %v10332_v63 = vld [vmem:[#allocation21_spill] sm:$0xff] }
 0x255   :  { %v1797_v21 = vadd.f32 %v7683_v48, %v1705_v43  ;;  %v1798_v59 = vadd.f32 %v7686_v57, %v1706_v55  ;;  %v10322_v55 = vld [vmem:[#allocation62_spill] sm:$0xff] }
 0x256   :  { %v1801_v4 = vadd.f32 %v7669_v15, %v1709_v7  ;;  %v10335_v27 = vld [vmem:[#allocation114_spill] sm:$0xff] }
 0x257   :  { %v1877_v28 = vmax.f32 %v1797_v21, 0.0  ;;  %v1878_v19 = vmax.f32 %v1798_v59, 0.0  ;;  %v1591_v21 = vmax.f32 %v10323_v36, %v10322_v55  ;;  %v10339_v55 = vld [vmem:[#allocation19_spill] sm:$0xff] }
 0x258   :  { %v1227_v53 = vpop.f32.mrf.mxu2  ;;  %v1316_v49 = vpop.f32.mrf.mxu3  ;;  %v1881_v10 = vmax.f32 %v1801_v4, 0.0 }
 0x259   :  { %v7787_v40 = vpop.f32.mrf.mxu0  ;;  %v7789_v1 = vpack.c.bf16 %v1877_v28, %v1872_v13  ;;  %v1140_v46 = vpop.f32.mrf.mxu1  ;;  %v7791_v58 = vpack.c.bf16 %v1878_v19, %v1873_v35  ;;  %v1585_v31 = vmax.f32 %v7452_v29, %v1227_v53  ;;  %v1586_v3 = vmax.f32 %v10314_v22, %v1316_v49  ;;  %v6443_v35 = vld [vmem:[%s10114_s0 + $0x20] sm:$0xff]  ;;  %v10325_v19 = vld [vmem:[#allocation112_spill] sm:$0xff] }
 0x25a   :  { %v1594_v16 = vmax.f32 %v10313_v20, %v1140_v46  ;;  %v10326_v46 = vld [vmem:[#allocation64_spill] sm:$0xff] }
 0x25b   :  { %10309 = vst [vmem:[#allocation102_spill] sm:$0xff] %v7789_v1  ;;  %2878 = vmatmul.bf16.gmra.mxu3 %v7789_v1  ;;  %v1710_v18 = vmax.f32 %v1580_v41, %v1585_v31  ;;  %v1711_v32 = vmax.f32 %v1581_v54, %v1586_v3  ;;  %v1599_v34 = vmax.f32 %v10327_v45, %v10326_v46  ;;  %v10344_v46 = vld [vmem:[#allocation70_spill] sm:$0xff]  ;;  %v10345_v45 = vld [vmem:[#allocation23_spill] sm:$0xff] }
 0x25c   :  { %10310 = vst [vmem:[#allocation54_spill] sm:$0xff] %v7791_v58  ;;  %v1714_v14 = vmax.f32 %v1589_v2, %v1594_v16  ;;  %v1609_v54 = vmax.f32 %v10332_v63, %v10331_v39  ;;  %v6444_v39 = vld [vmem:[%s10114_s0 + $0x28] sm:$0xff] }
 0x25d   :  { %v1802_v24 = vadd.f32 %v7683_v48, %v1710_v18  ;;  %v1803_v13 = vadd.f32 %v7686_v57, %v1711_v32  ;;  %v10333_v18 = vld [vmem:[#allocation113_spill] sm:$0xff]  ;;  %v10334_v32 = vld [vmem:[#allocation116_spill] sm:$0xff]  ;;  %v5625_v63 = vld [vmem:[%s10115_s2 + $0x228] sm:$0xf] }
 0x25e   :  { %v1806_v23 = vadd.f32 %v7669_v15, %v1714_v14 }
 0x25f   :  { %v1882_v2 = vmax.f32 %v1802_v24, 0.0  ;;  %v1883_v20 = vmax.f32 %v1803_v13, 0.0  ;;  %v10340_v24 = vld [vmem:[#allocation69_spill] sm:$0xff] }
 0x260   :  { %v1229_v29 = vpop.f32.mrf.mxu2  ;;  %v1318_v62 = vpop.f32.mrf.mxu3  ;;  %v1886_v42 = vmax.f32 %v1806_v23, 0.0 }
 0x261   :  { %v1595_v25 = vmax.f32 %v10321_v37, %v1229_v29  ;;  %v7808_v43 = vpop.f32.mrf.mxu0  ;;  %v1596_v38 = vmax.f32 %v10324_v60, %v1318_v62  ;;  %v1143_v59 = vpop.f32.mrf.mxu1 }
 0x262   :  { %v7814_v44 = vpack.c.bf16 %v1886_v42, %v1881_v10  ;;  %v1604_v7 = vmax.f32 %v10325_v19, %v1143_v59  ;;  %v10337_v10 = vld [vmem:[#allocation18_spill] sm:$0xff] }
 0x263   :  { %v1715_v51 = vmax.f32 %v1590_v12, %v1595_v25  ;;  %v1716_v28 = vmax.f32 %v1591_v21, %v1596_v38  ;;  %1369 = vmatmul.bf16.gmra.mxu0 %v6443_v35  ;;  %v10336_v12 = vld [vmem:[#allocation65_spill] sm:$0xff]  ;;  %v10338_v42 = vld [vmem:[#allocation66_spill] sm:$0xff] }
 0x264   :  { %1458 = vmatmul.bf16.gmra.mxu1 %v6443_v35  ;;  %2834 = vmatmul.bf16.gmra.mxu2 %v7814_v44  ;;  %v1719_v3 = vmax.f32 %v1599_v34, %v1604_v7  ;;  %v1600_v37 = vmax.f32 %v10337_v10, %v10336_v12  ;;  %v1601_v36 = vmax.f32 %v10339_v55, %v10338_v42  ;;  %v10342_v35 = vld [vmem:[#allocation117_spill] sm:$0xff]  ;;  %v5613_v55 = vld [vmem:[%s10115_s2 + $0x210] sm:$0xf] }
 0x265   :  { %v1807_v53 = vadd.f32 %v7683_v48, %v1715_v51  ;;  %v1808_v49 = vadd.f32 %v7686_v57, %v1716_v28  ;;  %v10341_v51 = vld [vmem:[#allocation22_spill] sm:$0xff]  ;;  %v1611_v34 = vmax.f32 %v10345_v45, %v10344_v46  ;;  %v10349_v12 = vld [vmem:[#allocation25_spill] sm:$0xff]  ;;  %v10356_v45 = vld [vmem:[#allocation124_spill] sm:$0xff] }
 0x266   :  { %v1811_v25 = vadd.f32 %v7669_v15, %v1719_v3  ;;  %v1610_v13 = vmax.f32 %v10341_v51, %v10340_v24 }
 0x267   :  { %v1887_v31 = vmax.f32 %v1807_v53, 0.0  ;;  %v1888_v22 = vmax.f32 %v1808_v49, 0.0 }
 0x268   :  { %v1232_v16 = vpop.f32.mrf.mxu2  ;;  %v1321_v52 = vpop.f32.mrf.mxu3  ;;  %v1891_v28 = vmax.f32 %v1811_v25, 0.0 }
 0x269   :  { %v7826_v6 = vpop.f32.mrf.mxu0  ;;  %v7828_v41 = vpack.c.bf16 %v1887_v31, %v1882_v2  ;;  %v1145_v4 = vpop.f32.mrf.mxu1  ;;  %v7830_v14 = vpack.c.bf16 %v1888_v22, %v1883_v20  ;;  %v1605_v23 = vmax.f32 %v10333_v18, %v1232_v16  ;;  %v1606_v0 = vmax.f32 %v10335_v27, %v1321_v52  ;;  %v10346_v2 = vld [vmem:[#allocation118_spill] sm:$0xff] }
 0x26a   :  { %10328 = vst [vmem:[#allocation7_spill] sm:$0xff] %v7826_v6  ;;  %v1614_v29 = vmax.f32 %v10334_v32, %v1145_v4 }
 0x26b   :  { %10329 = vst [vmem:[#allocation103_spill] sm:$0xff] %v7828_v41  ;;  %2883 = vmatmul.bf16.gmra.mxu3 %v7828_v41  ;;  %v1720_v21 = vmax.f32 %v1600_v37, %v1605_v23  ;;  %v1721_v38 = vmax.f32 %v1601_v36, %v1606_v0  ;;  %v10347_v23 = vld [vmem:[#allocation120_spill] sm:$0xff]  ;;  %v6182_v36 = vld [vmem:[%s10115_s2 + $0x218] sm:$0xf0] }
 0x26c   :  { %10330 = vst [vmem:[#allocation105_spill] sm:$0xff] %v7830_v14  ;;  %v1724_v62 = vmax.f32 %v1609_v54, %v1614_v29  ;;  %v6185_v54 = vld [vmem:[%s10115_s2 + $0x230] sm:$0xf0]  ;;  %v5614_v51 = vor.u32 %v6182_v36, %v5613_v55  ;;  %v10364_v36 = vld [vmem:[#allocation125_spill] sm:$0xff] }
 0x26d   :  { %v1812_v16 = vadd.f32 %v7683_v48, %v1720_v21  ;;  %v1813_v52 = vadd.f32 %v7686_v57, %v1721_v38  ;;  %v5626_v29 = vor.u32 %v6185_v54, %v5625_v63  ;;  %v10348_v0 = vld [vmem:[#allocation72_spill] sm:$0xff] }
 0x26e   :  { %v1816_v60 = vadd.f32 %v7669_v15, %v1724_v62  ;;  %v1619_v10 = vmax.f32 %v10349_v12, %v10348_v0  ;;  %v10362_v0 = vld [vmem:[#allocation77_spill] sm:$0xff]  ;;  %v10363_v12 = vld [vmem:[#allocation30_spill] sm:$0xff] }
 0x26f   :  { %v1892_v37 = vmax.f32 %v1812_v16, 0.0  ;;  %2909 = vmatpush.bf16.msrb.mxu2 %v5626_v29  ;;  %v1893_v62 = vmax.f32 %v1813_v52, 0.0  ;;  %v6179_v16 = vld [vmem:[%s10115_s2 + $0x200] sm:$0xf0] }
 0x270   :  { %v1234_v59 = vpop.f32.mrf.mxu2  ;;  %v1323_v19 = vpop.f32.mrf.mxu3  ;;  %v1896_v49 = vmax.f32 %v1816_v60, 0.0  ;;  %v10359_v52 = vld [vmem:[#allocation26_spill] sm:$0xff] }
 0x271   :  { %v1615_v53 = vmax.f32 %v10342_v35, %v1234_v59  ;;  %v7847_v7 = vpop.f32.mrf.mxu0  ;;  %v1616_v31 = vmax.f32 %v10346_v2, %v1323_v19  ;;  %v1148_v20 = vpop.f32.mrf.mxu1  ;;  %v10353_v35 = vld [vmem:[#allocation76_spill] sm:$0xff]  ;;  %v10357_v2 = vld [vmem:[#allocation122_spill] sm:$0xff] }
 0x272   :  { %10343 = vst [vmem:[#allocation56_spill] sm:$0xff] %v7847_v7  ;;  %v7853_v3 = vpack.c.bf16 %v1896_v49, %v1891_v28  ;;  %v1624_v32 = vmax.f32 %v10347_v23, %v1148_v20  ;;  %v10355_v49 = vld [vmem:[#allocation121_spill] sm:$0xff]  ;;  %v10361_v23 = vld [vmem:[#allocation27_spill] sm:$0xff] }
 0x273   :  { %v1725_v22 = vmax.f32 %v1610_v13, %v1615_v53  ;;  %v1726_v4 = vmax.f32 %v1611_v34, %v1616_v31  ;;  %1374 = vmatmul.bf16.gmra.mxu0 %v6444_v39  ;;  %v10354_v53 = vld [vmem:[#allocation29_spill] sm:$0xff]  ;;  %2910 = vmatpush.bf16.msrb.mxu2 %v5614_v51 }
 0x274   :  { %1463 = vmatmul.bf16.gmra.mxu1 %v6444_v39  ;;  %2839 = vmatmul.bf16.gmra.mxu2 %v7853_v3  ;;  %v1729_v60 = vmax.f32 %v1619_v10, %v1624_v32  ;;  %v1629_v19 = vmax.f32 %v10354_v53, %v10353_v35  ;;  %v5601_v20 = vld [vmem:[%s10115_s2 + $0x1f8] sm:$0xf]  ;;  %v1630_v10 = vmax.f32 %v10363_v12, %v10362_v0  ;;  %v10366_v35 = vld [vmem:[#allocation78_spill] sm:$0xff]  ;;  %v10367_v53 = vld [vmem:[#allocation31_spill] sm:$0xff] }
 0x275   :  { %v1817_v18 = vadd.f32 %v7683_v48, %v1725_v22  ;;  %v1818_v27 = vadd.f32 %v7686_v57, %v1726_v4  ;;  %v10358_v22 = vld [vmem:[#allocation73_spill] sm:$0xff]  ;;  %v5602_v54 = vor.u32 %v6179_v16, %v5601_v20 }
 0x276   :  { %v1620_v4 = vmax.f32 %v10359_v52, %v10358_v22  ;;  %v1821_v39 = vadd.f32 %v7669_v15, %v1729_v60  ;;  %v6445_v22 = vld [vmem:[%s10114_s0 + $0x30] sm:$0xff]  ;;  %v5577_v52 = vld [vmem:[%s10115_s2 + $0x1c8] sm:$0xf] }
 0x277   :  { %v1897_v25 = vmax.f32 %v1817_v18, 0.0  ;;  %v1898_v21 = vmax.f32 %v1818_v27, 0.0  ;;  %v10360_v18 = vld [vmem:[#allocation74_spill] sm:$0xff]  ;;  %2911 = vmatpush.bf16.msrb.mxu2 %v5602_v54 }
 0x278   :  { %v1237_v42 = vpop.f32.mrf.mxu2  ;;  %v1326_v38 = vpop.f32.mrf.mxu3  ;;  %v1621_v32 = vmax.f32 %v10361_v23, %v10360_v18  ;;  %v1901_v55 = vmax.f32 %v1821_v39, 0.0 }
 0x279   :  { %v7877_v59 = vpop.f32.mrf.mxu0  ;;  %v7879_v24 = vpack.c.bf16 %v1897_v25, %v1892_v37  ;;  %v1150_v13 = vpop.f32.mrf.mxu1  ;;  %v7881_v28 = vpack.c.bf16 %v1898_v21, %v1893_v62  ;;  %v1625_v46 = vmax.f32 %v10355_v49, %v1237_v42  ;;  %v1626_v31 = vmax.f32 %v10357_v2, %v1326_v38  ;;  %v5589_v62 = vld [vmem:[%s10115_s2 + $0x1e0] sm:$0xf]  ;;  %v6176_v42 = vld [vmem:[%s10115_s2 + $0x1e8] sm:$0xf0] }
 0x27a   :  { %10350 = vst [vmem:[#allocation9_spill] sm:$0xff] %v7877_v59  ;;  %v1634_v34 = vmax.f32 %v10356_v45, %v1150_v13  ;;  %v5590_v13 = vor.u32 %v6176_v42, %v5589_v62  ;;  %v10368_v49 = vld [vmem:[#allocation126_spill] sm:$0xff]  ;;  %v6170_v62 = vld [vmem:[%s10115_s2 + $0x1b8] sm:$0xf0] }
 0x27b   :  { %10351 = vst [vmem:[#allocation60_spill] sm:$0xff] %v7879_v24  ;;  %2888 = vmatmul.bf16.gmra.mxu3 %v7879_v24  ;;  %v1730_v29 = vmax.f32 %v1620_v4, %v1625_v46  ;;  %v1731_v37 = vmax.f32 %v1621_v32, %v1626_v31  ;;  %v6173_v4 = vld [vmem:[%s10115_s2 + $0x1d0] sm:$0xf0] }
 0x27c   :  { %10352 = vst [vmem:[#allocation13_spill] sm:$0xff] %v7881_v28  ;;  %v1734_v63 = vmax.f32 %v1629_v19, %v1634_v34  ;;  %v1631_v19 = vmax.f32 %v10367_v53, %v10366_v35  ;;  %2912 = vmatpush.bf16.msrb.mxu2 %v5590_v13  ;;  %v5578_v18 = vor.u32 %v6173_v4, %v5577_v52  ;;  %v10371_v32 = vld [vmem:[#allocation80_spill] sm:$0xff] }
 0x27d   :  { %v1822_v34 = vadd.f32 %v7683_v48, %v1730_v29  ;;  %v1823_v20 = vadd.f32 %v7686_v57, %v1731_v37  ;;  %v10372_v29 = vld [vmem:[#allocation33_spill] sm:$0xff]  ;;  %v10376_v53 = vld [vmem:[#allocation84_spill] sm:$0xff] }
 0x27e   :  { %v1826_v27 = vadd.f32 %v7669_v15, %v1734_v63  ;;  %v10370_v63 = vld [vmem:[#allocation128_spill] sm:$0xff] }
 0x27f   :  { %v1902_v0 = vmax.f32 %v1822_v34, 0.0  ;;  %v10379_v34 = vld [vmem:[#allocation132_spill] sm:$0xff] }
 0x280   :  { %v1239_v25 = vpop.f32.mrf.mxu2  ;;  %v1328_v60 = vpop.f32.mrf.mxu3  ;;  %v1906_v51 = vmax.f32 %v1826_v27, 0.0  ;;  %v1639_v27 = vmax.f32 %v10372_v29, %v10371_v32  ;;  %2913 = vmatpush.bf16.msrb.mxu2 %v5578_v18  ;;  %v10383_v32 = vld [vmem:[#allocation82_spill] sm:$0xff]  ;;  %v10384_v29 = vld [vmem:[#allocation35_spill] sm:$0xff] }
 0x281   :  { %v1635_v21 = vmax.f32 %v10364_v36, %v1239_v25  ;;  %v7910_v38 = vpop.f32.mrf.mxu0  ;;  %v1636_v46 = vmax.f32 %v10368_v49, %v1328_v60  ;;  %v1153_v45 = vpop.f32.mrf.mxu1  ;;  %v5565_v25 = vld [vmem:[%s10115_s2 + $0x1b0] sm:$0xf] }
 0x282   :  { %10365 = vst [vmem:[#allocation108_spill] sm:$0xff] %v7910_v38  ;;  %v7916_v31 = vpack.c.bf16 %v1906_v51, %v1901_v55  ;;  %v1644_v54 = vmax.f32 %v10370_v63, %v1153_v45  ;;  %v5566_v51 = vor.u32 %v6170_v62, %v5565_v25  ;;  %v10382_v63 = vld [vmem:[#allocation34_spill] sm:$0xff] }
 0x283   :  { %v1735_v2 = vmax.f32 %v1630_v10, %v1635_v21  ;;  %v1736_v16 = vmax.f32 %v1631_v19, %v1636_v46  ;;  %1379 = vmatmul.bf16.gmra.mxu0 %v6445_v22  ;;  %v1903_v10 = vmax.f32 %v1823_v20, 0.0  ;;  %v10377_v19 = vld [vmem:[#allocation37_spill] sm:$0xff] }
 0x284   :  { %10369 = vst [vmem:[#allocation106_spill] sm:$0xff] %v7916_v31  ;;  %1468 = vmatmul.bf16.gmra.mxu1 %v6445_v22  ;;  %2844 = vmatmul.bf16.gmra.mxu2 %v7916_v31  ;;  %v1739_v55 = vmax.f32 %v1639_v27, %v1644_v54  ;;  %v1649_v49 = vmax.f32 %v10377_v19, %v10376_v53  ;;  %v10378_v46 = vld [vmem:[#allocation129_spill] sm:$0xff]  ;;  %v10380_v22 = vld [vmem:[#allocation130_spill] sm:$0xff] }
 0x285   :  { %v1827_v39 = vadd.f32 %v7683_v48, %v1735_v2  ;;  %v1828_v23 = vadd.f32 %v7686_v57, %v1736_v16  ;;  %2914 = vmatpush.bf16.msrb.mxu2 %v5566_v51  ;;  %v5553_v20 = vld [vmem:[%s10115_s2 + $0x198] sm:$0xf]  ;;  %v6167_v16 = vld [vmem:[%s10115_s2 + $0x1a0] sm:$0xf0]  ;;  %v1641_v27 = vmax.f32 %v10384_v29, %v10383_v32  ;;  %v10393_v29 = vld [vmem:[#allocation136_spill] sm:$0xff] }
 0x286   :  { %v5554_v4 = vor.u32 %v6167_v16, %v5553_v20  ;;  %v1831_v18 = vadd.f32 %v7669_v15, %v1739_v55  ;;  %v6164_v55 = vld [vmem:[%s10115_s2 + $0x188] sm:$0xf0]  ;;  %v10391_v16 = vld [vmem:[#allocation134_spill] sm:$0xff] }
 0x287   :  { %v1907_v12 = vmax.f32 %v1827_v39, 0.0  ;;  %v1908_v42 = vmax.f32 %v1828_v23, 0.0  ;;  %v10381_v39 = vld [vmem:[#allocation81_spill] sm:$0xff] }
 0x288   :  { %v1242_v37 = vpop.f32.mrf.mxu2  ;;  %v1331_v36 = vpop.f32.mrf.mxu3  ;;  %v1640_v54 = vmax.f32 %v10382_v63, %v10381_v39  ;;  %v1911_v51 = vmax.f32 %v1831_v18, 0.0 }
 0x289   :  { %v7940_v21 = vpop.f32.mrf.mxu0  ;;  %v7942_v60 = vpack.c.bf16 %v1907_v12, %v1902_v0  ;;  %v1155_v13 = vpop.f32.mrf.mxu1  ;;  %v7944_v35 = vpack.c.bf16 %v1908_v42, %v1903_v10  ;;  %v1645_v45 = vmax.f32 %v10378_v46, %v1242_v37  ;;  %v1646_v52 = vmax.f32 %v10380_v22, %v1331_v36  ;;  %2915 = vmatpush.bf16.msrb.mxu2 %v5554_v4  ;;  %v10385_v10 = vld [vmem:[#allocation85_spill] sm:$0xff]  ;;  %v10386_v37 = vld [vmem:[#allocation38_spill] sm:$0xff] }
 0x28a   :  { %10373 = vst [vmem:[#allocation57_spill] sm:$0xff] %v7940_v21  ;;  %v1654_v2 = vmax.f32 %v10379_v34, %v1155_v13  ;;  %v1650_v25 = vmax.f32 %v10386_v37, %v10385_v10  ;;  %v5541_v36 = vld [vmem:[%s10115_s2 + $0x180] sm:$0xf]  ;;  %v10387_v13 = vld [vmem:[#allocation133_spill] sm:$0xff] }
 0x28b   :  { %10374 = vst [vmem:[#allocation10_spill] sm:$0xff] %v7942_v60  ;;  %2893 = vmatmul.bf16.gmra.mxu3 %v7942_v60  ;;  %v1740_v0 = vmax.f32 %v1640_v54, %v1645_v45  ;;  %v1741_v62 = vmax.f32 %v1641_v27, %v1646_v52  ;;  %v5542_v45 = vor.u32 %v6164_v55, %v5541_v36  ;;  %v10389_v34 = vld [vmem:[#allocation86_spill] sm:$0xff] }
 0x28c   :  { %10375 = vst [vmem:[#allocation58_spill] sm:$0xff] %v7944_v35  ;;  %v1744_v23 = vmax.f32 %v1649_v49, %v1654_v2  ;;  %v10390_v2 = vld [vmem:[#allocation39_spill] sm:$0xff] }
 0x28d   :  { %v1651_v20 = vmax.f32 %v10390_v2, %v10389_v34  ;;  %v1832_v4 = vadd.f32 %v7683_v48, %v1740_v0  ;;  %2916 = vmatpush.bf16.msrb.mxu2 %v5542_v45  ;;  %v1833_v54 = vadd.f32 %v7686_v57, %v1741_v62  ;;  %v5721_v0 = vld [vmem:[%s10115_s2 + $0x2e8] sm:$0xf]  ;;  %v10395_v62 = vld [vmem:[#allocation41_spill] sm:$0xff] }
 0x28e   :  { %v1836_v12 = vadd.f32 %v7669_v15, %v1744_v23  ;;  %v6446_v23 = vld [vmem:[%s10114_s0 + $0x38] sm:$0xff] }
 0x28f   :  { %v1912_v36 = vmax.f32 %v1832_v4, 0.0  ;;  %v10402_v4 = vld [vmem:[#allocation140_spill] sm:$0xff] }
 0x290   :  { %v1244_v42 = vpop.f32.mrf.mxu2  ;;  %v1333_v19 = vpop.f32.mrf.mxu3  ;;  %v1916_v46 = vmax.f32 %v1836_v12, 0.0  ;;  %v6209_v12 = vld [vmem:[%s10115_s2 + $0x2f0] sm:$0xf0] }
 0x291   :  { %v1655_v53 = vmax.f32 %v10387_v13, %v1244_v42  ;;  %v7973_v49 = vpop.f32.mrf.mxu0  ;;  %v1656_v22 = vmax.f32 %v10391_v16, %v1333_v19  ;;  %v1158_v52 = vpop.f32.mrf.mxu1  ;;  %v5722_v37 = vor.u32 %v6209_v12, %v5721_v0  ;;  %v10399_v16 = vld [vmem:[#allocation92_spill] sm:$0xff] }
 0x292   :  { %10388 = vst [vmem:[#allocation11_spill] sm:$0xff] %v7973_v49  ;;  %v7979_v63 = vpack.c.bf16 %v1916_v46, %v1911_v51  ;;  %v1664_v27 = vmax.f32 %v10393_v29, %v1158_v52  ;;  %v1913_v51 = vmax.f32 %v1833_v54, 0.0  ;;  %v10403_v54 = vld [vmem:[#allocation138_spill] sm:$0xff]  ;;  %v10404_v29 = vld [vmem:[#allocation89_spill] sm:$0xff] }
 0x293   :  { %v1745_v39 = vmax.f32 %v1650_v25, %v1655_v53  ;;  %v1746_v18 = vmax.f32 %v1651_v20, %v1656_v22  ;;  %1384 = vmatmul.bf16.gmra.mxu0 %v6446_v23  ;;  %v10394_v25 = vld [vmem:[#allocation88_spill] sm:$0xff]  ;;  %2958 = vmatpush.bf16.msrb.mxu3 %v5722_v37  ;;  %v10400_v22 = vld [vmem:[#allocation45_spill] sm:$0xff]  ;;  %v10406_v37 = vld [vmem:[#allocation90_spill] sm:$0xff] }
 0x294   :  { %10392 = vst [vmem:[#allocation61_spill] sm:$0xff] %v7979_v63  ;;  %1473 = vmatmul.bf16.gmra.mxu1 %v6446_v23  ;;  %2849 = vmatmul.bf16.gmra.mxu2 %v7979_v63  ;;  %v1659_v42 = vmax.f32 %v10395_v62, %v10394_v25  ;;  %v1669_v52 = vmax.f32 %v10400_v22, %v10399_v16  ;;  %v10407_v25 = vld [vmem:[#allocation43_spill] sm:$0xff]  ;;  %v10410_v22 = vld [vmem:[#allocation141_spill] sm:$0xff] }
 0x295   :  { %v1837_v32 = vadd.f32 %v7683_v48, %v1745_v39  ;;  %v1838_v10 = vadd.f32 %v7686_v57, %v1746_v18  ;;  %v10401_v39 = vld [vmem:[#allocation137_spill] sm:$0xff]  ;;  %v1661_v62 = vmax.f32 %v10407_v25, %v10406_v37  ;;  %v6447_v37 = vld [vmem:[%s10114_s0 + $0x40] sm:$0xff] }
 0x296   :  { %v1749_v19 = vmax.f32 %v1659_v42, %v1664_v27  ;;  %v10405_v27 = vld [vmem:[#allocation42_spill] sm:$0xff] }
 0x297   :  { %v1917_v55 = vmax.f32 %v1837_v32, 0.0  ;;  %v1918_v53 = vmax.f32 %v1838_v10, 0.0  ;;  %v1660_v0 = vmax.f32 %v10405_v27, %v10404_v29  ;;  %v10413_v29 = vld [vmem:[#allocation142_spill] sm:$0xff] }
 0x298   :  { %v1247_v13 = vpop.f32.mrf.mxu2  ;;  %v1336_v46 = vpop.f32.mrf.mxu3  ;;  %v1841_v12 = vadd.f32 %v7669_v15, %v1749_v19  ;;  %v10411_v19 = vld [vmem:[#allocation94_spill] sm:$0xff] }
 0x299   :  { %v7997_v45 = vpop.f32.mrf.mxu0  ;;  %v7999_v34 = vpack.c.bf16 %v1917_v55, %v1912_v36  ;;  %v1160_v2 = vpop.f32.mrf.mxu1  ;;  %v8001_v20 = vpack.c.bf16 %v1918_v53, %v1913_v51  ;;  %v1665_v18 = vmax.f32 %v10401_v39, %v1247_v13  ;;  %v1666_v32 = vmax.f32 %v10403_v54, %v1336_v46  ;;  %v10408_v13 = vld [vmem:[#allocation93_spill] sm:$0xff]  ;;  %v10409_v53 = vld [vmem:[#allocation46_spill] sm:$0xff] }
 0x29a   :  { %10396 = vst [vmem:[#allocation14_spill] sm:$0xff] %v7997_v45  ;;  %v1674_v23 = vmax.f32 %v10402_v4, %v1160_v2  ;;  %v1670_v2 = vmax.f32 %v10409_v53, %v10408_v13  ;;  %v1921_v16 = vmax.f32 %v1841_v12, 0.0 }
 0x29b   :  { %10397 = vst [vmem:[#allocation109_spill] sm:$0xff] %v7999_v34  ;;  %2898 = vmatmul.bf16.gmra.mxu3 %v7999_v34  ;;  %v1750_v42 = vmax.f32 %v1660_v0, %v1665_v18  ;;  %v1751_v55 = vmax.f32 %v1661_v62, %v1666_v32  ;;  %v5709_v62 = vld [vmem:[%s10115_s2 + $0x2d0] sm:$0xf] }
 0x29c   :  { %10398 = vst [vmem:[#allocation62_spill] sm:$0xff] %v8001_v20  ;;  %v1754_v10 = vmax.f32 %v1669_v52, %v1674_v23  ;;  %v10412_v52 = vld [vmem:[#allocation47_spill] sm:$0xff] }
 0x29d   :  { %v1671_v23 = vmax.f32 %v10412_v52, %v10411_v19  ;;  %v1843_v12 = vadd.f32 %v7686_v57, %v1751_v55  ;;  %v5697_v19 = vld [vmem:[%s10115_s2 + $0x2b8] sm:$0xf]  ;;  %v6203_v52 = vld [vmem:[%s10115_s2 + $0x2c0] sm:$0xf0] }
 0x29e   :  { %v1846_v36 = vadd.f32 %v7669_v15, %v1754_v10  ;;  %v1842_v15 = vadd.f32 %v7683_v48, %v1750_v42  ;;  %v6206_v42 = vld [vmem:[%s10115_s2 + $0x2d8] sm:$0xf0] }
 0x29f   :  { %v5710_v55 = vor.u32 %v6206_v42, %v5709_v62  ;;  %v1923_v53 = vmax.f32 %v1843_v12, 0.0 }
 0x2a0   :  { %v1249_v51 = vpop.f32.mrf.mxu2  ;;  %v1338_v39 = vpop.f32.mrf.mxu3  ;;  %v1926_v54 = vmax.f32 %v1846_v36, 0.0 }
 0x2a1   :  { %v1675_v46 = vmax.f32 %v10410_v22, %v1249_v51  ;;  %v8018_v4 = vpop.f32.mrf.mxu0  ;;  %v1676_v27 = vmax.f32 %v10413_v29, %v1338_v39  ;;  %v8023_v18 = vpop.f32.mrf.mxu1  ;;  %v1922_v51 = vmax.f32 %v1842_v15, 0.0  ;;  %2959 = vmatpush.bf16.msrb.mxu3 %v5710_v55  ;;  %v5698_v29 = vor.u32 %v6203_v52, %v5697_v19  ;;  %v6136_v55 = vld [vmem:[%s10115_s2 + $0xac] sm:$0xf]  ;;  %v6449_v19 = vld [vmem:[%s10114_s0 + $0x50] sm:$0xff]  ;;  %v5685_v52 = vld [vmem:[%s10115_s2 + $0x2a0] sm:$0xf] }
 0x2a2   :  { %v8026_v0 = vpack.c.bf16 %v1926_v54, %v1921_v16 }
 0x2a3   :  { %v1755_v32 = vmax.f32 %v1670_v2, %v1675_v46  ;;  %v1756_v10 = vmax.f32 %v1671_v23, %v1676_v27  ;;  %1389 = vmatmul.bf16.gmra.mxu0 %v6447_v37  ;;  %v2163_v23 = vld [vmem:[%s10116_s4 + $0x5] sm:$0x7] }
 0x2a4   :  { %10414 = vst [vmem:[#allocation15_spill] sm:$0xff] %v8026_v0  ;;  %1478 = vmatmul.bf16.gmra.mxu1 %v6447_v37  ;;  %2854 = vmatmul.bf16.gmra.mxu2 %v8026_v0  ;;  %v8067_v15 = vperm.slane %v2163_v23, 0  ;;  %v6233_v37 = vld [vmem:[%s10115_s2 + $0x3b0] sm:$0xf0]  ;;  %v6200_v23 = vld [vmem:[%s10115_s2 + $0x2a8] sm:$0xf0] }
 0x2a5   :  { %v1847_v25 = vadd.f32 %v7683_v48, %v1755_v32  ;;  %v1848_v36 = vadd.f32 %v7686_v57, %v1756_v10  ;;  %v6448_v57 = vld [vmem:[%s10114_s0 + $0x48] sm:$0xff]  ;;  %2960 = vmatpush.bf16.msrb.mxu3 %v5698_v29 }
 0x2a6   :  { %v5817_v10 = vld [vmem:[%s10115_s2 + $0x3a8] sm:$0xf] }
 0x2a7   :  { %v1927_v13 = vmax.f32 %v1847_v25, 0.0  ;;  %v1928_v2 = vmax.f32 %v1848_v36, 0.0  ;;  %v5818_v25 = vor.u32 %v6233_v37, %v5817_v10 }
 0x2a9   :  { %v8041_v48 = vpop.f32.mrf.mxu0  ;;  %v8043_v16 = vpack.c.bf16 %v1927_v13, %v1922_v51  ;;  %v8045_v22 = vpop.f32.mrf.mxu1  ;;  %v8047_v46 = vpack.c.bf16 %v1928_v2, %v1923_v53  ;;  %3007 = vmatpush.bf16.msrb.mxu0 %v5818_v25  ;;  %v5435_v51 = vld [vmem:[%s10115_s2 + $0xb4] sm:$0xf0] }
 0x2aa   :  { %v5438_v53 = vor.u32 %v6136_v55, %v5435_v51 }
 0x2ab   :  { %10415 = vst [vmem:[#allocation110_spill] sm:$0xff] %v8043_v16  ;;  %2903 = vmatmul.bf16.gmra.mxu3 %v8043_v16 }
 0x2ac   :  { %10416 = vst [vmem:[#allocation112_spill] sm:$0xff] %v8047_v46  ;;  %3056 = vmatpush.bf16.msrb.mxu1 %v5438_v53 }
 0x2b1   :  { %v8050_v39 = vpop.f32.mrf.mxu0  ;;  %v8052_v54 = vpop.f32.mrf.mxu1 }
 0x2b3   :  { %1394 = vmatmul.bf16.gmra.mxu0 %v6448_v57 }
 0x2b4   :  { %1483 = vmatmul.bf16.gmra.mxu1 %v6448_v57  ;;  %2917 = vmatmul.bf16.vlgmr.msrb.gmra.mxu2 %v7713_v5 }
 0x2b7   :  { %v2820_v27 = vpop.f32.mrf.mxu2 }
 0x2b8   :  { %v2821_v62 = vadd.f32 %v2820_v27, %v8067_v15  ;;  %v5686_v27 = vor.u32 %v6200_v23, %v5685_v52  ;;  %v6450_v52 = vld [vmem:[%s10114_s0 + $0x58] sm:$0xff]  ;;  %v5673_v23 = vld [vmem:[%s10115_s2 + $0x288] sm:$0xf] }
 0x2b9   :  { %v8069_v32 = vpop.f32.mrf.mxu0  ;;  %v8071_v12 = vpop.f32.mrf.mxu1 }
 0x2ba   :  { %2961 = vmatpush.bf16.msrb.mxu3 %v5686_v27  ;;  %v6197_v27 = vld [vmem:[%s10115_s2 + $0x290] sm:$0xf0] }
 0x2be   :  { %v2869_v42 = vpop.f32.mrf.mxu3 }
 0x2bf   :  { %v8080_v36 = vadd.f32 %v2869_v42, %v2821_v62  ;;  %v8088_v13 = vpop.f32.mrf.mxu2 }
 0x2c1   :  { %v8090_v2 = vpop.f32.mrf.mxu0  ;;  %v8092_v57 = vpop.f32.mrf.mxu1 }
 0x2c3   :  { %1399 = vmatmul.bf16.gmra.mxu0 %v6449_v19 }
 0x2c4   :  { %1488 = vmatmul.bf16.gmra.mxu1 %v6449_v19  ;;  %2922 = vmatmul.bf16.gmra.mxu2 %v7752_v56 }
 0x2c6   :  { %v8104_v29 = vpop.f32.mrf.mxu3 }
 0x2c7   :  { %v2825_v10 = vpop.f32.mrf.mxu2 }
 0x2c8   :  { %v2826_v62 = vadd.f32 %v2825_v10, %v8067_v15 }
 0x2c9   :  { %v8106_v37 = vpop.f32.mrf.mxu0  ;;  %v8108_v25 = vpop.f32.mrf.mxu1 }
 0x2ce   :  { %v2874_v42 = vpop.f32.mrf.mxu3 }
 0x2cf   :  { %v8111_v55 = vadd.f32 %v2874_v42, %v2826_v62  ;;  %v8113_v51 = vpop.f32.mrf.mxu2  ;;  %v5674_v62 = vor.u32 %v6197_v27, %v5673_v23  ;;  %v6133_v27 = vld [vmem:[%s10115_s2 + $0x94] sm:$0xf] }
 0x2d1   :  { %v8115_v53 = vpop.f32.mrf.mxu0  ;;  %v8117_v19 = vpop.f32.mrf.mxu1  ;;  %2962 = vmatpush.bf16.msrb.mxu3 %v5674_v62  ;;  %v5423_v62 = vld [vmem:[%s10115_s2 + $0x9c] sm:$0xf0] }
 0x2d2   :  { %v5426_v0 = vor.u32 %v6133_v27, %v5423_v62 }
 0x2d3   :  { %1404 = vmatmul.bf16.gmra.mxu0 %v6450_v52 }
 0x2d4   :  { %1493 = vmatmul.bf16.gmra.mxu1 %v6450_v52  ;;  %2927 = vmatmul.bf16.gmra.mxu2 %v7791_v58  ;;  %v5805_v52 = vld [vmem:[%s10115_s2 + $0x390] sm:$0xf]  ;;  %v6230_v58 = vld [vmem:[%s10115_s2 + $0x398] sm:$0xf0] }
 0x2d5   :  { %v5806_v16 = vor.u32 %v6230_v58, %v5805_v52  ;;  %3057 = vmatpush.bf16.msrb.mxu1 %v5426_v0 }
 0x2d6   :  { %v8129_v10 = vpop.f32.mrf.mxu3 }
 0x2d7   :  { %v2830_v42 = vpop.f32.mrf.mxu2  ;;  %3008 = vmatpush.bf16.msrb.mxu0 %v5806_v16  ;;  %v6194_v16 = vld [vmem:[%s10115_s2 + $0x278] sm:$0xf0] }
 0x2d8   :  { %v2831_v45 = vadd.f32 %v2830_v42, %v8067_v15 }
 0x2d9   :  { %v8131_v56 = vpop.f32.mrf.mxu0  ;;  %v8133_v5 = vpop.f32.mrf.mxu1 }
 0x2de   :  { %v2879_v49 = vpop.f32.mrf.mxu3 }
 0x2df   :  { %v8142_v23 = vadd.f32 %v2879_v49, %v2831_v45  ;;  %v8150_v34 = vpop.f32.mrf.mxu2  ;;  %v6451_v49 = vld [vmem:[%s10114_s0 + $0x60] sm:$0xff]  ;;  %v5661_v45 = vld [vmem:[%s10115_s2 + $0x270] sm:$0xf] }
 0x2e0   :  { %v5662_v52 = vor.u32 %v6194_v16, %v5661_v45  ;;  %v6127_v16 = vld [vmem:[%s10115_s2 + $0x64] sm:$0xf] }
 0x2e1   :  { %v8152_v21 = vpop.f32.mrf.mxu0  ;;  %v8154_v58 = vpop.f32.mrf.mxu1 }
 0x2e2   :  { %2963 = vmatpush.bf16.msrb.mxu3 %v5662_v52  ;;  %v5399_v52 = vld [vmem:[%s10115_s2 + $0x6c] sm:$0xf0] }
 0x2e3   :  { %1409 = vmatmul.bf16.gmra.mxu0 %v6451_v49  ;;  %v5402_v24 = vor.u32 %v6127_v16, %v5399_v52  ;;  %v5531_v16 = vld [vmem:[%s10115_s2 + $0x174] sm:$0xf0] }
 0x2e4   :  { %1498 = vmatmul.bf16.gmra.mxu1 %v6451_v49  ;;  %2932 = vmatmul.bf16.gmra.mxu2 %v7830_v14  ;;  %v6130_v49 = vld [vmem:[%s10115_s2 + $0x7c] sm:$0xf]  ;;  %v5411_v14 = vld [vmem:[%s10115_s2 + $0x84] sm:$0xf0] }
 0x2e5   :  { %v5414_v60 = vor.u32 %v6130_v49, %v5411_v14  ;;  %v6452_v14 = vld [vmem:[%s10114_s0 + $0x68] sm:$0xff] }
 0x2e6   :  { %v8166_v42 = vpop.f32.mrf.mxu3 }
 0x2e7   :  { %v2835_v0 = vpop.f32.mrf.mxu2  ;;  %3058 = vmatpush.bf16.msrb.mxu1 %v5414_v60  ;;  %v5387_v60 = vld [vmem:[%s10115_s2 + $0x54] sm:$0xf0] }
 0x2e8   :  { %v2836_v38 = vadd.f32 %v2835_v0, %v8067_v15  ;;  %v6191_v0 = vld [vmem:[%s10115_s2 + $0x260] sm:$0xf0] }
 0x2e9   :  { %v8168_v27 = vpop.f32.mrf.mxu0  ;;  %v8170_v62 = vpop.f32.mrf.mxu1 }
 0x2ea   :  { %10417 = vst [vmem:[#allocation64_spill] sm:$0xff] %v8168_v27 }
 0x2eb   :  { %10418 = vst [vmem:[#allocation17_spill] sm:$0xff] %v8170_v62  ;;  %3059 = vmatpush.bf16.msrb.mxu1 %v5402_v24  ;;  %v5649_v24 = vld [vmem:[%s10115_s2 + $0x258] sm:$0xf] }
 0x2ee   :  { %v2884_v63 = vpop.f32.mrf.mxu3 }
 0x2ef   :  { %v8179_v59 = vadd.f32 %v2884_v63, %v2836_v38  ;;  %v8181_v45 = vpop.f32.mrf.mxu2  ;;  %v6124_v38 = vld [vmem:[%s10115_s2 + $0x4c] sm:$0xf] }
 0x2f0   :  { %10420 = vst [vmem:[#allocation21_spill] sm:$0xff] %v8181_v45  ;;  %v6160_v63 = vld [vmem:[%s10115_s2 + $0x16c] sm:$0xf]  ;;  %v5390_v49 = vor.u32 %v6124_v38, %v5387_v60  ;;  %v5375_v38 = vld [vmem:[%s10115_s2 + $0x3c] sm:$0xf0] }
 0x2f1   :  { %10419 = vst [vmem:[#allocation68_spill] sm:$0xff] %v8179_v59  ;;  %v8189_v7 = vpop.f32.mrf.mxu0  ;;  %v8191_v31 = vpop.f32.mrf.mxu1  ;;  %v6157_v60 = vld [vmem:[%s10115_s2 + $0x154] sm:$0xf] }
 0x2f2   :  { %10421 = vst [vmem:[#allocation113_spill] sm:$0xff] %v8189_v7  ;;  %v5534_v7 = vor.u32 %v6160_v63, %v5531_v16  ;;  %3060 = vmatpush.bf16.msrb.mxu1 %v5390_v49  ;;  %v6227_v49 = vld [vmem:[%s10115_s2 + $0x380] sm:$0xf0] }
 0x2f3   :  { %10422 = vst [vmem:[#allocation116_spill] sm:$0xff] %v8191_v31  ;;  %1414 = vmatmul.bf16.gmra.mxu0 %v6452_v14  ;;  %v5650_v31 = vor.u32 %v6191_v0, %v5649_v24  ;;  %v5793_v0 = vld [vmem:[%s10115_s2 + $0x378] sm:$0xf] }
 0x2f4   :  { %1503 = vmatmul.bf16.gmra.mxu1 %v6452_v14  ;;  %2937 = vmatmul.bf16.gmra.mxu2 %v7881_v28  ;;  %v6121_v28 = vld [vmem:[%s10115_s2 + $0x34] sm:$0xf]  ;;  %v5794_v16 = vor.u32 %v6227_v49, %v5793_v0 }
 0x2f5   :  { %2964 = vmatpush.bf16.msrb.mxu3 %v5650_v31  ;;  %3105 = vmatpush.bf16.msra.mxu2 %v5534_v7  ;;  %v5378_v24 = vor.u32 %v6121_v28, %v5375_v38  ;;  %v5519_v31 = vld [vmem:[%s10115_s2 + $0x15c] sm:$0xf0]  ;;  %v6118_v28 = vld [vmem:[%s10115_s2 + $0x1c] sm:$0xf]  ;;  %v5363_v38 = vld [vmem:[%s10115_s2 + $0x24] sm:$0xf0] }
 0x2f6   :  { %v8215_v52 = vpop.f32.mrf.mxu3  ;;  %v5522_v63 = vor.u32 %v6157_v60, %v5519_v31  ;;  %v6154_v60 = vld [vmem:[%s10115_s2 + $0x13c] sm:$0xf]  ;;  %3009 = vmatpush.bf16.msrb.mxu0 %v5794_v16  ;;  %v6115_v16 = vld [vmem:[%s10115_s2 + $0x4] sm:$0xf] }
 0x2f7   :  { %10423 = vst [vmem:[#allocation114_spill] sm:$0xff] %v8215_v52  ;;  %v2840_v14 = vpop.f32.mrf.mxu2  ;;  %3061 = vmatpush.bf16.msrb.mxu1 %v5378_v24  ;;  %v5507_v24 = vld [vmem:[%s10115_s2 + $0x144] sm:$0xf0]  ;;  %v5781_v52 = vld [vmem:[%s10115_s2 + $0x360] sm:$0xf] }
 0x2f8   :  { %v2841_v31 = vadd.f32 %v2840_v14, %v8067_v15  ;;  %v5510_v0 = vor.u32 %v6154_v60, %v5507_v24  ;;  %v6224_v14 = vld [vmem:[%s10115_s2 + $0x368] sm:$0xf0]  ;;  %v6151_v60 = vld [vmem:[%s10115_s2 + $0x124] sm:$0xf] }
 0x2f9   :  { %v8226_v45 = vpop.f32.mrf.mxu0  ;;  %v8231_v7 = vpop.f32.mrf.mxu1  ;;  %3106 = vmatpush.bf16.msra.mxu2 %v5522_v63 }
 0x2fa   :  { %10424 = vst [vmem:[#allocation65_spill] sm:$0xff] %v8226_v45 }
 0x2fb   :  { %10425 = vst [vmem:[#allocation18_spill] sm:$0xff] %v8231_v7  ;;  %v5366_v7 = vor.u32 %v6118_v28, %v5363_v38  ;;  %v5782_v38 = vor.u32 %v6224_v14, %v5781_v52  ;;  %v6453_v52 = vld [vmem:[%s10114_s0 + $0x70] sm:$0xff]  ;;  %v5769_v14 = vld [vmem:[%s10115_s2 + $0x348] sm:$0xf] }
 0x2fd   :  { %3062 = vmatpush.bf16.msrb.mxu1 %v5366_v7  ;;  %3107 = vmatpush.bf16.msra.mxu2 %v5510_v0  ;;  %v5351_v7 = vld [vmem:[%s10115_s2 + $0xc] sm:$0xf0] }
 0x2fe   :  { %v2889_v63 = vpop.f32.mrf.mxu3  ;;  %3010 = vmatpush.bf16.msrb.mxu0 %v5782_v38  ;;  %v6148_v38 = vld [vmem:[%s10115_s2 + $0x10c] sm:$0xf] }
 0x2ff   :  { %v8252_v49 = vadd.f32 %v2889_v63, %v2841_v31  ;;  %v8254_v45 = vpop.f32.mrf.mxu2  ;;  %v5495_v31 = vld [vmem:[%s10115_s2 + $0x12c] sm:$0xf0]  ;;  %v5354_v63 = vor.u32 %v6115_v16, %v5351_v7  ;;  %v5483_v7 = vld [vmem:[%s10115_s2 + $0x114] sm:$0xf0] }
 0x300   :  { %10427 = vst [vmem:[#allocation19_spill] sm:$0xff] %v8254_v45  ;;  %v5498_v0 = vor.u32 %v6151_v60, %v5495_v31  ;;  %v5486_v31 = vor.u32 %v6148_v38, %v5483_v7  ;;  %v5471_v7 = vld [vmem:[%s10115_s2 + $0xfc] sm:$0xf0] }
 0x301   :  { %10426 = vst [vmem:[#allocation66_spill] sm:$0xff] %v8252_v49  ;;  %v8265_v28 = vpop.f32.mrf.mxu0  ;;  %v8276_v24 = vpop.f32.mrf.mxu1  ;;  %3063 = vmatpush.bf16.msrb.mxu1 %v5354_v63  ;;  %v6215_v49 = vld [vmem:[%s10115_s2 + $0x320] sm:$0xf0] }
 0x302   :  { %10428 = vst [vmem:[#allocation69_spill] sm:$0xff] %v8265_v28  ;;  %v6221_v28 = vld [vmem:[%s10115_s2 + $0x350] sm:$0xf0]  ;;  %3108 = vmatpush.bf16.msra.mxu2 %v5498_v0  ;;  %v5637_v0 = vld [vmem:[%s10115_s2 + $0x240] sm:$0xf] }
 0x303   :  { %10429 = vst [vmem:[#allocation22_spill] sm:$0xff] %v8276_v24  ;;  %1419 = vmatmul.bf16.gmra.mxu0 %v6453_v52  ;;  %v5770_v16 = vor.u32 %v6221_v28, %v5769_v14  ;;  %v6218_v28 = vld [vmem:[%s10115_s2 + $0x338] sm:$0xf0]  ;;  %v6145_v14 = vld [vmem:[%s10115_s2 + $0xf4] sm:$0xf] }
 0x304   :  { %1508 = vmatmul.bf16.gmra.mxu1 %v6453_v52  ;;  %2942 = vmatmul.bf16.gmra.mxu2 %v7944_v35  ;;  %v5757_v52 = vld [vmem:[%s10115_s2 + $0x330] sm:$0xf]  ;;  %v5474_v45 = vor.u32 %v6145_v14, %v5471_v7 }
 0x305   :  { %3011 = vmatpush.bf16.msrb.mxu0 %v5770_v16  ;;  %v6188_v16 = vld [vmem:[%s10115_s2 + $0x248] sm:$0xf0]  ;;  %v5758_v38 = vor.u32 %v6218_v28, %v5757_v52  ;;  %v6142_v52 = vld [vmem:[%s10115_s2 + $0xdc] sm:$0xf] }
 0x306   :  { %v8294_v60 = vpop.f32.mrf.mxu3  ;;  %3109 = vmatpush.bf16.msra.mxu2 %v5486_v31  ;;  %v5459_v31 = vld [vmem:[%s10115_s2 + $0xe4] sm:$0xf0] }
 0x307   :  { %10430 = vst [vmem:[#allocation117_spill] sm:$0xff] %v8294_v60  ;;  %v2845_v63 = vpop.f32.mrf.mxu2  ;;  %v5638_v60 = vor.u32 %v6188_v16, %v5637_v0  ;;  %v5462_v14 = vor.u32 %v6142_v52, %v5459_v31 }
 0x308   :  { %v2846_v28 = vadd.f32 %v2845_v63, %v8067_v15 }
 0x309   :  { %v8305_v35 = vpop.f32.mrf.mxu0  ;;  %v8316_v24 = vpop.f32.mrf.mxu1  ;;  %3012 = vmatpush.bf16.msrb.mxu0 %v5758_v38  ;;  %2965 = vmatpush.bf16.msrb.mxu3 %v5638_v60  ;;  %v5733_v38 = vld [vmem:[%s10115_s2 + $0x300] sm:$0xf] }
 0x30a   :  { %10431 = vst [vmem:[#allocation70_spill] sm:$0xff] %v8305_v35  ;;  %v5745_v35 = vld [vmem:[%s10115_s2 + $0x318] sm:$0xf]  ;;  %3110 = vmatpush.bf16.msra.mxu2 %v5474_v45 }
 0x30b   :  { %10432 = vst [vmem:[#allocation23_spill] sm:$0xff] %v8316_v24  ;;  %v5746_v24 = vor.u32 %v6215_v49, %v5745_v35  ;;  %v6212_v35 = vld [vmem:[%s10115_s2 + $0x308] sm:$0xf0]  ;;  %v6139_v49 = vld [vmem:[%s10115_s2 + $0xc4] sm:$0xf] }
 0x30c   :  { %v5734_v45 = vor.u32 %v6212_v35, %v5733_v38  ;;  %v5627_v35 = vld [vmem:[%s10115_s2 + $0x234] sm:$0xf0] }
 0x30d   :  { %3013 = vmatpush.bf16.msrb.mxu0 %v5746_v24  ;;  %v5447_v24 = vld [vmem:[%s10115_s2 + $0xcc] sm:$0xf0] }
 0x30e   :  { %v2894_v60 = vpop.f32.mrf.mxu3  ;;  %3111 = vmatpush.bf16.msra.mxu2 %v5462_v14  ;;  %v5450_v52 = vor.u32 %v6139_v49, %v5447_v24  ;;  %v6184_v14 = vld [vmem:[%s10115_s2 + $0x22c] sm:$0xf] }
 0x30f   :  { %v8331_v0 = vadd.f32 %v2894_v60, %v2846_v28  ;;  %v8333_v16 = vpop.f32.mrf.mxu2  ;;  %v6454_v28 = vld [vmem:[%s10114_s0 + $0x78] sm:$0xff] }
 0x310   :  { %10434 = vst [vmem:[#allocation120_spill] sm:$0xff] %v8333_v16  ;;  %v10449_v16 = vld [vmem:[#allocation144_spill] sm:$0xff] }
 0x311   :  { %10433 = vst [vmem:[#allocation118_spill] sm:$0xff] %v8331_v0  ;;  %v8344_v63 = vpop.f32.mrf.mxu0  ;;  %v8349_v7 = vpop.f32.mrf.mxu1  ;;  %3014 = vmatpush.bf16.msrb.mxu0 %v5734_v45  ;;  %v5630_v45 = vor.u32 %v6184_v14, %v5627_v35  ;;  %v10443_v14 = vld [vmem:[#allocation2_spill] sm:$0xff] }
 0x312   :  { %10435 = vst [vmem:[#allocation72_spill] sm:$0xff] %v8344_v63  ;;  %3112 = vmatpush.bf16.msra.mxu2 %v5450_v52 }
 0x313   :  { %10436 = vst [vmem:[#allocation25_spill] sm:$0xff] %v8349_v7  ;;  %1424 = vmatmul.bf16.gmra.mxu0 %v6454_v28  ;;  %3154 = vmatpush.bf16.msra.mxu3 %v5630_v45 }
 0x314   :  { %1513 = vmatmul.bf16.gmra.mxu1 %v6454_v28  ;;  %2947 = vmatmul.bf16.gmra.mxu2 %v8001_v20 }
 0x316   :  { %v8355_v31 = vpop.f32.mrf.mxu3 }
 0x317   :  { %10437 = vst [vmem:[#allocation76_spill] sm:$0xff] %v8355_v31  ;;  %v2850_v60 = vpop.f32.mrf.mxu2 }
 0x318   :  { %v2851_v24 = vadd.f32 %v2850_v60, %v8067_v15  ;;  %v10445_v60 = vld [vmem:[#allocation143_spill] sm:$0xff] }
 0x319   :  { %v8357_v38 = vpop.f32.mrf.mxu0  ;;  %v8365_v49 = vpop.f32.mrf.mxu1 }
 0x31a   :  { %10438 = vst [vmem:[#allocation29_spill] sm:$0xff] %v8357_v38 }
 0x31b   :  { %10439 = vst [vmem:[#allocation121_spill] sm:$0xff] %v8365_v49  ;;  %v10442_v49 = vld [vmem:[#allocation49_spill] sm:$0xff] }
 0x31c   :  { %v1522_v35 = vmax.f32 %v10443_v14, %v10442_v49  ;;  %v6181_v49 = vld [vmem:[%s10115_s2 + $0x214] sm:$0xf]  ;;  %v5615_v14 = vld [vmem:[%s10115_s2 + $0x21c] sm:$0xf0] }
 0x31e   :  { %v2899_v28 = vpop.f32.mrf.mxu3 }
 0x31f   :  { %v8368_v20 = vadd.f32 %v2899_v28, %v2851_v24  ;;  %v8370_v52 = vpop.f32.mrf.mxu2  ;;  %v10446_v24 = vld [vmem:[#allocation96_spill] sm:$0xff] }
 0x320   :  { %10441 = vst [vmem:[#allocation122_spill] sm:$0xff] %v8370_v52  ;;  %v1523_v28 = vmax.f32 %v10446_v24, %v10445_v60  ;;  %v6455_v52 = vld [vmem:[%s10116_s4] sm:$0x1f] }
 0x321   :  { %10440 = vst [vmem:[#allocation124_spill] sm:$0xff] %v8368_v20  ;;  %v1390_v38 = vpop.f32.mrf.mxu0  ;;  %v1479_v7 = vpop.f32.mrf.mxu1 }
 0x322   :  { %v1527_v63 = vmax.f32 %v8018_v4, %v1390_v38  ;;  %v1528_v31 = vmax.f32 %v8023_v18, %v1479_v7  ;;  %v8385_v4 = vperm.slane %v6455_v52, 3  ;;  %v8387_v38 = vperm.slane %v6455_v52, 4 }
 0x324   :  { %2952 = vmatmul.bf16.gmra.mxu2 %v8047_v46  ;;  %3064 = vmatmul.bf16.vlgmr.msrb.gmra.mxu1 %v7697_v47  ;;  %v1682_v20 = vmax.f32 %v1522_v35, %v1527_v63  ;;  %v1683_v7 = vmax.f32 %v1523_v28, %v1528_v31  ;;  %v10447_v63 = vld [vmem:[#allocation50_spill] sm:$0xff]  ;;  %v10448_v35 = vld [vmem:[#allocation3_spill] sm:$0xff]  ;;  %v10450_v31 = vld [vmem:[#allocation97_spill] sm:$0xff] }
 0x325   :  { %v1532_v60 = vmax.f32 %v10448_v35, %v10447_v63  ;;  %v1533_v52 = vmax.f32 %v10450_v31, %v10449_v16 }
 0x326   :  { %v8378_v45 = vpop.f32.mrf.mxu3  ;;  %v1774_v0 = vadd.f32 %v8385_v4, %v1682_v20  ;;  %v1775_v6 = vadd.f32 %v8387_v38, %v1683_v7 }
 0x327   :  { %10444 = vst [vmem:[#allocation73_spill] sm:$0xff] %v8378_v45  ;;  %v2855_v18 = vpop.f32.mrf.mxu2  ;;  %v5618_v45 = vor.u32 %v6181_v49, %v5615_v14 }
 0x328   :  { %v2856_v27 = vadd.f32 %v2855_v18, %v8067_v15  ;;  %v1854_v49 = vmax.f32 %v1774_v0, 0.0  ;;  %v10453_v0 = vld [vmem:[#allocation98_spill] sm:$0xff] }
 0x329   :  { %v1392_v46 = vpop.f32.mrf.mxu0  ;;  %v1481_v47 = vpop.f32.mrf.mxu1  ;;  %3155 = vmatpush.bf16.msra.mxu3 %v5618_v45 }
 0x32a   :  { %v1537_v24 = vmax.f32 %v8041_v48, %v1392_v46  ;;  %v1538_v28 = vmax.f32 %v8045_v22, %v1481_v47  ;;  %v1855_v47 = vmax.f32 %v1775_v6, 0.0 }
 0x32c   :  { %v1687_v62 = vmax.f32 %v1532_v60, %v1537_v24  ;;  %v1688_v59 = vmax.f32 %v1533_v52, %v1538_v28  ;;  %v1543_v24 = vmax.f32 %v10453_v0, %v7691_v61 }
 0x32e   :  { %v1779_v63 = vadd.f32 %v8385_v4, %v1687_v62  ;;  %v2904_v35 = vpop.f32.mrf.mxu3  ;;  %v1780_v48 = vadd.f32 %v8387_v38, %v1688_v59  ;;  %v10452_v62 = vld [vmem:[#allocation4_spill] sm:$0xff] }
 0x32f   :  { %v8406_v46 = vadd.f32 %v2904_v35, %v2856_v27  ;;  %v8408_v14 = vpop.f32.mrf.mxu2  ;;  %v10451_v27 = vld [vmem:[#allocation51_spill] sm:$0xff] }
 0x330   :  { %v1859_v16 = vmax.f32 %v1779_v63, 0.0  ;;  %v1860_v20 = vmax.f32 %v1780_v48, 0.0  ;;  %v1542_v6 = vmax.f32 %v10452_v62, %v10451_v27  ;;  %v5603_v35 = vld [vmem:[%s10115_s2 + $0x204] sm:$0xf0]  ;;  %v10454_v48 = vld [vmem:[#allocation52_spill] sm:$0xff]  ;;  %v2823_v27 = vadd.f32 %v8088_v13, %v8067_v15 }
 0x331   :  { %v1395_v22 = vpop.f32.mrf.mxu0  ;;  %v1484_v7 = vpop.f32.mrf.mxu1 }
 0x332   :  { %v8410_v45 = vpack.c.bf16 %v1859_v16, %v1854_v49  ;;  %v8412_v60 = vpack.c.bf16 %v1860_v20, %v1855_v47  ;;  %v1547_v18 = vmax.f32 %v8050_v39, %v1395_v22  ;;  %v1548_v59 = vmax.f32 %v8052_v54, %v1484_v7  ;;  %v6178_v54 = vld [vmem:[%s10115_s2 + $0x1fc] sm:$0xf]  ;;  %v10456_v22 = vld [vmem:[#allocation99_spill] sm:$0xff] }
 0x333   :  { %v10455_v49 = vld [vmem:[#allocation5_spill] sm:$0xff]  ;;  %v5606_v20 = vor.u32 %v6178_v54, %v5603_v35 }
 0x334   :  { %2966 = vmatmul.bf16.vlgmr.msrb.gmra.mxu3 %v8410_v45  ;;  %3015 = vmatmul.bf16.vlgmr.msrb.gmra.mxu0 %v8412_v60  ;;  %v1692_v31 = vmax.f32 %v1542_v6, %v1547_v18  ;;  %v1693_v28 = vmax.f32 %v1543_v24, %v1548_v59  ;;  %v1552_v16 = vmax.f32 %v10455_v49, %v10454_v48 }
 0x335   :  { %3069 = vmatmul.bf16.gmra.mxu1 %v7736_v50  ;;  %3113 = vmatmul.bf16.vlgmr.msra.gmra.mxu2 %v7709_v26 }
 0x336   :  { %v1784_v18 = vadd.f32 %v8385_v4, %v1692_v31  ;;  %3156 = vmatpush.bf16.msra.mxu3 %v5606_v20  ;;  %v1785_v62 = vadd.f32 %v8387_v38, %v1693_v28  ;;  %v10459_v20 = vld [vmem:[#allocation100_spill] sm:$0xff] }
 0x337   :  { %v2918_v52 = vpop.f32.mrf.mxu2 }
 0x338   :  { %v8425_v39 = vadd.f32 %v2918_v52, %v8080_v36  ;;  %v1553_v36 = vmax.f32 %v10456_v22, %v7711_v33  ;;  %v1864_v52 = vmax.f32 %v1784_v18, 0.0  ;;  %v1563_v22 = vmax.f32 %v10459_v20, %v7730_v9 }
 0x339   :  { %v1397_v63 = vpop.f32.mrf.mxu0  ;;  %v1486_v47 = vpop.f32.mrf.mxu1 }
 0x33a   :  { %v1557_v61 = vmax.f32 %v8069_v32, %v1397_v63  ;;  %v1558_v7 = vmax.f32 %v8071_v12, %v1486_v47  ;;  %v2872_v32 = vadd.f32 %v8104_v29, %v2823_v27  ;;  %v1865_v12 = vmax.f32 %v1785_v62, 0.0  ;;  %v5591_v27 = vld [vmem:[%s10115_s2 + $0x1ec] sm:$0xf0]  ;;  %v10460_v62 = vld [vmem:[#allocation55_spill] sm:$0xff] }
 0x33c   :  { %v1697_v59 = vmax.f32 %v1552_v16, %v1557_v61  ;;  %v1698_v6 = vmax.f32 %v1553_v36, %v1558_v7  ;;  %v10457_v16 = vld [vmem:[#allocation53_spill] sm:$0xff]  ;;  %v10458_v61 = vld [vmem:[#allocation6_spill] sm:$0xff] }
 0x33d   :  { %v1562_v47 = vmax.f32 %v10458_v61, %v10457_v16 }
 0x33e   :  { %v1789_v0 = vadd.f32 %v8385_v4, %v1697_v59  ;;  %v1790_v24 = vadd.f32 %v8387_v38, %v1698_v6  ;;  %v10461_v6 = vld [vmem:[#allocation8_spill] sm:$0xff] }
 0x33f   :  { %v2920_v33 = vpop.f32.mrf.mxu2 }
 0x340   :  { %v1869_v63 = vmax.f32 %v1789_v0, 0.0  ;;  %v8446_v54 = vadd.f32 %v2920_v33, %v2872_v32  ;;  %v1870_v35 = vmax.f32 %v1790_v24, 0.0  ;;  %v1572_v0 = vmax.f32 %v10461_v6, %v10460_v62  ;;  %v10465_v62 = vld [vmem:[#allocation104_spill] sm:$0xff] }
 0x341   :  { %v1400_v31 = vpop.f32.mrf.mxu0  ;;  %v1489_v48 = vpop.f32.mrf.mxu1  ;;  %v1583_v6 = vmax.f32 %v10465_v62, %v7769_v30  ;;  %v5819_v62 = vld [vmem:[%s10115_s2 + $0x3b4] sm:$0xf0] }
 0x342   :  { %v8448_v49 = vpack.c.bf16 %v1869_v63, %v1864_v52  ;;  %v8450_v13 = vpack.c.bf16 %v1870_v35, %v1865_v12  ;;  %v1567_v28 = vmax.f32 %v8090_v2, %v1400_v31  ;;  %v1568_v29 = vmax.f32 %v8092_v57, %v1489_v48  ;;  %v6175_v57 = vld [vmem:[%s10115_s2 + $0x1e4] sm:$0xf]  ;;  %v10462_v52 = vld [vmem:[#allocation101_spill] sm:$0xff] }
 0x343   :  { %v5594_v24 = vor.u32 %v6175_v57, %v5591_v27  ;;  %v2828_v31 = vadd.f32 %v8113_v51, %v8067_v15  ;;  %v10464_v57 = vld [vmem:[#allocation12_spill] sm:$0xff] }
 0x344   :  { %2971 = vmatmul.bf16.gmra.mxu3 %v8448_v49  ;;  %3020 = vmatmul.bf16.gmra.mxu0 %v8450_v13  ;;  %v1702_v36 = vmax.f32 %v1562_v47, %v1567_v28  ;;  %v1703_v18 = vmax.f32 %v1563_v22, %v1568_v29 }
 0x345   :  { %3074 = vmatmul.bf16.gmra.mxu1 %v7775_v17  ;;  %3118 = vmatmul.bf16.gmra.mxu2 %v7750_v11 }
 0x346   :  { %v1794_v63 = vadd.f32 %v8385_v4, %v1702_v36  ;;  %3157 = vmatpush.bf16.msra.mxu3 %v5594_v24  ;;  %v1795_v35 = vadd.f32 %v8387_v38, %v1703_v18 }
 0x347   :  { %v2923_v7 = vpop.f32.mrf.mxu2 }
 0x348   :  { %v8463_v2 = vadd.f32 %v2923_v7, %v8111_v55  ;;  %v1573_v55 = vmax.f32 %v10462_v52, %v7748_v8  ;;  %v1874_v16 = vmax.f32 %v1794_v63, 0.0  ;;  %v5579_v52 = vld [vmem:[%s10115_s2 + $0x1d4] sm:$0xf0] }
 0x349   :  { %v1402_v59 = vpop.f32.mrf.mxu0  ;;  %v1491_v32 = vpop.f32.mrf.mxu1 }
 0x34a   :  { %v1577_v9 = vmax.f32 %v8106_v37, %v1402_v59  ;;  %v1578_v33 = vmax.f32 %v8108_v25, %v1491_v32  ;;  %v2877_v37 = vadd.f32 %v8129_v10, %v2828_v31  ;;  %v1875_v25 = vmax.f32 %v1795_v35, 0.0  ;;  %v10463_v59 = vld [vmem:[#allocation59_spill] sm:$0xff] }
 0x34b   :  { %v1582_v27 = vmax.f32 %v10464_v57, %v10463_v59  ;;  %v10468_v35 = vld [vmem:[#allocation107_spill] sm:$0xff] }
 0x34c   :  { %v1707_v12 = vmax.f32 %v1572_v0, %v1577_v9  ;;  %v1708_v48 = vmax.f32 %v1573_v55, %v1578_v33  ;;  %v10466_v55 = vld [vmem:[#allocation63_spill] sm:$0xff]  ;;  %v10467_v33 = vld [vmem:[#allocation16_spill] sm:$0xff] }
 0x34d   :  { %v1592_v63 = vmax.f32 %v10467_v33, %v10466_v55  ;;  %v5807_v33 = vld [vmem:[%s10115_s2 + $0x39c] sm:$0xf0] }
 0x34e   :  { %v1799_v28 = vadd.f32 %v8385_v4, %v1707_v12  ;;  %v1800_v29 = vadd.f32 %v8387_v38, %v1708_v48 }
 0x34f   :  { %v2925_v8 = vpop.f32.mrf.mxu2 }
 0x350   :  { %v1879_v61 = vmax.f32 %v1799_v28, 0.0  ;;  %v8484_v47 = vadd.f32 %v2925_v8, %v2877_v37  ;;  %v1880_v22 = vmax.f32 %v1800_v29, 0.0  ;;  %v2833_v29 = vadd.f32 %v8150_v34, %v8067_v15 }
 0x351   :  { %v1405_v20 = vpop.f32.mrf.mxu0  ;;  %v1494_v36 = vpop.f32.mrf.mxu1 }
 0x352   :  { %v8486_v7 = vpack.c.bf16 %v1879_v61, %v1874_v16  ;;  %v8488_v51 = vpack.c.bf16 %v1880_v22, %v1875_v25  ;;  %v1587_v18 = vmax.f32 %v8115_v53, %v1405_v20  ;;  %v1588_v10 = vmax.f32 %v8117_v19, %v1494_v36  ;;  %v6172_v19 = vld [vmem:[%s10115_s2 + $0x1cc] sm:$0xf] }
 0x353   :  { %v5582_v31 = vor.u32 %v6172_v19, %v5579_v52 }
 0x354   :  { %2976 = vmatmul.bf16.gmra.mxu3 %v8486_v7  ;;  %3025 = vmatmul.bf16.gmra.mxu0 %v8488_v51  ;;  %v1712_v0 = vmax.f32 %v1582_v27, %v1587_v18  ;;  %v1713_v32 = vmax.f32 %v1583_v6, %v1588_v10 }
 0x355   :  { %3079 = vmatmul.bf16.gmra.mxu1 %v7814_v44  ;;  %3123 = vmatmul.bf16.gmra.mxu2 %v7789_v1  ;;  %v10528_v1 = vld [vmem:[#allocation139_spill] sm:$0xff] }
 0x356   :  { %v1804_v28 = vadd.f32 %v8385_v4, %v1712_v0  ;;  %3158 = vmatpush.bf16.msra.mxu3 %v5582_v31  ;;  %v1805_v16 = vadd.f32 %v8387_v38, %v1713_v32  ;;  %v10470_v32 = vld [vmem:[#allocation20_spill] sm:$0xff] }
 0x357   :  { %v2928_v9 = vpop.f32.mrf.mxu2 }
 0x358   :  { %v8501_v53 = vadd.f32 %v2928_v9, %v8142_v23  ;;  %v1593_v23 = vmax.f32 %v10468_v35, %v7787_v40  ;;  %v1884_v20 = vmax.f32 %v1804_v28, 0.0  ;;  %v10469_v9 = vld [vmem:[#allocation67_spill] sm:$0xff]  ;;  %v5567_v35 = vld [vmem:[%s10115_s2 + $0x1bc] sm:$0xf0]  ;;  %v10474_v28 = vld [vmem:[#allocation24_spill] sm:$0xff] }
 0x359   :  { %v1407_v24 = vpop.f32.mrf.mxu0  ;;  %v1496_v12 = vpop.f32.mrf.mxu1 }
 0x35a   :  { %v1597_v30 = vmax.f32 %v8131_v56, %v1407_v24  ;;  %v1598_v48 = vmax.f32 %v8133_v5, %v1496_v12  ;;  %v2882_v56 = vadd.f32 %v8166_v42, %v2833_v29  ;;  %v1885_v5 = vmax.f32 %v1805_v16, 0.0  ;;  %v6232_v42 = vld [vmem:[%s10115_s2 + $0x3ac] sm:$0xf]  ;;  %v10475_v29 = vld [vmem:[#allocation64_spill] sm:$0xff] }
 0x35b   :  { %v5822_v0 = vor.u32 %v6232_v42, %v5819_v62  ;;  %v10471_v24 = vld [vmem:[#allocation111_spill] sm:$0xff] }
 0x35c   :  { %v1717_v37 = vmax.f32 %v1592_v63, %v1597_v30  ;;  %v1718_v8 = vmax.f32 %v1593_v23, %v1598_v48  ;;  %v1603_v19 = vmax.f32 %v10471_v24, %v7808_v43  ;;  %v10472_v30 = vld [vmem:[#allocation68_spill] sm:$0xff]  ;;  %v10473_v48 = vld [vmem:[#allocation71_spill] sm:$0xff] }
 0x35d   :  { %3252 = vmatpush.bf16.msra.mxu1 %v5822_v0  ;;  %v6169_v43 = vld [vmem:[%s10115_s2 + $0x1b4] sm:$0xf] }
 0x35e   :  { %v1809_v61 = vadd.f32 %v8385_v4, %v1717_v37  ;;  %v1810_v25 = vadd.f32 %v8387_v38, %v1718_v8  ;;  %v1612_v37 = vmax.f32 %v10474_v28, %v10473_v48 }
 0x35f   :  { %v2930_v40 = vpop.f32.mrf.mxu2 }
 0x360   :  { %v1889_v22 = vmax.f32 %v1809_v61, 0.0  ;;  %v8522_v36 = vadd.f32 %v2930_v40, %v2882_v56  ;;  %v1890_v10 = vmax.f32 %v1810_v25, 0.0  ;;  %v5570_v61 = vor.u32 %v6169_v43, %v5567_v35  ;;  %v10476_v56 = vld [vmem:[#allocation7_spill] sm:$0xff]  ;;  %v10478_v40 = vld [vmem:[#allocation17_spill] sm:$0xff] }
 0x361   :  { %v1410_v18 = vpop.f32.mrf.mxu0  ;;  %v1499_v59 = vpop.f32.mrf.mxu1  ;;  %v10477_v25 = vld [vmem:[#allocation115_spill] sm:$0xff] }
 0x362   :  { %v8524_v57 = vpack.c.bf16 %v1889_v22, %v1884_v20  ;;  %v8526_v34 = vpack.c.bf16 %v1890_v10, %v1885_v5  ;;  %v1607_v27 = vmax.f32 %v8152_v21, %v1410_v18  ;;  %v1608_v6 = vmax.f32 %v8154_v58, %v1499_v59  ;;  %v6229_v58 = vld [vmem:[%s10115_s2 + $0x394] sm:$0xf]  ;;  %3159 = vmatpush.bf16.msra.mxu3 %v5570_v61  ;;  %v6226_v10 = vld [vmem:[%s10115_s2 + $0x37c] sm:$0xf]  ;;  %v5795_v59 = vld [vmem:[%s10115_s2 + $0x384] sm:$0xf0] }
 0x363   :  { %v1602_v21 = vmax.f32 %v10470_v32, %v10469_v9  ;;  %v5810_v23 = vor.u32 %v6229_v58, %v5807_v33  ;;  %v1613_v20 = vmax.f32 %v10477_v25, %v10476_v56  ;;  %v5798_v0 = vor.u32 %v6226_v10, %v5795_v59  ;;  %v10480_v32 = vld [vmem:[#allocation114_spill] sm:$0xff]  ;;  %v5783_v33 = vld [vmem:[%s10115_s2 + $0x36c] sm:$0xf0]  ;;  %v6220_v61 = vld [vmem:[%s10115_s2 + $0x34c] sm:$0xf] }
 0x364   :  { %2981 = vmatmul.bf16.gmra.mxu3 %v8524_v57  ;;  %3030 = vmatmul.bf16.gmra.mxu0 %v8526_v34  ;;  %v1723_v63 = vmax.f32 %v1603_v19, %v1608_v6  ;;  %v6223_v58 = vld [vmem:[%s10115_s2 + $0x364] sm:$0xf]  ;;  %v10482_v56 = vld [vmem:[#allocation116_spill] sm:$0xff]  ;;  %v10484_v10 = vld [vmem:[#allocation75_spill] sm:$0xff] }
 0x365   :  { %3084 = vmatmul.bf16.gmra.mxu1 %v7853_v3  ;;  %3128 = vmatmul.bf16.gmra.mxu2 %v7828_v41  ;;  %v1722_v52 = vmax.f32 %v1602_v21, %v1607_v27  ;;  %v10479_v27 = vld [vmem:[#allocation21_spill] sm:$0xff]  ;;  %v5786_v35 = vor.u32 %v6223_v58, %v5783_v33  ;;  %v10485_v59 = vld [vmem:[#allocation28_spill] sm:$0xff]  ;;  %v10489_v58 = vld [vmem:[#allocation66_spill] sm:$0xff] }
 0x366   :  { %3253 = vmatpush.bf16.msra.mxu1 %v5810_v23  ;;  %v2838_v42 = vadd.f32 %v10479_v27, %v8067_v15  ;;  %v1815_v62 = vadd.f32 %v8387_v38, %v1723_v63  ;;  %v1622_v27 = vmax.f32 %v10485_v59, %v10484_v10  ;;  %v10495_v59 = vld [vmem:[#allocation18_spill] sm:$0xff] }
 0x367   :  { %v2933_v55 = vpop.f32.mrf.mxu2  ;;  %v1814_v5 = vadd.f32 %v8385_v4, %v1722_v52  ;;  %v10527_v41 = vld [vmem:[#allocation14_spill] sm:$0xff] }
 0x368   :  { %v8551_v12 = vadd.f32 %v2933_v55, %v10472_v30  ;;  %v2887_v21 = vadd.f32 %v10480_v32, %v2838_v42  ;;  %v1895_v63 = vmax.f32 %v1815_v62, 0.0  ;;  %v10486_v42 = vld [vmem:[#allocation60_spill] sm:$0xff]  ;;  %v1673_v11 = vmax.f32 %v10528_v1, %v10527_v41 }
 0x369   :  { %v1412_v31 = vpop.f32.mrf.mxu0  ;;  %v1501_v8 = vpop.f32.mrf.mxu1  ;;  %v1894_v19 = vmax.f32 %v1814_v5, 0.0  ;;  %v5441_v5 = vld [vmem:[%s10115_s2 + $0xb0] sm:$0xf] }
 0x36a   :  { %v1617_v16 = vmax.f32 %v10475_v29, %v1412_v31  ;;  %v1618_v22 = vmax.f32 %v10478_v40, %v1501_v8  ;;  %3254 = vmatpush.bf16.msra.mxu1 %v5798_v0  ;;  %v5723_v8 = vld [vmem:[%s10115_s2 + $0x2f4] sm:$0xf0]  ;;  %v10487_v0 = vld [vmem:[#allocation56_spill] sm:$0xff] }
 0x36c   :  { %v1727_v18 = vmax.f32 %v1612_v37, %v1617_v16  ;;  %v1728_v6 = vmax.f32 %v1613_v20, %v1618_v22  ;;  %v10481_v37 = vld [vmem:[#allocation113_spill] sm:$0xff]  ;;  %v6208_v16 = vld [vmem:[%s10115_s2 + $0x2ec] sm:$0xf]  ;;  %v10483_v20 = vld [vmem:[#allocation106_spill] sm:$0xff] }
 0x36d   :  { %v5726_v40 = vor.u32 %v6208_v16, %v5723_v8  ;;  %v5771_v22 = vld [vmem:[%s10115_s2 + $0x354] sm:$0xf0] }
 0x36e   :  { %v1819_v9 = vadd.f32 %v8385_v4, %v1727_v18  ;;  %v1820_v24 = vadd.f32 %v8387_v38, %v1728_v6  ;;  %3255 = vmatpush.bf16.msra.mxu1 %v5786_v35  ;;  %v6138_v18 = vld [vmem:[%s10115_s2 + $0xb8] sm:$0xf0]  ;;  %v5774_v62 = vor.u32 %v6220_v61, %v5771_v22  ;;  %v5429_v22 = vld [vmem:[%s10115_s2 + $0x98] sm:$0xf] }
 0x36f   :  { %v2935_v52 = vpop.f32.mrf.mxu2  ;;  %v5442_v6 = vor.u32 %v6138_v18, %v5441_v5  ;;  %3203 = vmatpush.bf16.msra.mxu0 %v5726_v40  ;;  %v10492_v16 = vld [vmem:[#allocation65_spill] sm:$0xff]  ;;  %v5759_v40 = vld [vmem:[%s10115_s2 + $0x33c] sm:$0xf0]  ;;  %v10494_v18 = vld [vmem:[#allocation123_spill] sm:$0xff] }
 0x370   :  { %v1899_v55 = vmax.f32 %v1819_v9, 0.0  ;;  %v8584_v30 = vadd.f32 %v2935_v52, %v2887_v21  ;;  %v1900_v43 = vmax.f32 %v1820_v24, 0.0  ;;  %v10488_v9 = vld [vmem:[#allocation119_spill] sm:$0xff]  ;;  %v5711_v52 = vld [vmem:[%s10115_s2 + $0x2dc] sm:$0xf0]  ;;  %v10493_v5 = vld [vmem:[#allocation9_spill] sm:$0xff] }
 0x371   :  { %v1415_v31 = vpop.f32.mrf.mxu0  ;;  %v1504_v23 = vpop.f32.mrf.mxu1  ;;  %v1623_v32 = vmax.f32 %v10488_v9, %v10487_v0  ;;  %3301 = vmatpush.bf16.msrb.mxu2 %v5442_v6  ;;  %v1633_v10 = vmax.f32 %v10494_v18, %v10493_v5  ;;  %v6135_v6 = vld [vmem:[%s10115_s2 + $0xa0] sm:$0xf0]  ;;  %v5687_v18 = vld [vmem:[%s10115_s2 + $0x2ac] sm:$0xf0] }
 0x372   :  { %v8586_v48 = vpack.c.bf16 %v1899_v55, %v1894_v19  ;;  %v8588_v28 = vpack.c.bf16 %v1900_v43, %v1895_v63  ;;  %v1627_v29 = vmax.f32 %v10481_v37, %v1415_v31  ;;  %v1628_v25 = vmax.f32 %v10482_v56, %v1504_v23  ;;  %3256 = vmatpush.bf16.msra.mxu1 %v5774_v62  ;;  %v6205_v19 = vld [vmem:[%s10115_s2 + $0x2d4] sm:$0xf]  ;;  %v6166_v31 = vld [vmem:[%s10115_s2 + $0x19c] sm:$0xf]  ;;  %v5555_v43 = vld [vmem:[%s10115_s2 + $0x1a4] sm:$0xf0] }
 0x373   :  { %v5714_v35 = vor.u32 %v6205_v19, %v5711_v52  ;;  %v10490_v23 = vld [vmem:[#allocation79_spill] sm:$0xff]  ;;  %v10491_v37 = vld [vmem:[#allocation32_spill] sm:$0xff]  ;;  %v5558_v56 = vor.u32 %v6166_v31, %v5555_v43  ;;  %v6214_v52 = vld [vmem:[%s10115_s2 + $0x31c] sm:$0xf] }
 0x374   :  { %2986 = vmatmul.bf16.gmra.mxu3 %v8586_v48  ;;  %3035 = vmatmul.bf16.gmra.mxu0 %v8588_v28  ;;  %v1732_v21 = vmax.f32 %v1622_v27, %v1627_v29  ;;  %v1733_v55 = vmax.f32 %v1623_v32, %v1628_v25  ;;  %v1632_v29 = vmax.f32 %v10491_v37, %v10490_v23  ;;  %v6217_v25 = vld [vmem:[%s10115_s2 + $0x334] sm:$0xf]  ;;  %v5699_v19 = vld [vmem:[%s10115_s2 + $0x2c4] sm:$0xf0]  ;;  %v5417_v23 = vld [vmem:[%s10115_s2 + $0x80] sm:$0xf] }
 0x375   :  { %3089 = vmatmul.bf16.gmra.mxu1 %v10483_v20  ;;  %3133 = vmatmul.bf16.gmra.mxu2 %v10486_v42  ;;  %v5762_v62 = vor.u32 %v6217_v25, %v5759_v40  ;;  %v5430_v32 = vor.u32 %v6135_v6, %v5429_v22  ;;  %v6132_v37 = vld [vmem:[%s10115_s2 + $0x88] sm:$0xf0]  ;;  %v6199_v5 = vld [vmem:[%s10115_s2 + $0x2a4] sm:$0xf] }
 0x376   :  { %3204 = vmatpush.bf16.msra.mxu0 %v5714_v35  ;;  %v1824_v0 = vadd.f32 %v8385_v4, %v1732_v21  ;;  %3160 = vmatpush.bf16.msra.mxu3 %v5558_v56  ;;  %v1825_v21 = vadd.f32 %v8387_v38, %v1733_v55  ;;  %v5747_v35 = vld [vmem:[%s10115_s2 + $0x324] sm:$0xf0]  ;;  %v5418_v55 = vor.u32 %v6132_v37, %v5417_v23  ;;  %v5675_v23 = vld [vmem:[%s10115_s2 + $0x294] sm:$0xf0]  ;;  %v5393_v37 = vld [vmem:[%s10115_s2 + $0x50] sm:$0xf] }
 0x377   :  { %v2938_v24 = vpop.f32.mrf.mxu2  ;;  %3257 = vmatpush.bf16.msra.mxu1 %v5762_v62  ;;  %3302 = vmatpush.bf16.msrb.mxu2 %v5430_v32  ;;  %v5690_v6 = vor.u32 %v6199_v5, %v5687_v18  ;;  %v6163_v5 = vld [vmem:[%s10115_s2 + $0x184] sm:$0xf]  ;;  %v5543_v18 = vld [vmem:[%s10115_s2 + $0x18c] sm:$0xf0] }
 0x378   :  { %v8625_v33 = vadd.f32 %v2938_v24, %v10489_v58  ;;  %v6202_v24 = vld [vmem:[%s10115_s2 + $0x2bc] sm:$0xf]  ;;  %v10496_v58 = vld [vmem:[#allocation19_spill] sm:$0xff]  ;;  %v1904_v25 = vmax.f32 %v1824_v0, 0.0  ;;  %v6211_v0 = vld [vmem:[%s10115_s2 + $0x304] sm:$0xf] }
 0x379   :  { %v1417_v63 = vpop.f32.mrf.mxu0  ;;  %v1506_v61 = vpop.f32.mrf.mxu1  ;;  %v5702_v43 = vor.u32 %v6202_v24, %v5699_v19 }
 0x37a   :  { %v1637_v8 = vmax.f32 %v10492_v16, %v1417_v63  ;;  %v1638_v27 = vmax.f32 %v10495_v59, %v1506_v61  ;;  %v2843_v63 = vadd.f32 %v10496_v58, %v8067_v15  ;;  %v5750_v16 = vor.u32 %v6214_v52, %v5747_v35  ;;  %v5405_v52 = vld [vmem:[%s10115_s2 + $0x68] sm:$0xf]  ;;  %v6129_v58 = vld [vmem:[%s10115_s2 + $0x70] sm:$0xf0]  ;;  %v6196_v35 = vld [vmem:[%s10115_s2 + $0x28c] sm:$0xf] }
 0x37b   :  { %3205 = vmatpush.bf16.msra.mxu0 %v5702_v43  ;;  %3303 = vmatpush.bf16.msrb.mxu2 %v5418_v55  ;;  %v10500_v55 = vld [vmem:[#allocation61_spill] sm:$0xff] }
 0x37c   :  { %v1737_v9 = vmax.f32 %v1632_v29, %v1637_v8  ;;  %v1738_v31 = vmax.f32 %v1633_v10, %v1638_v27  ;;  %v10497_v8 = vld [vmem:[#allocation117_spill] sm:$0xff]  ;;  %v1905_v10 = vmax.f32 %v1825_v21, 0.0  ;;  %3258 = vmatpush.bf16.msra.mxu1 %v5750_v16  ;;  %v5406_v21 = vor.u32 %v6129_v58, %v5405_v52  ;;  %v5663_v52 = vld [vmem:[%s10115_s2 + $0x27c] sm:$0xf0] }
 0x37d   :  { %v2892_v61 = vadd.f32 %v10497_v8, %v2843_v63  ;;  %v5678_v8 = vor.u32 %v6196_v35, %v5675_v23 }
 0x37e   :  { %v1829_v29 = vadd.f32 %v8385_v4, %v1737_v9  ;;  %v1830_v56 = vadd.f32 %v8387_v38, %v1738_v31  ;;  %v5735_v9 = vld [vmem:[%s10115_s2 + $0x30c] sm:$0xf0]  ;;  %v10498_v31 = vld [vmem:[#allocation69_spill] sm:$0xff] }
 0x37f   :  { %v2940_v40 = vpop.f32.mrf.mxu2  ;;  %v5738_v19 = vor.u32 %v6211_v0, %v5735_v9  ;;  %3206 = vmatpush.bf16.msra.mxu0 %v5690_v6  ;;  %3304 = vmatpush.bf16.msrb.mxu2 %v5406_v21  ;;  %v5546_v6 = vor.u32 %v6163_v5, %v5543_v18  ;;  %v10511_v5 = vld [vmem:[#allocation131_spill] sm:$0xff] }
 0x380   :  { %v1909_v22 = vmax.f32 %v1829_v29, 0.0  ;;  %v8682_v59 = vadd.f32 %v2940_v40, %v2892_v61  ;;  %v1910_v62 = vmax.f32 %v1830_v56, 0.0  ;;  %v10499_v29 = vld [vmem:[#allocation22_spill] sm:$0xff]  ;;  %v6126_v61 = vld [vmem:[%s10115_s2 + $0x58] sm:$0xf0]  ;;  %v10501_v56 = vld [vmem:[#allocation83_spill] sm:$0xff] }
 0x381   :  { %v1420_v27 = vpop.f32.mrf.mxu0  ;;  %v1509_v32 = vpop.f32.mrf.mxu1  ;;  %3259 = vmatpush.bf16.msra.mxu1 %v5738_v19  ;;  %v5394_v0 = vor.u32 %v6126_v61, %v5393_v37  ;;  %v6193_v19 = vld [vmem:[%s10115_s2 + $0x274] sm:$0xf]  ;;  %3161 = vmatpush.bf16.msra.mxu3 %v5546_v6  ;;  %v6123_v37 = vld [vmem:[%s10115_s2 + $0x40] sm:$0xf0]  ;;  %v6190_v6 = vld [vmem:[%s10115_s2 + $0x25c] sm:$0xf] }
 0x382   :  { %v8690_v24 = vpack.c.bf16 %v1909_v22, %v1904_v25  ;;  %v8698_v63 = vpack.c.bf16 %v1910_v62, %v1905_v10  ;;  %v1647_v43 = vmax.f32 %v10498_v31, %v1420_v27  ;;  %v1648_v16 = vmax.f32 %v10499_v29, %v1509_v32  ;;  %v10502_v25 = vld [vmem:[#allocation36_spill] sm:$0xff]  ;;  %v10503_v22 = vld [vmem:[#allocation10_spill] sm:$0xff]  ;;  %v10505_v27 = vld [vmem:[#allocation127_spill] sm:$0xff] }
 0x383   :  { %v1642_v40 = vmax.f32 %v10502_v25, %v10501_v56  ;;  %v10504_v10 = vld [vmem:[#allocation108_spill] sm:$0xff]  ;;  %3207 = vmatpush.bf16.msra.mxu0 %v5678_v8  ;;  %v10506_v31 = vld [vmem:[#allocation118_spill] sm:$0xff]  ;;  %v5666_v21 = vor.u32 %v6193_v19, %v5663_v52  ;;  %v10507_v29 = vld [vmem:[#allocation87_spill] sm:$0xff]  ;;  %3305 = vmatpush.bf16.msrb.mxu2 %v5394_v0 }
 0x384   :  { %2991 = vmatmul.bf16.gmra.mxu3 %v8690_v24  ;;  %3040 = vmatmul.bf16.gmra.mxu0 %v8698_v63  ;;  %v1643_v62 = vmax.f32 %v10505_v27, %v10504_v10  ;;  %v10508_v8 = vld [vmem:[#allocation40_spill] sm:$0xff]  ;;  %v10509_v56 = vld [vmem:[#allocation70_spill] sm:$0xff]  ;;  %v10512_v10 = vld [vmem:[#allocation23_spill] sm:$0xff] }
 0x385   :  { %3094 = vmatmul.bf16.gmra.mxu1 %v10500_v55  ;;  %3138 = vmatmul.bf16.gmra.mxu2 %v10503_v22  ;;  %v1742_v9 = vmax.f32 %v1642_v40, %v1647_v43  ;;  %v5381_v43 = vld [vmem:[%s10115_s2 + $0x38] sm:$0xf]  ;;  %v1652_v61 = vmax.f32 %v10508_v8, %v10507_v29  ;;  %v6120_v0 = vld [vmem:[%s10115_s2 + $0x28] sm:$0xf0] }
 0x386   :  { %v1743_v58 = vmax.f32 %v1643_v62, %v1648_v16  ;;  %v10510_v40 = vld [vmem:[#allocation57_spill] sm:$0xff]  ;;  %v5382_v62 = vor.u32 %v6123_v37, %v5381_v43 }
 0x387   :  { %v2943_v32 = vpop.f32.mrf.mxu2  ;;  %v1653_v18 = vmax.f32 %v10511_v5, %v10510_v40  ;;  %3208 = vmatpush.bf16.msra.mxu0 %v5666_v21  ;;  %v1834_v19 = vadd.f32 %v8385_v4, %v1742_v9  ;;  %v10513_v21 = vld [vmem:[#allocation120_spill] sm:$0xff] }
 0x388   :  { %v8735_v35 = vadd.f32 %v2943_v32, %v10506_v31  ;;  %v5651_v32 = vld [vmem:[%s10115_s2 + $0x264] sm:$0xf0]  ;;  %v2848_v43 = vadd.f32 %v10513_v21, %v8067_v15  ;;  %v1835_v37 = vadd.f32 %v8387_v38, %v1743_v58  ;;  %3306 = vmatpush.bf16.msrb.mxu2 %v5382_v62  ;;  %v5639_v58 = vld [vmem:[%s10115_s2 + $0x24c] sm:$0xf0] }
 0x389   :  { %v1422_v23 = vpop.f32.mrf.mxu0  ;;  %v1511_v16 = vpop.f32.mrf.mxu1  ;;  %v5654_v31 = vor.u32 %v6190_v6, %v5651_v32  ;;  %v5357_v62 = vld [vmem:[%s10115_s2 + $0x8] sm:$0xf] }
 0x38a   :  { %v1657_v25 = vmax.f32 %v10509_v56, %v1422_v23  ;;  %v1658_v27 = vmax.f32 %v10512_v10, %v1511_v16  ;;  %v5369_v23 = vld [vmem:[%s10115_s2 + $0x20] sm:$0xf]  ;;  %v10514_v56 = vld [vmem:[#allocation76_spill] sm:$0xff]  ;;  %v1914_v16 = vmax.f32 %v1834_v19, 0.0  ;;  %v6187_v10 = vld [vmem:[%s10115_s2 + $0x244] sm:$0xf] }
 0x38b   :  { %v2897_v9 = vadd.f32 %v10514_v56, %v2848_v43  ;;  %3209 = vmatpush.bf16.msra.mxu0 %v5654_v31  ;;  %v6117_v19 = vld [vmem:[%s10115_s2 + $0x10] sm:$0xf0]  ;;  %v10517_v56 = vld [vmem:[#allocation15_spill] sm:$0xff] }
 0x38c   :  { %v1747_v52 = vmax.f32 %v1652_v61, %v1657_v25  ;;  %v1748_v29 = vmax.f32 %v1653_v18, %v1658_v27  ;;  %v5370_v25 = vor.u32 %v6120_v0, %v5369_v23  ;;  %v1915_v18 = vmax.f32 %v1835_v37, 0.0  ;;  %v10515_v43 = vld [vmem:[#allocation72_spill] sm:$0xff] }
 0x38d   :  { %v5358_v21 = vor.u32 %v6117_v19, %v5357_v62  ;;  %v10523_v19 = vld [vmem:[#allocation124_spill] sm:$0xff] }
 0x38e   :  { %v1839_v8 = vadd.f32 %v8385_v4, %v1747_v52  ;;  %v1840_v61 = vadd.f32 %v8387_v38, %v1748_v29  ;;  %v5642_v52 = vor.u32 %v6187_v10, %v5639_v58  ;;  %3307 = vmatpush.bf16.msrb.mxu2 %v5370_v25  ;;  %v10516_v29 = vld [vmem:[#allocation25_spill] sm:$0xff]  ;;  %v5537_v25 = vld [vmem:[%s10115_s2 + $0x170] sm:$0xf]  ;;  %v10521_v10 = vld [vmem:[#allocation11_spill] sm:$0xff] }
 0x38f   :  { %v2945_v40 = vpop.f32.mrf.mxu2  ;;  %v10522_v58 = vld [vmem:[#allocation135_spill] sm:$0xff] }
 0x390   :  { %v1919_v5 = vmax.f32 %v1839_v8, 0.0  ;;  %v8774_v27 = vadd.f32 %v2945_v40, %v2897_v9  ;;  %v1920_v32 = vmax.f32 %v1840_v61, 0.0  ;;  %3210 = vmatpush.bf16.msra.mxu0 %v5642_v52  ;;  %v10518_v9 = vld [vmem:[#allocation91_spill] sm:$0xff]  ;;  %v10519_v61 = vld [vmem:[#allocation44_spill] sm:$0xff] }
 0x391   :  { %v1425_v6 = vpop.f32.mrf.mxu0  ;;  %v1514_v31 = vpop.f32.mrf.mxu1  ;;  %v1662_v40 = vmax.f32 %v10519_v61, %v10518_v9  ;;  %v10525_v9 = vld [vmem:[#allocation48_spill] sm:$0xff] }
 0x392   :  { %v8782_v23 = vpack.c.bf16 %v1919_v5, %v1914_v16  ;;  %v8784_v0 = vpack.c.bf16 %v1920_v32, %v1915_v18  ;;  %v1667_v37 = vmax.f32 %v10515_v43, %v1425_v6  ;;  %v1668_v8 = vmax.f32 %v10516_v29, %v1514_v31  ;;  %v10520_v16 = vld [vmem:[#allocation109_spill] sm:$0xff]  ;;  %3308 = vmatpush.bf16.msrb.mxu2 %v5358_v21  ;;  %v10524_v29 = vld [vmem:[#allocation95_spill] sm:$0xff] }
 0x393   :  { %v6162_v5 = vld [vmem:[%s10115_s2 + $0x178] sm:$0xf0]  ;;  %v1663_v18 = vmax.f32 %v10522_v58, %v10521_v10  ;;  %v1672_v61 = vmax.f32 %v10525_v9, %v10524_v29 }
 0x394   :  { %2996 = vmatmul.bf16.gmra.mxu3 %v8782_v23  ;;  %3045 = vmatmul.bf16.gmra.mxu0 %v8784_v0  ;;  %v5538_v6 = vor.u32 %v6162_v5, %v5537_v25  ;;  %v1752_v32 = vmax.f32 %v1662_v40, %v1667_v37  ;;  %v10529_v10 = vld [vmem:[#allocation121_spill] sm:$0xff] }
 0x395   :  { %3099 = vmatmul.bf16.gmra.mxu1 %v10517_v56  ;;  %3143 = vmatmul.bf16.gmra.mxu2 %v10520_v16  ;;  %v1753_v62 = vmax.f32 %v1663_v18, %v1668_v8  ;;  %v10526_v16 = vld [vmem:[#allocation29_spill] sm:$0xff]  ;;  %v10530_v8 = vld [vmem:[#allocation122_spill] sm:$0xff] }
 0x396   :  { %3350 = vmatpush.bf16.msrb.mxu3 %v5538_v6  ;;  %v1844_v37 = vadd.f32 %v8385_v4, %v1752_v32  ;;  %v2853_v25 = vadd.f32 %v10530_v8, %v8067_v15  ;;  %v10531_v6 = vld [vmem:[#allocation73_spill] sm:$0xff] }
 0x397   :  { %v2948_v52 = vpop.f32.mrf.mxu2  ;;  %v1845_v5 = vadd.f32 %v8387_v38, %v1753_v62 }
 0x398   :  { %v8803_v31 = vadd.f32 %v2948_v52, %v10523_v19  ;;  %v2902_v52 = vadd.f32 %v10531_v6, %v2853_v25  ;;  %v1924_v19 = vmax.f32 %v1844_v37, 0.0  ;;  %v2906_v37 = vpop.f32.mrf.mxu3  ;;  %v6456_v6 = vld [vmem:[%s10116_s4 + $0x5] sm:$0x7] }
 0x399   :  { %v1427_v43 = vpop.f32.mrf.mxu0  ;;  %v1516_v42 = vpop.f32.mrf.mxu1  ;;  %v1925_v41 = vmax.f32 %v1845_v5, 0.0 }
 0x39a   :  { %v1677_v22 = vmax.f32 %v10526_v16, %v1427_v43  ;;  %v1678_v21 = vmax.f32 %v10529_v10, %v1516_v42 }
 0x39c   :  { %v1757_v40 = vmax.f32 %v1672_v61, %v1677_v22  ;;  %v1758_v58 = vmax.f32 %v1673_v11, %v1678_v21  ;;  %v10532_v11 = vld [vmem:[#allocation110_spill] sm:$0xff] }
 0x39e   :  { %v1849_v18 = vadd.f32 %v8385_v4, %v1757_v40  ;;  %v1850_v16 = vadd.f32 %v8387_v38, %v1758_v58  ;;  %v5525_v4 = vld [vmem:[%s10115_s2 + $0x158] sm:$0xf]  ;;  %v6159_v38 = vld [vmem:[%s10115_s2 + $0x160] sm:$0xf0]  ;;  %v2858_v40 = vadd.f32 %v8408_v14, %v8067_v15  ;;  %v5513_v15 = vld [vmem:[%s10115_s2 + $0x140] sm:$0xf] }
 0x39f   :  { %v2950_v43 = vpop.f32.mrf.mxu2  ;;  %v5526_v62 = vor.u32 %v6159_v38, %v5525_v4  ;;  %v6156_v14 = vld [vmem:[%s10115_s2 + $0x148] sm:$0xf0] }
 0x3a0   :  { %v1929_v1 = vmax.f32 %v1849_v18, 0.0  ;;  %v8818_v42 = vadd.f32 %v2950_v43, %v2902_v52  ;;  %v1930_v32 = vmax.f32 %v1850_v16, 0.0  ;;  %v2907_v8 = vadd.f32 %v2906_v37, %v2858_v40  ;;  %v10534_v16 = vld [vmem:[#allocation145_spill] sm:$0xff] }
 0x3a1   :  { %v3065_v22 = vpop.f32.mrf.mxu1  ;;  %3351 = vmatpush.bf16.msrb.mxu3 %v5526_v62  ;;  %v8844_v52 = vperm.slane %v6456_v6, 1  ;;  %v5514_v43 = vor.u32 %v6156_v14, %v5513_v15 }
 0x3a2   :  { %v8820_v29 = vpack.c.bf16 %v1929_v1, %v1924_v19  ;;  %v8822_v9 = vpack.c.bf16 %v1930_v32, %v1925_v41 }
 0x3a3   :  { %v3066_v1 = vadd.f32 %v3065_v22, %v8844_v52 }
 0x3a4   :  { %3001 = vmatmul.bf16.gmra.mxu3 %v8820_v29  ;;  %3050 = vmatmul.bf16.gmra.mxu0 %v8822_v9 }
 0x3a5   :  { %3260 = vmatmul.bf16.vlgmr.msra.gmra.mxu1 %v8412_v60  ;;  %3148 = vmatmul.bf16.gmra.mxu2 %v10532_v11 }
 0x3a6   :  { %3352 = vmatpush.bf16.msrb.mxu3 %v5514_v43 }
 0x3a7   :  { %v2953_v61 = vpop.f32.mrf.mxu2 }
 0x3a8   :  { %v8835_v10 = vadd.f32 %v2953_v61, %v8406_v46  ;;  %v10533_v46 = vld [vmem:[#allocation146_spill] sm:$0xff] }
 0x3a9   :  { %v3067_v21 = vpop.f32.mrf.mxu1 }
 0x3aa   :  { %v3068_v40 = vadd.f32 %v3067_v21, %v8844_v52  ;;  %v5501_v21 = vld [vmem:[%s10115_s2 + $0x128] sm:$0xf] }
 0x3af   :  { %v2955_v25 = vpop.f32.mrf.mxu2 }
 0x3b0   :  { %v8839_v5 = vadd.f32 %v2955_v25, %v2907_v8 }
 0x3b1   :  { %v3016_v58 = vpop.f32.mrf.mxu0 }
 0x3b2   :  { %v3070_v18 = vpop.f32.mrf.mxu1 }
 0x3b4   :  { %3162 = vmatmul.bf16.vlgmr.msra.gmra.mxu3 %v10533_v46  ;;  %3211 = vmatmul.bf16.vlgmr.msra.gmra.mxu0 %v8410_v45 }
 0x3b5   :  { %3265 = vmatmul.bf16.gmra.mxu1 %v8450_v13  ;;  %3309 = vmatmul.bf16.vlgmr.msrb.gmra.mxu2 %v10534_v16 }
 0x3b7   :  { %v2967_v19 = vpop.f32.mrf.mxu3 }
 0x3b8   :  { %v2968_v41 = vadd.f32 %v2967_v19, %v8425_v39  ;;  %v3114_v32 = vpop.f32.mrf.mxu2  ;;  %v10536_v39 = vld [vmem:[#allocation148_spill] sm:$0xff]  ;;  %v3071_v19 = vadd.f32 %v3070_v18, %v8844_v52 }
 0x3b9   :  { %v8858_v4 = vadd.f32 %v3114_v32, %v3066_v1  ;;  %v3018_v38 = vpop.f32.mrf.mxu0 }
 0x3ba   :  { %v3072_v62 = vpop.f32.mrf.mxu1  ;;  %v8860_v61 = vadd.f32 %v3016_v58, %v2968_v41 }
 0x3bf   :  { %v2969_v37 = vpop.f32.mrf.mxu3 }
 0x3c0   :  { %v2970_v8 = vadd.f32 %v2969_v37, %v8446_v54  ;;  %v3116_v25 = vpop.f32.mrf.mxu2  ;;  %v6153_v54 = vld [vmem:[%s10115_s2 + $0x130] sm:$0xf0] }
 0x3c1   :  { %v8864_v6 = vadd.f32 %v3116_v25, %v3068_v40  ;;  %v3021_v16 = vpop.f32.mrf.mxu0  ;;  %v5502_v14 = vor.u32 %v6153_v54, %v5501_v21  ;;  %v3073_v40 = vadd.f32 %v3072_v62, %v8844_v52  ;;  %v5489_v62 = vld [vmem:[%s10115_s2 + $0x110] sm:$0xf] }
 0x3c2   :  { %v3075_v22 = vpop.f32.mrf.mxu1  ;;  %v8866_v15 = vadd.f32 %v3018_v38, %v2970_v8 }
 0x3c3   :  { %3353 = vmatpush.bf16.msrb.mxu3 %v5502_v14  ;;  %v3076_v14 = vadd.f32 %v3075_v22, %v8844_v52 }
 0x3c4   :  { %10535 = vst [vmem:[#allocation26_spill] sm:$0xff] %v8866_v15  ;;  %3167 = vmatmul.bf16.gmra.mxu3 %v10536_v39  ;;  %3216 = vmatmul.bf16.gmra.mxu0 %v8448_v49 }
 0x3c5   :  { %3270 = vmatmul.bf16.gmra.mxu1 %v8488_v51  ;;  %3314 = vmatmul.bf16.gmra.mxu2 %v7736_v50 }
 0x3c7   :  { %v2972_v58 = vpop.f32.mrf.mxu3 }
 0x3c8   :  { %v2973_v43 = vadd.f32 %v2972_v58, %v8463_v2  ;;  %v3119_v1 = vpop.f32.mrf.mxu2  ;;  %v10539_v2 = vld [vmem:[#allocation54_spill] sm:$0xff] }
 0x3c9   :  { %v8880_v41 = vadd.f32 %v3119_v1, %v3071_v19  ;;  %v3023_v32 = vpop.f32.mrf.mxu0 }
 0x3ca   :  { %v3077_v50 = vpop.f32.mrf.mxu1  ;;  %v8882_v38 = vadd.f32 %v3021_v16, %v2973_v43 }
 0x3cc   :  { %10537 = vst [vmem:[#allocation74_spill] sm:$0xff] %v8882_v38 }
 0x3cf   :  { %v2974_v37 = vpop.f32.mrf.mxu3 }
 0x3d0   :  { %v2975_v8 = vadd.f32 %v2974_v37, %v8484_v47  ;;  %v3121_v25 = vpop.f32.mrf.mxu2  ;;  %v6150_v47 = vld [vmem:[%s10115_s2 + $0x118] sm:$0xf0] }
 0x3d1   :  { %v8886_v15 = vadd.f32 %v3121_v25, %v3073_v40  ;;  %v3026_v21 = vpop.f32.mrf.mxu0  ;;  %v5490_v58 = vor.u32 %v6150_v47, %v5489_v62 }
 0x3d2   :  { %v3080_v18 = vpop.f32.mrf.mxu1  ;;  %v8888_v54 = vadd.f32 %v3023_v32, %v2975_v8  ;;  %v3078_v8 = vadd.f32 %v3077_v50, %v8844_v52  ;;  %v5477_v50 = vld [vmem:[%s10115_s2 + $0xf8] sm:$0xf] }
 0x3d3   :  { %3354 = vmatpush.bf16.msrb.mxu3 %v5490_v58 }
 0x3d4   :  { %10538 = vst [vmem:[#allocation27_spill] sm:$0xff] %v8888_v54  ;;  %3172 = vmatmul.bf16.gmra.mxu3 %v10539_v2  ;;  %3221 = vmatmul.bf16.gmra.mxu0 %v8486_v7 }
 0x3d5   :  { %3275 = vmatmul.bf16.gmra.mxu1 %v8526_v34  ;;  %3319 = vmatmul.bf16.gmra.mxu2 %v7775_v17 }
 0x3d7   :  { %v2977_v16 = vpop.f32.mrf.mxu3 }
 0x3d8   :  { %v2978_v19 = vadd.f32 %v2977_v16, %v8501_v53  ;;  %v3124_v43 = vpop.f32.mrf.mxu2  ;;  %v10542_v53 = vld [vmem:[#allocation105_spill] sm:$0xff]  ;;  %v5729_v16 = vld [vmem:[%s10115_s2 + $0x2f0] sm:$0xf] }
 0x3d9   :  { %v8902_v1 = vadd.f32 %v3124_v43, %v3076_v14  ;;  %v3028_v32 = vpop.f32.mrf.mxu0 }
 0x3da   :  { %v3082_v17 = vpop.f32.mrf.mxu1  ;;  %v8904_v37 = vadd.f32 %v3026_v21, %v2978_v19  ;;  %v6210_v21 = vld [vmem:[%s10115_s2 + $0x2f8] sm:$0xf0]  ;;  %v3081_v19 = vadd.f32 %v3080_v18, %v8844_v52  ;;  %v6204_v18 = vld [vmem:[%s10115_s2 + $0x2c8] sm:$0xf0] }
 0x3dc   :  { %10540 = vst [vmem:[#allocation77_spill] sm:$0xff] %v8904_v37 }
 0x3df   :  { %v2979_v40 = vpop.f32.mrf.mxu3 }
 0x3e0   :  { %v2980_v25 = vadd.f32 %v2979_v40, %v8522_v36  ;;  %v3126_v54 = vpop.f32.mrf.mxu2  ;;  %v5730_v36 = vor.u32 %v6210_v21, %v5729_v16 }
 0x3e1   :  { %v8908_v38 = vadd.f32 %v3126_v54, %v3078_v8  ;;  %v3031_v62 = vpop.f32.mrf.mxu0  ;;  %v6147_v54 = vld [vmem:[%s10115_s2 + $0x100] sm:$0xf0] }
 0x3e2   :  { %v3085_v22 = vpop.f32.mrf.mxu1  ;;  %v8910_v47 = vadd.f32 %v3028_v32, %v2980_v25  ;;  %v5478_v14 = vor.u32 %v6147_v54, %v5477_v50  ;;  %3448 = vmatpush.bf16.msrb.mxu1 %v5730_v36  ;;  %v5717_v32 = vld [vmem:[%s10115_s2 + $0x2d8] sm:$0xf] }
 0x3e4   :  { %10541 = vst [vmem:[#allocation30_spill] sm:$0xff] %v8910_v47  ;;  %3177 = vmatmul.bf16.gmra.mxu3 %v10542_v53  ;;  %3226 = vmatmul.bf16.gmra.mxu0 %v8524_v57  ;;  %v6183_v47 = vld [vmem:[%s10115_s2 + $0x220] sm:$0xf0] }
 0x3e5   :  { %3280 = vmatmul.bf16.gmra.mxu1 %v8588_v28  ;;  %3324 = vmatmul.bf16.gmra.mxu2 %v7814_v44  ;;  %v6207_v44 = vld [vmem:[%s10115_s2 + $0x2e0] sm:$0xf0] }
 0x3e6   :  { %3355 = vmatpush.bf16.msrb.mxu3 %v5478_v14  ;;  %v5718_v8 = vor.u32 %v6207_v44, %v5717_v32 }
 0x3e7   :  { %v2982_v58 = vpop.f32.mrf.mxu3 }
 0x3e8   :  { %v2983_v43 = vadd.f32 %v2982_v58, %v8551_v12  ;;  %v3129_v40 = vpop.f32.mrf.mxu2  ;;  %3449 = vmatpush.bf16.msrb.mxu1 %v5718_v8  ;;  %v5705_v12 = vld [vmem:[%s10115_s2 + $0x2c0] sm:$0xf]  ;;  %v3083_v58 = vadd.f32 %v3082_v17, %v8844_v52  ;;  %v10545_v17 = vld [vmem:[#allocation13_spill] sm:$0xff] }
 0x3e9   :  { %v8936_v25 = vadd.f32 %v3129_v40, %v3081_v19  ;;  %v3033_v16 = vpop.f32.mrf.mxu0  ;;  %v5706_v50 = vor.u32 %v6204_v18, %v5705_v12  ;;  %v6201_v19 = vld [vmem:[%s10115_s2 + $0x2b0] sm:$0xf0]  ;;  %v6186_v18 = vld [vmem:[%s10115_s2 + $0x238] sm:$0xf0] }
 0x3ea   :  { %v8938_v21 = vpop.f32.mrf.mxu1  ;;  %v8940_v36 = vadd.f32 %v3031_v62, %v2983_v43  ;;  %v5693_v62 = vld [vmem:[%s10115_s2 + $0x2a8] sm:$0xf] }
 0x3eb   :  { %v5694_v32 = vor.u32 %v6201_v19, %v5693_v62  ;;  %v5465_v62 = vld [vmem:[%s10115_s2 + $0xe0] sm:$0xf]  ;;  %v6144_v19 = vld [vmem:[%s10115_s2 + $0xe8] sm:$0xf0] }
 0x3ec   :  { %10543 = vst [vmem:[#allocation125_spill] sm:$0xff] %v8940_v36  ;;  %3450 = vmatpush.bf16.msrb.mxu1 %v5706_v50  ;;  %v5681_v50 = vld [vmem:[%s10115_s2 + $0x290] sm:$0xf] }
 0x3ef   :  { %v2984_v54 = vpop.f32.mrf.mxu3 }
 0x3f0   :  { %v2985_v14 = vadd.f32 %v2984_v54, %v8584_v30  ;;  %v3131_v43 = vpop.f32.mrf.mxu2  ;;  %3451 = vmatpush.bf16.msrb.mxu1 %v5694_v32  ;;  %v5633_v30 = vld [vmem:[%s10115_s2 + $0x230] sm:$0xf]  ;;  %v6198_v54 = vld [vmem:[%s10115_s2 + $0x298] sm:$0xf0] }
 0x3f1   :  { %v8956_v44 = vadd.f32 %v3131_v43, %v3083_v58  ;;  %v3036_v40 = vpop.f32.mrf.mxu0  ;;  %v5825_v58 = vld [vmem:[%s10115_s2 + $0x3b0] sm:$0xf]  ;;  %v5682_v43 = vor.u32 %v6198_v54, %v5681_v50  ;;  %v5669_v50 = vld [vmem:[%s10115_s2 + $0x278] sm:$0xf] }
 0x3f2   :  { %v8958_v8 = vpop.f32.mrf.mxu1  ;;  %v8960_v12 = vadd.f32 %v3033_v16, %v2985_v14  ;;  %v5634_v16 = vor.u32 %v6186_v18, %v5633_v30  ;;  %v6234_v14 = vld [vmem:[%s10115_s2 + $0x3b8] sm:$0xf0]  ;;  %v5466_v18 = vor.u32 %v6144_v19, %v5465_v62 }
 0x3f3   :  { %v5826_v32 = vor.u32 %v6234_v14, %v5825_v58  ;;  %v6231_v58 = vld [vmem:[%s10115_s2 + $0x3a0] sm:$0xf0] }
 0x3f4   :  { %10544 = vst [vmem:[#allocation78_spill] sm:$0xff] %v8960_v12  ;;  %3182 = vmatmul.bf16.gmra.mxu3 %v10545_v17  ;;  %3231 = vmatmul.bf16.gmra.mxu0 %v8586_v48  ;;  %v3086_v12 = vadd.f32 %v3085_v22, %v8844_v52  ;;  %v5813_v22 = vld [vmem:[%s10115_s2 + $0x398] sm:$0xf] }
 0x3f5   :  { %3285 = vmatmul.bf16.gmra.mxu1 %v8698_v63  ;;  %3329 = vmatmul.bf16.gmra.mxu2 %v7853_v3  ;;  %v5621_v3 = vld [vmem:[%s10115_s2 + $0x218] sm:$0xf] }
 0x3f6   :  { %3399 = vmatpush.bf16.msrb.mxu0 %v5634_v16  ;;  %3452 = vmatpush.bf16.msrb.mxu1 %v5682_v43  ;;  %v5622_v16 = vor.u32 %v6183_v47, %v5621_v3 }
 0x3f7   :  { %v2987_v30 = vpop.f32.mrf.mxu3  ;;  %3497 = vmatpush.bf16.msra.mxu2 %v5826_v32  ;;  %3356 = vmatpush.bf16.msrb.mxu3 %v5466_v18  ;;  %v5814_v32 = vor.u32 %v6231_v58, %v5813_v22  ;;  %v6180_v18 = vld [vmem:[%s10115_s2 + $0x208] sm:$0xf0]  ;;  %v3088_v22 = vadd.f32 %v8938_v21, %v8844_v52  ;;  %v5789_v21 = vld [vmem:[%s10115_s2 + $0x368] sm:$0xf] }
 0x3f8   :  { %v2988_v36 = vadd.f32 %v2987_v30, %v8625_v33  ;;  %v3134_v54 = vpop.f32.mrf.mxu2  ;;  %v6195_v33 = vld [vmem:[%s10115_s2 + $0x280] sm:$0xf0]  ;;  %v5609_v30 = vld [vmem:[%s10115_s2 + $0x200] sm:$0xf] }
 0x3f9   :  { %v9010_v14 = vadd.f32 %v3134_v54, %v3086_v12  ;;  %v3038_v62 = vpop.f32.mrf.mxu0  ;;  %v5670_v43 = vor.u32 %v6195_v33, %v5669_v50  ;;  %v5657_v12 = vld [vmem:[%s10115_s2 + $0x260] sm:$0xf]  ;;  %v5610_v3 = vor.u32 %v6180_v18, %v5609_v30  ;;  %v6228_v50 = vld [vmem:[%s10115_s2 + $0x388] sm:$0xf0]  ;;  %v5645_v30 = vld [vmem:[%s10115_s2 + $0x248] sm:$0xf] }
 0x3fa   :  { %v9012_v19 = vpop.f32.mrf.mxu1  ;;  %v9014_v47 = vadd.f32 %v3036_v40, %v2988_v36  ;;  %3400 = vmatpush.bf16.msrb.mxu0 %v5622_v16  ;;  %v6192_v36 = vld [vmem:[%s10115_s2 + $0x268] sm:$0xf0]  ;;  %v5801_v40 = vld [vmem:[%s10115_s2 + $0x380] sm:$0xf] }
 0x3fb   :  { %3453 = vmatpush.bf16.msrb.mxu1 %v5670_v43  ;;  %3498 = vmatpush.bf16.msra.mxu2 %v5814_v32  ;;  %v5658_v54 = vor.u32 %v6192_v36, %v5657_v12  ;;  %v5802_v16 = vor.u32 %v6228_v50, %v5801_v40  ;;  %v5597_v43 = vld [vmem:[%s10115_s2 + $0x1e8] sm:$0xf]  ;;  %v6177_v32 = vld [vmem:[%s10115_s2 + $0x1f0] sm:$0xf0] }
 0x3fc   :  { %10546 = vst [vmem:[#allocation31_spill] sm:$0xff] %v9014_v47  ;;  %v5598_v12 = vor.u32 %v6177_v32, %v5597_v43  ;;  %v10548_v43 = vld [vmem:[#allocation58_spill] sm:$0xff]  ;;  %v5585_v32 = vld [vmem:[%s10115_s2 + $0x1d0] sm:$0xf] }
 0x3fe   :  { %3401 = vmatpush.bf16.msrb.mxu0 %v5610_v3  ;;  %v6225_v3 = vld [vmem:[%s10115_s2 + $0x370] sm:$0xf0] }
 0x3ff   :  { %v2989_v33 = vpop.f32.mrf.mxu3  ;;  %3454 = vmatpush.bf16.msrb.mxu1 %v5658_v54  ;;  %3499 = vmatpush.bf16.msra.mxu2 %v5802_v16 }
 0x400   :  { %v2990_v58 = vadd.f32 %v2989_v33, %v8682_v59  ;;  %v3136_v18 = vpop.f32.mrf.mxu2  ;;  %v6189_v59 = vld [vmem:[%s10115_s2 + $0x250] sm:$0xf0]  ;;  %v5790_v33 = vor.u32 %v6225_v3, %v5789_v21 }
 0x401   :  { %v9055_v36 = vadd.f32 %v3136_v18, %v3088_v22  ;;  %v3041_v40 = vpop.f32.mrf.mxu0  ;;  %v5646_v54 = vor.u32 %v6189_v59, %v5645_v30  ;;  %v6174_v22 = vld [vmem:[%s10115_s2 + $0x1d8] sm:$0xf0]  ;;  %v5777_v18 = vld [vmem:[%s10115_s2 + $0x350] sm:$0xf]  ;;  %v5453_v30 = vld [vmem:[%s10115_s2 + $0xc8] sm:$0xf] }
 0x402   :  { %v9057_v50 = vpop.f32.mrf.mxu1  ;;  %v9059_v16 = vadd.f32 %v3038_v62, %v2990_v58  ;;  %3402 = vmatpush.bf16.msrb.mxu0 %v5598_v12  ;;  %v5586_v62 = vor.u32 %v6174_v22, %v5585_v32  ;;  %v6222_v58 = vld [vmem:[%s10115_s2 + $0x358] sm:$0xf0]  ;;  %v6141_v12 = vld [vmem:[%s10115_s2 + $0xd0] sm:$0xf0]  ;;  %v6171_v22 = vld [vmem:[%s10115_s2 + $0x1c0] sm:$0xf0] }
 0x403   :  { %3455 = vmatpush.bf16.msrb.mxu1 %v5646_v54  ;;  %3500 = vmatpush.bf16.msra.mxu2 %v5790_v33  ;;  %v5454_v21 = vor.u32 %v6141_v12, %v5453_v30  ;;  %v5778_v3 = vor.u32 %v6222_v58, %v5777_v18  ;;  %v3091_v54 = vadd.f32 %v8958_v8, %v8844_v52  ;;  %v5765_v33 = vld [vmem:[%s10115_s2 + $0x338] sm:$0xf]  ;;  %v6219_v8 = vld [vmem:[%s10115_s2 + $0x340] sm:$0xf0]  ;;  %v5561_v12 = vld [vmem:[%s10115_s2 + $0x1a0] sm:$0xf] }
 0x404   :  { %10547 = vst [vmem:[#allocation126_spill] sm:$0xff] %v9059_v16  ;;  %3187 = vmatmul.bf16.gmra.mxu3 %v10548_v43  ;;  %3236 = vmatmul.bf16.gmra.mxu0 %v8690_v24 }
 0x405   :  { %3290 = vmatmul.bf16.gmra.mxu1 %v8784_v0  ;;  %3334 = vmatmul.bf16.gmra.mxu2 %v10483_v20  ;;  %v5573_v20 = vld [vmem:[%s10115_s2 + $0x1b8] sm:$0xf] }
 0x406   :  { %3403 = vmatpush.bf16.msrb.mxu0 %v5586_v62  ;;  %3357 = vmatpush.bf16.msrb.mxu3 %v5454_v21  ;;  %v5574_v18 = vor.u32 %v6171_v22, %v5573_v20  ;;  %v5766_v21 = vor.u32 %v6219_v8, %v5765_v33  ;;  %v6216_v22 = vld [vmem:[%s10115_s2 + $0x328] sm:$0xf0]  ;;  %v6165_v33 = vld [vmem:[%s10115_s2 + $0x190] sm:$0xf0] }
 0x407   :  { %v2992_v59 = vpop.f32.mrf.mxu3  ;;  %3501 = vmatpush.bf16.msra.mxu2 %v5778_v3 }
 0x408   :  { %v2993_v32 = vadd.f32 %v2992_v59, %v8735_v35  ;;  %v3139_v30 = vpop.f32.mrf.mxu2  ;;  %v6168_v59 = vld [vmem:[%s10115_s2 + $0x1a8] sm:$0xf0] }
 0x409   :  { %v9098_v35 = vadd.f32 %v3139_v30, %v3091_v54  ;;  %v3043_v62 = vpop.f32.mrf.mxu0  ;;  %v5562_v20 = vor.u32 %v6168_v59, %v5561_v12  ;;  %v5753_v54 = vld [vmem:[%s10115_s2 + $0x320] sm:$0xf] }
 0x40a   :  { %v3097_v58 = vpop.f32.mrf.mxu1  ;;  %v9106_v16 = vadd.f32 %v3041_v40, %v2993_v32  ;;  %3404 = vmatpush.bf16.msrb.mxu0 %v5574_v18  ;;  %v5754_v47 = vor.u32 %v6216_v22, %v5753_v54  ;;  %v3093_v40 = vadd.f32 %v9012_v19, %v8844_v52  ;;  %v5549_v32 = vld [vmem:[%s10115_s2 + $0x188] sm:$0xf]  ;;  %v6213_v19 = vld [vmem:[%s10115_s2 + $0x310] sm:$0xf0]  ;;  %v10551_v22 = vld [vmem:[#allocation62_spill] sm:$0xff] }
 0x40b   :  { %3502 = vmatpush.bf16.msra.mxu2 %v5766_v21  ;;  %v5741_v18 = vld [vmem:[%s10115_s2 + $0x308] sm:$0xf]  ;;  %v5550_v12 = vor.u32 %v6165_v33, %v5549_v32 }
 0x40c   :  { %10549 = vst [vmem:[#allocation128_spill] sm:$0xff] %v9106_v16  ;;  %v5742_v54 = vor.u32 %v6213_v19, %v5741_v18  ;;  %v10554_v16 = vld [vmem:[#allocation112_spill] sm:$0xff] }
 0x40e   :  { %3405 = vmatpush.bf16.msrb.mxu0 %v5562_v20 }
 0x40f   :  { %v2994_v30 = vpop.f32.mrf.mxu3  ;;  %3503 = vmatpush.bf16.msra.mxu2 %v5754_v47 }
 0x410   :  { %v2995_v3 = vadd.f32 %v2994_v30, %v8774_v27  ;;  %v3141_v8 = vpop.f32.mrf.mxu2  ;;  %v5913_v30 = vld [vmem:[%s10115_s2 + $0x468] sm:$0xf] }
 0x411   :  { %v9129_v59 = vadd.f32 %v3141_v8, %v3093_v40  ;;  %v3046_v27 = vpop.f32.mrf.mxu0 }
 0x412   :  { %v3100_v21 = vpop.f32.mrf.mxu1  ;;  %v9131_v20 = vadd.f32 %v3043_v62, %v2995_v3  ;;  %3406 = vmatpush.bf16.msrb.mxu0 %v5550_v12  ;;  %v6257_v62 = vld [vmem:[%s10115_s2 + $0x470] sm:$0xf0]  ;;  %v3096_v3 = vadd.f32 %v9057_v50, %v8844_v52 }
 0x413   :  { %3504 = vmatpush.bf16.msra.mxu2 %v5742_v54  ;;  %v9143_v47 = vor.u32 %v6257_v62, %v5913_v30  ;;  %v3098_v54 = vadd.f32 %v3097_v58, %v8844_v52  ;;  %v5901_v58 = vld [vmem:[%s10115_s2 + $0x450] sm:$0xf] }
 0x414   :  { %10550 = vst [vmem:[#allocation80_spill] sm:$0xff] %v9131_v20  ;;  %3192 = vmatmul.bf16.gmra.mxu3 %v10551_v22  ;;  %3241 = vmatmul.bf16.gmra.mxu0 %v8782_v23 }
 0x415   :  { %3295 = vmatmul.bf16.gmra.mxu1 %v8822_v9  ;;  %3339 = vmatmul.bf16.gmra.mxu2 %v10500_v55 }
 0x416   :  { %3675 = vmatpush.bf16.msra.mxu3 %v9143_v47 }
 0x417   :  { %v2997_v40 = vpop.f32.mrf.mxu3  ;;  %3956 = vmatpush.bf16.msrb.mxu2 %v9143_v47 }
 0x418   :  { %v2998_v32 = vadd.f32 %v2997_v40, %v8803_v31  ;;  %v3144_v33 = vpop.f32.mrf.mxu2 }
 0x419   :  { %v9150_v55 = vadd.f32 %v3144_v33, %v3096_v3  ;;  %v3048_v18 = vpop.f32.mrf.mxu0 }
 0x41a   :  { %v3102_v8 = vpop.f32.mrf.mxu1  ;;  %v9152_v12 = vadd.f32 %v3046_v27, %v2998_v32  ;;  %v3101_v32 = vadd.f32 %v3100_v21, %v8844_v52 }
 0x41c   :  { %10552 = vst [vmem:[#allocation33_spill] sm:$0xff] %v9152_v12 }
 0x41f   :  { %v2999_v19 = vpop.f32.mrf.mxu3 }
 0x420   :  { %v3000_v30 = vadd.f32 %v2999_v19, %v8818_v42  ;;  %v3146_v62 = vpop.f32.mrf.mxu2  ;;  %v6254_v42 = vld [vmem:[%s10115_s2 + $0x458] sm:$0xf0] }
 0x421   :  { %v9156_v50 = vadd.f32 %v3146_v62, %v3098_v54  ;;  %v3051_v31 = vpop.f32.mrf.mxu0  ;;  %v9170_v3 = vor.u32 %v6254_v42, %v5901_v58  ;;  %v3103_v62 = vadd.f32 %v3102_v8, %v8844_v52  ;;  %v5889_v52 = vld [vmem:[%s10115_s2 + $0x438] sm:$0xf] }
 0x422   :  { %v3261_v40 = vpop.f32.mrf.mxu1  ;;  %v9158_v20 = vadd.f32 %v3048_v18, %v3000_v30 }
 0x423   :  { %3676 = vmatpush.bf16.msra.mxu3 %v9170_v3  ;;  %3957 = vmatpush.bf16.msrb.mxu2 %v9170_v3 }
 0x424   :  { %10553 = vst [vmem:[#allocation84_spill] sm:$0xff] %v9158_v20  ;;  %3197 = vmatmul.bf16.gmra.mxu3 %v10554_v16  ;;  %3246 = vmatmul.bf16.gmra.mxu0 %v8820_v29 }
 0x425   :  { %3456 = vmatmul.bf16.vlgmr.msrb.gmra.mxu1 %v8410_v45  ;;  %3344 = vmatmul.bf16.gmra.mxu2 %v10517_v56 }
 0x427   :  { %v3002_v27 = vpop.f32.mrf.mxu3 }
 0x428   :  { %v3003_v33 = vadd.f32 %v3002_v27, %v8835_v10  ;;  %v3149_v18 = vpop.f32.mrf.mxu2 }
 0x429   :  { %v9176_v45 = vadd.f32 %v3149_v18, %v3101_v32  ;;  %v3053_v56 = vpop.f32.mrf.mxu0 }
 0x42a   :  { %v3263_v19 = vpop.f32.mrf.mxu1  ;;  %v9178_v54 = vadd.f32 %v3051_v31, %v3003_v33 }
 0x42c   :  { %10555 = vst [vmem:[#allocation37_spill] sm:$0xff] %v9178_v54  ;;  %v6235_v54 = vld [vmem:[%s10115_s2 + $0x3c4] sm:$0xf] }
 0x42f   :  { %v3004_v30 = vpop.f32.mrf.mxu3 }
 0x430   :  { %v3005_v58 = vadd.f32 %v3004_v30, %v8839_v5  ;;  %v3151_v42 = vpop.f32.mrf.mxu2  ;;  %v6251_v5 = vld [vmem:[%s10115_s2 + $0x440] sm:$0xf0] }
 0x431   :  { %v9182_v21 = vadd.f32 %v3151_v42, %v3103_v62  ;;  %v3212_v10 = vpop.f32.mrf.mxu0  ;;  %v9196_v31 = vor.u32 %v6251_v5, %v5889_v52 }
 0x432   :  { %v3266_v27 = vpop.f32.mrf.mxu1  ;;  %v9184_v20 = vadd.f32 %v3053_v56, %v3005_v58 }
 0x433   :  { %10556 = vst [vmem:[#allocation129_spill] sm:$0xff] %v9182_v21  ;;  %3677 = vmatpush.bf16.msra.mxu3 %v9196_v31  ;;  %3958 = vmatpush.bf16.msrb.mxu2 %v9196_v31  ;;  %v5855_v21 = vld [vmem:[%s10115_s2 + $0x3fc] sm:$0xf0] }
 0x434   :  { %10557 = vst [vmem:[#allocation132_spill] sm:$0xff] %v9184_v20  ;;  %3358 = vmatmul.bf16.vlgmr.msrb.gmra.mxu3 %v7709_v26  ;;  %3407 = vmatmul.bf16.vlgmr.msrb.gmra.mxu0 %v10533_v46  ;;  %v6241_v20 = vld [vmem:[%s10115_s2 + $0x3f4] sm:$0xf] }
 0x435   :  { %3461 = vmatmul.bf16.gmra.mxu1 %v8448_v49  ;;  %3505 = vmatmul.bf16.vlgmr.msra.gmra.mxu2 %v8412_v60 }
 0x437   :  { %v3163_v8 = vpop.f32.mrf.mxu3 }
 0x438   :  { %v3164_v32 = vadd.f32 %v3163_v8, %v8858_v4  ;;  %v9199_v26 = vpop.f32.mrf.mxu2  ;;  %v10558_v4 = vld [vmem:[#allocation147_spill] sm:$0xff] }
 0x439   :  { %v3214_v49 = vpop.f32.mrf.mxu0 }
 0x43a   :  { %v3213_v60 = vadd.f32 %v3212_v10, %v3164_v32  ;;  %v3268_v46 = vpop.f32.mrf.mxu1 }
 0x43c   :  { %v9203_v33 = vadd.f32 %v3261_v40, %v3213_v60  ;;  %v5877_v40 = vld [vmem:[%s10115_s2 + $0x420] sm:$0xf] }
 0x43f   :  { %v3165_v18 = vpop.f32.mrf.mxu3 }
 0x440   :  { %v3166_v56 = vadd.f32 %v3165_v18, %v8864_v6  ;;  %v9206_v30 = vpop.f32.mrf.mxu2  ;;  %v6248_v6 = vld [vmem:[%s10115_s2 + $0x428] sm:$0xf0] }
 0x441   :  { %v3217_v58 = vpop.f32.mrf.mxu0  ;;  %v9220_v5 = vor.u32 %v6248_v6, %v5877_v40 }
 0x442   :  { %v3215_v62 = vadd.f32 %v3214_v49, %v3166_v56  ;;  %v3271_v42 = vpop.f32.mrf.mxu1 }
 0x443   :  { %3678 = vmatpush.bf16.msra.mxu3 %v9220_v5  ;;  %3959 = vmatpush.bf16.msrb.mxu2 %v9220_v5 }
 0x444   :  { %3363 = vmatmul.bf16.gmra.mxu3 %v10558_v4  ;;  %v9209_v52 = vadd.f32 %v3263_v19, %v3215_v62  ;;  %3412 = vmatmul.bf16.gmra.mxu0 %v10536_v39 }
 0x445   :  { %3466 = vmatmul.bf16.gmra.mxu1 %v8486_v7  ;;  %3510 = vmatmul.bf16.gmra.mxu2 %v8450_v13 }
 0x447   :  { %v3168_v10 = vpop.f32.mrf.mxu3 }
 0x448   :  { %v3169_v19 = vadd.f32 %v3168_v10, %v8880_v41  ;;  %v9223_v8 = vpop.f32.mrf.mxu2  ;;  %v10561_v41 = vld [vmem:[#allocation102_spill] sm:$0xff] }
 0x449   :  { %v3219_v7 = vpop.f32.mrf.mxu0 }
 0x44a   :  { %v3218_v13 = vadd.f32 %v3217_v58, %v3169_v19  ;;  %v3273_v39 = vpop.f32.mrf.mxu1 }
 0x44c   :  { %v9227_v32 = vadd.f32 %v3266_v27, %v3218_v13  ;;  %v5865_v27 = vld [vmem:[%s10115_s2 + $0x408] sm:$0xf] }
 0x44e   :  { %10559 = vst [vmem:[#allocation130_spill] sm:$0xff] %v9227_v32 }
 0x44f   :  { %v3170_v60 = vpop.f32.mrf.mxu3 }
 0x450   :  { %v3171_v49 = vadd.f32 %v3170_v60, %v8886_v15  ;;  %v9230_v18 = vpop.f32.mrf.mxu2  ;;  %v6245_v15 = vld [vmem:[%s10115_s2 + $0x410] sm:$0xf0] }
 0x451   :  { %10560 = vst [vmem:[#allocation81_spill] sm:$0xff] %v9230_v18  ;;  %v3222_v62 = vpop.f32.mrf.mxu0  ;;  %v9244_v6 = vor.u32 %v6245_v15, %v5865_v27 }
 0x452   :  { %v3220_v56 = vadd.f32 %v3219_v7, %v3171_v49  ;;  %v3276_v4 = vpop.f32.mrf.mxu1 }
 0x453   :  { %3679 = vmatpush.bf16.msra.mxu3 %v9244_v6  ;;  %3960 = vmatpush.bf16.msrb.mxu2 %v9244_v6 }
 0x454   :  { %3368 = vmatmul.bf16.gmra.mxu3 %v10561_v41  ;;  %v9233_v40 = vadd.f32 %v3268_v46, %v3220_v56  ;;  %3417 = vmatmul.bf16.gmra.mxu0 %v10539_v2 }
 0x455   :  { %3471 = vmatmul.bf16.gmra.mxu1 %v8524_v57  ;;  %3515 = vmatmul.bf16.gmra.mxu2 %v8488_v51 }
 0x456   :  { %10562 = vst [vmem:[#allocation34_spill] sm:$0xff] %v9233_v40 }
 0x457   :  { %v3173_v58 = vpop.f32.mrf.mxu3 }
 0x458   :  { %v3174_v46 = vadd.f32 %v3173_v58, %v8902_v1  ;;  %v9247_v10 = vpop.f32.mrf.mxu2  ;;  %v10564_v1 = vld [vmem:[#allocation103_spill] sm:$0xff] }
 0x459   :  { %v3224_v57 = vpop.f32.mrf.mxu0 }
 0x45a   :  { %v3223_v51 = vadd.f32 %v3222_v62, %v3174_v46  ;;  %v3278_v2 = vpop.f32.mrf.mxu1 }
 0x45c   :  { %v9251_v19 = vadd.f32 %v3271_v42, %v3223_v51  ;;  %v5853_v42 = vld [vmem:[%s10115_s2 + $0x3f0] sm:$0xf] }
 0x45e   :  { %10563 = vst [vmem:[#allocation82_spill] sm:$0xff] %v9251_v19 }
 0x45f   :  { %v3175_v13 = vpop.f32.mrf.mxu3 }
 0x460   :  { %v3176_v7 = vadd.f32 %v3175_v13, %v8908_v38  ;;  %v9254_v60 = vpop.f32.mrf.mxu2  ;;  %v6242_v38 = vld [vmem:[%s10115_s2 + $0x3f8] sm:$0xf0] }
 0x461   :  { %v3227_v56 = vpop.f32.mrf.mxu0  ;;  %v9268_v15 = vor.u32 %v6242_v38, %v5853_v42 }
 0x462   :  { %v3225_v49 = vadd.f32 %v3224_v57, %v3176_v7  ;;  %v3281_v41 = vpop.f32.mrf.mxu1 }
 0x463   :  { %3680 = vmatpush.bf16.msra.mxu3 %v9268_v15  ;;  %3961 = vmatpush.bf16.msrb.mxu2 %v9268_v15 }
 0x464   :  { %3373 = vmatmul.bf16.gmra.mxu3 %v10564_v1  ;;  %v9257_v27 = vadd.f32 %v3273_v39, %v3225_v49  ;;  %3422 = vmatmul.bf16.gmra.mxu0 %v10542_v53  ;;  %v5841_v1 = vld [vmem:[%s10115_s2 + $0x3d8] sm:$0xf] }
 0x465   :  { %3476 = vmatmul.bf16.gmra.mxu1 %v8586_v48  ;;  %3520 = vmatmul.bf16.gmra.mxu2 %v8526_v34 }
 0x466   :  { %10565 = vst [vmem:[#allocation35_spill] sm:$0xff] %v9257_v27 }
 0x467   :  { %v3178_v62 = vpop.f32.mrf.mxu3 }
 0x468   :  { %v3179_v39 = vadd.f32 %v3178_v62, %v8936_v25  ;;  %v9271_v58 = vpop.f32.mrf.mxu2  ;;  %v6236_v62 = vld [vmem:[%s10115_s2 + $0x3c8] sm:$0xf0] }
 0x469   :  { %v3229_v48 = vpop.f32.mrf.mxu0 }
 0x46a   :  { %v3228_v34 = vadd.f32 %v3227_v56, %v3179_v39  ;;  %v9275_v53 = vpop.f32.mrf.mxu1  ;;  %v6239_v56 = vld [vmem:[%s10115_s2 + $0x3e0] sm:$0xf0] }
 0x46b   :  { %10566 = vst [vmem:[#allocation85_spill] sm:$0xff] %v9275_v53  ;;  %v9290_v42 = vor.u32 %v6239_v56, %v5841_v1  ;;  %v6253_v1 = vld [vmem:[%s10115_s2 + $0x454] sm:$0xf]  ;;  %v5903_v56 = vld [vmem:[%s10115_s2 + $0x45c] sm:$0xf0] }
 0x46c   :  { %v9277_v46 = vadd.f32 %v3276_v4, %v3228_v34  ;;  %v10568_v4 = vld [vmem:[#allocation60_spill] sm:$0xff] }
 0x46d   :  { %3681 = vmatpush.bf16.msra.mxu3 %v9290_v42  ;;  %3962 = vmatpush.bf16.msrb.mxu2 %v9290_v42 }
 0x46e   :  { %10567 = vst [vmem:[#allocation38_spill] sm:$0xff] %v9277_v46 }
 0x46f   :  { %v3180_v51 = vpop.f32.mrf.mxu3 }
 0x470   :  { %v3181_v57 = vadd.f32 %v3180_v51, %v8956_v44  ;;  %v9280_v13 = vpop.f32.mrf.mxu2  ;;  %v5829_v44 = vld [vmem:[%s10115_s2 + $0x3c0] sm:$0xf] }
 0x471   :  { %v3232_v49 = vpop.f32.mrf.mxu0  ;;  %v9305_v34 = vor.u32 %v6236_v62, %v5829_v44  ;;  %v6250_v44 = vld [vmem:[%s10115_s2 + $0x43c] sm:$0xf]  ;;  %v5891_v62 = vld [vmem:[%s10115_s2 + $0x444] sm:$0xf0] }
 0x472   :  { %v3230_v7 = vadd.f32 %v3229_v48, %v3181_v57  ;;  %v9282_v25 = vpop.f32.mrf.mxu1 }
 0x473   :  { %3682 = vmatpush.bf16.msra.mxu3 %v9305_v34  ;;  %3963 = vmatpush.bf16.msrb.mxu2 %v9305_v34 }
 0x474   :  { %3378 = vmatmul.bf16.gmra.mxu3 %v10568_v4  ;;  %v9293_v38 = vadd.f32 %v3278_v2, %v3230_v7  ;;  %3427 = vmatmul.bf16.gmra.mxu0 %v10545_v17  ;;  %v6256_v17 = vld [vmem:[%s10115_s2 + $0x46c] sm:$0xf] }
 0x475   :  { %3481 = vmatmul.bf16.gmra.mxu1 %v8690_v24  ;;  %3525 = vmatmul.bf16.gmra.mxu2 %v8588_v28  ;;  %v5915_v28 = vld [vmem:[%s10115_s2 + $0x474] sm:$0xf0] }
 0x476   :  { %10569 = vst [vmem:[#allocation133_spill] sm:$0xff] %v9293_v38  ;;  %v9315_v2 = vor.u32 %v6256_v17, %v5915_v28  ;;  %v9349_v17 = vor.u32 %v6250_v44, %v5891_v62  ;;  %v6244_v44 = vld [vmem:[%s10115_s2 + $0x40c] sm:$0xf]  ;;  %v5867_v62 = vld [vmem:[%s10115_s2 + $0x414] sm:$0xf0] }
 0x477   :  { %v3183_v39 = vpop.f32.mrf.mxu3 }
 0x478   :  { %v3184_v24 = vadd.f32 %v3183_v39, %v9010_v14  ;;  %v9317_v48 = vpop.f32.mrf.mxu2  ;;  %3831 = vmatpush.bf16.msra.mxu0 %v9315_v2  ;;  %3689 = vmatpush.bf16.msrb.mxu3 %v9315_v2  ;;  %v9332_v14 = vor.u32 %v6253_v1, %v5903_v56  ;;  %v10574_v1 = vld [vmem:[#allocation10_spill] sm:$0xff] }
 0x479   :  { %v9319_v57 = vpop.f32.mrf.mxu0  ;;  %4109 = vmatpush.bf16.msra.mxu2 %v9315_v2 }
 0x47a   :  { %v3233_v51 = vadd.f32 %v3232_v49, %v3184_v24  ;;  %10570 = vst [vmem:[#allocation86_spill] sm:$0xff] %v9319_v57  ;;  %v9321_v7 = vpop.f32.mrf.mxu1 }
 0x47b   :  { %10571 = vst [vmem:[#allocation39_spill] sm:$0xff] %v9321_v7  ;;  %v6252_v7 = vld [vmem:[%s10115_s2 + $0x448] sm:$0xf0] }
 0x47c   :  { %v9336_v49 = vadd.f32 %v3281_v41, %v3233_v51  ;;  %3832 = vmatpush.bf16.msra.mxu0 %v9332_v14  ;;  %3690 = vmatpush.bf16.msrb.mxu3 %v9332_v14  ;;  %v6247_v51 = vld [vmem:[%s10115_s2 + $0x424] sm:$0xf] }
 0x47d   :  { %4110 = vmatpush.bf16.msra.mxu2 %v9332_v14 }
 0x47e   :  { %10572 = vst [vmem:[#allocation134_spill] sm:$0xff] %v9336_v49 }
 0x47f   :  { %v3185_v4 = vpop.f32.mrf.mxu3 }
 0x480   :  { %v9347_v39 = vadd.f32 %v3185_v4, %v9055_v36  ;;  %v9352_v41 = vpop.f32.mrf.mxu2  ;;  %3833 = vmatpush.bf16.msra.mxu0 %v9349_v17  ;;  %3691 = vmatpush.bf16.msrb.mxu3 %v9349_v17  ;;  %v5879_v36 = vld [vmem:[%s10115_s2 + $0x42c] sm:$0xf0] }
 0x481   :  { %v3237_v28 = vpop.f32.mrf.mxu0  ;;  %v9365_v56 = vor.u32 %v6247_v51, %v5879_v36  ;;  %4111 = vmatpush.bf16.msra.mxu2 %v9349_v17 }
 0x482   :  { %10573 = vst [vmem:[#allocation136_spill] sm:$0xff] %v9347_v39  ;;  %v9354_v24 = vpop.f32.mrf.mxu1 }
 0x484   :  { %3383 = vmatmul.bf16.gmra.mxu3 %v10574_v1  ;;  %3432 = vmatmul.bf16.gmra.mxu0 %v10548_v43  ;;  %v9380_v43 = vor.u32 %v6244_v44, %v5867_v62  ;;  %v6238_v44 = vld [vmem:[%s10115_s2 + $0x3dc] sm:$0xf]  ;;  %v5843_v62 = vld [vmem:[%s10115_s2 + $0x3e4] sm:$0xf0] }
 0x485   :  { %3486 = vmatmul.bf16.gmra.mxu1 %v8782_v23  ;;  %3530 = vmatmul.bf16.gmra.mxu2 %v8698_v63 }
 0x486   :  { %3834 = vmatpush.bf16.msra.mxu0 %v9365_v56  ;;  %3692 = vmatpush.bf16.msrb.mxu3 %v9365_v56 }
 0x487   :  { %v3188_v4 = vpop.f32.mrf.mxu3  ;;  %4112 = vmatpush.bf16.msra.mxu2 %v9365_v56 }
 0x488   :  { %v3189_v51 = vadd.f32 %v3188_v4, %v9098_v35  ;;  %v9383_v63 = vpop.f32.mrf.mxu2  ;;  %v9397_v35 = vor.u32 %v6241_v20, %v5855_v21  ;;  %v9414_v21 = vor.u32 %v6238_v44, %v5843_v62  ;;  %v5921_v62 = vld [vmem:[%s10115_s2 + $0x470] sm:$0xf] }
 0x489   :  { %v9385_v36 = vpop.f32.mrf.mxu0 }
 0x48a   :  { %v3238_v23 = vadd.f32 %v3237_v28, %v3189_v51  ;;  %10575 = vst [vmem:[#allocation88_spill] sm:$0xff] %v9385_v36  ;;  %v9387_v1 = vpop.f32.mrf.mxu1  ;;  %3835 = vmatpush.bf16.msra.mxu0 %v9380_v43  ;;  %3693 = vmatpush.bf16.msrb.mxu3 %v9380_v43 }
 0x48b   :  { %10576 = vst [vmem:[#allocation41_spill] sm:$0xff] %v9387_v1  ;;  %4113 = vmatpush.bf16.msra.mxu2 %v9380_v43  ;;  %v6258_v1 = vld [vmem:[%s10115_s2 + $0x478] sm:$0xf0] }
 0x48c   :  { %v9401_v28 = vadd.f32 %v9282_v25, %v3238_v23  ;;  %v9441_v12 = vor.u32 %v6258_v1, %v5921_v62 }
 0x48e   :  { %10577 = vst [vmem:[#allocation92_spill] sm:$0xff] %v9401_v28  ;;  %3836 = vmatpush.bf16.msra.mxu0 %v9397_v35  ;;  %3694 = vmatpush.bf16.msrb.mxu3 %v9397_v35 }
 0x48f   :  { %v3190_v4 = vpop.f32.mrf.mxu3  ;;  %4114 = vmatpush.bf16.msra.mxu2 %v9397_v35  ;;  %3845 = vmatpush.bf16.msra.mxu1 %v9441_v12 }
 0x490   :  { %v9412_v20 = vadd.f32 %v3190_v4, %v9129_v59  ;;  %v9417_v25 = vpop.f32.mrf.mxu2  ;;  %v5831_v59 = vld [vmem:[%s10115_s2 + $0x3cc] sm:$0xf0]  ;;  %v10579_v4 = vld [vmem:[#allocation109_spill] sm:$0xff] }
 0x491   :  { %v3242_v51 = vpop.f32.mrf.mxu0  ;;  %v9430_v44 = vor.u32 %v6235_v54, %v5831_v59 }
 0x492   :  { %10578 = vst [vmem:[#allocation45_spill] sm:$0xff] %v9412_v20  ;;  %v9419_v23 = vpop.f32.mrf.mxu1  ;;  %3837 = vmatpush.bf16.msra.mxu0 %v9414_v21  ;;  %3695 = vmatpush.bf16.msrb.mxu3 %v9414_v21 }
 0x493   :  { %4115 = vmatpush.bf16.msra.mxu2 %v9414_v21 }
 0x494   :  { %3388 = vmatmul.bf16.gmra.mxu3 %v10579_v4  ;;  %3437 = vmatmul.bf16.gmra.mxu0 %v10551_v22  ;;  %v5909_v4 = vld [vmem:[%s10115_s2 + $0x458] sm:$0xf] }
 0x495   :  { %3491 = vmatmul.bf16.gmra.mxu1 %v8820_v29  ;;  %3535 = vmatmul.bf16.gmra.mxu2 %v8784_v0  ;;  %v6255_v29 = vld [vmem:[%s10115_s2 + $0x460] sm:$0xf0] }
 0x496   :  { %3838 = vmatpush.bf16.msra.mxu0 %v9430_v44  ;;  %3696 = vmatpush.bf16.msrb.mxu3 %v9430_v44  ;;  %v9458_v22 = vor.u32 %v6255_v29, %v5909_v4 }
 0x497   :  { %v3193_v54 = vpop.f32.mrf.mxu3  ;;  %4116 = vmatpush.bf16.msra.mxu2 %v9430_v44 }
 0x498   :  { %v3194_v59 = vadd.f32 %v3193_v54, %v9150_v55  ;;  %v9456_v0 = vpop.f32.mrf.mxu2  ;;  %3846 = vmatpush.bf16.msra.mxu1 %v9458_v22  ;;  %v5897_v54 = vld [vmem:[%s10115_s2 + $0x440] sm:$0xf] }
 0x499   :  { %v9460_v62 = vpop.f32.mrf.mxu0 }
 0x49a   :  { %3984 = vmatpush.bf16.msrb.mxu0 %v9441_v12  ;;  %v3243_v1 = vadd.f32 %v3242_v51, %v3194_v59  ;;  %10580 = vst [vmem:[#allocation137_spill] sm:$0xff] %v9460_v62  ;;  %v9462_v55 = vpop.f32.mrf.mxu1  ;;  %v9475_v51 = vor.u32 %v6252_v7, %v5897_v54  ;;  %v6249_v62 = vld [vmem:[%s10115_s2 + $0x430] sm:$0xf0] }
 0x49b   :  { %10581 = vst [vmem:[#allocation140_spill] sm:$0xff] %v9462_v55  ;;  %v5885_v55 = vld [vmem:[%s10115_s2 + $0x428] sm:$0xf] }
 0x49c   :  { %v9473_v4 = vadd.f32 %v9354_v24, %v3243_v1  ;;  %3847 = vmatpush.bf16.msra.mxu1 %v9475_v51  ;;  %v9490_v7 = vor.u32 %v6249_v62, %v5885_v55 }
 0x49e   :  { %3985 = vmatpush.bf16.msrb.mxu0 %v9458_v22  ;;  %10582 = vst [vmem:[#allocation138_spill] sm:$0xff] %v9473_v4  ;;  %v6243_v4 = vld [vmem:[%s10115_s2 + $0x400] sm:$0xf0] }
 0x49f   :  { %v3195_v59 = vpop.f32.mrf.mxu3 }
 0x4a0   :  { %v9479_v29 = vadd.f32 %v3195_v59, %v9156_v50  ;;  %v9488_v24 = vpop.f32.mrf.mxu2  ;;  %3848 = vmatpush.bf16.msra.mxu1 %v9490_v7  ;;  %v5873_v50 = vld [vmem:[%s10115_s2 + $0x410] sm:$0xf]  ;;  %v6246_v59 = vld [vmem:[%s10115_s2 + $0x418] sm:$0xf0] }
 0x4a1   :  { %v3247_v1 = vpop.f32.mrf.mxu0  ;;  %v9504_v62 = vor.u32 %v6246_v59, %v5873_v50 }
 0x4a2   :  { %10583 = vst [vmem:[#allocation89_spill] sm:$0xff] %v9479_v29  ;;  %3986 = vmatpush.bf16.msrb.mxu0 %v9475_v51  ;;  %v9492_v54 = vpop.f32.mrf.mxu1  ;;  %v5861_v29 = vld [vmem:[%s10115_s2 + $0x3f8] sm:$0xf] }
 0x4a3   :  { %v9518_v50 = vor.u32 %v6243_v4, %v5861_v29 }
 0x4a4   :  { %3393 = vmatmul.bf16.gmra.mxu3 %v10532_v11  ;;  %3442 = vmatmul.bf16.gmra.mxu0 %v10554_v16 }
 0x4a5   :  { %3540 = vmatmul.bf16.gmra.mxu2 %v8822_v9  ;;  %3849 = vmatpush.bf16.msra.mxu1 %v9504_v62 }
 0x4a6   :  { %3987 = vmatpush.bf16.msrb.mxu0 %v9490_v7 }
 0x4a7   :  { %v3198_v55 = vpop.f32.mrf.mxu3 }
 0x4a8   :  { %v3199_v11 = vadd.f32 %v3198_v55, %v9176_v45  ;;  %v9516_v16 = vpop.f32.mrf.mxu2  ;;  %v5849_v45 = vld [vmem:[%s10115_s2 + $0x3e0] sm:$0xf]  ;;  %v6240_v55 = vld [vmem:[%s10115_s2 + $0x3e8] sm:$0xf0] }
 0x4a9   :  { %v9520_v59 = vpop.f32.mrf.mxu0  ;;  %3850 = vmatpush.bf16.msra.mxu1 %v9518_v50  ;;  %v9535_v29 = vor.u32 %v6240_v55, %v5849_v45 }
 0x4aa   :  { %3988 = vmatpush.bf16.msrb.mxu0 %v9504_v62  ;;  %v3248_v9 = vadd.f32 %v3247_v1, %v3199_v11  ;;  %10584 = vst [vmem:[#allocation42_spill] sm:$0xff] %v9520_v59  ;;  %v9522_v36 = vpop.f32.mrf.mxu1  ;;  %v5837_v11 = vld [vmem:[%s10115_s2 + $0x3c8] sm:$0xf]  ;;  %v6237_v59 = vld [vmem:[%s10115_s2 + $0x3d0] sm:$0xf0] }
 0x4ac   :  { %v9533_v4 = vadd.f32 %v9419_v23, %v3248_v9  ;;  %v9549_v23 = vor.u32 %v6237_v59, %v5837_v11  ;;  %v6457_v9 = vld [vmem:[%s10116_s4 + $0x5] sm:$0x7] }
 0x4ad   :  { %3851 = vmatpush.bf16.msra.mxu1 %v9535_v29  ;;  %v9554_v45 = vperm.slane %v6457_v9, 2 }
 0x4ae   :  { %3989 = vmatpush.bf16.msrb.mxu0 %v9518_v50  ;;  %10585 = vst [vmem:[#allocation90_spill] sm:$0xff] %v9533_v4 }
 0x4af   :  { %v9537_v1 = vpop.f32.mrf.mxu3  ;;  %10588 = vst [vmem:[#allocation46_spill] sm:$0xff] %v9549_v23  ;;  %v3311_v59 = vadd.f32 %v9199_v26, %v9554_v45 }
 0x4b0   :  { %10586 = vst [vmem:[#allocation43_spill] sm:$0xff] %v9537_v1  ;;  %v9547_v20 = vpop.f32.mrf.mxu2  ;;  %v6459_v1 = vmov 0  }
 0x4b1   :  { %10587 = vst [vmem:[#allocation93_spill] sm:$0xff] %v9547_v20  ;;  %v9556_v55 = vpop.f32.mrf.mxu0  ;;  %3852 = vmatpush.bf16.msra.mxu1 %v9549_v23 }
 0x4b2   :  { %3990 = vmatpush.bf16.msrb.mxu0 %v9535_v29  ;;  %v3462_v4 = vpop.f32.mrf.mxu1 }
 0x4b4   :  { %3683 = vmatmul.bf16.vlgmr.msra.gmra.mxu3 %v6459_v1 }
 0x4b5   :  { %3703 = vmatpush.bf16.msra.mxu3 %v9441_v12  ;;  %4095 = vmatpush.bf16.msrb.mxu1 %v9143_v47 }
 0x4b6   :  { %3991 = vmatpush.bf16.msrb.mxu0 %v9549_v23 }
 0x4b7   :  { %v3359_v11 = vpop.f32.mrf.mxu3 }
 0x4b8   :  { %v9564_v20 = vadd.f32 %v3359_v11, %v3311_v59  ;;  %v9566_v9 = vpop.f32.mrf.mxu2  ;;  %v3316_v11 = vadd.f32 %v9223_v8, %v9554_v45 }
 0x4b9   :  { %3704 = vmatpush.bf16.msra.mxu3 %v9458_v22  ;;  %4096 = vmatpush.bf16.msrb.mxu1 %v9170_v3  ;;  %v9570_v28 = vpop.f32.mrf.mxu0 }
 0x4ba   :  { %v9572_v53 = vpop.f32.mrf.mxu1 }
 0x4bb   :  { %10589 = vst [vmem:[#allocation141_spill] sm:$0xff] %v9572_v53 }
 0x4bd   :  { %3705 = vmatpush.bf16.msra.mxu3 %v9475_v51  ;;  %4097 = vmatpush.bf16.msrb.mxu1 %v9196_v31 }
 0x4bf   :  { %v9576_v57 = vpop.f32.mrf.mxu3 }
 0x4c0   :  { %v9578_v26 = vpop.f32.mrf.mxu2 }
 0x4c1   :  { %3706 = vmatpush.bf16.msra.mxu3 %v9490_v7  ;;  %4098 = vmatpush.bf16.msrb.mxu1 %v9220_v5  ;;  %v3413_v59 = vpop.f32.mrf.mxu0 }
 0x4c2   :  { %v3467_v39 = vpop.f32.mrf.mxu1 }
 0x4c4   :  { %3697 = vmatmul.bf16.vlgmr.msrb.gmra.mxu3 %v6459_v1 }
 0x4c5   :  { %3707 = vmatpush.bf16.msra.mxu3 %v9504_v62  ;;  %4099 = vmatpush.bf16.msrb.mxu1 %v9244_v6 }
 0x4c7   :  { %v3364_v49 = vpop.f32.mrf.mxu3 }
 0x4c8   :  { %v3365_v38 = vadd.f32 %v3364_v49, %v3316_v11  ;;  %v9586_v46 = vpop.f32.mrf.mxu2 }
 0x4c9   :  { %10590 = vst [vmem:[#allocation94_spill] sm:$0xff] %v9586_v46  ;;  %3708 = vmatpush.bf16.msra.mxu3 %v9518_v50  ;;  %4100 = vmatpush.bf16.msrb.mxu1 %v9268_v15  ;;  %v9590_v19 = vpop.f32.mrf.mxu0 }
 0x4ca   :  { %v3414_v27 = vadd.f32 %v3413_v59, %v3365_v38  ;;  %10591 = vst [vmem:[#allocation47_spill] sm:$0xff] %v9590_v19  ;;  %v3469_v8 = vpop.f32.mrf.mxu1  ;;  %v3323_v19 = vadd.f32 %v9254_v60, %v9554_v45 }
 0x4cc   :  { %v9592_v37 = vadd.f32 %v3462_v4, %v3414_v27  ;;  %v3321_v27 = vadd.f32 %v9247_v10, %v9554_v45 }
 0x4cd   :  { %3709 = vmatpush.bf16.msra.mxu3 %v9535_v29  ;;  %4101 = vmatpush.bf16.msrb.mxu1 %v9290_v42 }
 0x4ce   :  { %10592 = vst [vmem:[#allocation142_spill] sm:$0xff] %v9592_v37 }
 0x4cf   :  { %v9596_v53 = vpop.f32.mrf.mxu3 }
 0x4d0   :  { %10593 = vst [vmem:[#allocation49_spill] sm:$0xff] %v9596_v53  ;;  %v9598_v18 = vpop.f32.mrf.mxu2 }
 0x4d1   :  { %10594 = vst [vmem:[#allocation2_spill] sm:$0xff] %v9598_v18  ;;  %3710 = vmatpush.bf16.msra.mxu3 %v9549_v23  ;;  %4102 = vmatpush.bf16.msrb.mxu1 %v9305_v34  ;;  %v3418_v49 = vpop.f32.mrf.mxu0 }
 0x4d2   :  { %v3472_v18 = vpop.f32.mrf.mxu1 }
 0x4d4   :  { %3711 = vmatmul.bf16.vlgmr.msra.gmra.mxu3 %v6459_v1 }
 0x4d5   :  { %3817 = vmatpush.bf16.msrb.mxu3 %v9143_v47 }
 0x4d7   :  { %v3369_v38 = vpop.f32.mrf.mxu3 }
 0x4d8   :  { %v3370_v4 = vadd.f32 %v3369_v38, %v3321_v27  ;;  %v3516_v59 = vpop.f32.mrf.mxu2  ;;  %v3326_v38 = vadd.f32 %v9271_v58, %v9554_v45 }
 0x4d9   :  { %3818 = vmatpush.bf16.msrb.mxu3 %v9170_v3  ;;  %v3420_v46 = vpop.f32.mrf.mxu0 }
 0x4da   :  { %v3419_v11 = vadd.f32 %v3418_v49, %v3370_v4  ;;  %v3474_v27 = vpop.f32.mrf.mxu1 }
 0x4dc   :  { %v3468_v37 = vadd.f32 %v3467_v39, %v3419_v11 }
 0x4dd   :  { %3819 = vmatpush.bf16.msrb.mxu3 %v9196_v31 }
 0x4de   :  { %v9609_v53 = vadd.f32 %v3516_v59, %v3468_v37 }
 0x4df   :  { %v3371_v1 = vpop.f32.mrf.mxu3 }
 0x4e0   :  { %v3372_v10 = vadd.f32 %v3371_v1, %v3323_v19  ;;  %v3518_v40 = vpop.f32.mrf.mxu2 }
 0x4e1   :  { %3820 = vmatpush.bf16.msrb.mxu3 %v9220_v5  ;;  %v3423_v23 = vpop.f32.mrf.mxu0 }
 0x4e2   :  { %v3421_v32 = vadd.f32 %v3420_v46, %v3372_v10  ;;  %v3328_v46 = vadd.f32 %v9280_v13, %v9554_v45  ;;  %v3477_v58 = vpop.f32.mrf.mxu1 }
 0x4e4   :  { %v3470_v49 = vadd.f32 %v3469_v8, %v3421_v32 }
 0x4e5   :  { %3821 = vmatpush.bf16.msrb.mxu3 %v9244_v6 }
 0x4e6   :  { %v9615_v39 = vadd.f32 %v3518_v40, %v3470_v49 }
 0x4e7   :  { %v3374_v37 = vpop.f32.mrf.mxu3 }
 0x4e8   :  { %v3375_v60 = vadd.f32 %v3374_v37, %v3326_v38  ;;  %v3521_v4 = vpop.f32.mrf.mxu2 }
 0x4e9   :  { %3822 = vmatpush.bf16.msrb.mxu3 %v9268_v15  ;;  %v3425_v11 = vpop.f32.mrf.mxu0 }
 0x4ea   :  { %v3424_v59 = vadd.f32 %v3423_v23, %v3375_v60  ;;  %v3479_v60 = vpop.f32.mrf.mxu1 }
 0x4ec   :  { %v3473_v19 = vadd.f32 %v3472_v18, %v3424_v59  ;;  %v3331_v18 = vadd.f32 %v9317_v48, %v9554_v45 }
 0x4ed   :  { %3823 = vmatpush.bf16.msrb.mxu3 %v9290_v42 }
 0x4ee   :  { %v9621_v32 = vadd.f32 %v3521_v4, %v3473_v19 }
 0x4ef   :  { %v3376_v40 = vpop.f32.mrf.mxu3 }
 0x4f0   :  { %v3377_v8 = vadd.f32 %v3376_v40, %v3328_v46  ;;  %v3523_v1 = vpop.f32.mrf.mxu2  ;;  %v3333_v46 = vadd.f32 %v9352_v41, %v9554_v45 }
 0x4f1   :  { %3824 = vmatpush.bf16.msrb.mxu3 %v9305_v34  ;;  %v3428_v49 = vpop.f32.mrf.mxu0 }
 0x4f2   :  { %v3426_v10 = vadd.f32 %v3425_v11, %v3377_v8 }
 0x4f4   :  { %v3475_v23 = vadd.f32 %v3474_v27, %v3426_v10 }
 0x4f5   :  { %3970 = vmatpush.bf16.msra.mxu3 %v9315_v2 }
 0x4f6   :  { %v9628_v38 = vadd.f32 %v3523_v1, %v3475_v23  ;;  %v3482_v23 = vpop.f32.mrf.mxu1 }
 0x4f7   :  { %v3379_v13 = vpop.f32.mrf.mxu3 }
 0x4f8   :  { %v3380_v37 = vadd.f32 %v3379_v13, %v3331_v18  ;;  %v3526_v4 = vpop.f32.mrf.mxu2  ;;  %v3336_v18 = vadd.f32 %v9383_v63, %v9554_v45 }
 0x4f9   :  { %3971 = vmatpush.bf16.msra.mxu3 %v9332_v14  ;;  %v3430_v19 = vpop.f32.mrf.mxu0 }
 0x4fa   :  { %v3429_v59 = vadd.f32 %v3428_v49, %v3380_v37 }
 0x4fc   :  { %v3478_v11 = vadd.f32 %v3477_v58, %v3429_v59 }
 0x4fd   :  { %3972 = vmatpush.bf16.msra.mxu3 %v9349_v17 }
 0x4fe   :  { %v9634_v27 = vadd.f32 %v3526_v4, %v3478_v11  ;;  %v3484_v11 = vpop.f32.mrf.mxu1 }
 0x4ff   :  { %v3381_v40 = vpop.f32.mrf.mxu3 }
 0x500   :  { %10595 = vst [vmem:[#allocation143_spill] sm:$0xff] %v9634_v27  ;;  %v3382_v48 = vadd.f32 %v3381_v40, %v3333_v46  ;;  %v3528_v8 = vpop.f32.mrf.mxu2  ;;  %v3338_v46 = vadd.f32 %v9417_v25, %v9554_v45  ;;  %v3343_v25 = vadd.f32 %v9488_v24, %v9554_v45 }
 0x501   :  { %3973 = vmatpush.bf16.msra.mxu3 %v9365_v56  ;;  %v3433_v10 = vpop.f32.mrf.mxu0 }
 0x502   :  { %v3431_v1 = vadd.f32 %v3430_v19, %v3382_v48 }
 0x504   :  { %v3480_v49 = vadd.f32 %v3479_v60, %v3431_v1 }
 0x505   :  { %3974 = vmatpush.bf16.msra.mxu3 %v9380_v43 }
 0x506   :  { %v9640_v58 = vadd.f32 %v3528_v8, %v3480_v49 }
 0x507   :  { %v3384_v13 = vpop.f32.mrf.mxu3 }
 0x508   :  { %10596 = vst [vmem:[#allocation96_spill] sm:$0xff] %v9640_v58  ;;  %v3385_v41 = vadd.f32 %v3384_v13, %v3336_v18  ;;  %v3531_v37 = vpop.f32.mrf.mxu2  ;;  %v3341_v18 = vadd.f32 %v9456_v0, %v9554_v45  ;;  %v3487_v13 = vpop.f32.mrf.mxu1 }
 0x509   :  { %3975 = vmatpush.bf16.msra.mxu3 %v9397_v35  ;;  %v3435_v59 = vpop.f32.mrf.mxu0 }
 0x50a   :  { %v3434_v4 = vadd.f32 %v3433_v10, %v3385_v41 }
 0x50c   :  { %v3483_v19 = vadd.f32 %v3482_v23, %v3434_v4 }
 0x50d   :  { %3976 = vmatpush.bf16.msra.mxu3 %v9414_v21 }
 0x50e   :  { %v9646_v60 = vadd.f32 %v3531_v37, %v3483_v19 }
 0x50f   :  { %v3386_v40 = vpop.f32.mrf.mxu3 }
 0x510   :  { %v3387_v63 = vadd.f32 %v3386_v40, %v3338_v46  ;;  %v3533_v48 = vpop.f32.mrf.mxu2  ;;  %v3489_v46 = vpop.f32.mrf.mxu1 }
 0x511   :  { %3977 = vmatpush.bf16.msra.mxu3 %v9430_v44  ;;  %v3438_v49 = vpop.f32.mrf.mxu0 }
 0x512   :  { %v3436_v8 = vadd.f32 %v3435_v59, %v3387_v63 }
 0x514   :  { %v3485_v1 = vadd.f32 %v3484_v11, %v3436_v8 }
 0x516   :  { %v9650_v10 = vadd.f32 %v3533_v48, %v3485_v1  ;;  %v3346_v48 = vadd.f32 %v9516_v16, %v9554_v45  ;;  %v10599_v16 = vld [vmem:[#allocation26_spill] sm:$0xff] }
 0x517   :  { %v3389_v41 = vpop.f32.mrf.mxu3 }
 0x518   :  { %v3390_v23 = vadd.f32 %v3389_v41, %v3341_v18  ;;  %v3536_v4 = vpop.f32.mrf.mxu2 }
 0x519   :  { %v3440_v19 = vpop.f32.mrf.mxu0 }
 0x51a   :  { %v3439_v58 = vadd.f32 %v3438_v49, %v3390_v23 }
 0x51c   :  { %v3488_v27 = vadd.f32 %v3487_v13, %v3439_v58  ;;  %v3492_v13 = vpop.f32.mrf.mxu1 }
 0x51e   :  { %v9654_v37 = vadd.f32 %v3536_v4, %v3488_v27 }
 0x51f   :  { %v3391_v59 = vpop.f32.mrf.mxu3 }
 0x520   :  { %v3392_v11 = vadd.f32 %v3391_v59, %v3343_v25  ;;  %v3538_v63 = vpop.f32.mrf.mxu2 }
 0x521   :  { %v3443_v58 = vpop.f32.mrf.mxu0 }
 0x522   :  { %v3441_v40 = vadd.f32 %v3440_v19, %v3392_v11 }
 0x524   :  { %v3490_v0 = vadd.f32 %v3489_v46, %v3441_v40 }
 0x526   :  { %v9658_v8 = vadd.f32 %v3538_v63, %v3490_v0 }
 0x527   :  { %v3394_v1 = vpop.f32.mrf.mxu3 }
 0x528   :  { %v3395_v49 = vadd.f32 %v3394_v1, %v3346_v48  ;;  %v3541_v27 = vpop.f32.mrf.mxu2 }
 0x52a   :  { %v3444_v18 = vadd.f32 %v3443_v58, %v3395_v49 }
 0x52c   :  { %v3493_v24 = vadd.f32 %v3492_v13, %v3444_v18 }
 0x52e   :  { %v9660_v41 = vadd.f32 %v3541_v27, %v3493_v24 }
 0x52f   :  { %v9662_v23 = vpop.f32.mrf.mxu3 }
 0x530   :  { %10597 = vst [vmem:[#allocation50_spill] sm:$0xff] %v9660_v41 }
 0x531   :  { %10598 = vst [vmem:[#allocation3_spill] sm:$0xff] %v9662_v23 }
 0x537   :  { %v3684_v4 = vpop.f32.mrf.mxu3 }
 0x538   :  { %v3717_v25 = vadd.f32 %v3684_v4, %v8860_v61 }
 0x53a   :  { %v5923_v19 = vmul.f32 -1.442695, %v3717_v25  ;;  %v3409_v25 = vadd.f32 %v9556_v55, %v9564_v20 }
 0x53c   :  { %6279 = vpow2.f32 %v5923_v19  ;;  %v3458_v20 = vadd.f32 %v9492_v54, %v3409_v25 }
 0x53f   :  { %v3686_v59 = vpop.f32.mrf.mxu3 }
 0x540   :  { %v3718_v11 = vadd.f32 %v3686_v59, %v10599_v16 }
 0x542   :  { %v6280_v46 = vpop.eup %6279  ;;  %v5924_v40 = vmul.f32 -1.442695, %v3718_v11  ;;  %v3313_v11 = vadd.f32 %v9206_v30, %v9554_v45 }
 0x543   :  { %v3725_v63 = vadd.f32 1.0, %v6280_v46 }
 0x544   :  { %6281 = vpow2.f32 %v5924_v40  ;;  %v3362_v55 = vadd.f32 %v9576_v57, %v3313_v11 }
 0x545   :  { %6283 = vrcp.f32 %v3725_v63  ;;  %v3738_v40 = vand.u32 2147483648, %v3725_v63  ;;  %vm3732_vm1 = vweird.f32 %v3725_v63 }
 0x547   :  { %v3698_v0 = vpop.f32.mrf.mxu3 }
 0x548   :  { %v3757_v48 = vadd.f32 %v3698_v0, %v9203_v33  ;;  %v3736_v0 = vand.u32 2147483647, %v3725_v63 }
 0x54a   :  { %v6282_v1 = vpop.eup %6281  ;;  %v5925_v49 = vmul.f32 -1.442695, %v3757_v48  ;;  %vm3737_vm3 = vcmp.eq.f32.partialorder %v3736_v0, 8.507059e+37 }
 0x54b   :  { %v6284_v58 = vpop.eup %6283  ;;  %v3726_v18 = vadd.f32 1.0, %v6282_v1 }
 0x54c   :  { %6285 = vpow2.f32 %v5925_v49  ;;  %v3728_v13 = vmul.f32 %v6284_v58, %v3725_v63  ;;  %vm3733_vm0 = vweird.f32 %v6284_v58 }
 0x54d   :  { %6287 = vrcp.f32 %v3726_v18  ;;  %vm3734_vm2 = vmor %vm3732_vm1, %vm3733_vm0  ;;  %v3751_v57 = vand.u32 2147483647, %v3726_v18  ;;  %vm3747_vm5 = vweird.f32 %v3726_v18 }
 0x54e   :  { %v3729_v61 = vsub.f32 1.0, %v3728_v13  ;;  %v3739_v13 = vor.u32 1.1754944e-38, %v3738_v40 }
 0x54f   :  { %v3700_v24 = vpop.f32.mrf.mxu3  ;;  %vm3752_vm7 = vcmp.eq.f32.partialorder %v3751_v57, 8.507059e+37 }
 0x550   :  { %v3758_v27 = vadd.f32 %v3700_v24, %v9209_v52  ;;  %v3730_v4 = vmul.f32 %v6284_v58, %v3729_v61  ;;  %v9675_v52 = vld [vmem:[%s10116_s4 + $0x8] ss:$0 sm:$0xff]  ;;  %v3507_v24 = vadd.f32 %v9566_v9, %v3458_v20 }
 0x552   :  { %v6286_v19 = vpop.eup %6285  ;;  %v5926_v59 = vmul.f32 -1.442695, %v3758_v27  ;;  %v3731_v16 = vadd.f32 %v6284_v58, %v3730_v4 }
 0x553   :  { %v6288_v33 = vpop.eup %6287  ;;  %v3765_v46 = vadd.f32 1.0, %v6286_v19  ;;  %v3411_v19 = vadd.f32 %v9570_v28, %v3362_v55 }
 0x554   :  { %6289 = vpow2.f32 %v5926_v59  ;;  %v3743_v48 = vmul.f32 %v6288_v33, %v3726_v18  ;;  %v3735_v1 = vsel %vm3734_vm2, %v6284_v58, %v3731_v16  ;;  %vm3748_vm4 = vweird.f32 %v6288_v33 }
 0x555   :  { %6291 = vrcp.f32 %v3765_v46  ;;  %v3740_v27 = vsel %vm3737_vm3, %v3739_v13, %v3735_v1  ;;  %v3753_v58 = vand.u32 2147483648, %v3726_v18  ;;  %vm3749_vm6 = vmor %vm3747_vm5, %vm3748_vm4  ;;  %v3460_v40 = vadd.f32 %v9522_v36, %v3411_v19 }
 0x556   :  { %v3744_v49 = vsub.f32 1.0, %v3743_v48  ;;  %v3778_v48 = vand.u32 2147483648, %v3765_v46  ;;  %v3776_v1 = vand.u32 2147483647, %v3765_v46  ;;  %vm3772_vm9 = vweird.f32 %v3765_v46 }
 0x557   :  { %v3712_v30 = vpop.f32.mrf.mxu3  ;;  %v3754_v28 = vor.u32 1.1754944e-38, %v3753_v58  ;;  %v3509_v13 = vadd.f32 %v9578_v26, %v3460_v40 }
 0x558   :  { %v3800_v61 = vadd.f32 %v9675_v52, %v3712_v30  ;;  %v3745_v63 = vmul.f32 %v6288_v33, %v3744_v49  ;;  %v3779_v36 = vor.u32 1.1754944e-38, %v3778_v48  ;;  %vm3777_vm11 = vcmp.eq.f32.partialorder %v3776_v1, 8.507059e+37 }
 0x55a   :  { %v6290_v4 = vpop.eup %6289  ;;  %v3802_v59 = vmul.f32 %v3800_v61, %v3740_v27  ;;  %v3746_v54 = vadd.f32 %v6288_v33, %v3745_v63 }
 0x55b   :  { %v6292_v25 = vpop.eup %6291  ;;  %v3766_v41 = vadd.f32 1.0, %v6290_v4 }
 0x55c   :  { %v3768_v16 = vmul.f32 %v6292_v25, %v3765_v46  ;;  %v3804_v11 = vadd.f32 %v3802_v59, %v3507_v24  ;;  %v3750_v9 = vsel %vm3749_vm6, %v6288_v33, %v3746_v54  ;;  %vm3773_vm8 = vweird.f32 %v6292_v25 }
 0x55d   :  { %6293 = vrcp.f32 %v3766_v41  ;;  %v3755_v30 = vsel %vm3752_vm7, %v3754_v28, %v3750_v9  ;;  %vm3774_vm10 = vmor %vm3772_vm9, %vm3773_vm8  ;;  %v3791_v57 = vand.u32 2147483647, %v3766_v41  ;;  %v3793_v58 = vand.u32 2147483648, %v3766_v41 }
 0x55e   :  { %v3769_v0 = vsub.f32 1.0, %v3768_v16  ;;  %6295 = vtanh.f32 %v3804_v11  ;;  %vm3787_vm13 = vweird.f32 %v3766_v41 }
 0x55f   :  { %v3714_v20 = vpop.f32.mrf.mxu3  ;;  %vm3792_vm15 = vcmp.eq.f32.partialorder %v3791_v57, 8.507059e+37 }
 0x560   :  { %v3770_v55 = vmul.f32 %v6292_v25, %v3769_v0  ;;  %v3801_v49 = vadd.f32 %v9675_v52, %v3714_v20  ;;  %v3794_v0 = vor.u32 1.1754944e-38, %v3793_v58 }
 0x562   :  { %v3771_v18 = vadd.f32 %v6292_v25, %v3770_v55  ;;  %v3803_v61 = vmul.f32 %v3801_v49, %v3755_v30  ;;  %v9715_v30 = vpop.f32.mrf.mxu0 }
 0x563   :  { %v6294_v63 = vpop.eup %6293  ;;  %10601 = vst [vmem:[#allocation144_spill] sm:$0xff] %v9715_v30  ;;  %v10611_v30 = vld [vmem:[#allocation94_spill] sm:$0xff] }
 0x564   :  { %v3783_v33 = vmul.f32 %v6294_v63, %v3766_v41  ;;  %v3775_v24 = vsel %vm3774_vm10, %v6292_v25, %v3771_v18  ;;  %v3805_v27 = vadd.f32 %v3803_v61, %v3509_v13  ;;  %v6296_v54 = vpop.eup %6295  ;;  %vm3788_vm12 = vweird.f32 %v6294_v63  ;;  %v10600_v41 = vld [vmem:[#allocation46_spill] sm:$0xff] }
 0x565   :  { %v3780_v4 = vsel %vm3777_vm11, %v3779_v36, %v3775_v24  ;;  %vm3789_vm14 = vmor %vm3787_vm13, %vm3788_vm12  ;;  %v10602_v18 = vld [vmem:[#allocation130_spill] sm:$0xff] }
 0x566   :  { %v3784_v19 = vsub.f32 1.0, %v3783_v33  ;;  %v3808_v59 = vsub.f32 1.0, %v3780_v4  ;;  %v3812_v26 = vmul.f32 0.0, %v3780_v4  ;;  %6297 = vtanh.f32 %v3805_v27  ;;  %v10603_v33 = vld [vmem:[#allocation74_spill] sm:$0xff] }
 0x568   :  { %v3785_v16 = vmul.f32 %v6294_v63, %v3784_v19  ;;  %v3810_v11 = vmul.f32 %v6296_v54, %v3808_v59  ;;  %v10604_v19 = vld [vmem:[#allocation34_spill] sm:$0xff] }
 0x56a   :  { %v3786_v46 = vadd.f32 %v6294_v63, %v3785_v16  ;;  %v9685_v40 = vadd.f32 %v3812_v26, %v3810_v11  ;;  %v10605_v11 = vld [vmem:[#allocation27_spill] sm:$0xff] }
 0x56c   :  { %v3790_v25 = vsel %vm3789_vm14, %v6294_v63, %v3786_v46  ;;  %v6298_v20 = vpop.eup %6297 }
 0x56d   :  { %v3795_v9 = vsel %vm3792_vm15, %v3794_v0, %v3790_v25 }
 0x56e   :  { %v3809_v48 = vsub.f32 1.0, %v3795_v9  ;;  %v3813_v55 = vmul.f32 0.0, %v3795_v9 }
 0x570   :  { %v3811_v28 = vmul.f32 %v6298_v20, %v3809_v48 }
 0x572   :  { %v9687_v1 = vadd.f32 %v3813_v55, %v3811_v28  ;;  %v9728_v28 = vpop.f32.mrf.mxu1 }
 0x573   :  { %10606 = vst [vmem:[#allocation97_spill] sm:$0xff] %v9728_v28  ;;  %v10610_v28 = vld [vmem:[#allocation142_spill] sm:$0xff] }
 0x574   :  { %v3816_v49 = vpack.c.bf16 %v9687_v1, %v9685_v40 }
 0x576   :  { %3825 = vmatmul.bf16.vlgmr.msrb.gmra.mxu3 %v3816_v49  ;;  %3839 = vmatmul.bf16.vlgmr.msra.gmra.mxu0 %v3816_v49 }
 0x577   :  { %3853 = vmatmul.bf16.vlgmr.msra.gmra.mxu1 %v3816_v49  ;;  %4123 = vmatpush.bf16.msrb.mxu3 %v9441_v12 }
 0x578   :  { %4234 = vmatpush.bf16.msra.mxu0 %v9143_v47  ;;  %4248 = vmatpush.bf16.msra.mxu1 %v9315_v2 }
 0x57b   :  { %4124 = vmatpush.bf16.msrb.mxu3 %v9458_v22 }
 0x57c   :  { %4235 = vmatpush.bf16.msra.mxu0 %v9170_v3  ;;  %4249 = vmatpush.bf16.msra.mxu1 %v9332_v14 }
 0x57f   :  { %4125 = vmatpush.bf16.msrb.mxu3 %v9475_v51 }
 0x580   :  { %4236 = vmatpush.bf16.msra.mxu0 %v9196_v31  ;;  %4250 = vmatpush.bf16.msra.mxu1 %v9349_v17 }
 0x583   :  { %4126 = vmatpush.bf16.msrb.mxu3 %v9490_v7 }
 0x584   :  { %4237 = vmatpush.bf16.msra.mxu0 %v9220_v5  ;;  %4251 = vmatpush.bf16.msra.mxu1 %v9365_v56 }
 0x587   :  { %4127 = vmatpush.bf16.msrb.mxu3 %v9504_v62 }
 0x588   :  { %4238 = vmatpush.bf16.msra.mxu0 %v9244_v6  ;;  %4252 = vmatpush.bf16.msra.mxu1 %v9380_v43 }
 0x58b   :  { %4128 = vmatpush.bf16.msrb.mxu3 %v9518_v50 }
 0x58c   :  { %4239 = vmatpush.bf16.msra.mxu0 %v9268_v15  ;;  %4253 = vmatpush.bf16.msra.mxu1 %v9397_v35 }
 0x58f   :  { %4129 = vmatpush.bf16.msrb.mxu3 %v9535_v29 }
 0x590   :  { %4240 = vmatpush.bf16.msra.mxu0 %v9290_v42  ;;  %4254 = vmatpush.bf16.msra.mxu1 %v9414_v21 }
 0x593   :  { %4130 = vmatpush.bf16.msrb.mxu3 %v10600_v41 }
 0x594   :  { %4241 = vmatpush.bf16.msra.mxu0 %v9305_v34  ;;  %4255 = vmatpush.bf16.msra.mxu1 %v9430_v44 }
 0x5f3   :  { %v3840_v13 = vpop.f32.mrf.mxu0 }
 0x5f4   :  { %v3899_v61 = vadd.f32 %v3840_v13, %v10602_v18 }
 0x5f6   :  { %v5929_v63 = vmul.f32 -1.442695, %v3899_v61 }
 0x5f8   :  { %6299 = vpow2.f32 %v5929_v63  ;;  %v10607_v63 = vld [vmem:[#allocation81_spill] sm:$0xff] }
 0x5f9   :  { %v3826_v36 = vpop.f32.mrf.mxu3 }
 0x5fa   :  { %v3859_v24 = vadd.f32 %v3826_v36, %v10603_v33  ;;  %v3318_v36 = vadd.f32 %v10607_v63, %v9554_v45 }
 0x5fb   :  { %v3842_v27 = vpop.f32.mrf.mxu0 }
 0x5fc   :  { %v5927_v4 = vmul.f32 -1.442695, %v3859_v24  ;;  %v3900_v59 = vadd.f32 %v3842_v27, %v10604_v19 }
 0x5fe   :  { %v6300_v54 = vpop.eup %6299  ;;  %6301 = vpow2.f32 %v5927_v4  ;;  %v5930_v57 = vmul.f32 -1.442695, %v3900_v59  ;;  %v10608_v4 = vld [vmem:[#allocation49_spill] sm:$0xff]  ;;  %v3854_v59 = vpop.f32.mrf.mxu1 }
 0x5ff   :  { %v9720_v58 = vadd.f32 1.0, %v6300_v54  ;;  %v3367_v19 = vadd.f32 %v10608_v4, %v3318_v36 }
 0x600   :  { %6303 = vpow2.f32 %v5930_v57 }
 0x601   :  { %v3828_v16 = vpop.f32.mrf.mxu3  ;;  %6305 = vrcp.f32 %v9720_v58  ;;  %vm3914_vm5 = vweird.f32 %v9720_v58 }
 0x602   :  { %v3860_v26 = vadd.f32 %v3828_v16, %v10605_v11 }
 0x604   :  { %v6302_v46 = vpop.eup %6301  ;;  %v5928_v0 = vmul.f32 -1.442695, %v3860_v26 }
 0x605   :  { %v3867_v25 = vadd.f32 1.0, %v6302_v46 }
 0x606   :  { %v6304_v9 = vpop.eup %6303  ;;  %6307 = vpow2.f32 %v5928_v0 }
 0x607   :  { %6309 = vrcp.f32 %v3867_v25  ;;  %v9724_v48 = vpop.eup %6305  ;;  %v9726_v20 = vadd.f32 1.0, %v6304_v9  ;;  %v3880_v54 = vand.u32 2147483648, %v3867_v25  ;;  %v3878_v16 = vand.u32 2147483647, %v3867_v25  ;;  %v10609_v9 = vld [vmem:[#allocation47_spill] sm:$0xff] }
 0x608   :  { %v3910_v55 = vmul.f32 %v9724_v48, %v9720_v58  ;;  %vm3874_vm1 = vweird.f32 %v3867_v25  ;;  %vm3915_vm4 = vweird.f32 %v9724_v48 }
 0x609   :  { %6311 = vrcp.f32 %v9726_v20  ;;  %vm3879_vm3 = vcmp.eq.f32.partialorder %v3878_v16, 8.507059e+37  ;;  %vm9750_vm6 = vmor %vm3914_vm5, %vm3915_vm4  ;;  %vm3929_vm13 = vweird.f32 %v9726_v20 }
 0x60a   :  { %v3911_v33 = vsub.f32 1.0, %v3910_v55  ;;  %v3416_v55 = vadd.f32 %v10609_v9, %v3367_v19 }
 0x60c   :  { %v6308_v49 = vpop.eup %6307  ;;  %v3912_v11 = vmul.f32 %v9724_v48, %v3911_v33 }
 0x60d   :  { %v6310_v13 = vpop.eup %6309  ;;  %v3868_v18 = vadd.f32 1.0, %v6308_v49  ;;  %v3881_v49 = vor.u32 1.1754944e-38, %v3880_v54 }
 0x60e   :  { %v3870_v61 = vmul.f32 %v6310_v13, %v3867_v25  ;;  %vm3875_vm0 = vweird.f32 %v6310_v13  ;;  %v3920_v25 = vand.u32 2147483648, %v9720_v58 }
 0x60f   :  { %6313 = vrcp.f32 %v3868_v18  ;;  %v9735_v24 = vpop.eup %6311  ;;  %vm3876_vm2 = vmor %vm3874_vm1, %vm3875_vm0  ;;  %vm3889_vm8 = vweird.f32 %v3868_v18 }
 0x610   :  { %v3871_v27 = vsub.f32 1.0, %v3870_v61  ;;  %v3925_v26 = vmul.f32 %v9735_v24, %v9726_v20  ;;  %v3939_v61 = vadd.f32 %v9675_v52, %v3854_v59  ;;  %v3918_v59 = vand.u32 2147483647, %v9720_v58 }
 0x611   :  { %vm3930_vm12 = vweird.f32 %v9735_v24 }
 0x612   :  { %v3872_v57 = vmul.f32 %v6310_v13, %v3871_v27  ;;  %v3913_v27 = vadd.f32 %v9724_v48, %v3912_v11  ;;  %v3926_v4 = vsub.f32 1.0, %v3925_v26  ;;  %v3893_v26 = vand.u32 2147483647, %v3868_v18  ;;  %vm3931_vm14 = vmor %vm3929_vm13, %vm3930_vm12 }
 0x613   :  { %vm3919_vm9 = vcmp.eq.f32.partialorder %v3918_v59, 8.507059e+37 }
 0x614   :  { %v3873_v46 = vadd.f32 %v6310_v13, %v3872_v57  ;;  %v3512_v57 = vadd.f32 %v10611_v30, %v10610_v28  ;;  %v3917_v30 = vsel %vm9750_vm6, %v9724_v48, %v3913_v27  ;;  %v3927_v28 = vmul.f32 %v9735_v24, %v3926_v4  ;;  %v10615_v27 = vld [vmem:[#allocation2_spill] sm:$0xff] }
 0x615   :  { %v6314_v0 = vpop.eup %6313  ;;  %vm3894_vm11 = vcmp.eq.f32.partialorder %v3893_v26, 8.507059e+37 }
 0x616   :  { %v3877_v63 = vsel %vm3876_vm2, %v6310_v13, %v3873_v46  ;;  %v3885_v36 = vmul.f32 %v6314_v0, %v3868_v18  ;;  %v3895_v13 = vand.u32 2147483648, %v3868_v18  ;;  %vm3890_vm7 = vweird.f32 %v6314_v0  ;;  %v10614_v46 = vld [vmem:[#allocation141_spill] sm:$0xff] }
 0x617   :  { %v3882_v33 = vsel %vm3879_vm3, %v3881_v49, %v3877_v63  ;;  %v3465_v9 = vadd.f32 %v10614_v46, %v3416_v55  ;;  %v3856_v49 = vpop.f32.mrf.mxu1  ;;  %vm3891_vm10 = vmor %vm3889_vm8, %vm3890_vm7  ;;  %v3928_v55 = vadd.f32 %v9735_v24, %v3927_v28  ;;  %v3933_v18 = vand.u32 2147483647, %v9726_v20 }
 0x618   :  { %v3941_v23 = vmul.f32 %v3939_v61, %v3882_v33  ;;  %v3886_v19 = vsub.f32 1.0, %v3885_v36  ;;  %v3921_v61 = vor.u32 1.1754944e-38, %v3920_v25  ;;  %v3896_v63 = vor.u32 1.1754944e-38, %v3895_v13 }
 0x619   :  { %v3514_v4 = vadd.f32 %v10615_v27, %v3465_v9  ;;  %v3932_v13 = vsel %vm3931_vm14, %v9735_v24, %v3928_v55  ;;  %vm3934_vm15 = vcmp.eq.f32.partialorder %v3933_v18, 8.507059e+37 }
 0x61a   :  { %v3943_v16 = vadd.f32 %v3941_v23, %v3512_v57  ;;  %v3887_v11 = vmul.f32 %v6314_v0, %v3886_v19  ;;  %v3940_v23 = vadd.f32 %v9675_v52, %v3856_v49  ;;  %v3922_v33 = vsel %vm3919_vm9, %v3921_v61, %v3917_v30 }
 0x61b   :  { %v3935_v57 = vand.u32 2147483648, %v9726_v20  ;;  %v3947_v19 = vsub.f32 1.0, %v3922_v33 }
 0x61c   :  { %6315 = vtanh.f32 %v3943_v16  ;;  %v3888_v58 = vadd.f32 %v6314_v0, %v3887_v11  ;;  %v3951_v16 = vmul.f32 %v3922_v33, %v9685_v40  ;;  %v9799_v40 = vpop.f32.mrf.mxu2 }
 0x61d   :  { %v3936_v11 = vor.u32 1.1754944e-38, %v3935_v57 }
 0x61e   :  { %v3892_v36 = vsel %vm3891_vm10, %v6314_v0, %v3888_v58  ;;  %v10616_v58 = vld [vmem:[#allocation77_spill] sm:$0xff] }
 0x61f   :  { %v3897_v48 = vsel %vm3894_vm11, %v3896_v63, %v3892_v36  ;;  %v3937_v46 = vsel %vm3934_vm15, %v3936_v11, %v3932_v13 }
 0x620   :  { %v3942_v25 = vmul.f32 %v3940_v23, %v3897_v48  ;;  %v3948_v9 = vsub.f32 1.0, %v3937_v46  ;;  %v3952_v20 = vmul.f32 %v3937_v46, %v9687_v1  ;;  %v10617_v23 = vld [vmem:[#allocation82_spill] sm:$0xff] }
 0x622   :  { %v6316_v59 = vpop.eup %6315  ;;  %v3944_v0 = vadd.f32 %v3942_v25, %v3514_v4  ;;  %v10618_v4 = vld [vmem:[#allocation30_spill] sm:$0xff]  ;;  %v10619_v25 = vld [vmem:[#allocation35_spill] sm:$0xff] }
 0x623   :  { %v3949_v54 = vmul.f32 %v6316_v59, %v3947_v19 }
 0x624   :  { %6317 = vtanh.f32 %v3944_v0 }
 0x625   :  { %v9768_v26 = vadd.f32 %v3951_v16, %v3949_v54 }
 0x62a   :  { %v6318_v30 = vpop.eup %6317 }
 0x62b   :  { %v3950_v28 = vmul.f32 %v6318_v30, %v3948_v9 }
 0x62d   :  { %v9771_v49 = vadd.f32 %v3952_v20, %v3950_v28 }
 0x62f   :  { %v3955_v61 = vpack.c.bf16 %v9771_v49, %v9768_v26 }
 0x631   :  { %3964 = vmatmul.bf16.vlgmr.msrb.gmra.mxu2 %v3955_v61  ;;  %3978 = vmatmul.bf16.vlgmr.msra.gmra.mxu3 %v3955_v61 }
 0x632   :  { %3992 = vmatmul.bf16.vlgmr.msrb.gmra.mxu0 %v3955_v61  ;;  %4262 = vmatpush.bf16.msrb.mxu2 %v9441_v12 }
 0x633   :  { %4373 = vmatpush.bf16.msra.mxu3 %v9143_v47  ;;  %4387 = vmatpush.bf16.msrb.mxu0 %v9315_v2 }
 0x636   :  { %4263 = vmatpush.bf16.msrb.mxu2 %v9458_v22 }
 0x637   :  { %4374 = vmatpush.bf16.msra.mxu3 %v9170_v3  ;;  %4388 = vmatpush.bf16.msrb.mxu0 %v9332_v14 }
 0x63a   :  { %4264 = vmatpush.bf16.msrb.mxu2 %v9475_v51 }
 0x63b   :  { %4375 = vmatpush.bf16.msra.mxu3 %v9196_v31  ;;  %4389 = vmatpush.bf16.msrb.mxu0 %v9349_v17 }
 0x63e   :  { %4265 = vmatpush.bf16.msrb.mxu2 %v9490_v7 }
 0x63f   :  { %4376 = vmatpush.bf16.msra.mxu3 %v9220_v5  ;;  %4390 = vmatpush.bf16.msrb.mxu0 %v9365_v56 }
 0x642   :  { %4266 = vmatpush.bf16.msrb.mxu2 %v9504_v62 }
 0x643   :  { %4377 = vmatpush.bf16.msra.mxu3 %v9244_v6  ;;  %4391 = vmatpush.bf16.msrb.mxu0 %v9380_v43 }
 0x646   :  { %4267 = vmatpush.bf16.msrb.mxu2 %v9518_v50 }
 0x647   :  { %4378 = vmatpush.bf16.msra.mxu3 %v9268_v15  ;;  %4392 = vmatpush.bf16.msrb.mxu0 %v9397_v35 }
 0x64a   :  { %4268 = vmatpush.bf16.msrb.mxu2 %v9535_v29 }
 0x64b   :  { %4379 = vmatpush.bf16.msra.mxu3 %v9290_v42  ;;  %4393 = vmatpush.bf16.msrb.mxu0 %v9414_v21 }
 0x64e   :  { %4269 = vmatpush.bf16.msrb.mxu2 %v10600_v41 }
 0x64f   :  { %4380 = vmatpush.bf16.msra.mxu3 %v9305_v34  ;;  %4394 = vmatpush.bf16.msrb.mxu0 %v9430_v44 }
 0x6b4   :  { %v3965_v1 = vpop.f32.mrf.mxu2  ;;  %v3979_v24 = vpop.f32.mrf.mxu3 }
 0x6b5   :  { %v3998_v63 = vadd.f32 %v3965_v1, %v10616_v58  ;;  %v4038_v36 = vadd.f32 %v3979_v24, %v10617_v23  ;;  %v3993_v58 = vpop.f32.mrf.mxu0 }
 0x6b7   :  { %v5931_v33 = vmul.f32 -1.442695, %v3998_v63  ;;  %v5933_v55 = vmul.f32 -1.442695, %v4038_v36 }
 0x6b9   :  { %6319 = vpow2.f32 %v5931_v33 }
 0x6ba   :  { %6321 = vpow2.f32 %v5933_v55 }
 0x6bc   :  { %v3967_v48 = vpop.f32.mrf.mxu2  ;;  %v3981_v27 = vpop.f32.mrf.mxu3 }
 0x6bd   :  { %v3999_v57 = vadd.f32 %v3967_v48, %v10618_v4  ;;  %v4039_v18 = vadd.f32 %v3981_v27, %v10619_v25 }
 0x6bf   :  { %v6320_v19 = vpop.eup %6319  ;;  %v5932_v59 = vmul.f32 -1.442695, %v3999_v57  ;;  %v5934_v54 = vmul.f32 -1.442695, %v4039_v18  ;;  %v4078_v57 = vadd.f32 %v9675_v52, %v3993_v58 }
 0x6c0   :  { %v6322_v0 = vpop.eup %6321  ;;  %v4006_v13 = vadd.f32 1.0, %v6320_v19 }
 0x6c1   :  { %v4046_v16 = vadd.f32 1.0, %v6322_v0  ;;  %6323 = vpow2.f32 %v5932_v59 }
 0x6c2   :  { %6325 = vrcp.f32 %v4006_v13  ;;  %v4019_v63 = vand.u32 2147483648, %v4006_v13  ;;  %v4017_v33 = vand.u32 2147483647, %v4006_v13  ;;  %vm4013_vm1 = vweird.f32 %v4006_v13 }
 0x6c3   :  { %6327 = vrcp.f32 %v4046_v16  ;;  %vm4053_vm5 = vweird.f32 %v4046_v16 }
 0x6c4   :  { %6329 = vpow2.f32 %v5934_v54  ;;  %v4020_v4 = vor.u32 1.1754944e-38, %v4019_v63  ;;  %vm4018_vm3 = vcmp.eq.f32.partialorder %v4017_v33, 8.507059e+37 }
 0x6c7   :  { %v6324_v11 = vpop.eup %6323 }
 0x6c8   :  { %v6326_v46 = vpop.eup %6325  ;;  %v4007_v9 = vadd.f32 1.0, %v6324_v11  ;;  %v4059_v11 = vand.u32 2147483648, %v4046_v16 }
 0x6c9   :  { %v6328_v30 = vpop.eup %6327  ;;  %v4009_v28 = vmul.f32 %v6326_v46, %v4006_v13  ;;  %vm4014_vm0 = vweird.f32 %v6326_v46 }
 0x6ca   :  { %v6330_v20 = vpop.eup %6329  ;;  %v4049_v61 = vmul.f32 %v6328_v30, %v4046_v16  ;;  %6331 = vrcp.f32 %v4007_v9  ;;  %vm4015_vm2 = vmor %vm4013_vm1, %vm4014_vm0  ;;  %vm4054_vm4 = vweird.f32 %v6328_v30  ;;  %v4032_v58 = vand.u32 2147483647, %v4007_v9 }
 0x6cb   :  { %v4010_v1 = vsub.f32 1.0, %v4009_v28  ;;  %v9805_v24 = vadd.f32 1.0, %v6330_v20  ;;  %v4057_v20 = vand.u32 2147483647, %v4046_v16  ;;  %vm9811_vm6 = vmor %vm4053_vm5, %vm4054_vm4  ;;  %vm4028_vm8 = vweird.f32 %v4007_v9 }
 0x6cc   :  { %v4050_v23 = vsub.f32 1.0, %v4049_v61  ;;  %v4034_v61 = vand.u32 2147483648, %v4007_v9  ;;  %vm4033_vm11 = vcmp.eq.f32.partialorder %v4032_v58, 8.507059e+37 }
 0x6cd   :  { %v4011_v36 = vmul.f32 %v6326_v46, %v4010_v1  ;;  %6333 = vrcp.f32 %v9805_v24  ;;  %vm4058_vm9 = vcmp.eq.f32.partialorder %v4057_v20, 8.507059e+37  ;;  %vm4068_vm13 = vweird.f32 %v9805_v24 }
 0x6ce   :  { %v4051_v55 = vmul.f32 %v6328_v30, %v4050_v23 }
 0x6cf   :  { %v4012_v48 = vadd.f32 %v6326_v46, %v4011_v36  ;;  %v3995_v36 = vpop.f32.mrf.mxu0 }
 0x6d0   :  { %v6332_v27 = vpop.eup %6331  ;;  %v4052_v59 = vadd.f32 %v6328_v30, %v4051_v55  ;;  %v4060_v55 = vor.u32 1.1754944e-38, %v4059_v11 }
 0x6d1   :  { %v4016_v25 = vsel %vm4015_vm2, %v6326_v46, %v4012_v48  ;;  %v4024_v18 = vmul.f32 %v6332_v27, %v4007_v9  ;;  %vm4029_vm7 = vweird.f32 %v6332_v27  ;;  %v4035_v48 = vor.u32 1.1754944e-38, %v4034_v61 }
 0x6d2   :  { %v4021_v19 = vsel %vm4018_vm3, %v4020_v4, %v4016_v25  ;;  %v4056_v23 = vsel %vm9811_vm6, %v6328_v30, %v4052_v59  ;;  %vm4030_vm10 = vmor %vm4028_vm8, %vm4029_vm7  ;;  %v4079_v4 = vadd.f32 %v9675_v52, %v3995_v36  ;;  %v4074_v30 = vand.u32 2147483648, %v9805_v24 }
 0x6d3   :  { %v6334_v0 = vpop.eup %6333  ;;  %v4080_v54 = vmul.f32 %v4078_v57, %v4021_v19  ;;  %v4025_v28 = vsub.f32 1.0, %v4024_v18  ;;  %v4061_v25 = vsel %vm4058_vm9, %v4060_v55, %v4056_v23  ;;  %v4072_v59 = vand.u32 2147483647, %v9805_v24 }
 0x6d4   :  { %v4064_v13 = vmul.f32 %v6334_v0, %v9805_v24  ;;  %vm4069_vm12 = vweird.f32 %v6334_v0  ;;  %v4086_v9 = vsub.f32 1.0, %v4061_v25 }
 0x6d5   :  { %v4082_v1 = vadd.f32 %v4080_v54, %v9609_v53  ;;  %v4026_v46 = vmul.f32 %v6332_v27, %v4025_v28  ;;  %vm4070_vm14 = vmor %vm4068_vm13, %vm4069_vm12  ;;  %vm4073_vm15 = vcmp.eq.f32.partialorder %v4072_v59, 8.507059e+37  ;;  %v10625_v59 = vld [vmem:[#allocation133_spill] sm:$0xff] }
 0x6d6   :  { %v4065_v33 = vsub.f32 1.0, %v4064_v13  ;;  %v4075_v13 = vor.u32 1.1754944e-38, %v4074_v30 }
 0x6d7   :  { %6335 = vtanh.f32 %v4082_v1  ;;  %v4027_v16 = vadd.f32 %v6332_v27, %v4026_v46 }
 0x6d8   :  { %v4066_v53 = vmul.f32 %v6334_v0, %v4065_v33 }
 0x6d9   :  { %v4031_v57 = vsel %vm4030_vm10, %v6332_v27, %v4027_v16  ;;  %v4090_v27 = vmul.f32 %v4061_v25, %v9768_v26  ;;  %v10623_v16 = vld [vmem:[#allocation38_spill] sm:$0xff] }
 0x6da   :  { %v4036_v18 = vsel %vm4033_vm11, %v4035_v48, %v4031_v57  ;;  %v4067_v19 = vadd.f32 %v6334_v0, %v4066_v53  ;;  %v10624_v57 = vld [vmem:[#allocation78_spill] sm:$0xff] }
 0x6db   :  { %v4081_v54 = vmul.f32 %v4079_v4, %v4036_v18 }
 0x6dc   :  { %v4071_v20 = vsel %vm4070_vm14, %v6334_v0, %v4067_v19 }
 0x6dd   :  { %v6336_v11 = vpop.eup %6335  ;;  %v4083_v28 = vadd.f32 %v4081_v54, %v9615_v39  ;;  %v4076_v63 = vsel %vm4073_vm15, %v4075_v13, %v4071_v20 }
 0x6de   :  { %v4088_v61 = vmul.f32 %v6336_v11, %v4086_v9  ;;  %v4087_v46 = vsub.f32 1.0, %v4076_v63  ;;  %v4091_v24 = vmul.f32 %v4076_v63, %v9771_v49  ;;  %v10622_v49 = vld [vmem:[#allocation125_spill] sm:$0xff] }
 0x6df   :  { %6337 = vtanh.f32 %v4083_v28 }
 0x6e0   :  { %v9823_v1 = vadd.f32 %v4090_v27, %v4088_v61 }
 0x6e5   :  { %v6338_v58 = vpop.eup %6337 }
 0x6e6   :  { %v4089_v23 = vmul.f32 %v6338_v58, %v4087_v46 }
 0x6e8   :  { %v9826_v36 = vadd.f32 %v4091_v24, %v4089_v23 }
 0x6ea   :  { %v4094_v39 = vpack.c.bf16 %v9826_v36, %v9823_v1 }
 0x6ec   :  { %4103 = vmatmul.bf16.vlgmr.msrb.gmra.mxu1 %v4094_v39  ;;  %4117 = vmatmul.bf16.vlgmr.msra.gmra.mxu2 %v4094_v39 }
 0x6ed   :  { %4131 = vmatmul.bf16.vlgmr.msrb.gmra.mxu3 %v4094_v39  ;;  %4401 = vmatpush.bf16.msrb.mxu1 %v9441_v12 }
 0x6ee   :  { %4512 = vmatpush.bf16.msra.mxu2 %v9143_v47  ;;  %4526 = vmatpush.bf16.msrb.mxu3 %v9315_v2 }
 0x6f1   :  { %4402 = vmatpush.bf16.msrb.mxu1 %v9458_v22 }
 0x6f2   :  { %4513 = vmatpush.bf16.msra.mxu2 %v9170_v3  ;;  %4527 = vmatpush.bf16.msrb.mxu3 %v9332_v14 }
 0x6f5   :  { %4403 = vmatpush.bf16.msrb.mxu1 %v9475_v51 }
 0x6f6   :  { %4514 = vmatpush.bf16.msra.mxu2 %v9196_v31  ;;  %4528 = vmatpush.bf16.msrb.mxu3 %v9349_v17 }
 0x6f9   :  { %4404 = vmatpush.bf16.msrb.mxu1 %v9490_v7 }
 0x6fa   :  { %4515 = vmatpush.bf16.msra.mxu2 %v9220_v5  ;;  %4529 = vmatpush.bf16.msrb.mxu3 %v9365_v56 }
 0x6fd   :  { %4405 = vmatpush.bf16.msrb.mxu1 %v9504_v62 }
 0x6fe   :  { %4516 = vmatpush.bf16.msra.mxu2 %v9244_v6  ;;  %4530 = vmatpush.bf16.msrb.mxu3 %v9380_v43 }
 0x701   :  { %4406 = vmatpush.bf16.msrb.mxu1 %v9518_v50 }
 0x702   :  { %4517 = vmatpush.bf16.msra.mxu2 %v9268_v15  ;;  %4531 = vmatpush.bf16.msrb.mxu3 %v9397_v35 }
 0x705   :  { %4407 = vmatpush.bf16.msrb.mxu1 %v9535_v29 }
 0x706   :  { %4518 = vmatpush.bf16.msra.mxu2 %v9290_v42  ;;  %4532 = vmatpush.bf16.msrb.mxu3 %v9414_v21 }
 0x709   :  { %4408 = vmatpush.bf16.msrb.mxu1 %v10600_v41 }
 0x70a   :  { %4519 = vmatpush.bf16.msra.mxu2 %v9305_v34  ;;  %4533 = vmatpush.bf16.msrb.mxu3 %v9430_v44 }
 0x769   :  { %v4104_v26 = vpop.f32.mrf.mxu1 }
 0x76a   :  { %v4137_v0 = vadd.f32 %v4104_v26, %v10622_v49 }
 0x76c   :  { %v5935_v33 = vmul.f32 -1.442695, %v4137_v0 }
 0x76e   :  { %6339 = vpow2.f32 %v5935_v33 }
 0x76f   :  { %v4118_v55 = vpop.f32.mrf.mxu2 }
 0x770   :  { %v4177_v48 = vadd.f32 %v4118_v55, %v10623_v16  ;;  %v4132_v24 = vpop.f32.mrf.mxu3 }
 0x771   :  { %v4106_v53 = vpop.f32.mrf.mxu1 }
 0x772   :  { %v5937_v4 = vmul.f32 -1.442695, %v4177_v48  ;;  %v4138_v25 = vadd.f32 %v4106_v53, %v10624_v57  ;;  %v4217_v57 = vadd.f32 %v9675_v52, %v4132_v24 }
 0x774   :  { %v6340_v18 = vpop.eup %6339  ;;  %6341 = vpow2.f32 %v5937_v4  ;;  %v5936_v19 = vmul.f32 -1.442695, %v4138_v25 }
 0x775   :  { %v4145_v54 = vadd.f32 1.0, %v6340_v18 }
 0x776   :  { %6343 = vpow2.f32 %v5936_v19 }
 0x777   :  { %6345 = vrcp.f32 %v4145_v54  ;;  %v4120_v30 = vpop.f32.mrf.mxu2  ;;  %v4158_v58 = vand.u32 2147483648, %v4145_v54  ;;  %v4156_v26 = vand.u32 2147483647, %v4145_v54  ;;  %vm4152_vm1 = vweird.f32 %v4145_v54 }
 0x778   :  { %v4178_v9 = vadd.f32 %v4120_v30, %v10625_v59 }
 0x779   :  { %v4159_v16 = vor.u32 1.1754944e-38, %v4158_v58  ;;  %vm4157_vm3 = vcmp.eq.f32.partialorder %v4156_v26, 8.507059e+37 }
 0x77a   :  { %v6342_v11 = vpop.eup %6341  ;;  %v5938_v28 = vmul.f32 -1.442695, %v4178_v9 }
 0x77b   :  { %v4185_v20 = vadd.f32 1.0, %v6342_v11 }
 0x77c   :  { %v6344_v61 = vpop.eup %6343  ;;  %6347 = vpow2.f32 %v5938_v28 }
 0x77d   :  { %v6346_v27 = vpop.eup %6345  ;;  %6349 = vrcp.f32 %v4185_v20  ;;  %v4146_v63 = vadd.f32 1.0, %v6344_v61  ;;  %v4198_v30 = vand.u32 2147483648, %v4185_v20  ;;  %v4196_v9 = vand.u32 2147483647, %v4185_v20 }
 0x77e   :  { %v4148_v13 = vmul.f32 %v6346_v27, %v4145_v54  ;;  %vm4153_vm0 = vweird.f32 %v6346_v27  ;;  %vm4192_vm5 = vweird.f32 %v4185_v20 }
 0x77f   :  { %6351 = vrcp.f32 %v4146_v63  ;;  %vm4154_vm2 = vmor %vm4152_vm1, %vm4153_vm0  ;;  %v4173_v61 = vand.u32 2147483648, %v4146_v63  ;;  %v4199_v58 = vor.u32 1.1754944e-38, %v4198_v30  ;;  %vm4197_vm8 = vcmp.eq.f32.partialorder %v4196_v9, 8.507059e+37 }
 0x780   :  { %v4149_v46 = vsub.f32 1.0, %v4148_v13  ;;  %vm4167_vm9 = vweird.f32 %v4146_v63 }
 0x782   :  { %v6348_v23 = vpop.eup %6347  ;;  %v4150_v39 = vmul.f32 %v6346_v27, %v4149_v46 }
 0x783   :  { %v6350_v49 = vpop.eup %6349  ;;  %v4186_v0 = vadd.f32 1.0, %v6348_v23 }
 0x784   :  { %v4188_v33 = vmul.f32 %v6350_v49, %v4185_v20  ;;  %v4151_v55 = vadd.f32 %v6346_v27, %v4150_v39  ;;  %vm4193_vm4 = vweird.f32 %v6350_v49  ;;  %v4134_v39 = vpop.f32.mrf.mxu3  ;;  %v4174_v20 = vor.u32 1.1754944e-38, %v4173_v61 }
 0x785   :  { %6353 = vrcp.f32 %v4186_v0  ;;  %v6352_v48 = vpop.eup %6351  ;;  %vm4194_vm6 = vmor %vm4192_vm5, %vm4193_vm4  ;;  %vm4207_vm13 = vweird.f32 %v4186_v0  ;;  %v4211_v30 = vand.u32 2147483647, %v4186_v0 }
 0x786   :  { %v4189_v53 = vsub.f32 1.0, %v4188_v33  ;;  %v4155_v4 = vsel %vm4154_vm2, %v6346_v27, %v4151_v55  ;;  %v4163_v18 = vmul.f32 %v6352_v48, %v4146_v63  ;;  %vm4168_vm7 = vweird.f32 %v6352_v48 }
 0x787   :  { %v4160_v25 = vsel %vm4157_vm3, %v4159_v16, %v4155_v4  ;;  %v4171_v27 = vand.u32 2147483647, %v4146_v63  ;;  %vm4169_vm10 = vmor %vm4167_vm9, %vm4168_vm7  ;;  %vm4212_vm15 = vcmp.eq.f32.partialorder %v4211_v30, 8.507059e+37 }
 0x788   :  { %v4190_v19 = vmul.f32 %v6350_v49, %v4189_v53  ;;  %v4219_v59 = vmul.f32 %v4217_v57, %v4160_v25  ;;  %v4164_v11 = vsub.f32 1.0, %v4163_v18  ;;  %v4213_v25 = vand.u32 2147483648, %v4186_v0 }
 0x789   :  { %vm4172_vm11 = vcmp.eq.f32.partialorder %v4171_v27, 8.507059e+37 }
 0x78a   :  { %v4191_v28 = vadd.f32 %v6350_v49, %v4190_v19  ;;  %v4221_v54 = vadd.f32 %v4219_v59, %v9621_v32  ;;  %v4165_v46 = vmul.f32 %v6352_v48, %v4164_v11  ;;  %v4218_v32 = vadd.f32 %v9675_v52, %v4134_v39 }
 0x78b   :  { %v6354_v13 = vpop.eup %6353  ;;  %v4214_v11 = vor.u32 1.1754944e-38, %v4213_v25 }
 0x78c   :  { %v4195_v23 = vsel %vm4194_vm6, %v6350_v49, %v4191_v28  ;;  %6355 = vtanh.f32 %v4221_v54  ;;  %v4203_v24 = vmul.f32 %v6354_v13, %v4186_v0  ;;  %v4166_v26 = vadd.f32 %v6352_v48, %v4165_v46 }
 0x78d   :  { %v4200_v33 = vsel %vm4197_vm8, %v4199_v58, %v4195_v23  ;;  %vm4208_vm12 = vweird.f32 %v6354_v13 }
 0x78e   :  { %v4204_v55 = vsub.f32 1.0, %v4203_v24  ;;  %v4170_v16 = vsel %vm4169_vm10, %v6352_v48, %v4166_v26  ;;  %v4225_v57 = vsub.f32 1.0, %v4200_v33  ;;  %vm4209_vm14 = vmor %vm4207_vm13, %vm4208_vm12  ;;  %v4229_v9 = vmul.f32 %v4200_v33, %v9823_v1 }
 0x78f   :  { %v4175_v4 = vsel %vm4172_vm11, %v4174_v20, %v4170_v16 }
 0x790   :  { %v4205_v53 = vmul.f32 %v6354_v13, %v4204_v55  ;;  %v4220_v49 = vmul.f32 %v4218_v32, %v4175_v4 }
 0x792   :  { %v6356_v18 = vpop.eup %6355  ;;  %v4206_v19 = vadd.f32 %v6354_v13, %v4205_v53  ;;  %v4222_v63 = vadd.f32 %v4220_v49, %v9628_v38 }
 0x793   :  { %v4227_v59 = vmul.f32 %v6356_v18, %v4225_v57 }
 0x794   :  { %v4210_v48 = vsel %vm4209_vm14, %v6354_v13, %v4206_v19  ;;  %6357 = vtanh.f32 %v4222_v63 }
 0x795   :  { %v9863_v52 = vadd.f32 %v4229_v9, %v4227_v59  ;;  %v4215_v28 = vsel %vm4212_vm15, %v4214_v11, %v4210_v48 }
 0x796   :  { %v4226_v54 = vsub.f32 1.0, %v4215_v28  ;;  %v4230_v27 = vmul.f32 %v4215_v28, %v9826_v36 }
 0x79a   :  { %v6358_v61 = vpop.eup %6357 }
 0x79b   :  { %v4228_v46 = vmul.f32 %v6358_v61, %v4226_v54  ;;  %v9906_v54 = vld [vmem:[%s10116_s4 + $0x8] ss:$0 sm:$0xff] }
 0x79d   :  { %v9866_v58 = vadd.f32 %v4230_v27, %v4228_v46 }
 0x79f   :  { %v4233_v0 = vpack.c.bf16 %v9866_v58, %v9863_v52 }
 0x7a1   :  { %4242 = vmatmul.bf16.vlgmr.msra.gmra.mxu0 %v4233_v0  ;;  %4256 = vmatmul.bf16.vlgmr.msra.gmra.mxu1 %v4233_v0 }
 0x7a2   :  { %4270 = vmatmul.bf16.vlgmr.msrb.gmra.mxu2 %v4233_v0  ;;  %4540 = vmatpush.bf16.msra.mxu0 %v9441_v12 }
 0x7a3   :  { %4651 = vmatpush.bf16.msra.mxu1 %v9143_v47  ;;  %4665 = vmatpush.bf16.msrb.mxu2 %v9315_v2  ;;  %v10628_v2 = vld [vmem:[#allocation136_spill] sm:$0xff] }
 0x7a6   :  { %4541 = vmatpush.bf16.msra.mxu0 %v9458_v22 }
 0x7a7   :  { %4652 = vmatpush.bf16.msra.mxu1 %v9170_v3  ;;  %4666 = vmatpush.bf16.msrb.mxu2 %v9332_v14  ;;  %v10629_v14 = vld [vmem:[#allocation86_spill] sm:$0xff] }
 0x7aa   :  { %4542 = vmatpush.bf16.msra.mxu0 %v9475_v51 }
 0x7ab   :  { %4653 = vmatpush.bf16.msra.mxu1 %v9196_v31  ;;  %4667 = vmatpush.bf16.msrb.mxu2 %v9349_v17  ;;  %v10626_v31 = vld [vmem:[#allocation31_spill] sm:$0xff]  ;;  %v3235_v17 = vadd.f32 %v10629_v14, %v10628_v2 }
 0x7ae   :  { %4543 = vmatpush.bf16.msra.mxu0 %v9490_v7 }
 0x7af   :  { %4654 = vmatpush.bf16.msra.mxu1 %v9220_v5  ;;  %4668 = vmatpush.bf16.msrb.mxu2 %v9365_v56 }
 0x7b2   :  { %4544 = vmatpush.bf16.msra.mxu0 %v9504_v62 }
 0x7b3   :  { %4655 = vmatpush.bf16.msra.mxu1 %v9244_v6  ;;  %4669 = vmatpush.bf16.msrb.mxu2 %v9380_v43  ;;  %v10627_v6 = vld [vmem:[#allocation134_spill] sm:$0xff] }
 0x7b6   :  { %4545 = vmatpush.bf16.msra.mxu0 %v9518_v50 }
 0x7b7   :  { %4656 = vmatpush.bf16.msra.mxu1 %v9268_v15  ;;  %4670 = vmatpush.bf16.msrb.mxu2 %v9397_v35 }
 0x7ba   :  { %4546 = vmatpush.bf16.msra.mxu0 %v9535_v29 }
 0x7bb   :  { %4657 = vmatpush.bf16.msra.mxu1 %v9290_v42  ;;  %4671 = vmatpush.bf16.msrb.mxu2 %v9414_v21  ;;  %v10630_v42 = vld [vmem:[#allocation85_spill] sm:$0xff] }
 0x7bc   :  { %v3284_v35 = vadd.f32 %v10630_v42, %v3235_v17  ;;  %v10634_v17 = vld [vmem:[#allocation143_spill] sm:$0xff] }
 0x7be   :  { %4547 = vmatpush.bf16.msra.mxu0 %v10600_v41 }
 0x7bf   :  { %4658 = vmatpush.bf16.msra.mxu1 %v9305_v34  ;;  %4672 = vmatpush.bf16.msrb.mxu2 %v9430_v44  ;;  %v10631_v34 = vld [vmem:[#allocation126_spill] sm:$0xff] }
 0x81e   :  { %v4243_v47 = vpop.f32.mrf.mxu0  ;;  %v4257_v3 = vpop.f32.mrf.mxu1 }
 0x81f   :  { %v4276_v5 = vadd.f32 %v4243_v47, %v10626_v31  ;;  %v4316_v15 = vadd.f32 %v4257_v3, %v10627_v6 }
 0x821   :  { %v5939_v56 = vmul.f32 -1.442695, %v4276_v5  ;;  %v5941_v43 = vmul.f32 -1.442695, %v4316_v15 }
 0x823   :  { %6359 = vpow2.f32 %v5939_v56 }
 0x824   :  { %6361 = vpow2.f32 %v5941_v43 }
 0x825   :  { %v4271_v18 = vpop.f32.mrf.mxu2 }
 0x826   :  { %v4245_v21 = vpop.f32.mrf.mxu0  ;;  %v4259_v38 = vpop.f32.mrf.mxu1  ;;  %v4356_v61 = vadd.f32 %v9906_v54, %v4271_v18 }
 0x827   :  { %v4277_v1 = vadd.f32 %v4245_v21, %v10631_v34  ;;  %v4317_v44 = vadd.f32 %v4259_v38, %v3284_v35 }
 0x829   :  { %v6360_v36 = vpop.eup %6359  ;;  %v5940_v13 = vmul.f32 -1.442695, %v4277_v1  ;;  %v5942_v39 = vmul.f32 -1.442695, %v4317_v44 }
 0x82a   :  { %v6362_v23 = vpop.eup %6361  ;;  %v4284_v24 = vadd.f32 1.0, %v6360_v36 }
 0x82b   :  { %v4324_v26 = vadd.f32 1.0, %v6362_v23  ;;  %6363 = vpow2.f32 %v5940_v13 }
 0x82c   :  { %6365 = vrcp.f32 %v4284_v24  ;;  %v4297_v19 = vand.u32 2147483648, %v4284_v24  ;;  %v4295_v59 = vand.u32 2147483647, %v4284_v24  ;;  %vm4291_vm1 = vweird.f32 %v4284_v24 }
 0x82d   :  { %6367 = vrcp.f32 %v4324_v26  ;;  %v4337_v3 = vand.u32 2147483648, %v4324_v26  ;;  %vm4331_vm5 = vweird.f32 %v4324_v26  ;;  %v4335_v6 = vand.u32 2147483647, %v4324_v26  ;;  %v4273_v38 = vpop.f32.mrf.mxu2 }
 0x82e   :  { %6369 = vpow2.f32 %v5942_v39  ;;  %v4298_v11 = vor.u32 1.1754944e-38, %v4297_v19  ;;  %vm4296_vm3 = vcmp.eq.f32.partialorder %v4295_v59, 8.507059e+37 }
 0x82f   :  { %v4338_v34 = vor.u32 1.1754944e-38, %v4337_v3  ;;  %vm4336_vm9 = vcmp.eq.f32.partialorder %v4335_v6, 8.507059e+37 }
 0x831   :  { %v6364_v33 = vpop.eup %6363 }
 0x832   :  { %v6366_v55 = vpop.eup %6365  ;;  %v4285_v20 = vadd.f32 1.0, %v6364_v33 }
 0x833   :  { %v6368_v16 = vpop.eup %6367  ;;  %v4287_v32 = vmul.f32 %v6366_v55, %v4284_v24  ;;  %vm4292_vm0 = vweird.f32 %v6366_v55  ;;  %v4357_v24 = vadd.f32 %v9906_v54, %v4273_v38 }
 0x834   :  { %v6370_v53 = vpop.eup %6369  ;;  %v4327_v4 = vmul.f32 %v6368_v16, %v4324_v26  ;;  %6371 = vrcp.f32 %v4285_v20  ;;  %vm4293_vm2 = vmor %vm4291_vm1, %vm4292_vm0  ;;  %vm4332_vm4 = vweird.f32 %v6368_v16  ;;  %v4312_v2 = vand.u32 2147483648, %v4285_v20 }
 0x835   :  { %v4288_v57 = vsub.f32 1.0, %v4287_v32  ;;  %v9900_v25 = vadd.f32 1.0, %v6370_v53  ;;  %vm9910_vm6 = vmor %vm4331_vm5, %vm4332_vm4  ;;  %v4310_v42 = vand.u32 2147483647, %v4285_v20  ;;  %vm4306_vm8 = vweird.f32 %v4285_v20  ;;  %v10635_v53 = vld [vmem:[#allocation96_spill] sm:$0xff] }
 0x836   :  { %v4328_v49 = vsub.f32 1.0, %v4327_v4  ;;  %v4313_v36 = vor.u32 1.1754944e-38, %v4312_v2 }
 0x837   :  { %v4289_v30 = vmul.f32 %v6366_v55, %v4288_v57  ;;  %6373 = vrcp.f32 %v9900_v25  ;;  %vm4311_vm11 = vcmp.eq.f32.partialorder %v4310_v42, 8.507059e+37  ;;  %v4352_v33 = vand.u32 2147483648, %v9900_v25 }
 0x838   :  { %v4329_v63 = vmul.f32 %v6368_v16, %v4328_v49  ;;  %vm4346_vm13 = vweird.f32 %v9900_v25 }
 0x839   :  { %v4290_v9 = vadd.f32 %v6366_v55, %v4289_v30  ;;  %v4353_v19 = vor.u32 1.1754944e-38, %v4352_v33 }
 0x83a   :  { %v6372_v48 = vpop.eup %6371  ;;  %v4330_v27 = vadd.f32 %v6368_v16, %v4329_v63 }
 0x83b   :  { %v4294_v28 = vsel %vm4293_vm2, %v6366_v55, %v4290_v9  ;;  %v4302_v46 = vmul.f32 %v6372_v48, %v4285_v20  ;;  %vm4307_vm7 = vweird.f32 %v6372_v48  ;;  %v4350_v20 = vand.u32 2147483647, %v9900_v25 }
 0x83c   :  { %v4299_v0 = vsel %vm4296_vm3, %v4298_v11, %v4294_v28  ;;  %v4334_v35 = vsel %vm9910_vm6, %v6368_v16, %v4330_v27  ;;  %vm4308_vm10 = vmor %vm4306_vm8, %vm4307_vm7  ;;  %v10638_v27 = vld [vmem:[#allocation88_spill] sm:$0xff] }
 0x83d   :  { %v6374_v47 = vpop.eup %6373  ;;  %v4358_v31 = vmul.f32 %v4356_v61, %v4299_v0  ;;  %v4303_v5 = vsub.f32 1.0, %v4302_v46  ;;  %v4339_v13 = vsel %vm4336_vm9, %v4338_v34, %v4334_v35  ;;  %vm4351_vm15 = vcmp.eq.f32.partialorder %v4350_v20, 8.507059e+37  ;;  %v10637_v46 = vld [vmem:[#allocation45_spill] sm:$0xff] }
 0x83e   :  { %v4342_v15 = vmul.f32 %v6374_v47, %v9900_v25  ;;  %vm4347_vm12 = vweird.f32 %v6374_v47  ;;  %v4364_v16 = vsub.f32 1.0, %v4339_v13  ;;  %v4368_v18 = vmul.f32 %v4339_v13, %v9863_v52 }
 0x83f   :  { %v4360_v56 = vadd.f32 %v4358_v31, %v10634_v17  ;;  %v4304_v43 = vmul.f32 %v6372_v48, %v4303_v5  ;;  %vm4348_vm14 = vmor %vm4346_vm13, %vm4347_vm12 }
 0x840   :  { %v4343_v21 = vsub.f32 1.0, %v4342_v15  ;;  %v10641_v15 = vld [vmem:[#allocation80_spill] sm:$0xff] }
 0x841   :  { %6375 = vtanh.f32 %v4360_v56  ;;  %v4305_v1 = vadd.f32 %v6372_v48, %v4304_v43 }
 0x842   :  { %v4344_v44 = vmul.f32 %v6374_v47, %v4343_v21 }
 0x843   :  { %v4309_v23 = vsel %vm4308_vm10, %v6372_v48, %v4305_v1 }
 0x844   :  { %v4345_v39 = vadd.f32 %v6374_v47, %v4344_v44  ;;  %v4314_v26 = vsel %vm4311_vm11, %v4313_v36, %v4309_v23 }
 0x845   :  { %v4359_v55 = vmul.f32 %v4357_v24, %v4314_v26 }
 0x846   :  { %v4349_v49 = vsel %vm4348_vm14, %v6374_v47, %v4345_v39 }
 0x847   :  { %v6376_v32 = vpop.eup %6375  ;;  %v4361_v4 = vadd.f32 %v4359_v55, %v10635_v53  ;;  %v4354_v59 = vsel %vm4351_vm15, %v4353_v19, %v4349_v49 }
 0x848   :  { %v4366_v57 = vmul.f32 %v6376_v32, %v4364_v16  ;;  %v4365_v63 = vsub.f32 1.0, %v4354_v59  ;;  %v4369_v11 = vmul.f32 %v4354_v59, %v9866_v58  ;;  %v10636_v58 = vld [vmem:[#allocation92_spill] sm:$0xff] }
 0x849   :  { %6377 = vtanh.f32 %v4361_v4 }
 0x84a   :  { %v9923_v30 = vadd.f32 %v4368_v18, %v4366_v57 }
 0x84f   :  { %v6378_v9 = vpop.eup %6377 }
 0x850   :  { %v4367_v48 = vmul.f32 %v6378_v9, %v4365_v63 }
 0x852   :  { %v9926_v25 = vadd.f32 %v4369_v11, %v4367_v48 }
 0x854   :  { %v4372_v28 = vpack.c.bf16 %v9926_v25, %v9923_v30 }
 0x856   :  { %4381 = vmatmul.bf16.vlgmr.msra.gmra.mxu3 %v4372_v28  ;;  %4395 = vmatmul.bf16.vlgmr.msrb.gmra.mxu0 %v4372_v28 }
 0x857   :  { %4409 = vmatmul.bf16.vlgmr.msrb.gmra.mxu1 %v4372_v28  ;;  %4679 = vmatpush.bf16.msra.mxu3 %v9441_v12  ;;  %v3240_v12 = vadd.f32 %v10638_v27, %v10637_v46 }
 0x85b   :  { %4680 = vmatpush.bf16.msra.mxu3 %v9458_v22 }
 0x85f   :  { %4681 = vmatpush.bf16.msra.mxu3 %v9475_v51  ;;  %v10639_v51 = vld [vmem:[#allocation128_spill] sm:$0xff] }
 0x863   :  { %4682 = vmatpush.bf16.msra.mxu3 %v9490_v7  ;;  %v10640_v7 = vld [vmem:[#allocation39_spill] sm:$0xff] }
 0x864   :  { %v3289_v3 = vadd.f32 %v10640_v7, %v3240_v12 }
 0x867   :  { %4683 = vmatpush.bf16.msra.mxu3 %v9504_v62 }
 0x86b   :  { %4684 = vmatpush.bf16.msra.mxu3 %v9518_v50 }
 0x86f   :  { %4685 = vmatpush.bf16.msra.mxu3 %v9535_v29 }
 0x873   :  { %4686 = vmatpush.bf16.msra.mxu3 %v10600_v41 }
 0x8d3   :  { %v4396_v52 = vpop.f32.mrf.mxu0 }
 0x8d4   :  { %v4455_v61 = vadd.f32 %v4396_v52, %v10636_v58  ;;  %v4410_v24 = vpop.f32.mrf.mxu1 }
 0x8d5   :  { %v4495_v4 = vadd.f32 %v9906_v54, %v4410_v24 }
 0x8d6   :  { %v5945_v0 = vmul.f32 -1.442695, %v4455_v61 }
 0x8d8   :  { %6379 = vpow2.f32 %v5945_v0 }
 0x8d9   :  { %v4382_v22 = vpop.f32.mrf.mxu3 }
 0x8da   :  { %v4415_v47 = vadd.f32 %v4382_v22, %v10639_v51 }
 0x8db   :  { %v4398_v62 = vpop.f32.mrf.mxu0 }
 0x8dc   :  { %v5943_v31 = vmul.f32 -1.442695, %v4415_v47  ;;  %v4456_v50 = vadd.f32 %v4398_v62, %v3289_v3  ;;  %v4412_v0 = vpop.f32.mrf.mxu1 }
 0x8dd   :  { %v4496_v7 = vadd.f32 %v9906_v54, %v4412_v0 }
 0x8de   :  { %v6380_v5 = vpop.eup %6379  ;;  %6381 = vpow2.f32 %v5943_v31  ;;  %v5946_v29 = vmul.f32 -1.442695, %v4456_v50 }
 0x8df   :  { %v4463_v41 = vadd.f32 1.0, %v6380_v5 }
 0x8e0   :  { %6383 = vpow2.f32 %v5946_v29 }
 0x8e1   :  { %v4384_v6 = vpop.f32.mrf.mxu3  ;;  %6385 = vrcp.f32 %v4463_v41  ;;  %v4476_v63 = vand.u32 2147483648, %v4463_v41  ;;  %vm4470_vm5 = vweird.f32 %v4463_v41  ;;  %v4474_v11 = vand.u32 2147483647, %v4463_v41 }
 0x8e2   :  { %v4416_v2 = vadd.f32 %v4384_v6, %v10641_v15 }
 0x8e3   :  { %v4477_v22 = vor.u32 1.1754944e-38, %v4476_v63  ;;  %vm4475_vm9 = vcmp.eq.f32.partialorder %v4474_v11, 8.507059e+37 }
 0x8e4   :  { %v6382_v14 = vpop.eup %6381  ;;  %v5944_v17 = vmul.f32 -1.442695, %v4416_v2 }
 0x8e5   :  { %v4423_v56 = vadd.f32 1.0, %v6382_v14 }
 0x8e6   :  { %v6384_v43 = vpop.eup %6383  ;;  %6387 = vpow2.f32 %v5944_v17 }
 0x8e7   :  { %6389 = vrcp.f32 %v4423_v56  ;;  %v6386_v42 = vpop.eup %6385  ;;  %v9944_v35 = vadd.f32 1.0, %v6384_v43  ;;  %v4436_v39 = vand.u32 2147483648, %v4423_v56  ;;  %v4434_v33 = vand.u32 2147483647, %v4423_v56 }
 0x8e8   :  { %v4466_v21 = vmul.f32 %v6386_v42, %v4463_v41  ;;  %vm4430_vm1 = vweird.f32 %v4423_v56  ;;  %vm4471_vm4 = vweird.f32 %v6386_v42 }
 0x8e9   :  { %6391 = vrcp.f32 %v9944_v35  ;;  %v4437_v53 = vor.u32 1.1754944e-38, %v4436_v39  ;;  %vm4435_vm3 = vcmp.eq.f32.partialorder %v4434_v33, 8.507059e+37  ;;  %vm9952_vm6 = vmor %vm4470_vm5, %vm4471_vm4  ;;  %v4491_v50 = vand.u32 2147483648, %v9944_v35  ;;  %v10646_v39 = vld [vmem:[#allocation89_spill] sm:$0xff] }
 0x8ea   :  { %v4467_v36 = vsub.f32 1.0, %v4466_v21  ;;  %vm4485_vm13 = vweird.f32 %v9944_v35  ;;  %v4489_v29 = vand.u32 2147483647, %v9944_v35 }
 0x8ec   :  { %v6388_v38 = vpop.eup %6387  ;;  %v4468_v55 = vmul.f32 %v6386_v42, %v4467_v36  ;;  %vm4490_vm15 = vcmp.eq.f32.partialorder %v4489_v29, 8.507059e+37  ;;  %v10644_v36 = vld [vmem:[#allocation33_spill] sm:$0xff] }
 0x8ed   :  { %v6390_v34 = vpop.eup %6389  ;;  %v4424_v1 = vadd.f32 1.0, %v6388_v38 }
 0x8ee   :  { %v4426_v44 = vmul.f32 %v6390_v34, %v4423_v56  ;;  %vm4431_vm0 = vweird.f32 %v6390_v34  ;;  %v4469_v18 = vadd.f32 %v6386_v42, %v4468_v55  ;;  %v4492_v56 = vor.u32 1.1754944e-38, %v4491_v50 }
 0x8ef   :  { %6393 = vrcp.f32 %v4424_v1  ;;  %v9947_v13 = vpop.eup %6391  ;;  %vm4432_vm2 = vmor %vm4430_vm1, %vm4431_vm0  ;;  %v4451_v28 = vand.u32 2147483648, %v4424_v1  ;;  %v4449_v46 = vand.u32 2147483647, %v4424_v1  ;;  %vm4445_vm8 = vweird.f32 %v4424_v1 }
 0x8f0   :  { %v4427_v23 = vsub.f32 1.0, %v4426_v44  ;;  %v4481_v16 = vmul.f32 %v9947_v13, %v9944_v35  ;;  %v4473_v27 = vsel %vm9952_vm6, %v6386_v42, %v4469_v18  ;;  %vm4486_vm12 = vweird.f32 %v9947_v13 }
 0x8f1   :  { %v4452_v47 = vor.u32 1.1754944e-38, %v4451_v28  ;;  %vm4450_vm11 = vcmp.eq.f32.partialorder %v4449_v46, 8.507059e+37  ;;  %vm4487_vm14 = vmor %vm4485_vm13, %vm4486_vm12 }
 0x8f2   :  { %v4428_v26 = vmul.f32 %v6390_v34, %v4427_v23  ;;  %v4482_v59 = vsub.f32 1.0, %v4481_v16  ;;  %v10645_v23 = vld [vmem:[#allocation138_spill] sm:$0xff] }
 0x8f4   :  { %v4429_v20 = vadd.f32 %v6390_v34, %v4428_v26  ;;  %v4483_v12 = vmul.f32 %v9947_v13, %v4482_v59  ;;  %v10647_v26 = vld [vmem:[#allocation137_spill] sm:$0xff] }
 0x8f5   :  { %v6394_v32 = vpop.eup %6393  ;;  %v3245_v33 = vadd.f32 %v10647_v26, %v10646_v39 }
 0x8f6   :  { %v4433_v57 = vsel %vm4432_vm2, %v6390_v34, %v4429_v20  ;;  %v4441_v49 = vmul.f32 %v6394_v32, %v4424_v1  ;;  %vm4446_vm7 = vweird.f32 %v6394_v32  ;;  %v4484_v62 = vadd.f32 %v9947_v13, %v4483_v12 }
 0x8f7   :  { %v4438_v19 = vsel %vm4435_vm3, %v4437_v53, %v4433_v57  ;;  %vm4447_vm10 = vmor %vm4445_vm8, %vm4446_vm7 }
 0x8f8   :  { %v4497_v9 = vmul.f32 %v4495_v4, %v4438_v19  ;;  %v4442_v48 = vsub.f32 1.0, %v4441_v49  ;;  %v4488_v2 = vsel %vm4487_vm14, %v9947_v13, %v4484_v62  ;;  %v10649_v4 = vld [vmem:[#allocation84_spill] sm:$0xff] }
 0x8f9   :  { %v4493_v42 = vsel %vm4490_vm15, %v4492_v56, %v4488_v2 }
 0x8fa   :  { %v4499_v58 = vadd.f32 %v4497_v9, %v9646_v60  ;;  %v4443_v61 = vmul.f32 %v6394_v32, %v4442_v48  ;;  %v4478_v60 = vsel %vm4475_vm9, %v4477_v22, %v4473_v27  ;;  %v4504_v21 = vsub.f32 1.0, %v4493_v42 }
 0x8fb   :  { %v4503_v41 = vsub.f32 1.0, %v4478_v60  ;;  %v4507_v17 = vmul.f32 %v4478_v60, %v9923_v30  ;;  %v4508_v35 = vmul.f32 %v4493_v42, %v9926_v25  ;;  %v10648_v25 = vld [vmem:[#allocation41_spill] sm:$0xff] }
 0x8fc   :  { %6395 = vtanh.f32 %v4499_v58  ;;  %v4444_v51 = vadd.f32 %v6394_v32, %v4443_v61  ;;  %v3294_v20 = vadd.f32 %v10648_v25, %v3245_v33 }
 0x8fe   :  { %v4448_v3 = vsel %vm4447_vm10, %v6394_v32, %v4444_v51 }
 0x8ff   :  { %v4453_v31 = vsel %vm4450_vm11, %v4452_v47, %v4448_v3 }
 0x900   :  { %v4498_v5 = vmul.f32 %v4496_v7, %v4453_v31 }
 0x902   :  { %v6396_v6 = vpop.eup %6395  ;;  %v4500_v15 = vadd.f32 %v4498_v5, %v9650_v10 }
 0x903   :  { %v4505_v14 = vmul.f32 %v6396_v6, %v4503_v41 }
 0x904   :  { %6397 = vtanh.f32 %v4500_v15 }
 0x905   :  { %v9969_v43 = vadd.f32 %v4507_v17, %v4505_v14 }
 0x90a   :  { %v6398_v38 = vpop.eup %6397 }
 0x90b   :  { %v4506_v34 = vmul.f32 %v6398_v38, %v4504_v21 }
 0x90d   :  { %v9972_v1 = vadd.f32 %v4508_v35, %v4506_v34  ;;  %v6261_v35 = vld [vmem:[%s10117_s3 + $0x10] sm:$0xff] }
 0x90f   :  { %v4511_v10 = vpack.c.bf16 %v9972_v1, %v9969_v43 }
 0x911   :  { %4520 = vmatmul.bf16.vlgmr.msra.gmra.mxu2 %v4511_v10  ;;  %4534 = vmatmul.bf16.vlgmr.msrb.gmra.mxu3 %v4511_v10 }
 0x912   :  { %4548 = vmatmul.bf16.vlgmr.msra.gmra.mxu0 %v4511_v10 }
 0x98f   :  { %v4549_v22 = vpop.f32.mrf.mxu0 }
 0x990   :  { %v4634_v5 = vadd.f32 %v9906_v54, %v4549_v22  ;;  %v6264_v22 = vld [vmem:[%s10117_s3 + $0x28] sm:$0xff] }
 0x994   :  { %v4521_v30 = vpop.f32.mrf.mxu2  ;;  %v4535_v44 = vpop.f32.mrf.mxu3 }
 0x995   :  { %v4554_v13 = vadd.f32 %v4521_v30, %v10644_v36  ;;  %v4594_v24 = vadd.f32 %v4535_v44, %v10645_v23 }
 0x997   :  { %v5947_v55 = vmul.f32 -1.442695, %v4554_v13  ;;  %v5949_v16 = vmul.f32 -1.442695, %v4594_v24  ;;  %v4551_v36 = vpop.f32.mrf.mxu0 }
 0x998   :  { %v4635_v26 = vadd.f32 %v9906_v54, %v4551_v36 }
 0x999   :  { %6399 = vpow2.f32 %v5947_v55 }
 0x99a   :  { %6401 = vpow2.f32 %v5949_v16 }
 0x99c   :  { %v4523_v32 = vpop.f32.mrf.mxu2  ;;  %v4537_v53 = vpop.f32.mrf.mxu3 }
 0x99d   :  { %v4555_v57 = vadd.f32 %v4523_v32, %v10649_v4  ;;  %v4595_v49 = vadd.f32 %v4537_v53, %v3294_v20 }
 0x99f   :  { %v6400_v18 = vpop.eup %6399  ;;  %v5948_v19 = vmul.f32 -1.442695, %v4555_v57  ;;  %v5950_v9 = vmul.f32 -1.442695, %v4595_v49 }
 0x9a0   :  { %v6402_v59 = vpop.eup %6401  ;;  %v4562_v63 = vadd.f32 1.0, %v6400_v18 }
 0x9a1   :  { %v4602_v48 = vadd.f32 1.0, %v6402_v59  ;;  %6403 = vpow2.f32 %v5948_v19 }
 0x9a2   :  { %6405 = vrcp.f32 %v4562_v63  ;;  %v4575_v51 = vand.u32 2147483648, %v4562_v63  ;;  %v4573_v3 = vand.u32 2147483647, %v4562_v63  ;;  %vm4569_vm1 = vweird.f32 %v4562_v63 }
 0x9a3   :  { %6407 = vrcp.f32 %v4602_v48  ;;  %v4615_v17 = vand.u32 2147483648, %v4602_v48  ;;  %vm4609_vm5 = vweird.f32 %v4602_v48  ;;  %v4613_v42 = vand.u32 2147483647, %v4602_v48 }
 0x9a4   :  { %6409 = vpow2.f32 %v5950_v9  ;;  %v4576_v50 = vor.u32 1.1754944e-38, %v4575_v51  ;;  %vm4574_vm3 = vcmp.eq.f32.partialorder %v4573_v3, 8.507059e+37  ;;  %v10653_v51 = vld [vmem:[#allocation129_spill] sm:$0xff] }
 0x9a5   :  { %v4616_v23 = vor.u32 1.1754944e-38, %v4615_v17  ;;  %vm4614_vm9 = vcmp.eq.f32.partialorder %v4613_v42, 8.507059e+37  ;;  %v6262_v17 = vld [vmem:[%s10117_s3 + $0x18] sm:$0xff]  ;;  %v10658_v42 = vld [vmem:[#allocation140_spill] sm:$0xff] }
 0x9a7   :  { %v6404_v11 = vpop.eup %6403 }
 0x9a8   :  { %v6406_v28 = vpop.eup %6405  ;;  %v4563_v52 = vadd.f32 1.0, %v6404_v11 }
 0x9a9   :  { %v6408_v58 = vpop.eup %6407  ;;  %v4565_v61 = vmul.f32 %v6406_v28, %v4562_v63  ;;  %vm4570_vm0 = vweird.f32 %v6406_v28 }
 0x9aa   :  { %v6410_v46 = vpop.eup %6409  ;;  %v4605_v27 = vmul.f32 %v6408_v58, %v4602_v48  ;;  %6411 = vrcp.f32 %v4563_v52  ;;  %vm4571_vm2 = vmor %vm4569_vm1, %vm4570_vm0  ;;  %vm4610_vm4 = vweird.f32 %v6408_v58  ;;  %v4590_v21 = vand.u32 2147483648, %v4563_v52 }
 0x9ab   :  { %v4566_v12 = vsub.f32 1.0, %v4565_v61  ;;  %v9982_v0 = vadd.f32 1.0, %v6410_v46  ;;  %vm9988_vm6 = vmor %vm4609_vm5, %vm4610_vm4  ;;  %v4588_v30 = vand.u32 2147483647, %v4563_v52  ;;  %vm4584_vm8 = vweird.f32 %v4563_v52  ;;  %v6265_v46 = vld [vmem:[%s10117_s3 + $0x30] sm:$0xff] }
 0x9ac   :  { %v4606_v47 = vsub.f32 1.0, %v4605_v27  ;;  %v4591_v39 = vor.u32 1.1754944e-38, %v4590_v21 }
 0x9ad   :  { %v4567_v7 = vmul.f32 %v6406_v28, %v4566_v12  ;;  %6413 = vrcp.f32 %v9982_v0  ;;  %vm4589_vm11 = vcmp.eq.f32.partialorder %v4588_v30, 8.507059e+37  ;;  %v4630_v32 = vand.u32 2147483648, %v9982_v0  ;;  %v10652_v12 = vld [vmem:[#allocation37_spill] sm:$0xff] }
 0x9ae   :  { %v4607_v60 = vmul.f32 %v6408_v58, %v4606_v47  ;;  %vm4624_vm13 = vweird.f32 %v9982_v0  ;;  %v4628_v53 = vand.u32 2147483647, %v9982_v0  ;;  %v10654_v47 = vld [vmem:[#allocation43_spill] sm:$0xff] }
 0x9af   :  { %v4568_v62 = vadd.f32 %v6406_v28, %v4567_v7  ;;  %v4631_v63 = vor.u32 1.1754944e-38, %v4630_v32  ;;  %v3201_v7 = vadd.f32 %v10654_v47, %v10653_v51  ;;  %v6274_v32 = vld [vmem:[%s10117_s3 + $0x78] sm:$0xff] }
 0x9b0   :  { %v6412_v31 = vpop.eup %6411  ;;  %v4608_v15 = vadd.f32 %v6408_v58, %v4607_v60  ;;  %vm4629_vm15 = vcmp.eq.f32.partialorder %v4628_v53, 8.507059e+37  ;;  %v10655_v60 = vld [vmem:[#allocation90_spill] sm:$0xff]  ;;  %4943 = vmatpush.bf16.msrb.mxu1 %v6274_v32 }
 0x9b1   :  { %v4572_v29 = vsel %vm4571_vm2, %v6406_v28, %v4568_v62  ;;  %v4580_v41 = vmul.f32 %v6412_v31, %v4563_v52  ;;  %vm4585_vm7 = vweird.f32 %v6412_v31 }
 0x9b2   :  { %v4577_v6 = vsel %vm4574_vm3, %v4576_v50, %v4572_v29  ;;  %v4612_v44 = vsel %vm9988_vm6, %v6408_v58, %v4608_v15  ;;  %vm4586_vm10 = vmor %vm4584_vm8, %vm4585_vm7 }
 0x9b3   :  { %v6414_v2 = vpop.eup %6413  ;;  %v4636_v14 = vmul.f32 %v4634_v5, %v4577_v6  ;;  %v4581_v56 = vsub.f32 1.0, %v4580_v41  ;;  %v4617_v55 = vsel %vm4614_vm9, %v4616_v23, %v4612_v44  ;;  %v10656_v5 = vld [vmem:[#allocation42_spill] sm:$0xff]  ;;  %v10657_v6 = vld [vmem:[#allocation132_spill] sm:$0xff] }
 0x9b4   :  { %v4620_v38 = vmul.f32 %v6414_v2, %v9982_v0  ;;  %vm4625_vm12 = vweird.f32 %v6414_v2  ;;  %v4642_v4 = vsub.f32 1.0, %v4617_v55  ;;  %v4646_v59 = vmul.f32 %v4617_v55, %v9969_v43  ;;  %v6266_v43 = vld [vmem:[%s10117_s3 + $0x38] sm:$0xff] }
 0x9b5   :  { %v4638_v34 = vadd.f32 %v4636_v14, %v9654_v37  ;;  %v4582_v10 = vmul.f32 %v6412_v31, %v4581_v56  ;;  %vm4626_vm14 = vmor %vm4624_vm13, %vm4625_vm12  ;;  %4874 = vmatpush.bf16.msrb.mxu0 %v6266_v43  ;;  %v3250_v29 = vadd.f32 %v10656_v5, %v3201_v7 }
 0x9b6   :  { %v4621_v13 = vsub.f32 1.0, %v4620_v38 }
 0x9b7   :  { %6415 = vtanh.f32 %v4638_v34  ;;  %v4583_v24 = vadd.f32 %v6412_v31, %v4582_v10  ;;  %v3299_v21 = vadd.f32 %v10658_v42, %v3250_v29 }
 0x9b8   :  { %v4622_v37 = vmul.f32 %v6414_v2, %v4621_v13  ;;  %v6260_v13 = vld [vmem:[%s10117_s3 + $0x8] sm:$0xff] }
 0x9b9   :  { %v4587_v33 = vsel %vm4586_vm10, %v6412_v31, %v4583_v24  ;;  %4875 = vmatpush.bf16.msrb.mxu0 %v6265_v46  ;;  %v6263_v31 = vld [vmem:[%s10117_s3 + $0x20] sm:$0xff] }
 0x9ba   :  { %v4592_v16 = vsel %vm4589_vm11, %v4591_v39, %v4587_v33  ;;  %v4623_v25 = vadd.f32 %v6414_v2, %v4622_v37  ;;  %v6259_v37 = vld [vmem:[%s10117_s3] sm:$0xff] }
 0x9bb   :  { %v4637_v20 = vmul.f32 %v4635_v26, %v4592_v16 }
 0x9bc   :  { %v4627_v18 = vsel %vm4626_vm14, %v6414_v2, %v4623_v25 }
 0x9bd   :  { %v6416_v57 = vpop.eup %6415  ;;  %v4639_v49 = vadd.f32 %v4637_v20, %v9658_v8  ;;  %v4632_v48 = vsel %vm4629_vm15, %v4631_v63, %v4627_v18  ;;  %4876 = vmatpush.bf16.msrb.mxu0 %v6264_v22  ;;  %v10660_v63 = vld [vmem:[#allocation3_spill] sm:$0xff] }
 0x9be   :  { %v4644_v19 = vmul.f32 %v6416_v57, %v4642_v4  ;;  %v4643_v11 = vsub.f32 1.0, %v4632_v48  ;;  %v4647_v58 = vmul.f32 %v4632_v48, %v9972_v1  ;;  %v10659_v4 = vld [vmem:[#allocation93_spill] sm:$0xff] }
 0x9bf   :  { %6417 = vtanh.f32 %v4639_v49  ;;  %v3348_v57 = vadd.f32 %v10659_v4, %v9554_v45 }
 0x9c0   :  { %v10000_v9 = vadd.f32 %v4646_v59, %v4644_v19  ;;  %v6273_v59 = vld [vmem:[%s10117_s3 + $0x70] sm:$0xff] }
 0x9c1   :  { %4877 = vmatpush.bf16.msrb.mxu0 %v6263_v31  ;;  %v3397_v48 = vadd.f32 %v10660_v63, %v3348_v57  ;;  %4944 = vmatpush.bf16.msrb.mxu1 %v6273_v59  ;;  %v6268_v59 = vld [vmem:[%s10117_s3 + $0x48] sm:$0xff] }
 0x9c5   :  { %v6418_v28 = vpop.eup %6417  ;;  %4878 = vmatpush.bf16.msrb.mxu0 %v6262_v17  ;;  %v10665_v17 = vld [vmem:[#allocation97_spill] sm:$0xff] }
 0x9c6   :  { %v4645_v52 = vmul.f32 %v6418_v28, %v4643_v11 }
 0x9c8   :  { %v10003_v61 = vadd.f32 %v4647_v58, %v4645_v52 }
 0x9c9   :  { %4879 = vmatpush.bf16.msrb.mxu0 %v6261_v35 }
 0x9ca   :  { %v4650_v8 = vpack.c.bf16 %v10003_v61, %v10000_v9 }
 0x9cc   :  { %4659 = vmatmul.bf16.vlgmr.msra.gmra.mxu1 %v4650_v8  ;;  %4673 = vmatmul.bf16.vlgmr.msrb.gmra.mxu2 %v4650_v8 }
 0x9cd   :  { %4687 = vmatmul.bf16.vlgmr.msra.gmra.mxu3 %v4650_v8  ;;  %4880 = vmatpush.bf16.msrb.mxu0 %v6260_v13 }
 0x9d1   :  { %4881 = vmatpush.bf16.msrb.mxu0 %v6259_v37 }
 0xa49   :  { %v4660_v27 = vpop.f32.mrf.mxu1 }
 0xa4a   :  { %v4693_v1 = vadd.f32 %v4660_v27, %v10652_v12 }
 0xa4c   :  { %v5951_v0 = vmul.f32 -1.442695, %v4693_v1  ;;  %v6272_v1 = vld [vmem:[%s10117_s3 + $0x68] sm:$0xff] }
 0xa4d   :  { %4945 = vmatpush.bf16.msrb.mxu1 %v6272_v1 }
 0xa4e   :  { %6419 = vpow2.f32 %v5951_v0  ;;  %v10661_v0 = vld [vmem:[#allocation144_spill] sm:$0xff] }
 0xa4f   :  { %v4674_v3 = vpop.f32.mrf.mxu2  ;;  %v3446_v22 = vadd.f32 %v10661_v0, %v3397_v48  ;;  %v6277_v48 = vld [vmem:[%s10116_s4 + $0x9] ss:$0 sm:$0xff] }
 0xa50   :  { %v4733_v62 = vadd.f32 %v4674_v3, %v10655_v60  ;;  %v4688_v16 = vpop.f32.mrf.mxu3  ;;  %v10662_v3 = vld [vmem:[#allocation50_spill] sm:$0xff] }
 0xa51   :  { %v4662_v50 = vpop.f32.mrf.mxu1  ;;  %v4773_v58 = vadd.f32 %v9906_v54, %v4688_v16 }
 0xa52   :  { %v5953_v41 = vmul.f32 -1.442695, %v4733_v62  ;;  %v4694_v15 = vadd.f32 %v4662_v50, %v10657_v6 }
 0xa54   :  { %v6420_v2 = vpop.eup %6419  ;;  %6421 = vpow2.f32 %v5953_v41  ;;  %v5952_v14 = vmul.f32 -1.442695, %v4694_v15 }
 0xa55   :  { %v4701_v56 = vadd.f32 1.0, %v6420_v2 }
 0xa56   :  { %6423 = vpow2.f32 %v5952_v14  ;;  %v6271_v14 = vld [vmem:[%s10117_s3 + $0x60] sm:$0xff] }
 0xa57   :  { %6425 = vrcp.f32 %v4701_v56  ;;  %v4676_v38 = vpop.f32.mrf.mxu2  ;;  %v4714_v33 = vand.u32 2147483648, %v4701_v56  ;;  %v4712_v20 = vand.u32 2147483647, %v4701_v56  ;;  %vm4708_vm1 = vweird.f32 %v4701_v56  ;;  %4946 = vmatpush.bf16.msrb.mxu1 %v6271_v14 }
 0xa58   :  { %v4734_v34 = vadd.f32 %v4676_v38, %v3299_v21  ;;  %v4690_v2 = vpop.f32.mrf.mxu3 }
 0xa59   :  { %v4715_v11 = vor.u32 1.1754944e-38, %v4714_v33  ;;  %vm4713_vm3 = vcmp.eq.f32.partialorder %v4712_v20, 8.507059e+37 }
 0xa5a   :  { %v6422_v10 = vpop.eup %6421  ;;  %v5954_v30 = vmul.f32 -1.442695, %v4734_v34 }
 0xa5b   :  { %v10032_v44 = vadd.f32 1.0, %v6422_v10  ;;  %v4774_v10 = vadd.f32 %v9906_v54, %v4690_v2 }
 0xa5c   :  { %v6424_v36 = vpop.eup %6423  ;;  %6427 = vpow2.f32 %v5954_v30 }
 0xa5d   :  { %v6426_v23 = vpop.eup %6425  ;;  %6429 = vrcp.f32 %v10032_v44  ;;  %v10038_v39 = vadd.f32 1.0, %v6424_v36  ;;  %v4754_v27 = vand.u32 2147483648, %v10032_v44  ;;  %v4752_v51 = vand.u32 2147483647, %v10032_v44 }
 0xa5e   :  { %v4704_v24 = vmul.f32 %v6426_v23, %v4701_v56  ;;  %vm4709_vm0 = vweird.f32 %v6426_v23  ;;  %vm4748_vm5 = vweird.f32 %v10032_v44  ;;  %v3495_v56 = vadd.f32 %v10665_v17, %v3446_v22 }
 0xa5f   :  { %6431 = vrcp.f32 %v10038_v39  ;;  %vm4710_vm2 = vmor %vm4708_vm1, %vm4709_vm0  ;;  %v4729_v62 = vand.u32 2147483648, %v10038_v39  ;;  %v4727_v29 = vand.u32 2147483647, %v10038_v39  ;;  %v4755_v41 = vor.u32 1.1754944e-38, %v4754_v27 }
 0xa60   :  { %v4705_v26 = vsub.f32 1.0, %v4704_v24  ;;  %vm4753_vm8 = vcmp.eq.f32.partialorder %v4752_v51, 8.507059e+37  ;;  %vm4723_vm9 = vweird.f32 %v10038_v39  ;;  %v3544_v36 = vadd.f32 %v9799_v40, %v3495_v56 }
 0xa61   :  { %v4730_v34 = vor.u32 1.1754944e-38, %v4729_v62  ;;  %vm4728_vm11 = vcmp.eq.f32.partialorder %v4727_v29, 8.507059e+37 }
 0xa62   :  { %v6428_v55 = vpop.eup %6427  ;;  %v4706_v25 = vmul.f32 %v6426_v23, %v4705_v26 }
 0xa63   :  { %v6430_v53 = vpop.eup %6429  ;;  %v10049_v49 = vadd.f32 1.0, %v6428_v55 }
 0xa64   :  { %v4744_v18 = vmul.f32 %v6430_v53, %v10032_v44  ;;  %v4707_v19 = vadd.f32 %v6426_v23, %v4706_v25  ;;  %vm4749_vm4 = vweird.f32 %v6430_v53 }
 0xa65   :  { %6433 = vrcp.f32 %v10049_v49  ;;  %v6432_v28 = vpop.eup %6431  ;;  %vm10068_vm6 = vmor %vm4748_vm5, %vm4749_vm4  ;;  %vm4763_vm13 = vweird.f32 %v10049_v49  ;;  %v4767_v26 = vand.u32 2147483647, %v10049_v49 }
 0xa66   :  { %v4745_v52 = vsub.f32 1.0, %v4744_v18  ;;  %v4711_v45 = vsel %vm4710_vm2, %v6426_v23, %v4707_v19  ;;  %v4719_v43 = vmul.f32 %v6432_v28, %v10038_v39  ;;  %vm4724_vm7 = vweird.f32 %v6432_v28 }
 0xa67   :  { %v4716_v8 = vsel %vm4713_vm3, %v4715_v11, %v4711_v45  ;;  %vm4725_vm10 = vmor %vm4723_vm9, %vm4724_vm7  ;;  %v4769_v23 = vand.u32 2147483648, %v10049_v49  ;;  %vm4768_vm15 = vcmp.eq.f32.partialorder %v4767_v26, 8.507059e+37 }
 0xa68   :  { %v4746_v46 = vmul.f32 %v6430_v53, %v4745_v52  ;;  %v4775_v12 = vmul.f32 %v4773_v58, %v4716_v8  ;;  %v4720_v47 = vsub.f32 1.0, %v4719_v43  ;;  %v6278_v43 = vld [vmem:[%s10116_s4 + $0xa] ss:$0 sm:$0xff] }
 0xa69   :  { %v4770_v25 = vor.u32 1.1754944e-38, %v4769_v23 }
 0xa6a   :  { %v4747_v7 = vadd.f32 %v6430_v53, %v4746_v46  ;;  %v4777_v60 = vadd.f32 %v4775_v12, %v10662_v3  ;;  %v4721_v5 = vmul.f32 %v6432_v28, %v4720_v47 }
 0xa6b   :  { %v6434_v31 = vpop.eup %6433 }
 0xa6c   :  { %v4751_v6 = vsel %vm10068_vm6, %v6430_v53, %v4747_v7  ;;  %6435 = vtanh.f32 %v4777_v60  ;;  %v4759_v15 = vmul.f32 %v6434_v31, %v10049_v49  ;;  %v4722_v42 = vadd.f32 %v6432_v28, %v4721_v5  ;;  %v6270_v49 = vld [vmem:[%s10117_s3 + $0x58] sm:$0xff] }
 0xa6d   :  { %v4756_v21 = vsel %vm4753_vm8, %v4755_v41, %v4751_v6  ;;  %vm4764_vm12 = vweird.f32 %v6434_v31  ;;  %4947 = vmatpush.bf16.msrb.mxu1 %v6270_v49 }
 0xa6e   :  { %v4760_v38 = vsub.f32 1.0, %v4759_v15  ;;  %v4726_v35 = vsel %vm4725_vm10, %v6432_v28, %v4722_v42  ;;  %v4781_v13 = vsub.f32 1.0, %v4756_v21  ;;  %vm4765_vm14 = vmor %vm4763_vm13, %vm4764_vm12  ;;  %v4785_v54 = vmul.f32 %v4756_v21, %v10000_v9  ;;  %v6269_v9 = vld [vmem:[%s10117_s3 + $0x50] sm:$0xff] }
 0xa6f   :  { %v4731_v44 = vsel %vm4728_vm11, %v4730_v34, %v4726_v35 }
 0xa70   :  { %v4761_v30 = vmul.f32 %v6434_v31, %v4760_v38  ;;  %v4776_v24 = vmul.f32 %v4774_v10, %v4731_v44 }
 0xa71   :  { %4948 = vmatpush.bf16.msrb.mxu1 %v6269_v9 }
 0xa72   :  { %v6436_v39 = vpop.eup %6435  ;;  %v4762_v37 = vadd.f32 %v6434_v31, %v4761_v30  ;;  %v4778_v55 = vadd.f32 %v4776_v24, %v3544_v36 }
 0xa73   :  { %v4783_v33 = vmul.f32 %v6436_v39, %v4781_v13 }
 0xa74   :  { %v4766_v16 = vsel %vm4765_vm14, %v6434_v31, %v4762_v37  ;;  %6437 = vtanh.f32 %v4778_v55 }
 0xa75   :  { %v4787_v20 = vadd.f32 %v4785_v54, %v4783_v33  ;;  %v4771_v40 = vsel %vm4768_vm15, %v4770_v25, %v4766_v16  ;;  %4949 = vmatpush.bf16.msrb.mxu1 %v6268_v59 }
 0xa76   :  { %v4782_v32 = vsub.f32 1.0, %v4771_v40  ;;  %v4786_v57 = vmul.f32 %v4771_v40, %v10003_v61  ;;  %v6267_v61 = vld [vmem:[%s10117_s3 + $0x40] sm:$0xff] }
 0xa79   :  { %4950 = vmatpush.bf16.msrb.mxu1 %v6267_v61 }
 0xa7a   :  { %v6438_v53 = vpop.eup %6437 }
 0xa7b   :  { %v4784_v4 = vmul.f32 %v6438_v53, %v4782_v32 }
 0xa7d   :  { %v4788_v18 = vadd.f32 %v4786_v57, %v4784_v4 }
 0xa7f   :  { %v4821_v19 = vpack.c.bf16 %v4788_v18, %v4787_v20 }
 0xa81   :  { %4882 = vmatmul.bf16.vlgmr.msrb.gmra.mxu0 %v4821_v19 }
 0xafe   :  { %v4883_v63 = vpop.f32.mrf.mxu0 }
 0xaff   :  { %v4884_v11 = vadd.f32 %v6277_v48, %v4883_v63 }
 0xb01   :  { %v4888_v45 = vmax.f32 %v4884_v11, 0.0 }
 0xb06   :  { %v4885_v28 = vpop.f32.mrf.mxu0 }
 0xb07   :  { %v4886_v52 = vadd.f32 %v6277_v48, %v4885_v28 }
 0xb09   :  { %v4889_v58 = vmax.f32 %v4886_v52, 0.0 }
 0xb0b   :  { %v4890_v8 = vpack.c.bf16 %v4889_v58, %v4888_v45 }
 0xb0d   :  { %4951 = vmatmul.bf16.vlgmr.msrb.gmra.mxu1 %v4890_v8 }
 0xb8a   :  { %v4952_v46 = vpop.f32.mrf.mxu1 }
 0xb8b   :  { %v4953_v27 = vadd.f32 %v6278_v43, %v4952_v46 }
 0xb8d   :  { %4957 = vst [vmem:[%s10118_s5] sm:$0xff] %v4953_v27 }
 0xb92   :  { %v4954_v12 = vpop.f32.mrf.mxu1 }
 0xb93   :  { %v4955_v1 = vadd.f32 %v6278_v43, %v4954_v12 }
 0xb95   :  { %4958 = vst [vmem:[%s10118_s5 + $0x8] sm:$0xff] %v4955_v1 }

</bundles_post_ra>
